<compile_context>
chip_gen: v7x
topology: tpu7x:2x2x1
jax: 0.10.0
libtpu: 0.0.40
codegen_flags: <defaults>
</compile_context>

<pallas_src>
import jax
import jax.numpy as jnp
from jax import lax
from jax.experimental import pallas as pl
from jax.experimental.pallas import tpu as pltpu


# ---------------------------------------------------------------------------
# Fully fused kernel: conv1+pool1 + conv2+pool2 + conv3+pool3 + FC1+ReLU + FC2
# One image per grid step.
# ---------------------------------------------------------------------------
def _fused_kernel(x_ref, cb1, cbias1, cb2, cbias2, cb3, cbias3,
                  wfc1, bfc1, wfc2, bfc2, o_ref,
                  x1_s, x2_s, x3_s, c_s):
    f32 = jnp.float32
    bf16 = jnp.bfloat16

    # Zero padded activation slabs: unwritten borders ARE the conv "same"
    # zero padding (re-zeroed every step: grid is parallel across cores).
    x1_s[...] = jnp.zeros_like(x1_s)
    x2_s[...] = jnp.zeros_like(x2_s)
    x3_s[...] = jnp.zeros_like(x3_s)

    # Place the (32, 32*3) image into the padded (36, 128) slab: rows 2..33,
    # lanes 6..101 (lane index = w*3 + c).
    x1_s[2:34, 6:102] = x_ref[0]

    def conv_cols(x_s, w_ref, bias_ref, H, half):
        # Banded conv: 5 MXU dots over contiguous row slabs; taps + padding are
        # folded into the contraction.  Output columns are ordered
        # (even-w | odd-w), so the width-pair pool is one aligned lane max.
        y = jnp.dot(x_s[0:H, :], w_ref[0], preferred_element_type=f32)
        for ki in range(1, 5):
            y = y + jnp.dot(x_s[ki:ki + H, :], w_ref[ki],
                            preferred_element_type=f32)
        return jnp.maximum(y[:, :half], y[:, half:]) + bias_ref[...]

    # ---- conv1 (3->32) + 2x2 maxpool -> x2 interior (lane = w*32 + c) ------
    c_s[0:32, 0:512] = conv_cols(x1_s, cb1, cbias1, 32, 512)
    for r in range(16):                                    # row-pair max
        a = c_s[2 * r:2 * r + 1, 0:512]
        b = c_s[2 * r + 1:2 * r + 2, 0:512]
        x2_s[2 + r:3 + r, 64:576] = jnp.maximum(a, b).astype(bf16)

    # ---- conv2 (32->32) + 2x2 maxpool -> x3 interior ------------------------
    c_s[0:16, 0:256] = conv_cols(x2_s, cb2, cbias2, 16, 256)
    for r in range(8):
        a = c_s[2 * r:2 * r + 1, 0:256]
        b = c_s[2 * r + 1:2 * r + 2, 0:256]
        x3_s[2 + r:3 + r, 64:320] = jnp.maximum(a, b).astype(bf16)

    # ---- conv3 (32->64) + maxpool + Flatten + Linear(1024,64) ---------------
    c_s[0:8, 0:256] = conv_cols(x3_s, cb3, cbias3, 8, 256)
    acc = jnp.zeros((1, 128), f32)
    for r in range(4):                                     # pooled row r feeds FC1
        a = c_s[2 * r:2 * r + 1, 0:256]
        b = c_s[2 * r + 1:2 * r + 2, 0:256]
        row = jnp.maximum(a, b).astype(bf16)               # (1, 4*64)
        acc = acc + jnp.dot(row, wfc1[r], preferred_element_type=f32)

    hid = jnp.maximum(acc + bfc1[...], 0.0).astype(bf16)   # ReLU
    logits = jnp.dot(hid, wfc2[...], preferred_element_type=f32) + bfc2[...]
    o_ref[0] = logits


def _const_spec(a):
    nd = a.ndim
    return pl.BlockSpec(a.shape, lambda i, _nd=nd: (0,) * _nd)


@jax.jit
def model_forward(x_nchw, kp):
    n = x_nchw.shape[0]
    # Layout plumbing only: NCHW -> (N, H, W*C), bf16 (3 KB / image).
    x = jnp.transpose(x_nchw, (0, 2, 3, 1)).reshape(n, 32, 96).astype(jnp.bfloat16)
    w_args = (kp["cb1"], kp["cbias1"], kp["cb2"], kp["cbias2"],
              kp["cb3"], kp["cbias3"], kp["wfc1"], kp["bfc1"],
              kp["wfc2"], kp["bfc2"])
    out = pl.pallas_call(
        _fused_kernel,
        out_shape=jax.ShapeDtypeStruct((n, 1, 128), jnp.float32),
        grid=(n,),
        in_specs=[pl.BlockSpec((1, 32, 96), lambda i: (i, 0, 0))]
                 + [_const_spec(a) for a in w_args],
        out_specs=pl.BlockSpec((1, 1, 128), lambda i: (i, 0, 0)),
        scratch_shapes=[
            pltpu.VMEM((36, 128), jnp.bfloat16),   # padded conv1 input  (h, w*3+c)
            pltpu.VMEM((20, 640), jnp.bfloat16),   # padded conv2 input  (h, w*32+c)
            pltpu.VMEM((12, 384), jnp.bfloat16),   # padded conv3 input  (h, w*32+c)
            pltpu.VMEM((32, 512), jnp.float32),    # column-pair-pooled conv rows
        ],
        compiler_params=pltpu.CompilerParams(
            dimension_semantics=("parallel",),
            vmem_limit_bytes=32 * 1024 * 1024),
    )(x, *w_args)
    return out.reshape(n, 128)[:, :10]


# ---------------------------------------------------------------------------
# Parameters (logical shapes) + offline repacking into the kernel layout.
# ---------------------------------------------------------------------------
def init_params(key):
    ks = jax.random.split(key, 10)

    def w_init(k, shape, fan_in):
        return jax.random.normal(k, shape, jnp.float32) / jnp.sqrt(fan_in)

    return {
        "w1": w_init(ks[0], (5, 5, 3, 32), 5 * 5 * 3),
        "b1": w_init(ks[1], (32,), 5 * 5 * 3),
        "w2": w_init(ks[2], (5, 5, 32, 32), 5 * 5 * 32),
        "b2": w_init(ks[3], (32,), 5 * 5 * 32),
        "w3": w_init(ks[4], (5, 5, 32, 64), 5 * 5 * 32),
        "b3": w_init(ks[5], (64,), 5 * 5 * 32),
        "wl1": w_init(ks[6], (64 * 4 * 4, 64), 64 * 4 * 4),
        "bl1": w_init(ks[7], (64,), 64 * 4 * 4),
        "wl2": w_init(ks[8], (64, 10), 64),
        "bl2": w_init(ks[9], (10,), 64),
    }


def prep_params(p):
    """One-time repack into banded (Toeplitz) conv weights + folded FC weights."""

    def banded(w, b, W_out, Wp):
        # w: (5,5,Cin,Cout).  Returns
        #   B:    (5, Kpad, W_out*Cout) bf16, K = Wp*Cin (lane-merged width x ch),
        #         output cols ordered (even-w | odd-w) so pooling is lane-aligned.
        #   bias: (1, (W_out//2)*Cout) f32 in pooled column order.
        KH, KW, Cin, Cout = w.shape
        K = Wp * Cin
        u = jnp.arange(K)
        s = u // Cin                                   # padded input column
        ci = u % Cin
        wpos = jnp.arange(W_out)
        kj = s[:, None] - wpos[None, :]                # (K, W_out)
        valid = ((kj >= 0) & (kj < KW)).astype(jnp.float32)
        kj_c = jnp.clip(kj, 0, KW - 1)
        perm = jnp.concatenate([jnp.arange(0, W_out, 2), jnp.arange(1, W_out, 2)])
        mats = []
        for ki in range(KH):
            g = w[ki][kj_c, ci[:, None], :]            # (K, W_out, Cout)
            g = g * valid[:, :, None]
            g = g[:, perm, :].reshape(K, W_out * Cout)
            mats.append(g)
        B = jnp.stack(mats, 0)
        Kpad = ((K + 127) // 128) * 128
        if Kpad != K:
            B = jnp.pad(B, ((0, 0), (0, Kpad - K), (0, 0)))
        bias_pool = jnp.tile(b, W_out // 2).reshape(1, (W_out // 2) * Cout)
        return B.astype(jnp.bfloat16), bias_pool.astype(jnp.float32)

    cb1, cbias1 = banded(p["w1"], p["b1"], 32, 36)     # (5,128,1024)
    cb2, cbias2 = banded(p["w2"], p["b2"], 16, 20)     # (5,640,512)
    cb3, cbias3 = banded(p["w3"], p["b3"], 8, 12)      # (5,384,512)

    # Linear(1024,64): fold PyTorch (C,H,W) flatten order into per-pooled-row
    # weights; pooled row lanes are (w*64 + c).
    wl1 = p["wl1"].reshape(64, 4, 4, 64).transpose(1, 2, 0, 3).reshape(4, 256, 64)
    wfc1 = jnp.zeros((4, 256, 128), jnp.float32).at[:, :, :64].set(wl1)
    bfc1 = jnp.zeros((1, 128), jnp.float32).at[0, :64].set(p["bl1"])
    wfc2 = jnp.zeros((128, 128), jnp.float32).at[:64, :10].set(p["wl2"])
    bfc2 = jnp.zeros((1, 128), jnp.float32).at[0, :10].set(p["bl2"])

    return {"cb1": cb1, "cbias1": cbias1, "cb2": cb2, "cbias2": cbias2,
            "cb3": cb3, "cbias3": cbias3,
            "wfc1": wfc1.astype(jnp.bfloat16), "bfc1": bfc1,
            "wfc2": wfc2.astype(jnp.bfloat16), "bfc2": bfc2}


# ---------------------------------------------------------------------------
# Pure-JAX reference (f32) for a semantics check.
# ---------------------------------------------------------------------------
def reference_forward(x, p):
    def conv(z, w, b):
        y = lax.conv_general_dilated(
            z, w, (1, 1), ((2, 2), (2, 2)),
            dimension_numbers=("NCHW", "HWIO", "NCHW"))
        return y + b[None, :, None, None]

    def pool(z):
        return lax.reduce_window(z, -jnp.inf, lax.max,
                                 (1, 1, 2, 2), (1, 1, 2, 2), "VALID")

    z = pool(conv(x, p["w1"], p["b1"]))
    z = pool(conv(z, p["w2"], p["b2"]))
    z = pool(conv(z, p["w3"], p["b3"]))
    z = z.reshape(z.shape[0], -1)                       # NCHW flatten == PyTorch
    z = jnp.maximum(z @ p["wl1"] + p["bl1"], 0.0)
    return z @ p["wl2"] + p["bl2"]


if __name__ == "__main__":
    key = jax.random.PRNGKey(0)
    k_in, k_par = jax.random.split(key)
    # 32x32 spatial size is implied by Linear(64*4*4) after three /2 pools.
    x = jax.random.normal(k_in, (2, 3, 32, 32), dtype=jnp.float32)
    params = init_params(k_par)
    kparams = prep_params(params)

    out = jax.block_until_ready(model_forward(x, kparams))
    ref = jax.block_until_ready(reference_forward(x, params))

    assert out.shape == (2, 10), out.shape
    assert bool(jnp.all(jnp.isfinite(out)))
    # bf16 MXU operands vs f32 reference -> generous but bug-catching tolerance.
    assert bool(jnp.allclose(out, ref, atol=0.3, rtol=0.05)), \
        float(jnp.max(jnp.abs(out - ref)))
    print("KERNEL_OK")
</pallas_src>

<mosaic_0001>
module attributes {stable_mosaic.version = 11 : i64} {
  func.func @_fused_kernel(%arg0: i32, %arg1: memref<1x32x96xbf16, #tpu.memory_space<vmem>>, %arg2: memref<5x128x1024xbf16, #tpu.memory_space<vmem>>, %arg3: memref<1x512xf32, #tpu.memory_space<vmem>>, %arg4: memref<5x640x512xbf16, #tpu.memory_space<vmem>>, %arg5: memref<1x256xf32, #tpu.memory_space<vmem>>, %arg6: memref<5x384x512xbf16, #tpu.memory_space<vmem>>, %arg7: memref<1x256xf32, #tpu.memory_space<vmem>>, %arg8: memref<4x256x128xbf16, #tpu.memory_space<vmem>>, %arg9: memref<1x128xf32, #tpu.memory_space<vmem>>, %arg10: memref<128x128xbf16, #tpu.memory_space<vmem>>, %arg11: memref<1x128xf32, #tpu.memory_space<vmem>>, %arg12: memref<1x1x128xf32, #tpu.memory_space<vmem>>, %arg13: memref<36x128xbf16, #tpu.memory_space<vmem>>, %arg14: memref<20x640xbf16, #tpu.memory_space<vmem>>, %arg15: memref<12x384xbf16, #tpu.memory_space<vmem>>, %arg16: memref<32x512xf32, #tpu.memory_space<vmem>>) attributes {dimension_semantics = [#tpu.dimension_semantics<parallel>], iteration_bounds = array<i64: 2>, scalar_prefetch = 0 : i64, scratch_operands = 4 : i64, tpu.core_type = #tpu.core_type<tc>, window_params = [{transform_indices = @transform_0, window_bounds = array<i64: 1, 32, 96>}, {pipeline_mode = #tpu.pipeline_mode<synchronous>, transform_indices = @transform_1, window_bounds = array<i64: 5, 128, 1024>}, {pipeline_mode = #tpu.pipeline_mode<synchronous>, transform_indices = @transform_2, window_bounds = array<i64: 1, 512>}, {pipeline_mode = #tpu.pipeline_mode<synchronous>, transform_indices = @transform_3, window_bounds = array<i64: 5, 640, 512>}, {pipeline_mode = #tpu.pipeline_mode<synchronous>, transform_indices = @transform_4, window_bounds = array<i64: 1, 256>}, {pipeline_mode = #tpu.pipeline_mode<synchronous>, transform_indices = @transform_5, window_bounds = array<i64: 5, 384, 512>}, {pipeline_mode = #tpu.pipeline_mode<synchronous>, transform_indices = @transform_6, window_bounds = array<i64: 1, 256>}, {pipeline_mode = #tpu.pipeline_mode<synchronous>, transform_indices = @transform_7, window_bounds = array<i64: 4, 256, 128>}, {pipeline_mode = #tpu.pipeline_mode<synchronous>, transform_indices = @transform_8, window_bounds = array<i64: 1, 128>}, {pipeline_mode = #tpu.pipeline_mode<synchronous>, transform_indices = @transform_9, window_bounds = array<i64: 128, 128>}, {pipeline_mode = #tpu.pipeline_mode<synchronous>, transform_indices = @transform_10, window_bounds = array<i64: 1, 128>}, {transform_indices = @transform_11, window_bounds = array<i64: 1, 1, 128>}]} {
    %cst = arith.constant 0.000000e+00 : bf16
    %0 = vector.broadcast %cst : bf16 to vector<36x128xbf16>
    %c0 = arith.constant 0 : index
    %c0_0 = arith.constant 0 : index
    %1 = vector.load %arg13[%c0, %c0_0] : memref<36x128xbf16, #tpu.memory_space<vmem>>, vector<36x128xbf16>
    tpu.vector_store %arg13[%c0, %c0_0], %0 {strides = array<i32>} : memref<36x128xbf16, #tpu.memory_space<vmem>>, vector<36x128xbf16>,
    %cst_1 = arith.constant 0.000000e+00 : bf16
    %2 = vector.broadcast %cst_1 : bf16 to vector<20x640xbf16>
    %c0_2 = arith.constant 0 : index
    %c0_3 = arith.constant 0 : index
    %3 = vector.load %arg14[%c0_2, %c0_3] : memref<20x640xbf16, #tpu.memory_space<vmem>>, vector<20x640xbf16>
    tpu.vector_store %arg14[%c0_2, %c0_3], %2 {strides = array<i32>} : memref<20x640xbf16, #tpu.memory_space<vmem>>, vector<20x640xbf16>,
    %cst_4 = arith.constant 0.000000e+00 : bf16
    %4 = vector.broadcast %cst_4 : bf16 to vector<12x384xbf16>
    %c0_5 = arith.constant 0 : index
    %c0_6 = arith.constant 0 : index
    %5 = vector.load %arg15[%c0_5, %c0_6] : memref<12x384xbf16, #tpu.memory_space<vmem>>, vector<12x384xbf16>
    tpu.vector_store %arg15[%c0_5, %c0_6], %4 {strides = array<i32>} : memref<12x384xbf16, #tpu.memory_space<vmem>>, vector<12x384xbf16>,
    %c0_7 = arith.constant 0 : index
    %c0_8 = arith.constant 0 : index
    %c0_9 = arith.constant 0 : index
    %6 = vector.load %arg1[%c0_7, %c0_8, %c0_9] : memref<1x32x96xbf16, #tpu.memory_space<vmem>>, vector<1x32x96xbf16>
    %7 = vector.shape_cast %6 : vector<1x32x96xbf16> to vector<32x96xbf16>
    %c2 = arith.constant 2 : index
    %c6 = arith.constant 6 : index
    %8 = vector.load %arg13[%c2, %c6] : memref<36x128xbf16, #tpu.memory_space<vmem>>, vector<32x96xbf16>
    tpu.vector_store %arg13[%c2, %c6], %7 {strides = array<i32>} : memref<36x128xbf16, #tpu.memory_space<vmem>>, vector<32x96xbf16>,
    %c0_10 = arith.constant 0 : index
    %c0_11 = arith.constant 0 : index
    %9 = vector.load %arg13[%c0_10, %c0_11] : memref<36x128xbf16, #tpu.memory_space<vmem>>, vector<32x128xbf16>
    %c0_12 = arith.constant 0 : index
    %c0_13 = arith.constant 0 : index
    %c0_14 = arith.constant 0 : index
    %10 = vector.load %arg2[%c0_12, %c0_13, %c0_14] : memref<5x128x1024xbf16, #tpu.memory_space<vmem>>, vector<1x128x1024xbf16>
    %11 = vector.shape_cast %10 : vector<1x128x1024xbf16> to vector<128x1024xbf16>
    %cst_15 = arith.constant dense<0.000000e+00> : vector<32x1024xf32>
    %12 = tpu.matmul %9, %11, %cst_15 {dimension_numbers = #tpu.dot_dimension_numbers<[1], [0], [0], [1], [0, 0, 1, 1], [], []>} : vector<32x128xbf16>, vector<128x1024xbf16>, vector<32x1024xf32> -> vector<32x1024xf32>
    %c1 = arith.constant 1 : index
    %c0_16 = arith.constant 0 : index
    %13 = vector.load %arg13[%c1, %c0_16] : memref<36x128xbf16, #tpu.memory_space<vmem>>, vector<32x128xbf16>
    %c1_17 = arith.constant 1 : index
    %c0_18 = arith.constant 0 : index
    %c0_19 = arith.constant 0 : index
    %14 = vector.load %arg2[%c1_17, %c0_18, %c0_19] : memref<5x128x1024xbf16, #tpu.memory_space<vmem>>, vector<1x128x1024xbf16>
    %15 = vector.shape_cast %14 : vector<1x128x1024xbf16> to vector<128x1024xbf16>
    %cst_20 = arith.constant dense<0.000000e+00> : vector<32x1024xf32>
    %16 = tpu.matmul %13, %15, %cst_20 {dimension_numbers = #tpu.dot_dimension_numbers<[1], [0], [0], [1], [0, 0, 1, 1], [], []>} : vector<32x128xbf16>, vector<128x1024xbf16>, vector<32x1024xf32> -> vector<32x1024xf32>
    %17 = arith.addf %12, %16 : vector<32x1024xf32>
    %c2_21 = arith.constant 2 : index
    %c0_22 = arith.constant 0 : index
    %18 = vector.load %arg13[%c2_21, %c0_22] : memref<36x128xbf16, #tpu.memory_space<vmem>>, vector<32x128xbf16>
    %c2_23 = arith.constant 2 : index
    %c0_24 = arith.constant 0 : index
    %c0_25 = arith.constant 0 : index
    %19 = vector.load %arg2[%c2_23, %c0_24, %c0_25] : memref<5x128x1024xbf16, #tpu.memory_space<vmem>>, vector<1x128x1024xbf16>
    %20 = vector.shape_cast %19 : vector<1x128x1024xbf16> to vector<128x1024xbf16>
    %cst_26 = arith.constant dense<0.000000e+00> : vector<32x1024xf32>
    %21 = tpu.matmul %18, %20, %cst_26 {dimension_numbers = #tpu.dot_dimension_numbers<[1], [0], [0], [1], [0, 0, 1, 1], [], []>} : vector<32x128xbf16>, vector<128x1024xbf16>, vector<32x1024xf32> -> vector<32x1024xf32>
    %22 = arith.addf %17, %21 : vector<32x1024xf32>
    %c3 = arith.constant 3 : index
    %c0_27 = arith.constant 0 : index
    %23 = vector.load %arg13[%c3, %c0_27] : memref<36x128xbf16, #tpu.memory_space<vmem>>, vector<32x128xbf16>
    %c3_28 = arith.constant 3 : index
    %c0_29 = arith.constant 0 : index
    %c0_30 = arith.constant 0 : index
    %24 = vector.load %arg2[%c3_28, %c0_29, %c0_30] : memref<5x128x1024xbf16, #tpu.memory_space<vmem>>, vector<1x128x1024xbf16>
    %25 = vector.shape_cast %24 : vector<1x128x1024xbf16> to vector<128x1024xbf16>
    %cst_31 = arith.constant dense<0.000000e+00> : vector<32x1024xf32>
    %26 = tpu.matmul %23, %25, %cst_31 {dimension_numbers = #tpu.dot_dimension_numbers<[1], [0], [0], [1], [0, 0, 1, 1], [], []>} : vector<32x128xbf16>, vector<128x1024xbf16>, vector<32x1024xf32> -> vector<32x1024xf32>
    %27 = arith.addf %22, %26 : vector<32x1024xf32>
    %c4 = arith.constant 4 : index
    %c0_32 = arith.constant 0 : index
    %28 = vector.load %arg13[%c4, %c0_32] : memref<36x128xbf16, #tpu.memory_space<vmem>>, vector<32x128xbf16>
    %c4_33 = arith.constant 4 : index
    %c0_34 = arith.constant 0 : index
    %c0_35 = arith.constant 0 : index
    %29 = vector.load %arg2[%c4_33, %c0_34, %c0_35] : memref<5x128x1024xbf16, #tpu.memory_space<vmem>>, vector<1x128x1024xbf16>
    %30 = vector.shape_cast %29 : vector<1x128x1024xbf16> to vector<128x1024xbf16>
    %cst_36 = arith.constant dense<0.000000e+00> : vector<32x1024xf32>
    %31 = tpu.matmul %28, %30, %cst_36 {dimension_numbers = #tpu.dot_dimension_numbers<[1], [0], [0], [1], [0, 0, 1, 1], [], []>} : vector<32x128xbf16>, vector<128x1024xbf16>, vector<32x1024xf32> -> vector<32x1024xf32>
    %32 = arith.addf %27, %31 : vector<32x1024xf32>
    %33 = vector.extract_strided_slice %32 {offsets = [0, 0], sizes = [32, 512], strides = [1, 1]} : vector<32x1024xf32> to vector<32x512xf32>
    %34 = vector.extract_strided_slice %32 {offsets = [0, 512], sizes = [32, 512], strides = [1, 1]} : vector<32x1024xf32> to vector<32x512xf32>
    %35 = arith.maximumf %33, %34 : vector<32x512xf32>
    %c0_37 = arith.constant 0 : index
    %c0_38 = arith.constant 0 : index
    %36 = vector.load %arg3[%c0_37, %c0_38] : memref<1x512xf32, #tpu.memory_space<vmem>>, vector<1x512xf32>
    %37 = vector.broadcast %36 : vector<1x512xf32> to vector<32x512xf32>
    %38 = arith.addf %35, %37 : vector<32x512xf32>
    %c0_39 = arith.constant 0 : index
    %c0_40 = arith.constant 0 : index
    %39 = vector.load %arg16[%c0_39, %c0_40] : memref<32x512xf32, #tpu.memory_space<vmem>>, vector<32x512xf32>
    tpu.vector_store %arg16[%c0_39, %c0_40], %38 {strides = array<i32>} : memref<32x512xf32, #tpu.memory_space<vmem>>, vector<32x512xf32>,
    %c0_41 = arith.constant 0 : index
    %c0_42 = arith.constant 0 : index
    %40 = vector.load %arg16[%c0_41, %c0_42] : memref<32x512xf32, #tpu.memory_space<vmem>>, vector<1x512xf32>
    %c1_43 = arith.constant 1 : index
    %c0_44 = arith.constant 0 : index
    %41 = vector.load %arg16[%c1_43, %c0_44] : memref<32x512xf32, #tpu.memory_space<vmem>>, vector<1x512xf32>
    %42 = arith.maximumf %40, %41 : vector<1x512xf32>
    %43 = arith.truncf %42 : vector<1x512xf32> to vector<1x512xbf16>
    %c2_45 = arith.constant 2 : index
    %c64 = arith.constant 64 : index
    %44 = vector.load %arg14[%c2_45, %c64] : memref<20x640xbf16, #tpu.memory_space<vmem>>, vector<1x512xbf16>
    tpu.vector_store %arg14[%c2_45, %c64], %43 {strides = array<i32>} : memref<20x640xbf16, #tpu.memory_space<vmem>>, vector<1x512xbf16>,
    %c2_46 = arith.constant 2 : index
    %c0_47 = arith.constant 0 : index
    %45 = vector.load %arg16[%c2_46, %c0_47] : memref<32x512xf32, #tpu.memory_space<vmem>>, vector<1x512xf32>
    %c3_48 = arith.constant 3 : index
    %c0_49 = arith.constant 0 : index
    %46 = vector.load %arg16[%c3_48, %c0_49] : memref<32x512xf32, #tpu.memory_space<vmem>>, vector<1x512xf32>
    %47 = arith.maximumf %45, %46 : vector<1x512xf32>
    %48 = arith.truncf %47 : vector<1x512xf32> to vector<1x512xbf16>
    %c3_50 = arith.constant 3 : index
    %c64_51 = arith.constant 64 : index
    %49 = vector.load %arg14[%c3_50, %c64_51] : memref<20x640xbf16, #tpu.memory_space<vmem>>, vector<1x512xbf16>
    tpu.vector_store %arg14[%c3_50, %c64_51], %48 {strides = array<i32>} : memref<20x640xbf16, #tpu.memory_space<vmem>>, vector<1x512xbf16>,
    %c4_52 = arith.constant 4 : index
    %c0_53 = arith.constant 0 : index
    %50 = vector.load %arg16[%c4_52, %c0_53] : memref<32x512xf32, #tpu.memory_space<vmem>>, vector<1x512xf32>
    %c5 = arith.constant 5 : index
    %c0_54 = arith.constant 0 : index
    %51 = vector.load %arg16[%c5, %c0_54] : memref<32x512xf32, #tpu.memory_space<vmem>>, vector<1x512xf32>
    %52 = arith.maximumf %50, %51 : vector<1x512xf32>
    %53 = arith.truncf %52 : vector<1x512xf32> to vector<1x512xbf16>
    %c4_55 = arith.constant 4 : index
    %c64_56 = arith.constant 64 : index
    %54 = vector.load %arg14[%c4_55, %c64_56] : memref<20x640xbf16, #tpu.memory_space<vmem>>, vector<1x512xbf16>
    tpu.vector_store %arg14[%c4_55, %c64_56], %53 {strides = array<i32>} : memref<20x640xbf16, #tpu.memory_space<vmem>>, vector<1x512xbf16>,
    %c6_57 = arith.constant 6 : index
    %c0_58 = arith.constant 0 : index
    %55 = vector.load %arg16[%c6_57, %c0_58] : memref<32x512xf32, #tpu.memory_space<vmem>>, vector<1x512xf32>
    %c7 = arith.constant 7 : index
    %c0_59 = arith.constant 0 : index
    %56 = vector.load %arg16[%c7, %c0_59] : memref<32x512xf32, #tpu.memory_space<vmem>>, vector<1x512xf32>
    %57 = arith.maximumf %55, %56 : vector<1x512xf32>
    %58 = arith.truncf %57 : vector<1x512xf32> to vector<1x512xbf16>
    %c5_60 = arith.constant 5 : index
    %c64_61 = arith.constant 64 : index
    %59 = vector.load %arg14[%c5_60, %c64_61] : memref<20x640xbf16, #tpu.memory_space<vmem>>, vector<1x512xbf16>
    tpu.vector_store %arg14[%c5_60, %c64_61], %58 {strides = array<i32>} : memref<20x640xbf16, #tpu.memory_space<vmem>>, vector<1x512xbf16>,
    %c8 = arith.constant 8 : index
    %c0_62 = arith.constant 0 : index
    %60 = vector.load %arg16[%c8, %c0_62] : memref<32x512xf32, #tpu.memory_space<vmem>>, vector<1x512xf32>
    %c9 = arith.constant 9 : index
    %c0_63 = arith.constant 0 : index
    %61 = vector.load %arg16[%c9, %c0_63] : memref<32x512xf32, #tpu.memory_space<vmem>>, vector<1x512xf32>
    %62 = arith.maximumf %60, %61 : vector<1x512xf32>
    %63 = arith.truncf %62 : vector<1x512xf32> to vector<1x512xbf16>
    %c6_64 = arith.constant 6 : index
    %c64_65 = arith.constant 64 : index
    %64 = vector.load %arg14[%c6_64, %c64_65] : memref<20x640xbf16, #tpu.memory_space<vmem>>, vector<1x512xbf16>
    tpu.vector_store %arg14[%c6_64, %c64_65], %63 {strides = array<i32>} : memref<20x640xbf16, #tpu.memory_space<vmem>>, vector<1x512xbf16>,
    %c10 = arith.constant 10 : index
    %c0_66 = arith.constant 0 : index
    %65 = vector.load %arg16[%c10, %c0_66] : memref<32x512xf32, #tpu.memory_space<vmem>>, vector<1x512xf32>
    %c11 = arith.constant 11 : index
    %c0_67 = arith.constant 0 : index
    %66 = vector.load %arg16[%c11, %c0_67] : memref<32x512xf32, #tpu.memory_space<vmem>>, vector<1x512xf32>
    %67 = arith.maximumf %65, %66 : vector<1x512xf32>
    %68 = arith.truncf %67 : vector<1x512xf32> to vector<1x512xbf16>
    %c7_68 = arith.constant 7 : index
    %c64_69 = arith.constant 64 : index
    %69 = vector.load %arg14[%c7_68, %c64_69] : memref<20x640xbf16, #tpu.memory_space<vmem>>, vector<1x512xbf16>
    tpu.vector_store %arg14[%c7_68, %c64_69], %68 {strides = array<i32>} : memref<20x640xbf16, #tpu.memory_space<vmem>>, vector<1x512xbf16>,
    %c12 = arith.constant 12 : index
    %c0_70 = arith.constant 0 : index
    %70 = vector.load %arg16[%c12, %c0_70] : memref<32x512xf32, #tpu.memory_space<vmem>>, vector<1x512xf32>
    %c13 = arith.constant 13 : index
    %c0_71 = arith.constant 0 : index
    %71 = vector.load %arg16[%c13, %c0_71] : memref<32x512xf32, #tpu.memory_space<vmem>>, vector<1x512xf32>
    %72 = arith.maximumf %70, %71 : vector<1x512xf32>
    %73 = arith.truncf %72 : vector<1x512xf32> to vector<1x512xbf16>
    %c8_72 = arith.constant 8 : index
    %c64_73 = arith.constant 64 : index
    %74 = vector.load %arg14[%c8_72, %c64_73] : memref<20x640xbf16, #tpu.memory_space<vmem>>, vector<1x512xbf16>
    tpu.vector_store %arg14[%c8_72, %c64_73], %73 {strides = array<i32>} : memref<20x640xbf16, #tpu.memory_space<vmem>>, vector<1x512xbf16>,
    %c14 = arith.constant 14 : index
    %c0_74 = arith.constant 0 : index
    %75 = vector.load %arg16[%c14, %c0_74] : memref<32x512xf32, #tpu.memory_space<vmem>>, vector<1x512xf32>
    %c15 = arith.constant 15 : index
    %c0_75 = arith.constant 0 : index
    %76 = vector.load %arg16[%c15, %c0_75] : memref<32x512xf32, #tpu.memory_space<vmem>>, vector<1x512xf32>
    %77 = arith.maximumf %75, %76 : vector<1x512xf32>
    %78 = arith.truncf %77 : vector<1x512xf32> to vector<1x512xbf16>
    %c9_76 = arith.constant 9 : index
    %c64_77 = arith.constant 64 : index
    %79 = vector.load %arg14[%c9_76, %c64_77] : memref<20x640xbf16, #tpu.memory_space<vmem>>, vector<1x512xbf16>
    tpu.vector_store %arg14[%c9_76, %c64_77], %78 {strides = array<i32>} : memref<20x640xbf16, #tpu.memory_space<vmem>>, vector<1x512xbf16>,
    %c16 = arith.constant 16 : index
    %c0_78 = arith.constant 0 : index
    %80 = vector.load %arg16[%c16, %c0_78] : memref<32x512xf32, #tpu.memory_space<vmem>>, vector<1x512xf32>
    %c17 = arith.constant 17 : index
    %c0_79 = arith.constant 0 : index
    %81 = vector.load %arg16[%c17, %c0_79] : memref<32x512xf32, #tpu.memory_space<vmem>>, vector<1x512xf32>
    %82 = arith.maximumf %80, %81 : vector<1x512xf32>
    %83 = arith.truncf %82 : vector<1x512xf32> to vector<1x512xbf16>
    %c10_80 = arith.constant 10 : index
    %c64_81 = arith.constant 64 : index
    %84 = vector.load %arg14[%c10_80, %c64_81] : memref<20x640xbf16, #tpu.memory_space<vmem>>, vector<1x512xbf16>
    tpu.vector_store %arg14[%c10_80, %c64_81], %83 {strides = array<i32>} : memref<20x640xbf16, #tpu.memory_space<vmem>>, vector<1x512xbf16>,
    %c18 = arith.constant 18 : index
    %c0_82 = arith.constant 0 : index
    %85 = vector.load %arg16[%c18, %c0_82] : memref<32x512xf32, #tpu.memory_space<vmem>>, vector<1x512xf32>
    %c19 = arith.constant 19 : index
    %c0_83 = arith.constant 0 : index
    %86 = vector.load %arg16[%c19, %c0_83] : memref<32x512xf32, #tpu.memory_space<vmem>>, vector<1x512xf32>
    %87 = arith.maximumf %85, %86 : vector<1x512xf32>
    %88 = arith.truncf %87 : vector<1x512xf32> to vector<1x512xbf16>
    %c11_84 = arith.constant 11 : index
    %c64_85 = arith.constant 64 : index
    %89 = vector.load %arg14[%c11_84, %c64_85] : memref<20x640xbf16, #tpu.memory_space<vmem>>, vector<1x512xbf16>
    tpu.vector_store %arg14[%c11_84, %c64_85], %88 {strides = array<i32>} : memref<20x640xbf16, #tpu.memory_space<vmem>>, vector<1x512xbf16>,
    %c20 = arith.constant 20 : index
    %c0_86 = arith.constant 0 : index
    %90 = vector.load %arg16[%c20, %c0_86] : memref<32x512xf32, #tpu.memory_space<vmem>>, vector<1x512xf32>
    %c21 = arith.constant 21 : index
    %c0_87 = arith.constant 0 : index
    %91 = vector.load %arg16[%c21, %c0_87] : memref<32x512xf32, #tpu.memory_space<vmem>>, vector<1x512xf32>
    %92 = arith.maximumf %90, %91 : vector<1x512xf32>
    %93 = arith.truncf %92 : vector<1x512xf32> to vector<1x512xbf16>
    %c12_88 = arith.constant 12 : index
    %c64_89 = arith.constant 64 : index
    %94 = vector.load %arg14[%c12_88, %c64_89] : memref<20x640xbf16, #tpu.memory_space<vmem>>, vector<1x512xbf16>
    tpu.vector_store %arg14[%c12_88, %c64_89], %93 {strides = array<i32>} : memref<20x640xbf16, #tpu.memory_space<vmem>>, vector<1x512xbf16>,
    %c22 = arith.constant 22 : index
    %c0_90 = arith.constant 0 : index
    %95 = vector.load %arg16[%c22, %c0_90] : memref<32x512xf32, #tpu.memory_space<vmem>>, vector<1x512xf32>
    %c23 = arith.constant 23 : index
    %c0_91 = arith.constant 0 : index
    %96 = vector.load %arg16[%c23, %c0_91] : memref<32x512xf32, #tpu.memory_space<vmem>>, vector<1x512xf32>
    %97 = arith.maximumf %95, %96 : vector<1x512xf32>
    %98 = arith.truncf %97 : vector<1x512xf32> to vector<1x512xbf16>
    %c13_92 = arith.constant 13 : index
    %c64_93 = arith.constant 64 : index
    %99 = vector.load %arg14[%c13_92, %c64_93] : memref<20x640xbf16, #tpu.memory_space<vmem>>, vector<1x512xbf16>
    tpu.vector_store %arg14[%c13_92, %c64_93], %98 {strides = array<i32>} : memref<20x640xbf16, #tpu.memory_space<vmem>>, vector<1x512xbf16>,
    %c24 = arith.constant 24 : index
    %c0_94 = arith.constant 0 : index
    %100 = vector.load %arg16[%c24, %c0_94] : memref<32x512xf32, #tpu.memory_space<vmem>>, vector<1x512xf32>
    %c25 = arith.constant 25 : index
    %c0_95 = arith.constant 0 : index
    %101 = vector.load %arg16[%c25, %c0_95] : memref<32x512xf32, #tpu.memory_space<vmem>>, vector<1x512xf32>
    %102 = arith.maximumf %100, %101 : vector<1x512xf32>
    %103 = arith.truncf %102 : vector<1x512xf32> to vector<1x512xbf16>
    %c14_96 = arith.constant 14 : index
    %c64_97 = arith.constant 64 : index
    %104 = vector.load %arg14[%c14_96, %c64_97] : memref<20x640xbf16, #tpu.memory_space<vmem>>, vector<1x512xbf16>
    tpu.vector_store %arg14[%c14_96, %c64_97], %103 {strides = array<i32>} : memref<20x640xbf16, #tpu.memory_space<vmem>>, vector<1x512xbf16>,
    %c26 = arith.constant 26 : index
    %c0_98 = arith.constant 0 : index
    %105 = vector.load %arg16[%c26, %c0_98] : memref<32x512xf32, #tpu.memory_space<vmem>>, vector<1x512xf32>
    %c27 = arith.constant 27 : index
    %c0_99 = arith.constant 0 : index
    %106 = vector.load %arg16[%c27, %c0_99] : memref<32x512xf32, #tpu.memory_space<vmem>>, vector<1x512xf32>
    %107 = arith.maximumf %105, %106 : vector<1x512xf32>
    %108 = arith.truncf %107 : vector<1x512xf32> to vector<1x512xbf16>
    %c15_100 = arith.constant 15 : index
    %c64_101 = arith.constant 64 : index
    %109 = vector.load %arg14[%c15_100, %c64_101] : memref<20x640xbf16, #tpu.memory_space<vmem>>, vector<1x512xbf16>
    tpu.vector_store %arg14[%c15_100, %c64_101], %108 {strides = array<i32>} : memref<20x640xbf16, #tpu.memory_space<vmem>>, vector<1x512xbf16>,
    %c28 = arith.constant 28 : index
    %c0_102 = arith.constant 0 : index
    %110 = vector.load %arg16[%c28, %c0_102] : memref<32x512xf32, #tpu.memory_space<vmem>>, vector<1x512xf32>
    %c29 = arith.constant 29 : index
    %c0_103 = arith.constant 0 : index
    %111 = vector.load %arg16[%c29, %c0_103] : memref<32x512xf32, #tpu.memory_space<vmem>>, vector<1x512xf32>
    %112 = arith.maximumf %110, %111 : vector<1x512xf32>
    %113 = arith.truncf %112 : vector<1x512xf32> to vector<1x512xbf16>
    %c16_104 = arith.constant 16 : index
    %c64_105 = arith.constant 64 : index
    %114 = vector.load %arg14[%c16_104, %c64_105] : memref<20x640xbf16, #tpu.memory_space<vmem>>, vector<1x512xbf16>
    tpu.vector_store %arg14[%c16_104, %c64_105], %113 {strides = array<i32>} : memref<20x640xbf16, #tpu.memory_space<vmem>>, vector<1x512xbf16>,
    %c30 = arith.constant 30 : index
    %c0_106 = arith.constant 0 : index
    %115 = vector.load %arg16[%c30, %c0_106] : memref<32x512xf32, #tpu.memory_space<vmem>>, vector<1x512xf32>
    %c31 = arith.constant 31 : index
    %c0_107 = arith.constant 0 : index
    %116 = vector.load %arg16[%c31, %c0_107] : memref<32x512xf32, #tpu.memory_space<vmem>>, vector<1x512xf32>
    %117 = arith.maximumf %115, %116 : vector<1x512xf32>
    %118 = arith.truncf %117 : vector<1x512xf32> to vector<1x512xbf16>
    %c17_108 = arith.constant 17 : index
    %c64_109 = arith.constant 64 : index
    %119 = vector.load %arg14[%c17_108, %c64_109] : memref<20x640xbf16, #tpu.memory_space<vmem>>, vector<1x512xbf16>
    tpu.vector_store %arg14[%c17_108, %c64_109], %118 {strides = array<i32>} : memref<20x640xbf16, #tpu.memory_space<vmem>>, vector<1x512xbf16>,
    %c0_110 = arith.constant 0 : index
    %c0_111 = arith.constant 0 : index
    %120 = vector.load %arg14[%c0_110, %c0_111] : memref<20x640xbf16, #tpu.memory_space<vmem>>, vector<16x640xbf16>
    %c0_112 = arith.constant 0 : index
    %c0_113 = arith.constant 0 : index
    %c0_114 = arith.constant 0 : index
    %121 = vector.load %arg4[%c0_112, %c0_113, %c0_114] : memref<5x640x512xbf16, #tpu.memory_space<vmem>>, vector<1x640x512xbf16>
    %122 = vector.shape_cast %121 : vector<1x640x512xbf16> to vector<640x512xbf16>
    %cst_115 = arith.constant dense<0.000000e+00> : vector<16x512xf32>
    %123 = tpu.matmul %120, %122, %cst_115 {dimension_numbers = #tpu.dot_dimension_numbers<[1], [0], [0], [1], [0, 0, 1, 1], [], []>} : vector<16x640xbf16>, vector<640x512xbf16>, vector<16x512xf32> -> vector<16x512xf32>
    %c1_116 = arith.constant 1 : index
    %c0_117 = arith.constant 0 : index
    %124 = vector.load %arg14[%c1_116, %c0_117] : memref<20x640xbf16, #tpu.memory_space<vmem>>, vector<16x640xbf16>
    %c1_118 = arith.constant 1 : index
    %c0_119 = arith.constant 0 : index
    %c0_120 = arith.constant 0 : index
    %125 = vector.load %arg4[%c1_118, %c0_119, %c0_120] : memref<5x640x512xbf16, #tpu.memory_space<vmem>>, vector<1x640x512xbf16>
    %126 = vector.shape_cast %125 : vector<1x640x512xbf16> to vector<640x512xbf16>
    %cst_121 = arith.constant dense<0.000000e+00> : vector<16x512xf32>
    %127 = tpu.matmul %124, %126, %cst_121 {dimension_numbers = #tpu.dot_dimension_numbers<[1], [0], [0], [1], [0, 0, 1, 1], [], []>} : vector<16x640xbf16>, vector<640x512xbf16>, vector<16x512xf32> -> vector<16x512xf32>
    %128 = arith.addf %123, %127 : vector<16x512xf32>
    %c2_122 = arith.constant 2 : index
    %c0_123 = arith.constant 0 : index
    %129 = vector.load %arg14[%c2_122, %c0_123] : memref<20x640xbf16, #tpu.memory_space<vmem>>, vector<16x640xbf16>
    %c2_124 = arith.constant 2 : index
    %c0_125 = arith.constant 0 : index
    %c0_126 = arith.constant 0 : index
    %130 = vector.load %arg4[%c2_124, %c0_125, %c0_126] : memref<5x640x512xbf16, #tpu.memory_space<vmem>>, vector<1x640x512xbf16>
    %131 = vector.shape_cast %130 : vector<1x640x512xbf16> to vector<640x512xbf16>
    %cst_127 = arith.constant dense<0.000000e+00> : vector<16x512xf32>
    %132 = tpu.matmul %129, %131, %cst_127 {dimension_numbers = #tpu.dot_dimension_numbers<[1], [0], [0], [1], [0, 0, 1, 1], [], []>} : vector<16x640xbf16>, vector<640x512xbf16>, vector<16x512xf32> -> vector<16x512xf32>
    %133 = arith.addf %128, %132 : vector<16x512xf32>
    %c3_128 = arith.constant 3 : index
    %c0_129 = arith.constant 0 : index
    %134 = vector.load %arg14[%c3_128, %c0_129] : memref<20x640xbf16, #tpu.memory_space<vmem>>, vector<16x640xbf16>
    %c3_130 = arith.constant 3 : index
    %c0_131 = arith.constant 0 : index
    %c0_132 = arith.constant 0 : index
    %135 = vector.load %arg4[%c3_130, %c0_131, %c0_132] : memref<5x640x512xbf16, #tpu.memory_space<vmem>>, vector<1x640x512xbf16>
    %136 = vector.shape_cast %135 : vector<1x640x512xbf16> to vector<640x512xbf16>
    %cst_133 = arith.constant dense<0.000000e+00> : vector<16x512xf32>
    %137 = tpu.matmul %134, %136, %cst_133 {dimension_numbers = #tpu.dot_dimension_numbers<[1], [0], [0], [1], [0, 0, 1, 1], [], []>} : vector<16x640xbf16>, vector<640x512xbf16>, vector<16x512xf32> -> vector<16x512xf32>
    %138 = arith.addf %133, %137 : vector<16x512xf32>
    %c4_134 = arith.constant 4 : index
    %c0_135 = arith.constant 0 : index
    %139 = vector.load %arg14[%c4_134, %c0_135] : memref<20x640xbf16, #tpu.memory_space<vmem>>, vector<16x640xbf16>
    %c4_136 = arith.constant 4 : index
    %c0_137 = arith.constant 0 : index
    %c0_138 = arith.constant 0 : index
    %140 = vector.load %arg4[%c4_136, %c0_137, %c0_138] : memref<5x640x512xbf16, #tpu.memory_space<vmem>>, vector<1x640x512xbf16>
    %141 = vector.shape_cast %140 : vector<1x640x512xbf16> to vector<640x512xbf16>
    %cst_139 = arith.constant dense<0.000000e+00> : vector<16x512xf32>
    %142 = tpu.matmul %139, %141, %cst_139 {dimension_numbers = #tpu.dot_dimension_numbers<[1], [0], [0], [1], [0, 0, 1, 1], [], []>} : vector<16x640xbf16>, vector<640x512xbf16>, vector<16x512xf32> -> vector<16x512xf32>
    %143 = arith.addf %138, %142 : vector<16x512xf32>
    %144 = vector.extract_strided_slice %143 {offsets = [0, 0], sizes = [16, 256], strides = [1, 1]} : vector<16x512xf32> to vector<16x256xf32>
    %145 = vector.extract_strided_slice %143 {offsets = [0, 256], sizes = [16, 256], strides = [1, 1]} : vector<16x512xf32> to vector<16x256xf32>
    %146 = arith.maximumf %144, %145 : vector<16x256xf32>
    %c0_140 = arith.constant 0 : index
    %c0_141 = arith.constant 0 : index
    %147 = vector.load %arg5[%c0_140, %c0_141] : memref<1x256xf32, #tpu.memory_space<vmem>>, vector<1x256xf32>
    %148 = vector.broadcast %147 : vector<1x256xf32> to vector<16x256xf32>
    %149 = arith.addf %146, %148 : vector<16x256xf32>
    %c0_142 = arith.constant 0 : index
    %c0_143 = arith.constant 0 : index
    %150 = vector.load %arg16[%c0_142, %c0_143] : memref<32x512xf32, #tpu.memory_space<vmem>>, vector<16x256xf32>
    tpu.vector_store %arg16[%c0_142, %c0_143], %149 {strides = array<i32>} : memref<32x512xf32, #tpu.memory_space<vmem>>, vector<16x256xf32>,
    %c0_144 = arith.constant 0 : index
    %c0_145 = arith.constant 0 : index
    %151 = vector.load %arg16[%c0_144, %c0_145] : memref<32x512xf32, #tpu.memory_space<vmem>>, vector<1x256xf32>
    %c1_146 = arith.constant 1 : index
    %c0_147 = arith.constant 0 : index
    %152 = vector.load %arg16[%c1_146, %c0_147] : memref<32x512xf32, #tpu.memory_space<vmem>>, vector<1x256xf32>
    %153 = arith.maximumf %151, %152 : vector<1x256xf32>
    %154 = arith.truncf %153 : vector<1x256xf32> to vector<1x256xbf16>
    %c2_148 = arith.constant 2 : index
    %c64_149 = arith.constant 64 : index
    %155 = vector.load %arg15[%c2_148, %c64_149] : memref<12x384xbf16, #tpu.memory_space<vmem>>, vector<1x256xbf16>
    tpu.vector_store %arg15[%c2_148, %c64_149], %154 {strides = array<i32>} : memref<12x384xbf16, #tpu.memory_space<vmem>>, vector<1x256xbf16>,
    %c2_150 = arith.constant 2 : index
    %c0_151 = arith.constant 0 : index
    %156 = vector.load %arg16[%c2_150, %c0_151] : memref<32x512xf32, #tpu.memory_space<vmem>>, vector<1x256xf32>
    %c3_152 = arith.constant 3 : index
    %c0_153 = arith.constant 0 : index
    %157 = vector.load %arg16[%c3_152, %c0_153] : memref<32x512xf32, #tpu.memory_space<vmem>>, vector<1x256xf32>
    %158 = arith.maximumf %156, %157 : vector<1x256xf32>
    %159 = arith.truncf %158 : vector<1x256xf32> to vector<1x256xbf16>
    %c3_154 = arith.constant 3 : index
    %c64_155 = arith.constant 64 : index
    %160 = vector.load %arg15[%c3_154, %c64_155] : memref<12x384xbf16, #tpu.memory_space<vmem>>, vector<1x256xbf16>
    tpu.vector_store %arg15[%c3_154, %c64_155], %159 {strides = array<i32>} : memref<12x384xbf16, #tpu.memory_space<vmem>>, vector<1x256xbf16>,
    %c4_156 = arith.constant 4 : index
    %c0_157 = arith.constant 0 : index
    %161 = vector.load %arg16[%c4_156, %c0_157] : memref<32x512xf32, #tpu.memory_space<vmem>>, vector<1x256xf32>
    %c5_158 = arith.constant 5 : index
    %c0_159 = arith.constant 0 : index
    %162 = vector.load %arg16[%c5_158, %c0_159] : memref<32x512xf32, #tpu.memory_space<vmem>>, vector<1x256xf32>
    %163 = arith.maximumf %161, %162 : vector<1x256xf32>
    %164 = arith.truncf %163 : vector<1x256xf32> to vector<1x256xbf16>
    %c4_160 = arith.constant 4 : index
    %c64_161 = arith.constant 64 : index
    %165 = vector.load %arg15[%c4_160, %c64_161] : memref<12x384xbf16, #tpu.memory_space<vmem>>, vector<1x256xbf16>
    tpu.vector_store %arg15[%c4_160, %c64_161], %164 {strides = array<i32>} : memref<12x384xbf16, #tpu.memory_space<vmem>>, vector<1x256xbf16>,
    %c6_162 = arith.constant 6 : index
    %c0_163 = arith.constant 0 : index
    %166 = vector.load %arg16[%c6_162, %c0_163] : memref<32x512xf32, #tpu.memory_space<vmem>>, vector<1x256xf32>
    %c7_164 = arith.constant 7 : index
    %c0_165 = arith.constant 0 : index
    %167 = vector.load %arg16[%c7_164, %c0_165] : memref<32x512xf32, #tpu.memory_space<vmem>>, vector<1x256xf32>
    %168 = arith.maximumf %166, %167 : vector<1x256xf32>
    %169 = arith.truncf %168 : vector<1x256xf32> to vector<1x256xbf16>
    %c5_166 = arith.constant 5 : index
    %c64_167 = arith.constant 64 : index
    %170 = vector.load %arg15[%c5_166, %c64_167] : memref<12x384xbf16, #tpu.memory_space<vmem>>, vector<1x256xbf16>
    tpu.vector_store %arg15[%c5_166, %c64_167], %169 {strides = array<i32>} : memref<12x384xbf16, #tpu.memory_space<vmem>>, vector<1x256xbf16>,
    %c8_168 = arith.constant 8 : index
    %c0_169 = arith.constant 0 : index
    %171 = vector.load %arg16[%c8_168, %c0_169] : memref<32x512xf32, #tpu.memory_space<vmem>>, vector<1x256xf32>
    %c9_170 = arith.constant 9 : index
    %c0_171 = arith.constant 0 : index
    %172 = vector.load %arg16[%c9_170, %c0_171] : memref<32x512xf32, #tpu.memory_space<vmem>>, vector<1x256xf32>
    %173 = arith.maximumf %171, %172 : vector<1x256xf32>
    %174 = arith.truncf %173 : vector<1x256xf32> to vector<1x256xbf16>
    %c6_172 = arith.constant 6 : index
    %c64_173 = arith.constant 64 : index
    %175 = vector.load %arg15[%c6_172, %c64_173] : memref<12x384xbf16, #tpu.memory_space<vmem>>, vector<1x256xbf16>
    tpu.vector_store %arg15[%c6_172, %c64_173], %174 {strides = array<i32>} : memref<12x384xbf16, #tpu.memory_space<vmem>>, vector<1x256xbf16>,
    %c10_174 = arith.constant 10 : index
    %c0_175 = arith.constant 0 : index
    %176 = vector.load %arg16[%c10_174, %c0_175] : memref<32x512xf32, #tpu.memory_space<vmem>>, vector<1x256xf32>
    %c11_176 = arith.constant 11 : index
    %c0_177 = arith.constant 0 : index
    %177 = vector.load %arg16[%c11_176, %c0_177] : memref<32x512xf32, #tpu.memory_space<vmem>>, vector<1x256xf32>
    %178 = arith.maximumf %176, %177 : vector<1x256xf32>
    %179 = arith.truncf %178 : vector<1x256xf32> to vector<1x256xbf16>
    %c7_178 = arith.constant 7 : index
    %c64_179 = arith.constant 64 : index
    %180 = vector.load %arg15[%c7_178, %c64_179] : memref<12x384xbf16, #tpu.memory_space<vmem>>, vector<1x256xbf16>
    tpu.vector_store %arg15[%c7_178, %c64_179], %179 {strides = array<i32>} : memref<12x384xbf16, #tpu.memory_space<vmem>>, vector<1x256xbf16>,
    %c12_180 = arith.constant 12 : index
    %c0_181 = arith.constant 0 : index
    %181 = vector.load %arg16[%c12_180, %c0_181] : memref<32x512xf32, #tpu.memory_space<vmem>>, vector<1x256xf32>
    %c13_182 = arith.constant 13 : index
    %c0_183 = arith.constant 0 : index
    %182 = vector.load %arg16[%c13_182, %c0_183] : memref<32x512xf32, #tpu.memory_space<vmem>>, vector<1x256xf32>
    %183 = arith.maximumf %181, %182 : vector<1x256xf32>
    %184 = arith.truncf %183 : vector<1x256xf32> to vector<1x256xbf16>
    %c8_184 = arith.constant 8 : index
    %c64_185 = arith.constant 64 : index
    %185 = vector.load %arg15[%c8_184, %c64_185] : memref<12x384xbf16, #tpu.memory_space<vmem>>, vector<1x256xbf16>
    tpu.vector_store %arg15[%c8_184, %c64_185], %184 {strides = array<i32>} : memref<12x384xbf16, #tpu.memory_space<vmem>>, vector<1x256xbf16>,
    %c14_186 = arith.constant 14 : index
    %c0_187 = arith.constant 0 : index
    %186 = vector.load %arg16[%c14_186, %c0_187] : memref<32x512xf32, #tpu.memory_space<vmem>>, vector<1x256xf32>
    %c15_188 = arith.constant 15 : index
    %c0_189 = arith.constant 0 : index
    %187 = vector.load %arg16[%c15_188, %c0_189] : memref<32x512xf32, #tpu.memory_space<vmem>>, vector<1x256xf32>
    %188 = arith.maximumf %186, %187 : vector<1x256xf32>
    %189 = arith.truncf %188 : vector<1x256xf32> to vector<1x256xbf16>
    %c9_190 = arith.constant 9 : index
    %c64_191 = arith.constant 64 : index
    %190 = vector.load %arg15[%c9_190, %c64_191] : memref<12x384xbf16, #tpu.memory_space<vmem>>, vector<1x256xbf16>
    tpu.vector_store %arg15[%c9_190, %c64_191], %189 {strides = array<i32>} : memref<12x384xbf16, #tpu.memory_space<vmem>>, vector<1x256xbf16>,
    %c0_192 = arith.constant 0 : index
    %c0_193 = arith.constant 0 : index
    %191 = vector.load %arg15[%c0_192, %c0_193] : memref<12x384xbf16, #tpu.memory_space<vmem>>, vector<8x384xbf16>
    %c0_194 = arith.constant 0 : index
    %c0_195 = arith.constant 0 : index
    %c0_196 = arith.constant 0 : index
    %192 = vector.load %arg6[%c0_194, %c0_195, %c0_196] : memref<5x384x512xbf16, #tpu.memory_space<vmem>>, vector<1x384x512xbf16>
    %193 = vector.shape_cast %192 : vector<1x384x512xbf16> to vector<384x512xbf16>
    %cst_197 = arith.constant dense<0.000000e+00> : vector<8x512xf32>
    %194 = tpu.matmul %191, %193, %cst_197 {dimension_numbers = #tpu.dot_dimension_numbers<[1], [0], [0], [1], [0, 0, 1, 1], [], []>} : vector<8x384xbf16>, vector<384x512xbf16>, vector<8x512xf32> -> vector<8x512xf32>
    %c1_198 = arith.constant 1 : index
    %c0_199 = arith.constant 0 : index
    %195 = vector.load %arg15[%c1_198, %c0_199] : memref<12x384xbf16, #tpu.memory_space<vmem>>, vector<8x384xbf16>
    %c1_200 = arith.constant 1 : index
    %c0_201 = arith.constant 0 : index
    %c0_202 = arith.constant 0 : index
    %196 = vector.load %arg6[%c1_200, %c0_201, %c0_202] : memref<5x384x512xbf16, #tpu.memory_space<vmem>>, vector<1x384x512xbf16>
    %197 = vector.shape_cast %196 : vector<1x384x512xbf16> to vector<384x512xbf16>
    %cst_203 = arith.constant dense<0.000000e+00> : vector<8x512xf32>
    %198 = tpu.matmul %195, %197, %cst_203 {dimension_numbers = #tpu.dot_dimension_numbers<[1], [0], [0], [1], [0, 0, 1, 1], [], []>} : vector<8x384xbf16>, vector<384x512xbf16>, vector<8x512xf32> -> vector<8x512xf32>
    %199 = arith.addf %194, %198 : vector<8x512xf32>
    %c2_204 = arith.constant 2 : index
    %c0_205 = arith.constant 0 : index
    %200 = vector.load %arg15[%c2_204, %c0_205] : memref<12x384xbf16, #tpu.memory_space<vmem>>, vector<8x384xbf16>
    %c2_206 = arith.constant 2 : index
    %c0_207 = arith.constant 0 : index
    %c0_208 = arith.constant 0 : index
    %201 = vector.load %arg6[%c2_206, %c0_207, %c0_208] : memref<5x384x512xbf16, #tpu.memory_space<vmem>>, vector<1x384x512xbf16>
    %202 = vector.shape_cast %201 : vector<1x384x512xbf16> to vector<384x512xbf16>
    %cst_209 = arith.constant dense<0.000000e+00> : vector<8x512xf32>
    %203 = tpu.matmul %200, %202, %cst_209 {dimension_numbers = #tpu.dot_dimension_numbers<[1], [0], [0], [1], [0, 0, 1, 1], [], []>} : vector<8x384xbf16>, vector<384x512xbf16>, vector<8x512xf32> -> vector<8x512xf32>
    %204 = arith.addf %199, %203 : vector<8x512xf32>
    %c3_210 = arith.constant 3 : index
    %c0_211 = arith.constant 0 : index
    %205 = vector.load %arg15[%c3_210, %c0_211] : memref<12x384xbf16, #tpu.memory_space<vmem>>, vector<8x384xbf16>
    %c3_212 = arith.constant 3 : index
    %c0_213 = arith.constant 0 : index
    %c0_214 = arith.constant 0 : index
    %206 = vector.load %arg6[%c3_212, %c0_213, %c0_214] : memref<5x384x512xbf16, #tpu.memory_space<vmem>>, vector<1x384x512xbf16>
    %207 = vector.shape_cast %206 : vector<1x384x512xbf16> to vector<384x512xbf16>
    %cst_215 = arith.constant dense<0.000000e+00> : vector<8x512xf32>
    %208 = tpu.matmul %205, %207, %cst_215 {dimension_numbers = #tpu.dot_dimension_numbers<[1], [0], [0], [1], [0, 0, 1, 1], [], []>} : vector<8x384xbf16>, vector<384x512xbf16>, vector<8x512xf32> -> vector<8x512xf32>
    %209 = arith.addf %204, %208 : vector<8x512xf32>
    %c4_216 = arith.constant 4 : index
    %c0_217 = arith.constant 0 : index
    %210 = vector.load %arg15[%c4_216, %c0_217] : memref<12x384xbf16, #tpu.memory_space<vmem>>, vector<8x384xbf16>
    %c4_218 = arith.constant 4 : index
    %c0_219 = arith.constant 0 : index
    %c0_220 = arith.constant 0 : index
    %211 = vector.load %arg6[%c4_218, %c0_219, %c0_220] : memref<5x384x512xbf16, #tpu.memory_space<vmem>>, vector<1x384x512xbf16>
    %212 = vector.shape_cast %211 : vector<1x384x512xbf16> to vector<384x512xbf16>
    %cst_221 = arith.constant dense<0.000000e+00> : vector<8x512xf32>
    %213 = tpu.matmul %210, %212, %cst_221 {dimension_numbers = #tpu.dot_dimension_numbers<[1], [0], [0], [1], [0, 0, 1, 1], [], []>} : vector<8x384xbf16>, vector<384x512xbf16>, vector<8x512xf32> -> vector<8x512xf32>
    %214 = arith.addf %209, %213 : vector<8x512xf32>
    %215 = vector.extract_strided_slice %214 {offsets = [0, 0], sizes = [8, 256], strides = [1, 1]} : vector<8x512xf32> to vector<8x256xf32>
    %216 = vector.extract_strided_slice %214 {offsets = [0, 256], sizes = [8, 256], strides = [1, 1]} : vector<8x512xf32> to vector<8x256xf32>
    %217 = arith.maximumf %215, %216 : vector<8x256xf32>
    %c0_222 = arith.constant 0 : index
    %c0_223 = arith.constant 0 : index
    %218 = vector.load %arg7[%c0_222, %c0_223] : memref<1x256xf32, #tpu.memory_space<vmem>>, vector<1x256xf32>
    %219 = vector.broadcast %218 : vector<1x256xf32> to vector<8x256xf32>
    %220 = arith.addf %217, %219 : vector<8x256xf32>
    %c0_224 = arith.constant 0 : index
    %c0_225 = arith.constant 0 : index
    %221 = vector.load %arg16[%c0_224, %c0_225] : memref<32x512xf32, #tpu.memory_space<vmem>>, vector<8x256xf32>
    tpu.vector_store %arg16[%c0_224, %c0_225], %220 {strides = array<i32>} : memref<32x512xf32, #tpu.memory_space<vmem>>, vector<8x256xf32>,
    %cst_226 = arith.constant 0.000000e+00 : f32
    %222 = vector.broadcast %cst_226 : f32 to vector<1x128xf32>
    %c0_227 = arith.constant 0 : index
    %c0_228 = arith.constant 0 : index
    %223 = vector.load %arg16[%c0_227, %c0_228] : memref<32x512xf32, #tpu.memory_space<vmem>>, vector<1x256xf32>
    %c1_229 = arith.constant 1 : index
    %c0_230 = arith.constant 0 : index
    %224 = vector.load %arg16[%c1_229, %c0_230] : memref<32x512xf32, #tpu.memory_space<vmem>>, vector<1x256xf32>
    %225 = arith.maximumf %223, %224 : vector<1x256xf32>
    %226 = arith.truncf %225 : vector<1x256xf32> to vector<1x256xbf16>
    %c0_231 = arith.constant 0 : index
    %c0_232 = arith.constant 0 : index
    %c0_233 = arith.constant 0 : index
    %227 = vector.load %arg8[%c0_231, %c0_232, %c0_233] : memref<4x256x128xbf16, #tpu.memory_space<vmem>>, vector<1x256x128xbf16>
    %228 = vector.shape_cast %227 : vector<1x256x128xbf16> to vector<256x128xbf16>
    %cst_234 = arith.constant dense<0.000000e+00> : vector<1x128xf32>
    %229 = tpu.matmul %226, %228, %cst_234 {dimension_numbers = #tpu.dot_dimension_numbers<[1], [0], [0], [1], [0, 0, 1, 1], [], []>} : vector<1x256xbf16>, vector<256x128xbf16>, vector<1x128xf32> -> vector<1x128xf32>
    %230 = arith.addf %222, %229 : vector<1x128xf32>
    %c2_235 = arith.constant 2 : index
    %c0_236 = arith.constant 0 : index
    %231 = vector.load %arg16[%c2_235, %c0_236] : memref<32x512xf32, #tpu.memory_space<vmem>>, vector<1x256xf32>
    %c3_237 = arith.constant 3 : index
    %c0_238 = arith.constant 0 : index
    %232 = vector.load %arg16[%c3_237, %c0_238] : memref<32x512xf32, #tpu.memory_space<vmem>>, vector<1x256xf32>
    %233 = arith.maximumf %231, %232 : vector<1x256xf32>
    %234 = arith.truncf %233 : vector<1x256xf32> to vector<1x256xbf16>
    %c1_239 = arith.constant 1 : index
    %c0_240 = arith.constant 0 : index
    %c0_241 = arith.constant 0 : index
    %235 = vector.load %arg8[%c1_239, %c0_240, %c0_241] : memref<4x256x128xbf16, #tpu.memory_space<vmem>>, vector<1x256x128xbf16>
    %236 = vector.shape_cast %235 : vector<1x256x128xbf16> to vector<256x128xbf16>
    %cst_242 = arith.constant dense<0.000000e+00> : vector<1x128xf32>
    %237 = tpu.matmul %234, %236, %cst_242 {dimension_numbers = #tpu.dot_dimension_numbers<[1], [0], [0], [1], [0, 0, 1, 1], [], []>} : vector<1x256xbf16>, vector<256x128xbf16>, vector<1x128xf32> -> vector<1x128xf32>
    %238 = arith.addf %230, %237 : vector<1x128xf32>
    %c4_243 = arith.constant 4 : index
    %c0_244 = arith.constant 0 : index
    %239 = vector.load %arg16[%c4_243, %c0_244] : memref<32x512xf32, #tpu.memory_space<vmem>>, vector<1x256xf32>
    %c5_245 = arith.constant 5 : index
    %c0_246 = arith.constant 0 : index
    %240 = vector.load %arg16[%c5_245, %c0_246] : memref<32x512xf32, #tpu.memory_space<vmem>>, vector<1x256xf32>
    %241 = arith.maximumf %239, %240 : vector<1x256xf32>
    %242 = arith.truncf %241 : vector<1x256xf32> to vector<1x256xbf16>
    %c2_247 = arith.constant 2 : index
    %c0_248 = arith.constant 0 : index
    %c0_249 = arith.constant 0 : index
    %243 = vector.load %arg8[%c2_247, %c0_248, %c0_249] : memref<4x256x128xbf16, #tpu.memory_space<vmem>>, vector<1x256x128xbf16>
    %244 = vector.shape_cast %243 : vector<1x256x128xbf16> to vector<256x128xbf16>
    %cst_250 = arith.constant dense<0.000000e+00> : vector<1x128xf32>
    %245 = tpu.matmul %242, %244, %cst_250 {dimension_numbers = #tpu.dot_dimension_numbers<[1], [0], [0], [1], [0, 0, 1, 1], [], []>} : vector<1x256xbf16>, vector<256x128xbf16>, vector<1x128xf32> -> vector<1x128xf32>
    %246 = arith.addf %238, %245 : vector<1x128xf32>
    %c6_251 = arith.constant 6 : index
    %c0_252 = arith.constant 0 : index
    %247 = vector.load %arg16[%c6_251, %c0_252] : memref<32x512xf32, #tpu.memory_space<vmem>>, vector<1x256xf32>
    %c7_253 = arith.constant 7 : index
    %c0_254 = arith.constant 0 : index
    %248 = vector.load %arg16[%c7_253, %c0_254] : memref<32x512xf32, #tpu.memory_space<vmem>>, vector<1x256xf32>
    %249 = arith.maximumf %247, %248 : vector<1x256xf32>
    %250 = arith.truncf %249 : vector<1x256xf32> to vector<1x256xbf16>
    %c3_255 = arith.constant 3 : index
    %c0_256 = arith.constant 0 : index
    %c0_257 = arith.constant 0 : index
    %251 = vector.load %arg8[%c3_255, %c0_256, %c0_257] : memref<4x256x128xbf16, #tpu.memory_space<vmem>>, vector<1x256x128xbf16>
    %252 = vector.shape_cast %251 : vector<1x256x128xbf16> to vector<256x128xbf16>
    %cst_258 = arith.constant dense<0.000000e+00> : vector<1x128xf32>
    %253 = tpu.matmul %250, %252, %cst_258 {dimension_numbers = #tpu.dot_dimension_numbers<[1], [0], [0], [1], [0, 0, 1, 1], [], []>} : vector<1x256xbf16>, vector<256x128xbf16>, vector<1x128xf32> -> vector<1x128xf32>
    %254 = arith.addf %246, %253 : vector<1x128xf32>
    %c0_259 = arith.constant 0 : index
    %c0_260 = arith.constant 0 : index
    %255 = vector.load %arg9[%c0_259, %c0_260] : memref<1x128xf32, #tpu.memory_space<vmem>>, vector<1x128xf32>
    %256 = arith.addf %254, %255 : vector<1x128xf32>
    %cst_261 = arith.constant 0.000000e+00 : f32
    %257 = vector.broadcast %cst_261 : f32 to vector<1x128xf32>
    %258 = arith.maximumf %256, %257 : vector<1x128xf32>
    %259 = arith.truncf %258 : vector<1x128xf32> to vector<1x128xbf16>
    %c0_262 = arith.constant 0 : index
    %c0_263 = arith.constant 0 : index
    %260 = vector.load %arg10[%c0_262, %c0_263] : memref<128x128xbf16, #tpu.memory_space<vmem>>, vector<128x128xbf16>
    %cst_264 = arith.constant dense<0.000000e+00> : vector<1x128xf32>
    %261 = tpu.matmul %259, %260, %cst_264 {dimension_numbers = #tpu.dot_dimension_numbers<[1], [0], [0], [1], [0, 0, 1, 1], [], []>} : vector<1x128xbf16>, vector<128x128xbf16>, vector<1x128xf32> -> vector<1x128xf32>
    %c0_265 = arith.constant 0 : index
    %c0_266 = arith.constant 0 : index
    %262 = vector.load %arg11[%c0_265, %c0_266] : memref<1x128xf32, #tpu.memory_space<vmem>>, vector<1x128xf32>
    %263 = arith.addf %261, %262 : vector<1x128xf32>
    %c0_267 = arith.constant 0 : index
    %c0_268 = arith.constant 0 : index
    %c0_269 = arith.constant 0 : index
    %264 = vector.load %arg12[%c0_267, %c0_268, %c0_269] : memref<1x1x128xf32, #tpu.memory_space<vmem>>, vector<1x1x128xf32>
    %265 = vector.shape_cast %264 : vector<1x1x128xf32> to vector<1x128xf32>
    %266 = vector.shape_cast %263 : vector<1x128xf32> to vector<1x1x128xf32>
    tpu.vector_store %arg12[%c0_267, %c0_268, %c0_269], %266 {strides = array<i32>} : memref<1x1x128xf32, #tpu.memory_space<vmem>>, vector<1x1x128xf32>,
    return
  }
  func.func @transform_0(%arg0: i32) -> (i32, i32, i32) {
    %c0_i32 = arith.constant 0 : i32
    %c0_i32_0 = arith.constant 0 : i32
    %c0_i32_1 = arith.constant 0 : i32
    return %arg0, %c0_i32, %c0_i32_0 : i32, i32, i32
  }
  func.func @transform_1(%arg0: i32) -> (i32, i32, i32) {
    %c0_i32 = arith.constant 0 : i32
    %c0_i32_0 = arith.constant 0 : i32
    %c0_i32_1 = arith.constant 0 : i32
    %c0_i32_2 = arith.constant 0 : i32
    return %c0_i32, %c0_i32_0, %c0_i32_1 : i32, i32, i32
  }
  func.func @transform_2(%arg0: i32) -> (i32, i32) {
    %c0_i32 = arith.constant 0 : i32
    %c0_i32_0 = arith.constant 0 : i32
    %c0_i32_1 = arith.constant 0 : i32
    return %c0_i32, %c0_i32_0 : i32, i32
  }
  func.func @transform_3(%arg0: i32) -> (i32, i32, i32) {
    %c0_i32 = arith.constant 0 : i32
    %c0_i32_0 = arith.constant 0 : i32
    %c0_i32_1 = arith.constant 0 : i32
    %c0_i32_2 = arith.constant 0 : i32
    return %c0_i32, %c0_i32_0, %c0_i32_1 : i32, i32, i32
  }
  func.func @transform_4(%arg0: i32) -> (i32, i32) {
    %c0_i32 = arith.constant 0 : i32
    %c0_i32_0 = arith.constant 0 : i32
    %c0_i32_1 = arith.constant 0 : i32
    return %c0_i32, %c0_i32_0 : i32, i32
  }
  func.func @transform_5(%arg0: i32) -> (i32, i32, i32) {
    %c0_i32 = arith.constant 0 : i32
    %c0_i32_0 = arith.constant 0 : i32
    %c0_i32_1 = arith.constant 0 : i32
    %c0_i32_2 = arith.constant 0 : i32
    return %c0_i32, %c0_i32_0, %c0_i32_1 : i32, i32, i32
  }
  func.func @transform_6(%arg0: i32) -> (i32, i32) {
    %c0_i32 = arith.constant 0 : i32
    %c0_i32_0 = arith.constant 0 : i32
    %c0_i32_1 = arith.constant 0 : i32
    return %c0_i32, %c0_i32_0 : i32, i32
  }
  func.func @transform_7(%arg0: i32) -> (i32, i32, i32) {
    %c0_i32 = arith.constant 0 : i32
    %c0_i32_0 = arith.constant 0 : i32
    %c0_i32_1 = arith.constant 0 : i32
    %c0_i32_2 = arith.constant 0 : i32
    return %c0_i32, %c0_i32_0, %c0_i32_1 : i32, i32, i32
  }
  func.func @transform_8(%arg0: i32) -> (i32, i32) {
    %c0_i32 = arith.constant 0 : i32
    %c0_i32_0 = arith.constant 0 : i32
    %c0_i32_1 = arith.constant 0 : i32
    return %c0_i32, %c0_i32_0 : i32, i32
  }
  func.func @transform_9(%arg0: i32) -> (i32, i32) {
    %c0_i32 = arith.constant 0 : i32
    %c0_i32_0 = arith.constant 0 : i32
    %c0_i32_1 = arith.constant 0 : i32
    return %c0_i32, %c0_i32_0 : i32, i32
  }
  func.func @transform_10(%arg0: i32) -> (i32, i32) {
    %c0_i32 = arith.constant 0 : i32
    %c0_i32_0 = arith.constant 0 : i32
    %c0_i32_1 = arith.constant 0 : i32
    return %c0_i32, %c0_i32_0 : i32, i32
  }
  func.func @transform_11(%arg0: i32) -> (i32, i32, i32) {
    %c0_i32 = arith.constant 0 : i32
    %c0_i32_0 = arith.constant 0 : i32
    %c0_i32_1 = arith.constant 0 : i32
    return %arg0, %c0_i32, %c0_i32_0 : i32, i32, i32
  }
}

</mosaic_0001>

<bundles_post_ra>
// kernel: model_forward.1
= control target key start
LH: loop header
LB: loop body
LE: loop exit
PB: predicated region body
PF: predicated region fallthrough
CT: control target
= control target key end

     0   :  { %s23125_s0 = inlined_call_operand.vmem [shape: bf16[2,32,96], index: 0, kind: input, shape index: {}]   ;;  %s23126_s1 = inlined_call_operand.hbm [shape: bf16[5,128,1024], index: 1, kind: input, shape index: {}]   ;;  %s23127_s2 = inlined_call_operand.hbm [shape: f32[1,512], index: 2, kind: input, shape index: {}]   ;;  %s23128_s3 = inlined_call_operand.hbm [shape: bf16[5,640,512], index: 3, kind: input, shape index: {}]   ;;  %s23129_s4 = inlined_call_operand.hbm [shape: f32[1,256], index: 4, kind: input, shape index: {}]   ;;  %s23130_s5 = inlined_call_operand.hbm [shape: bf16[5,384,512], index: 5, kind: input, shape index: {}]   ;;  %s23131_s6 = inlined_call_operand.hbm [shape: f32[1,256], index: 6, kind: input, shape index: {}]   ;;  %s23132_s7 = inlined_call_operand.hbm [shape: bf16[4,256,128], index: 7, kind: input, shape index: {}]   ;;  %s23133_s8 = inlined_call_operand.hbm [shape: f32[1,128], index: 8, kind: input, shape index: {}]   ;;  %s23134_s9 = inlined_call_operand.hbm [shape: bf16[128,128], index: 9, kind: input, shape index: {}]   ;;  %s23135_s10 = inlined_call_operand.hbm [shape: f32[1,128], index: 10, kind: input, shape index: {}]   ;;  %s23136_s11 = inlined_call_operand.hbm [shape: f32[2,1,128], index: 11, kind: output, shape index: {}]  }
   0x1   :  { %23198 = sst [smem:[#allocation36_spill]] %s23127_s2 }
   0x2   :  { %23199 = sst [smem:[#allocation37_spill]] %s23129_s4 }
   0x3   :  { %16 = vsyncpa [#allocation7], 0 }
   0x4   :  { %17 = vsyncpa [#allocation10], 0 }
   0x5   :  { %18 = vsyncpa [#allocation13], 0 }
   0x6   :  { %19 = vsyncpa [#allocation16], 0 }
   0x7   :  { %20 = vsyncpa [#allocation19], 0 }
   0x8   :  { %21 = vsyncpa [#allocation22], 0 }
   0x9   :  { %22 = vsyncpa [#allocation8], 0 }
   0xa   :  { %24 = vsyncpa [#allocation8 + $0x1], 0  ;;  %s21476_s17 = smov 0   ;;  %s21478_s18 = smov 0  }
   0xb   :  { %s21480_s19 = smov 0   ;;  %s21482_s20 = smov 0  }
   0xc LB: > { %23200 = sst [smem:[#allocation31_spill]] %s21380_s17  ;;  %s21497_s21 = sadd.s32 4294967295, %s21392_s20   ;;  %s21392_s20 = sphi %s21482_s20, %s23446_s20   ;;  %s21388_s19 = sphi %s21480_s19, %s23448_s19   ;;  %s21384_s18 = sphi %s21478_s18, %s23450_s18   ;;  %s21380_s17 = sphi %s21476_s17, %s23449_s17  }
   0xd   : > { %23201 = sst [smem:[#allocation32_spill]] %s21388_s19  ;;  %s16536_s22 = sadd.s32 4294967294, %s21392_s20  }
   0xe   : > { %s21501_s23 = sadd.s32 1, %s21392_s20   ;;  %s273_s24 = sadd.s32 1, %s21388_s19 }
   0xf   : > { %23202 = sst [smem:[#allocation33_spill]] %s21501_s23  ;;  %s270_s25 = ssub.s32 %s21392_s20, %s21501_s23 }
  0x10   : > { %p283_p0 = scmp.ne.s32.totalorder %s21388_s19, %s21384_s18  ;;  %p271_p1 = scmp.eq.s32.totalorder %s270_s25, 0 }
  0x11   : > { %p284_p2 = scmp.eq.s32.totalorder %s21497_s21, 1  ;;  %p289_p3 = scmp.ne.s32.totalorder %s21384_s18, %s21380_s17 }
  0x12   : > { %p290_p4 = scmp.eq.s32.totalorder %s16536_s22, 1  ;;  %p16537_p7 = scmp.ge.s32.totalorder %s21392_s20, 1 }
  0x13   : > { %s21512_s26 = scalar_select %p271_p1, %s21388_s19, %s273_s24  }
  0x14   : > { %p21514_p5 = por %p284_p2, %p283_p0  ;;  %p21518_p6 = por %p290_p4, %p289_p3 }
  0x15   : > { %23203 = sst [smem:[#allocation34_spill]] %s21512_s26  ;;  %p297_p8 = scmp.lt.s32.totalorder %s21392_s20, 3 }
  0x16   : > { %s23204_s27 = scalar_select %p21514_p5, 1, 0 }
  0x17   : > { %s23205_s28 = scalar_select %p21518_p6, 1, 0 }
  0x18   : > { %p23140_p9 = scmp.eq.s32.totalorder %s21497_s21, 0  ;;  %p21525_p10 = pnand %p16537_p7, %p297_p8 }
  0x19   : > { %23206 = sst [smem:[#allocation35_spill]] %s23205_s28  ;;  %s21394_s30 = smov [#allocation9]  }
  0x1a   : > { %s23207_s29 = scalar_select %p21525_p10, 1, 0 }
  0x1b   : > { %s323_s12 = sshll.u32 %s21394_s30, 4  ;;  %p18835_p11 = pneg %p21525_p10  ;;  %s324_s12 = int_to_ptr.vmem [resolvable:$true] %s323_s12 }
  0x1c   : > { %s21395_s13 = smov [#allocation12]   ;;  %s21396_s16 = smov [#allocation15]  }
  0x1d   : > { %s347_s14 = sshll.u32 %s21395_s13, 4  ;;  %p21533_p12 = pnand %p23140_p9, %p18835_p11  ;;  %s21537_s14 = int_to_ptr.vmem [resolvable:$true] %s347_s14 }
  0x1e   : > { %s371_s22 = sshll.u32 %s21396_s16, 4  ;;  %s23209_s2 = sld [smem:[#allocation36_spill]]  ;;  %s21539_s22 = int_to_ptr.vmem [resolvable:$true] %s371_s22 }
  0x1f   : > { %p21549_p0 = pneg %p21533_p12 }
  0x24   : > { %s21026_s30 = scalar_lea.hbm %s23209_s2, 64 }
  0x25   : > { %p21027_p13 = scmp.ne.s32.totalorder %s23209_s2, %s21026_s30  ;;  %p21033_p3 = scmp.lt.u32.totalorder %s21026_s30, %s23209_s2 }
  0x27   : > { %p21029_p1 = pnand %p21549_p0, %p21027_p13 }
  0x29   : > { %p21030_p2 = pneg %p21029_p1 }
  0x2b   : > { %p21035_p4 = pnand %p21033_p3, %p21030_p2 }
  0x2d   : > { %21038 = shalt.err (!%p21035_p4)
}
  0x2e   : > { %s21039_s24 = scalar_lea.vmem %s324_s12, 64  ;;  %p21047_p9 = scmp.lt.s32.totalorder %s324_s12, %s324_s12 }
  0x2f   : > { %p21040_p7 = scmp.ne.s32.totalorder %s324_s12, %s21039_s24  ;;  %p21048_p6 = scmp.lt.s32.totalorder %s21039_s24, %s21039_s24 }
  0x31   : > { %p21042_p8 = pnand %p21040_p7, %p21549_p0  ;;  %p21049_p5 = por %p21048_p6, %p21047_p9 }
  0x33   : > { %p21043_p11 = pneg %p21042_p8 }
  0x35   : > { %p21050_p10 = pnand %p21049_p5, %p21043_p11 }
  0x37   : > { %21053 = shalt.err (!%p21050_p10)
}
  0x38   : > { %18841 = dma.hbm_to_vmem [thread:$0]  (!%p21533_p12), %s23209_s2, 64, %s324_s12, [#allocation10]  }
  0x39   : > { %s23211_s4 = sld [smem:[#allocation37_spill]] }
  0x3f   : > { %s21054_s30 = scalar_lea.hbm %s23211_s4, 32 }
  0x40   : > { %p21055_p13 = scmp.ne.s32.totalorder %s23211_s4, %s21054_s30  ;;  %p21061_p5 = scmp.lt.u32.totalorder %s21054_s30, %s23211_s4 }
  0x42   : > { %p21057_p1 = pnand %p21055_p13, %p21549_p0 }
  0x44   : > { %p21058_p6 = pneg %p21057_p1 }
  0x46   : > { %p21063_p9 = pnand %p21061_p5, %p21058_p6 }
  0x48   : > { %21066 = shalt.err (!%p21063_p9)
}
  0x49   : > { %s21067_s12 = scalar_lea.vmem %s21537_s14, 32  ;;  %p21075_p4 = scmp.lt.s32.totalorder %s21537_s14, %s21537_s14 }
  0x4a   : > { %p21068_p10 = scmp.ne.s32.totalorder %s21537_s14, %s21067_s12  ;;  %p21076_p7 = scmp.lt.s32.totalorder %s21067_s12, %s21067_s12 }
  0x4c   : > { %p21070_p2 = pnand %p21068_p10, %p21549_p0  ;;  %p21077_p8 = por %p21076_p7, %p21075_p4 }
  0x4e   : > { %p21071_p3 = pneg %p21070_p2 }
  0x50   : > { %p21078_p11 = pnand %p21077_p8, %p21071_p3 }
  0x52   : > { %21081 = shalt.err (!%p21078_p11)
}
  0x53   : > { %18847 = dma.hbm_to_vmem [thread:$0]  (!%p21533_p12), %s23211_s4, 32, %s21537_s14, [#allocation13]  }
  0x54   : > { %s21082_s23 = scalar_lea.hbm %s23131_s6, 32 }
  0x55   : > { %p21083_p13 = scmp.ne.s32.totalorder %s23131_s6, %s21082_s23  ;;  %p21089_p5 = scmp.lt.u32.totalorder %s21082_s23, %s23131_s6 }
  0x57   : > { %p21085_p1 = pnand %p21083_p13, %p21549_p0 }
  0x59   : > { %p21086_p6 = pneg %p21085_p1 }
  0x5b   : > { %p21091_p9 = pnand %p21089_p5, %p21086_p6 }
  0x5d   : > { %21094 = shalt.err (!%p21091_p9)
}
  0x5e   : > { %s21095_s14 = scalar_lea.vmem %s21539_s22, 32  ;;  %p21103_p4 = scmp.lt.s32.totalorder %s21539_s22, %s21539_s22 }
  0x5f   : > { %p21096_p10 = scmp.ne.s32.totalorder %s21539_s22, %s21095_s14  ;;  %p21104_p7 = scmp.lt.s32.totalorder %s21095_s14, %s21095_s14 }
  0x61   : > { %p21098_p2 = pnand %p21096_p10, %p21549_p0  ;;  %p21105_p8 = por %p21104_p7, %p21103_p4 }
  0x63   : > { %p21099_p3 = pneg %p21098_p2 }
  0x65   : > { %p21106_p11 = pnand %p21105_p8, %p21099_p3 }
  0x67   : > { %21109 = shalt.err (!%p21106_p11)
}
  0x68   : > { %18853 = dma.hbm_to_vmem [thread:$0]  (!%p21533_p12), %s23131_s6, 32, %s21539_s22, [#allocation16]  }
  0x69   : > { %s21397_s28 = smov [#allocation18]   ;;  %s21398_s26 = smov [#allocation6]  }
  0x6a   : > { %s395_s19 = sshll.u32 %s21397_s28, 4  ;;  %s309_s23 = sshll.u32 %s21398_s26, 4  ;;  %s396_s19 = int_to_ptr.vmem [resolvable:$true] %s395_s19  ;;  %s310_s23 = int_to_ptr.vmem [resolvable:$true] %s309_s23 }
  0x6b   : > { %s21110_s16 = scalar_lea.hbm %s23133_s8, 16 }
  0x6c   : > { %p21111_p13 = scmp.ne.s32.totalorder %s23133_s8, %s21110_s16  ;;  %p21117_p5 = scmp.lt.u32.totalorder %s21110_s16, %s23133_s8 }
  0x6e   : > { %p21113_p1 = pnand %p21111_p13, %p21549_p0 }
  0x70   : > { %p21114_p6 = pneg %p21113_p1 }
  0x72   : > { %p21119_p9 = pnand %p21117_p5, %p21114_p6 }
  0x74   : > { %21122 = shalt.err (!%p21119_p9)
}
  0x75   : > { %s21123_s22 = scalar_lea.vmem %s396_s19, 16  ;;  %s21130_s17 = scalar_lea.vmem %s396_s19, 32 }
  0x76   : > { %p21124_p10 = scmp.ne.s32.totalorder %s396_s19, %s21123_s22  ;;  %p21131_p4 = scmp.lt.s32.totalorder %s396_s19, %s396_s19 }
  0x77   : > { %p21132_p7 = scmp.lt.s32.totalorder %s21130_s17, %s21123_s22 }
  0x78   : > { %p21126_p2 = pnand %p21124_p10, %p21549_p0 }
  0x79   : > { %p21133_p8 = por %p21132_p7, %p21131_p4 }
  0x7a   : > { %p21127_p3 = pneg %p21126_p2 }
  0x7c   : > { %p21134_p11 = pnand %p21133_p8, %p21127_p3 }
  0x7e   : > { %21137 = shalt.err (!%p21134_p11)
}
  0x7f   : > { %18859 = dma.hbm_to_vmem [thread:$0]  (!%p21533_p12), %s23133_s8, 16, %s396_s19, [#allocation19]  }
  0x80   : > { %s21138_s30 = scalar_lea.hbm %s23126_s1, 40960 }
  0x81   : > { %p21139_p13 = scmp.ne.s32.totalorder %s23126_s1, %s21138_s30  ;;  %p21145_p5 = scmp.lt.u32.totalorder %s21138_s30, %s23126_s1 }
  0x83   : > { %p21141_p1 = pnand %p21139_p13, %p21549_p0 }
  0x85   : > { %p21142_p6 = pneg %p21141_p1 }
  0x87   : > { %p21147_p9 = pnand %p21145_p5, %p21142_p6 }
  0x89   : > { %21150 = shalt.err (!%p21147_p9)
}
  0x8a   : > { %s21151_s22 = scalar_lea.vmem %s310_s23, 40960  ;;  %p21159_p4 = scmp.lt.s32.totalorder %s310_s23, %s310_s23 }
  0x8b   : > { %p21152_p10 = scmp.ne.s32.totalorder %s310_s23, %s21151_s22  ;;  %p21160_p7 = scmp.lt.s32.totalorder %s21151_s22, %s21151_s22 }
  0x8d   : > { %p21154_p2 = pnand %p21152_p10, %p21549_p0  ;;  %p21161_p8 = por %p21160_p7, %p21159_p4 }
  0x8f   : > { %p21155_p3 = pneg %p21154_p2 }
  0x91   : > { %p21162_p11 = pnand %p21161_p8, %p21155_p3 }
  0x93   : > { %21165 = shalt.err (!%p21162_p11)
}
  0x94   : > { %s21399_s19 = smov 512   ;;  %s21400_s17 = smov 32  }
  0x95   : > { %18838 = dma.hbm_to_vmem [thread:$0]  (!%p21533_p12), %s23126_s1, 40960, %s310_s23, [#allocation7], %s21399_s19, %s21399_s19, %s21400_s17  }
  0x96   : > { %s21401_s2 = smov [#allocation11]   ;;  %s21166_s24 = scalar_lea.hbm %s23128_s3, 102400 }
  0x97   : > { %s333_s25 = sshll.u32 %s21401_s2, 4  ;;  %p21167_p13 = scmp.ne.s32.totalorder %s23128_s3, %s21166_s24  ;;  %s334_s25 = int_to_ptr.vmem [resolvable:$true] %s333_s25 }
  0x98   : > { %p21173_p5 = scmp.lt.u32.totalorder %s21166_s24, %s23128_s3 }
  0x99   : > { %p21169_p1 = pnand %p21167_p13, %p21549_p0 }
  0x9b   : > { %p21170_p6 = pneg %p21169_p1 }
  0x9d   : > { %p21175_p9 = pnand %p21173_p5, %p21170_p6 }
  0x9f   : > { %21178 = shalt.err (!%p21175_p9)
}
  0xa0   : > { %s21179_s23 = scalar_lea.vmem %s334_s25, 102400  ;;  %p21187_p4 = scmp.lt.s32.totalorder %s334_s25, %s334_s25 }
  0xa1   : > { %p21180_p10 = scmp.ne.s32.totalorder %s334_s25, %s21179_s23  ;;  %p21188_p7 = scmp.lt.s32.totalorder %s21179_s23, %s21179_s23 }
  0xa3   : > { %p21182_p2 = pnand %p21180_p10, %p21549_p0  ;;  %p21189_p8 = por %p21188_p7, %p21187_p4 }
  0xa5   : > { %p21183_p3 = pneg %p21182_p2 }
  0xa7   : > { %p21190_p11 = pnand %p21189_p8, %p21183_p3 }
  0xa9   : > { %21193 = shalt.err (!%p21190_p11)
}
  0xaa   : > { %s21402_s19 = smov 256   ;;  %s21403_s17 = smov 16  }
  0xab   : > { %18844 = dma.hbm_to_vmem [thread:$0]  (!%p21533_p12), %s23128_s3, 102400, %s334_s25, [#allocation10], %s21402_s19, %s21402_s19, %s21403_s17  }
  0xac   : > { %s21404_s26 = smov [#allocation14]   ;;  %s21405_s30 = smov [#allocation17]  }
  0xad   : > { %s357_s2 = sshll.u32 %s21404_s26, 4  ;;  %s381_s16 = sshll.u32 %s21405_s30, 4  ;;  %s358_s2 = int_to_ptr.vmem [resolvable:$true] %s357_s2  ;;  %s21665_s16 = int_to_ptr.vmem [resolvable:$true] %s381_s16 }
  0xae   : > { %s21194_s12 = scalar_lea.hbm %s23130_s5, 61440 }
  0xaf   : > { %p21195_p13 = scmp.ne.s32.totalorder %s23130_s5, %s21194_s12  ;;  %p21201_p5 = scmp.lt.u32.totalorder %s21194_s12, %s23130_s5 }
  0xb1   : > { %p21197_p1 = pnand %p21195_p13, %p21549_p0 }
  0xb3   : > { %p21198_p6 = pneg %p21197_p1 }
  0xb5   : > { %p21203_p9 = pnand %p21201_p5, %p21198_p6 }
  0xb7   : > { %21206 = shalt.err (!%p21203_p9)
}
  0xb8   : > { %s21207_s28 = scalar_lea.vmem %s358_s2, 61440  ;;  %p21215_p4 = scmp.lt.s32.totalorder %s358_s2, %s358_s2 }
  0xb9   : > { %p21208_p10 = scmp.ne.s32.totalorder %s358_s2, %s21207_s28  ;;  %p21216_p7 = scmp.lt.s32.totalorder %s21207_s28, %s21207_s28 }
  0xbb   : > { %p21210_p2 = pnand %p21208_p10, %p21549_p0  ;;  %p21217_p8 = por %p21216_p7, %p21215_p4 }
  0xbd   : > { %p21211_p3 = pneg %p21210_p2 }
  0xbf   : > { %p21218_p11 = pnand %p21217_p8, %p21211_p3 }
  0xc1   : > { %21221 = shalt.err (!%p21218_p11)
}
  0xc2   : > { %18850 = dma.hbm_to_vmem [thread:$0]  (!%p21533_p12), %s23130_s5, 61440, %s358_s2, [#allocation13], %s21402_s19, %s21402_s19, %s21403_s17  }
  0xc3   : > { %s21222_s12 = scalar_lea.hbm %s23132_s7, 8192 }
  0xc4   : > { %p21223_p13 = scmp.ne.s32.totalorder %s23132_s7, %s21222_s12  ;;  %p21229_p5 = scmp.lt.u32.totalorder %s21222_s12, %s23132_s7 }
  0xc6   : > { %p21225_p1 = pnand %p21223_p13, %p21549_p0 }
  0xc8   : > { %p21226_p6 = pneg %p21225_p1 }
  0xca   : > { %p21231_p9 = pnand %p21229_p5, %p21226_p6 }
  0xcc   : > { %21234 = shalt.err (!%p21231_p9)
}
  0xcd   : > { %s21235_s19 = scalar_lea.vmem %s21665_s16, 8192  ;;  %p21243_p4 = scmp.lt.s32.totalorder %s21665_s16, %s21665_s16 }
  0xce   : > { %p21236_p10 = scmp.ne.s32.totalorder %s21665_s16, %s21235_s19  ;;  %p21244_p7 = scmp.lt.s32.totalorder %s21235_s19, %s21235_s19 }
  0xd0   : > { %p21238_p2 = pnand %p21236_p10, %p21549_p0  ;;  %p21245_p8 = por %p21244_p7, %p21243_p4 }
  0xd2   : > { %p21239_p3 = pneg %p21238_p2 }
  0xd4   : > { %p21246_p11 = pnand %p21245_p8, %p21239_p3 }
  0xd6   : > { %21249 = shalt.err (!%p21246_p11)
}
  0xd7   : > { %s21406_s17 = smov 64   ;;  %s21407_s2 = smov 4  }
  0xd8   : > { %18856 = dma.hbm_to_vmem [thread:$0]  (!%p21533_p12), %s23132_s7, 8192, %s21665_s16, [#allocation16], %s21406_s17, %s21406_s17, %s21407_s2  }
  0xd9   : > { %s21408_s30 = smov [#allocation20]   ;;  %s21409_s14 = smov [#allocation21]  }
  0xda   : > { %s405_s24 = sshll.u32 %s21408_s30, 4  ;;  %s419_s12 = sshll.u32 %s21409_s14, 4  ;;  %s406_s24 = int_to_ptr.vmem [resolvable:$true] %s405_s24  ;;  %s21708_s12 = int_to_ptr.vmem [resolvable:$true] %s419_s12 }
  0xdb   : > { %s21250_s4 = scalar_lea.hbm %s23134_s9, 1024 }
  0xdc   : > { %p21251_p13 = scmp.ne.s32.totalorder %s23134_s9, %s21250_s4  ;;  %p21257_p5 = scmp.lt.u32.totalorder %s21250_s4, %s23134_s9 }
  0xde   : > { %p21253_p1 = pnand %p21251_p13, %p21549_p0 }
  0xe0   : > { %p21254_p6 = pneg %p21253_p1 }
  0xe2   : > { %p21259_p9 = pnand %p21257_p5, %p21254_p6 }
  0xe4   : > { %21262 = shalt.err (!%p21259_p9)
}
  0xe5   : > { %s21263_s26 = scalar_lea.vmem %s406_s24, 1024  ;;  %p21271_p4 = scmp.lt.s32.totalorder %s406_s24, %s406_s24 }
  0xe6   : > { %p21264_p10 = scmp.ne.s32.totalorder %s406_s24, %s21263_s26  ;;  %p21272_p7 = scmp.lt.s32.totalorder %s21263_s26, %s21263_s26 }
  0xe8   : > { %p21266_p2 = pnand %p21264_p10, %p21549_p0  ;;  %p21273_p8 = por %p21272_p7, %p21271_p4 }
  0xea   : > { %p21267_p3 = pneg %p21266_p2 }
  0xec   : > { %p21274_p11 = pnand %p21273_p8, %p21267_p3 }
  0xee   : > { %21277 = shalt.err (!%p21274_p11)
}
  0xef   : > { %18862 = dma.hbm_to_vmem [thread:$0]  (!%p21533_p12), %s23134_s9, 1024, %s406_s24, [#allocation19], %s21406_s17, %s21406_s17, %s21407_s2  }
  0xf0   : > { %s21278_s4 = scalar_lea.hbm %s23135_s10, 16 }
  0xf1   : > { %p21279_p13 = scmp.ne.s32.totalorder %s23135_s10, %s21278_s4  ;;  %p21285_p5 = scmp.lt.u32.totalorder %s21278_s4, %s23135_s10 }
  0xf3   : > { %p21281_p1 = pnand %p21279_p13, %p21549_p0 }
  0xf5   : > { %p21282_p6 = pneg %p21281_p1 }
  0xf7   : > { %p21287_p9 = pnand %p21285_p5, %p21282_p6 }
  0xf9   : > { %21290 = shalt.err (!%p21287_p9)
}
  0xfa   : > { %s21291_s17 = scalar_lea.vmem %s21708_s12, 16  ;;  %s21298_s2 = scalar_lea.vmem %s21708_s12, 32 }
  0xfb   : > { %p21292_p10 = scmp.ne.s32.totalorder %s21708_s12, %s21291_s17  ;;  %p21299_p4 = scmp.lt.s32.totalorder %s21708_s12, %s21708_s12 }
  0xfc   : > { %p21300_p7 = scmp.lt.s32.totalorder %s21298_s2, %s21291_s17 }
  0xfd   : > { %p21294_p2 = pnand %p21292_p10, %p21549_p0 }
  0xfe   : > { %p21301_p8 = por %p21300_p7, %p21299_p4 }
  0xff   : > { %p21295_p3 = pneg %p21294_p2 }
 0x101   : > { %p21302_p11 = pnand %p21301_p8, %p21295_p3 }
 0x103   : > { %21305 = shalt.err (!%p21302_p11)
}
 0x104   : > { %18865 = dma.hbm_to_vmem [thread:$0]  (!%p21533_p12), %s23135_s10, 16, %s21708_s12, [#allocation22]  }
 0x105   : > { %p23212_p13 = scmp.ne.s32.totalorder %s23207_s29, 0 }
 0x106   : > { %p23213_p0 = scmp.eq.s32.totalorder (!%p23212_p13), %s21497_s21, 0 }
 0x107   : > { %440 = sbr.rel (%p23212_p13) target bundleno = 3404 (0xd4c), region = 64 }
 0x10e   : > { %21351 = dma.done.wait (%p23213_p0), [#allocation7], 40960   ;;  %p23214_p1 = pmov %p23213_p0 }
 0x10f   : > { %p23215_p6 = pmov %p23213_p0 }
 0x110   : > { %21353 = vsyncadd (%p23214_p1), [#allocation7], 4294926336 }
 0x111   : > { %21355 = dma.done.wait (%p23215_p6), [#allocation10], 102464   ;;  %p23216_p5 = pmov %p23213_p0 }
 0x112   : > { %p23217_p9 = pmov %p23213_p0 }
 0x113   : > { %21357 = vsyncadd (%p23216_p5), [#allocation10], 4294864832 }
 0x114   : > { %21359 = dma.done.wait (%p23217_p9), [#allocation13], 61472   ;;  %p23218_p12 = pmov %p23213_p0 }
 0x115   : > { %p23219_p10 = pmov %p23213_p0 }
 0x116   : > { %21361 = vsyncadd (%p23218_p12), [#allocation13], 4294905824 }
 0x117   : > { %21363 = dma.done.wait (%p23219_p10), [#allocation16], 8224   ;;  %p23220_p2 = pmov %p23213_p0 }
 0x118   : > { %p23221_p3 = pmov %p23213_p0 }
 0x119   : > { %21365 = vsyncadd (%p23220_p2), [#allocation16], 4294959072 }
 0x11a   : > { %21367 = dma.done.wait (%p23221_p3), [#allocation19], 1040   ;;  %p23222_p4 = pmov %p23213_p0 }
 0x11b   : > { %p23223_p7 = pmov %p23213_p0 }
 0x11c   : > { %21369 = vsyncadd (%p23222_p4), [#allocation19], 4294966256 }
 0x11d   : > { %21371 = dma.done.wait (%p23223_p7), [#allocation22], 16   ;;  %p23224_p8 = pmov %p23213_p0 }
 0x11e   : > { %p515_p11 = scmp.lt.s32.totalorder %s21497_s21, 1  ;;  %v21410_v0 = vmov 0   ;;  %vm23147_vm0 = vcmask 1040384   ;;  %vm23158_vm1 = vcmask 1044484   ;;  %v654_v9 = vld [vmem:[#allocation6 + $0x200] sm:$0xff]  ;;  %v655_v12 = vld [vmem:[#allocation6 + $0x208] sm:$0xff] }
 0x11f   : > { %21373 = vsyncadd (%p23224_p8), [#allocation22], 4294967280  ;;  %521 = vst [vmem:[#allocation2] sm:$0xf] %v21410_v0  ;;  %1106 = vmatprep.mubr.bf16.mxu0 %v21410_v0  ;;  %1159 = vmatprep.mubr.bf16.mxu1 %v21410_v0  ;;  %v658_v11 = vld [vmem:[#allocation6 + $0x220] sm:$0xff]  ;;  %v659_v13 = vld [vmem:[#allocation6 + $0x228] sm:$0xff] }
 0x120   : > { %s516_s29 = scalar_select %p515_p11, %s21497_s21, 1  ;;  %522 = vst [vmem:[#allocation2 + $0x4] sm:$0xf] %v21410_v0  ;;  %523 = vst [vmem:[#allocation2 + $0x8] sm:$0xf] %v21410_v0  ;;  %v16566_v17 = vcombine.high %v654_v9, %v658_v11  ;;  %v662_v18 = vld [vmem:[#allocation6 + $0x240] sm:$0xff]  ;;  %v16568_v21 = vcombine.high %v655_v12, %v659_v13  ;;  %v16565_v22 = vcombine.low %v654_v9, %v658_v11 }
 0x121   : > { %524 = vst [vmem:[#allocation2 + $0xc] sm:$0xf] %v21410_v0  ;;  %525 = vst [vmem:[#allocation2 + $0x10] sm:$0x3] %v21410_v0  ;;  %s21411_s14 = smov 6   ;;  %v666_v19 = vld [vmem:[#allocation6 + $0x260] sm:$0xff]  ;;  %v16567_v23 = vcombine.low %v655_v12, %v659_v13 }
 0x122   : > { %526 = vst [vmem:[#allocation3] sm:$0xff] %v21410_v0  ;;  %527 = vst [vmem:[#allocation3 + $0x8] sm:$0xff] %v21410_v0  ;;  %s18323_s15 = sshll.u32 %s516_s29, 4  ;;  %v663_v20 = vld [vmem:[#allocation6 + $0x248] sm:$0xff]  ;;  %1074 = vmatprep.subr.bf16.mxu0 %v16566_v17  ;;  %v16574_v27 = vcombine.high %v662_v18, %v666_v19  ;;  %v670_v28 = vld [vmem:[#allocation6 + $0x280] sm:$0xff]  ;;  %1127 = vmatprep.subr.bf16.mxu1 %v16568_v21  ;;  %v16573_v35 = vcombine.low %v662_v18, %v666_v19  ;;  %vm576_vm3 = vcmask 830513  }
 0x123   : > { %528 = vst [vmem:[#allocation3 + $0x10] sm:$0xf] %v21410_v0  ;;  %529 = vst [vmem:[#allocation3 + $0x14] sm:$0xff] %v21410_v0  ;;  %s519_s30 = scalar_lea.vmem %s23125_s0, %s18323_s15  ;;  %v667_v24 = vld [vmem:[#allocation6 + $0x268] sm:$0xff]  ;;  %v674_v29 = vld [vmem:[#allocation6 + $0x2a0] sm:$0xff]  ;;  %1075 = vmatpush1.bf16.msra.mxu0 %v16565_v22  ;;  %1128 = vmatpush1.bf16.msra.mxu1 %v16567_v23  ;;  %vm578_vm4 = vcmask 830512  }
 0x124   : > { %530 = vst [vmem:[#allocation3 + $0x1c] sm:$0xff] %v21410_v0  ;;  %531 = vst [vmem:[#allocation3 + $0x24] sm:$0xf] %v21410_v0  ;;  %v539_v1 = vld [vmem:[%s519_s30] sm:$0xf]  ;;  %v16576_v30 = vcombine.high %v663_v20, %v667_v24  ;;  %v671_v31 = vld [vmem:[#allocation6 + $0x288] sm:$0xff]  ;;  %1076 = vmatprep.subr.bf16.mxu0 %v16574_v27  ;;  %v16575_v36 = vcombine.low %v663_v20, %v667_v24  ;;  %v16582_v37 = vcombine.high %v670_v28, %v674_v29 }
 0x125   : > { %532 = vst [vmem:[#allocation3 + $0x28] sm:$0x33] %v21410_v0  ;;  %533 = vst [vmem:[#allocation3 + $0x30] sm:$0x33] %v21410_v0  ;;  %v540_v2 = vld [vmem:[%s519_s30 + $0x4] sm:$0xf]  ;;  %v16581_v43 = vcombine.low %v670_v28, %v674_v29 }
 0x126   : > { %534 = vst [vmem:[#allocation3 + $0x38] sm:$0x3] %v21410_v0  ;;  %535 = vst [vmem:[#allocation4] sm:$0xff] %v21410_v0  ;;  %v541_v3 = vld [vmem:[%s519_s30 + $0x8] sm:$0xf]  ;;  %v550_v4 = vrot.slane %v539_v1, 7  ;;  %1129 = vmatprep.subr.bf16.mxu1 %v16576_v30 }
 0x127   : > { %536 = vst [vmem:[#allocation4 + $0x8] sm:$0xf] %v21410_v0  ;;  %537 = vst [vmem:[#allocation4 + $0xc] sm:$0x33] %v21410_v0  ;;  %v552_v6 = vrot.slane %v540_v2, 7  ;;  %v555_v7 = vrot.slane %v541_v3, 7  ;;  %1077 = vmatpush1.bf16.msra.mxu0 %v16573_v35  ;;  %1130 = vmatpush1.bf16.msra.mxu1 %v16575_v36 }
 0x128   : > { %538 = vst [vmem:[#allocation4 + $0x14] sm:$0x3] %v21410_v0  ;;  %vm21805_vm2 = vmor %vm23147_vm0, %vm23158_vm1  ;;  %v542_v8 = vld [vmem:[%s519_s30 + $0xc] sm:$0xf]  ;;  %561 = vrot.lane.b32.xlu0 %v550_v4, %s21411_s14  ;;  %v551_v14 = vrot.slane %v550_v4, 4  ;;  %v675_v32 = vld [vmem:[#allocation6 + $0x2a8] sm:$0xff]  ;;  %1078 = vmatprep.subr.bf16.mxu0 %v16582_v37 }
 0x129   : > { %v558_v10 = vrot.slane %v542_v8, 7  ;;  %v554_v15 = vrot.slane %v552_v6, 4  ;;  %v557_v16 = vrot.slane %v555_v7, 4  ;;  %v16584_v38 = vcombine.high %v671_v31, %v675_v32  ;;  %v678_v39 = vld [vmem:[#allocation6 + $0x2c0] sm:$0xff]  ;;  %v679_v41 = vld [vmem:[#allocation6 + $0x2c8] sm:$0xff]  ;;  %v21820_v47 = vld [vmem:[#allocation6 + $0x210] sm:$0xff] }
 0x12a   : > { %v553_v26 = vsel %vm21805_vm2, %v551_v14, %v552_v6  ;;  %v682_v40 = vld [vmem:[#allocation6 + $0x2e0] sm:$0xff]  ;;  %v683_v42 = vld [vmem:[#allocation6 + $0x2e8] sm:$0xff]  ;;  %v16583_v44 = vcombine.low %v671_v31, %v675_v32  ;;  %v21822_v48 = vld [vmem:[#allocation6 + $0x230] sm:$0xff]  ;;  %vm582_vm5 = vcmask 827440   ;;  %vm23156_vm6 = vsmask.f32 7424 }
 0x12b   : > { %v556_v25 = vsel %vm21805_vm2, %v554_v15, %v555_v7  ;;  %v559_v33 = vsel %vm21805_vm2, %v557_v16, %v558_v10  ;;  %v560_v34 = vrot.slane %v558_v10, 4  ;;  %v16590_v45 = vcombine.high %v678_v39, %v682_v40  ;;  %v686_v46 = vld [vmem:[#allocation6 + $0x300] sm:$0xff]  ;;  %1131 = vmatprep.subr.bf16.mxu1 %v16584_v38  ;;  %v21824_v51 = vld [vmem:[#allocation6 + $0x218] sm:$0xff]  ;;  %v687_v53 = vld [vmem:[#allocation6 + $0x308] sm:$0xff]  ;;  %1079 = vmatpush1.bf16.msra.mxu0 %v16581_v43  ;;  %s21412_s22 = smov 64   ;;  %s513_s23 = sand.u32 1, %s21384_s18  }
 0x12c   : > { %565 = vrot.lane.b32.xlu1 %v556_v25, %s21411_s14  ;;  %563 = vrot.lane.b32.xlu0 %v553_v26, %s21411_s14  ;;  %v16592_v49 = vcombine.high %v679_v41, %v683_v42  ;;  %v690_v50 = vld [vmem:[#allocation6 + $0x320] sm:$0xff]  ;;  %v21826_v52 = vld [vmem:[#allocation6 + $0x238] sm:$0xff]  ;;  %v691_v54 = vld [vmem:[#allocation6 + $0x328] sm:$0xff]  ;;  %v16569_v55 = vcombine.low %v21820_v47, %v21822_v48  ;;  %v16589_v57 = vcombine.low %v678_v39, %v682_v40  ;;  %vm23149_vm7 = vsmask.f32 6400  ;;  %s18320_s4 = sshll.u32 %s21497_s21, 4 }
 0x12d   : > { %v16571_v56 = vcombine.low %v21824_v51, %v21826_v52  ;;  %1132 = vmatpush1.bf16.msra.mxu1 %v16583_v44  ;;  %1080 = vmatprep.subr.bf16.mxu0 %v16590_v45  ;;  %v16591_v58 = vcombine.low %v679_v41, %v683_v42  ;;  %v16598_v59 = vcombine.high %v686_v46, %v690_v50  ;;  %v694_v61 = vld [vmem:[#allocation6 + $0x340] sm:$0xff]  ;;  %v695_v63 = vld [vmem:[#allocation6 + $0x348] sm:$0xff]  ;;  %v664_v40 = vld [vmem:[#allocation6 + $0x250] sm:$0xff]  ;;  %vm23146_vm8 = vcmask 1046528   ;;  %s514_s25 = scalar_lea.vmem [#allocation23], %s513_s23  ;;  %s23083_s17 = scalar_lea.hbm %s23136_s11, %s18320_s4 }
 0x12e   : > { %1133 = vmatprep.subr.bf16.mxu1 %v16592_v49  ;;  %v16600_v60 = vcombine.high %v687_v53, %v691_v54  ;;  %v698_v62 = vld [vmem:[#allocation6 + $0x360] sm:$0xff]  ;;  %v699_v1 = vld [vmem:[#allocation6 + $0x368] sm:$0xff]  ;;  %v16597_v2 = vcombine.low %v686_v46, %v690_v50  ;;  %v16599_v3 = vcombine.low %v687_v53, %v691_v54  ;;  %v16570_v24 = vcombine.high %v21820_v47, %v21822_v48  ;;  %v668_v43 = vld [vmem:[#allocation6 + $0x270] sm:$0xff]  ;;  %s16383_s19 = sshll.u32 %s514_s25, 4  ;;  %s16371_s2 = scalar_lea.sflag [#allocation8], %s513_s23  ;;  %s23085_s19 = int_to_ptr.vmem [resolvable:$true] %s16383_s19 }
 0x12f   : > { %1081 = vmatpush1.bf16.msra.mxu0 %v16589_v57  ;;  %v16606_v4 = vcombine.high %v694_v61, %v698_v62  ;;  %v16608_v5 = vcombine.high %v695_v63, %v699_v1  ;;  %v702_v6 = vld [vmem:[#allocation6 + $0x380] sm:$0xff]  ;;  %v703_v8 = vld [vmem:[#allocation6 + $0x388] sm:$0xff]  ;;  %v16605_v10 = vcombine.low %v694_v61, %v698_v62  ;;  %v16607_v11 = vcombine.low %v695_v63, %v699_v1  ;;  %v665_v44 = vld [vmem:[#allocation6 + $0x258] sm:$0xff]  ;;  %s21306_s21 = scalar_lea.vmem %s23085_s19, 16  ;;  %p23442_p0 = scmp.ne.s32.totalorder %s23204_s27, 0 }
 0x130   : > { %567 = vrot.lane.b32.xlu1 %v559_v33, %s21411_s14  ;;  %569 = vrot.lane.b32.xlu0 %v560_v34, %s21411_s14  ;;  %v706_v7 = vld [vmem:[#allocation6 + $0x3a0] sm:$0xff]  ;;  %v707_v9 = vld [vmem:[#allocation6 + $0x3a8] sm:$0xff]  ;;  %v16572_v25 = vcombine.high %v21824_v51, %v21826_v52  ;;  %v669_v45 = vld [vmem:[#allocation6 + $0x278] sm:$0xff]  ;;  %v16578_v61 = vcombine.high %v664_v40, %v668_v43  ;;  %vm23145_vm9 = vcmask 1045504   ;;  %vm4036_vm10 = vcmask 1042946   ;;  %p21307_p13 = scmp.ne.s32.totalorder %s23085_s19, %s21306_s21  ;;  %s21415_s24 = smov [#allocation23]  }
 0x131   : > { %1134 = vmatpush1.bf16.msra.mxu1 %v16591_v58  ;;  %1082 = vmatprep.subr.bf16.mxu0 %v16598_v59  ;;  %v16614_v12 = vcombine.high %v702_v6, %v706_v7  ;;  %v16616_v13 = vcombine.high %v703_v8, %v707_v9  ;;  %v710_v14 = vld [vmem:[#allocation6 + $0x3c0] sm:$0xff]  ;;  %v711_v16 = vld [vmem:[#allocation6 + $0x3c8] sm:$0xff]  ;;  %v16613_v18 = vcombine.low %v702_v6, %v706_v7  ;;  %v672_v63 = vld [vmem:[#allocation6 + $0x290] sm:$0xff]  ;;  %vm23148_vm11 = vsmask.f32 2304  ;;  %s21310_s26 = sshll.u32 %s21415_s24, 4  ;;  %s21311_s26 = int_to_ptr.vmem [resolvable:$false] %s21310_s26 }
 0x132   : > { %1135 = vmatprep.subr.bf16.mxu1 %v16600_v60  ;;  %v714_v15 = vld [vmem:[#allocation6 + $0x3e0] sm:$0xff]  ;;  %v715_v17 = vld [vmem:[#allocation6 + $0x3e8] sm:$0xff]  ;;  %v16615_v19 = vcombine.low %v703_v8, %v707_v9  ;;  %v16580_v62 = vcombine.high %v665_v44, %v669_v45  ;;  %v16577_v9 = vcombine.low %v664_v40, %v668_v43  ;;  %vm23150_vm12 = vcmask 1046534   ;;  %vm4038_vm15 = vmand %vm4036_vm10, %vm23148_vm11  ;;  %p21308_p1 = pnand %p21307_p13, %p23442_p0  ;;  %s21312_s29 = scalar_lea.vmem %s21311_s26, 32 }
 0x133   : > { %1083 = vmatpush1.bf16.msra.mxu0 %v16597_v2  ;;  %v16622_v20 = vcombine.high %v710_v14, %v714_v15  ;;  %v16624_v21 = vcombine.high %v711_v16, %v715_v17  ;;  %v16621_v22 = vcombine.low %v710_v14, %v714_v15  ;;  %v16623_v23 = vcombine.low %v711_v16, %v715_v17  ;;  %v681_v15 = vld [vmem:[#allocation6 + $0x2d8] sm:$0xff]  ;;  %v692_v17 = vld [vmem:[#allocation6 + $0x330] sm:$0xff]  ;;  %p21313_p5 = scmp.lt.s32.totalorder %s23085_s19, %s21311_s26  ;;  %p21314_p9 = scmp.lt.s32.totalorder %s21312_s29, %s21306_s21 }
 0x134   : > { %1084 = vmatprep.subr.bf16.mxu0 %v16606_v4  ;;  %v673_v4 = vld [vmem:[#allocation6 + $0x298] sm:$0xff]  ;;  %vm23153_vm13 = vcmask 1041921   ;;  %vm23151_vm14 = vsmask.f32 1280  ;;  %vm23152_vm2 = vcmask 1045509   ;;  %p21309_p6 = pneg %p21308_p1 }
 0x135   : > { %1136 = vmatpush1.bf16.msra.mxu1 %v16599_v3  ;;  %v676_v3 = vld [vmem:[#allocation6 + $0x2b0] sm:$0xff]  ;;  %v685_v16 = vld [vmem:[#allocation6 + $0x2f8] sm:$0xff]  ;;  %vm23154_vm0 = vsmask.f32 256  ;;  %p21315_p12 = por %p21314_p9, %p21313_p5 }
 0x136   : > { %1137 = vmatprep.subr.bf16.mxu1 %v16608_v5  ;;  %v677_v5 = vld [vmem:[#allocation6 + $0x2b8] sm:$0xff]  ;;  %v16585_v51 = vcombine.low %v672_v63, %v676_v3 }
 0x137   : > { %1085 = vmatpush1.bf16.msra.mxu0 %v16605_v10  ;;  %v16579_v10 = vcombine.low %v665_v44, %v669_v45  ;;  %v16588_v14 = vcombine.high %v673_v4, %v677_v5  ;;  %v16587_v52 = vcombine.low %v673_v4, %v677_v5  ;;  %v712_v45 = vld [vmem:[#allocation6 + $0x3d0] sm:$0xff]  ;;  %v596_v4 = vld [vmem:[#allocation6 + $0x40] sm:$0xff]  ;;  %p21316_p10 = pnand %p21315_p12, %p21309_p6 }
 0x138   : > { %1086 = vmatprep.subr.bf16.mxu0 %v16614_v12  ;;  %v684_v12 = vld [vmem:[#allocation6 + $0x2f0] sm:$0xff]  ;;  %v600_v5 = vld [vmem:[#allocation6 + $0x60] sm:$0xff] }
 0x139   : > { %1138 = vmatpush1.bf16.msra.mxu1 %v16607_v11  ;;  %v680_v11 = vld [vmem:[#allocation6 + $0x2d0] sm:$0xff] }
 0x13a   : > { %1139 = vmatprep.subr.bf16.mxu1 %v16616_v13  ;;  %v16586_v13 = vcombine.high %v672_v63, %v676_v3  ;;  %v593_v63 = vld [vmem:[#allocation6 + $0x28] sm:$0xff] }
 0x13b   : > { %1087 = vmatpush1.bf16.msra.mxu0 %v16613_v18  ;;  %v689_v18 = vld [vmem:[#allocation6 + $0x318] sm:$0xff] }
 0x13c   : > { %1088 = vmatprep.subr.bf16.mxu0 %v16622_v20 }
 0x13d   : > { %1140 = vmatpush1.bf16.msra.mxu1 %v16615_v19  ;;  %v693_v19 = vld [vmem:[#allocation6 + $0x338] sm:$0xff] }
 0x13e   : > { %1141 = vmatprep.subr.bf16.mxu1 %v16624_v21  ;;  %v16594_v21 = vcombine.high %v680_v11, %v684_v12 }
 0x13f   : > { %1089 = vmatpush1.bf16.msra.mxu0 %v16621_v22  ;;  %v16596_v22 = vcombine.high %v681_v15, %v685_v16 }
 0x140   : > { %1180 = vmatprep.subr.bf16.mxu0 %v16570_v24  ;;  %v16593_v24 = vcombine.low %v680_v11, %v684_v12 }
 0x141   : > { %1142 = vmatpush1.bf16.msra.mxu1 %v16623_v23 }
 0x142   : > { %1233 = vmatprep.subr.bf16.mxu1 %v16572_v25  ;;  %v16595_v25 = vcombine.low %v681_v15, %v685_v16  ;;  %v605_v15 = vld [vmem:[#allocation6 + $0x88] sm:$0xff] }
 0x143   : > { %v609_v16 = vld [vmem:[#allocation6 + $0xa8] sm:$0xff] }
 0x19a   : > { %v562_v26 = vpop.permute.xlu0 %561 }
 0x19b   : > { %577 = vst.msk [vmem:[#allocation2] sm:$0xe] %vm576_vm3, %v562_v26  ;;  %v696_v26 = vld [vmem:[#allocation6 + $0x350] sm:$0xff]  ;;  %vm3888_vm3 = vsmask.f32 5376 }
 0x19e   : > { %v566_v27 = vpop.permute.xlu1 %565  ;;  %v564_v28 = vpop.permute.xlu0 %563 }
 0x19f   : > { %580 = vst.msk [vmem:[#allocation2 + $0x8] sm:$0xf] %vm578_vm4, %v566_v27  ;;  %579 = vst.msk [vmem:[#allocation2 + $0x4] sm:$0xf] %vm578_vm4, %v564_v28  ;;  %v700_v27 = vld [vmem:[#allocation6 + $0x370] sm:$0xff] }
 0x1a0   : > { %v16609_v43 = vcombine.low %v696_v26, %v700_v27 }
 0x1a2   : > { %v568_v29 = vpop.permute.xlu1 %567  ;;  %v570_v30 = vpop.permute.xlu0 %569  ;;  %v584_v31 = vld [vmem:[#allocation2] sm:$0xf] }
 0x1a3   : > { %581 = vst.msk [vmem:[#allocation2 + $0xc] sm:$0xf] %vm578_vm4, %v568_v29  ;;  %v1820_v33 = vld [vmem:[#allocation2] sm:$0xe]  ;;  %v16604_v29 = vcombine.high %v689_v18, %v693_v19  ;;  %vm22188_vm4 = vmand %vm23150_vm12, %vm23149_vm7 }
 0x1a4   : > { %583 = vst.msk [vmem:[#allocation2 + $0x10] sm:$0x1] %vm582_vm5, %v570_v30  ;;  %v697_v30 = vld [vmem:[#allocation6 + $0x358] sm:$0xff]  ;;  %vm3886_vm5 = vmand %vm23153_vm13, %vm23151_vm14  ;;  %vm23160_vm14 = vcmask 1043971  }
 0x1a5   : > { %vm22201_vm11 = vmor %vm22188_vm4, %vm4038_vm15  ;;  %vm23159_vm15 = vcmask 1047559  }
 0x1a6   : > { %v585_v32 = vld [vmem:[#allocation2 + $0x4] sm:$0xf]  ;;  %v586_v36 = vld [vmem:[#allocation2 + $0x8] sm:$0xf] }
 0x1a7   : > { %v21836_v34 = vcombine.low %v584_v31, %v585_v32  ;;  %v21838_v35 = vcombine.low %v1820_v33, %v585_v32  ;;  %v701_v31 = vld [vmem:[#allocation6 + $0x378] sm:$0xff]  ;;  %v16603_v33 = vcombine.low %v689_v18, %v693_v19  ;;  %v16648_v18 = vcombine.high %v605_v15, %v609_v16  ;;  %v613_v19 = vld [vmem:[#allocation6 + $0xc8] sm:$0xff] }
 0x1a8   : > { %v16612_v40 = vcombine.high %v697_v30, %v701_v31  ;;  %v16611_v44 = vcombine.low %v697_v30, %v701_v31 }
 0x1a9   : > { %v735_v38 = vshll.u32 %v21836_v34, 16  ;;  %v733_v41 = vshrl.u32 %v21836_v34, 16  ;;  %v2532_v46 = vshrl.u32 %v21838_v35, 16  ;;  %v2535_v53 = vshll.u32 %v21838_v35, 16 }
 0x1aa   : > { %v587_v37 = vld [vmem:[#allocation2 + $0xc] sm:$0xf] }
 0x1ab   : > { %v21841_v39 = vcombine.low %v586_v36, %v587_v37  ;;  %v737_v42 = vrot.slane %v735_v38, 1  ;;  %v18985_v57 = vld [vmem:[#allocation2 + $0x10] ss:$0 sps:$4 sm:$0x11]   ;;  %v2534_v1 = vrot.slane %v2532_v46, 1  ;;  %v2537_v7 = vrot.slane %v2535_v53, 2 }
 0x1ac   : > { %v748_v6 = vshll.u32 %v18985_v57, 16  ;;  %v704_v36 = vld [vmem:[#allocation6 + $0x390] sm:$0xff]  ;;  %v16610_v38 = vcombine.high %v696_v26, %v700_v27  ;;  %v717_v53 = vld [vmem:[#allocation6 + $0x3f8] sm:$0xff]  ;;  %v624_v26 = vld [vmem:[#allocation6 + $0x120] sm:$0xff] }
 0x1ad   : > { %v740_v49 = vshll.u32 %v21841_v39, 16  ;;  %v744_v50 = vshrl.u32 %v21841_v39, 16  ;;  %v738_v54 = vor.u32 %v737_v42, %v733_v41  ;;  %v708_v37 = vld [vmem:[#allocation6 + $0x3b0] sm:$0xff]  ;;  %v705_v41 = vld [vmem:[#allocation6 + $0x398] sm:$0xff]  ;;  %v621_v27 = vld [vmem:[#allocation6 + $0x108] sm:$0xff] }
 0x1ae   : > { %v750_v48 = vrot.slane %v748_v6, 1  ;;  %v709_v42 = vld [vmem:[#allocation6 + $0x3b8] sm:$0xff]  ;;  %v716_v46 = vld [vmem:[#allocation6 + $0x3f0] sm:$0xff] }
 0x1af   : > { %v742_v58 = vrot.slane %v740_v49, 1  ;;  %v2540_v59 = vrot.slane %v740_v49, 2  ;;  %v2539_v60 = vrot.slane %v744_v50, 1  ;;  %v16620_v49 = vcombine.high %v705_v41, %v709_v42 }
 0x1b0   : > { %v16619_v57 = vcombine.low %v705_v41, %v709_v42  ;;  %v633_v41 = vld [vmem:[#allocation6 + $0x168] sm:$0xff] }
 0x1b1   : > { %v21849_v2 = vsel %vm23156_vm6, %v738_v54, %v742_v58  ;;  %v21851_v8 = vor.u32 %v2540_v59, %v2539_v60  ;;  %v746_v47 = vor.u32 %v744_v50, %v742_v58  ;;  %v713_v50 = vld [vmem:[#allocation6 + $0x3d8] sm:$0xff]  ;;  %v16617_v54 = vcombine.low %v704_v36, %v708_v37  ;;  %v588_v58 = vld [vmem:[#allocation6] sm:$0xff] }
 0x1b2   : > { %1107 = vmatmul.mubr.bf16.vlgmr.msra.gmra.mrb[0].mxu0 %v21849_v2  ;;  %1160 = vmatmul.mubr.bf16.vlgmr.msra.gmra.mrb[0].mxu1 %v21849_v2  ;;  %v592_v59 = vld [vmem:[#allocation6 + $0x20] sm:$0xff]  ;;  %v16626_v60 = vcombine.high %v712_v45, %v716_v46  ;;  %v16627_v3 = vcombine.low %v713_v50, %v717_v53 }
 0x1b3   : > { %1181 = vmatpush1.bf16.msra.mxu0 %v16569_v55  ;;  %1234 = vmatpush1.bf16.msra.mxu1 %v16571_v56  ;;  %v2538_v55 = vor.u32 %v2537_v7, %v2534_v1  ;;  %v688_v56 = vld [vmem:[#allocation6 + $0x310] sm:$0xff]  ;;  %v21868_v23 = vsel %vm23156_vm6, %v746_v47, %v750_v48  ;;  %v16625_v1 = vcombine.low %v712_v45, %v716_v46 }
 0x1b4   : > { %1182 = vmatprep.subr.bf16.mxu0 %v16578_v61  ;;  %1235 = vmatprep.subr.bf16.mxu1 %v16580_v62  ;;  %v16602_v28 = vcombine.high %v688_v56, %v692_v17  ;;  %v16601_v32 = vcombine.low %v688_v56, %v692_v17  ;;  %v16628_v61 = vcombine.high %v713_v50, %v717_v53  ;;  %v589_v62 = vld [vmem:[#allocation6 + $0x8] sm:$0xff]  ;;  %v616_v56 = vld [vmem:[#allocation6 + $0xe0] sm:$0xff] }
 0x1b5   : > { %1116 = vmatprep.mubr.bf16.mxu0 %v21410_v0  ;;  %1169 = vmatprep.mubr.bf16.mxu1 %v21410_v0  ;;  %v21865_v20 = vsel %vm23149_vm7, %v2538_v55, %v21851_v8  ;;  %v16630_v6 = vcombine.high %v588_v58, %v592_v59  ;;  %v16632_v7 = vcombine.high %v589_v62, %v593_v63 }
 0x1b6   : > { %v16629_v11 = vcombine.low %v588_v58, %v592_v59  ;;  %v16631_v12 = vcombine.low %v589_v62, %v593_v63  ;;  %v16638_v47 = vcombine.high %v596_v4, %v600_v5  ;;  %v16637_v55 = vcombine.low %v596_v4, %v600_v5 }
 0x1b7   : > { %1183 = vmatpush1.bf16.msra.mxu0 %v16577_v9  ;;  %1236 = vmatpush1.bf16.msra.mxu1 %v16579_v10  ;;  %v597_v9 = vld [vmem:[#allocation6 + $0x48] sm:$0xff] }
 0x1b8   : > { %1184 = vmatprep.subr.bf16.mxu0 %v16586_v13  ;;  %1237 = vmatprep.subr.bf16.mxu1 %v16588_v14  ;;  %v601_v10 = vld [vmem:[#allocation6 + $0x68] sm:$0xff]  ;;  %v604_v13 = vld [vmem:[#allocation6 + $0x80] sm:$0xff] }
 0x1b9   : > { %v608_v14 = vld [vmem:[#allocation6 + $0xa0] sm:$0xff]  ;;  %v16640_v48 = vcombine.high %v597_v9, %v601_v10 }
 0x1ba   : > { %1117 = vmatmul.mubr.bf16.gmra.mrb[4].mxu0 %v21868_v23  ;;  %1170 = vmatmul.mubr.bf16.gmra.mrb[4].mxu1 %v21868_v23  ;;  %v16646_v17 = vcombine.high %v604_v13, %v608_v14 }
 0x1bb   : > { %1185 = vmatpush1.bf16.msra.mxu0 %v16585_v51  ;;  %1238 = vmatpush1.bf16.msra.mxu1 %v16587_v52  ;;  %v16639_v51 = vcombine.low %v597_v9, %v601_v10  ;;  %v612_v52 = vld [vmem:[#allocation6 + $0xc0] sm:$0xff] }
 0x1bc   : > { %1186 = vmatprep.subr.bf16.mxu0 %v16594_v21  ;;  %1239 = vmatprep.subr.bf16.mxu1 %v16596_v22  ;;  %v617_v21 = vld [vmem:[#allocation6 + $0xe8] sm:$0xff]  ;;  %v16653_v31 = vcombine.low %v612_v52, %v616_v56 }
 0x1bd   : > { %1212 = vmatprep.mubr.bf16.mxu0 %v21410_v0  ;;  %1265 = vmatprep.mubr.bf16.mxu1 %v21410_v0  ;;  %v16618_v0 = vcombine.high %v704_v36, %v708_v37  ;;  %v21876_v22 = vld [vmem:[#allocation3] sm:$0xff]  ;;  %v16656_v30 = vcombine.high %v613_v19, %v617_v21  ;;  %v632_v36 = vld [vmem:[#allocation6 + $0x160] sm:$0xff] }
 0x1bf   : > { %1187 = vmatpush1.bf16.msra.mxu0 %v16593_v24  ;;  %1240 = vmatpush1.bf16.msra.mxu1 %v16595_v25  ;;  %v16647_v24 = vcombine.low %v605_v15, %v609_v16  ;;  %v620_v25 = vld [vmem:[#allocation6 + $0x100] sm:$0xff]  ;;  %v599_v15 = vld [vmem:[#allocation6 + $0x58] sm:$0xff] }
 0x1c0   : > { %1188 = vmatprep.subr.bf16.mxu0 %v16602_v28  ;;  %1241 = vmatprep.subr.bf16.mxu1 %v16604_v29  ;;  %v625_v28 = vld [vmem:[#allocation6 + $0x128] sm:$0xff]  ;;  %v16654_v29 = vcombine.high %v612_v52, %v616_v56  ;;  %v16662_v37 = vcombine.high %v620_v25, %v624_v26  ;;  %v16661_v42 = vcombine.low %v620_v25, %v624_v26  ;;  %v603_v16 = vld [vmem:[#allocation6 + $0x78] sm:$0xff] }
 0x1c1   : > { %v607_v52 = vld [vmem:[#allocation6 + $0x98] sm:$0xff] }
 0x1c2   : > { %v611_v56 = vld [vmem:[#allocation6 + $0xb8] sm:$0xff] }
 0x1c3   : > { %1189 = vmatpush1.bf16.msra.mxu0 %v16601_v32  ;;  %1242 = vmatpush1.bf16.msra.mxu1 %v16603_v33  ;;  %v16655_v32 = vcombine.low %v613_v19, %v617_v21  ;;  %v628_v33 = vld [vmem:[#allocation6 + $0x140] sm:$0xff]  ;;  %v16643_v21 = vcombine.low %v599_v15, %v603_v16  ;;  %v16652_v26 = vcombine.high %v607_v52, %v611_v56 }
 0x1c4   : > { %1190 = vmatprep.subr.bf16.mxu0 %v16610_v38  ;;  %1243 = vmatprep.subr.bf16.mxu1 %v16612_v40  ;;  %v16664_v38 = vcombine.high %v621_v27, %v625_v28  ;;  %v629_v40 = vld [vmem:[#allocation6 + $0x148] sm:$0xff]  ;;  %v16670_v45 = vcombine.high %v628_v33, %v632_v36  ;;  %v16669_v50 = vcombine.low %v628_v33, %v632_v36  ;;  %v623_v33 = vld [vmem:[#allocation6 + $0x118] sm:$0xff] }
 0x1c5   : > { %v16672_v46 = vcombine.high %v629_v40, %v633_v41  ;;  %v16671_v53 = vcombine.low %v629_v40, %v633_v41  ;;  %v627_v36 = vld [vmem:[#allocation6 + $0x138] sm:$0xff] }
 0x1c7   : > { %1191 = vmatpush1.bf16.msra.mxu0 %v16609_v43  ;;  %1244 = vmatpush1.bf16.msra.mxu1 %v16611_v44  ;;  %v636_v43 = vld [vmem:[#allocation6 + $0x180] sm:$0xff] }
 0x1c8   : > { %1192 = vmatprep.subr.bf16.mxu0 %v16618_v0  ;;  %1245 = vmatprep.subr.bf16.mxu1 %v16620_v49  ;;  %v640_v44 = vld [vmem:[#allocation6 + $0x1a0] sm:$0xff]  ;;  %v637_v0 = vld [vmem:[#allocation6 + $0x188] sm:$0xff] }
 0x1c9   : > { %v641_v49 = vld [vmem:[#allocation6 + $0x1a8] sm:$0xff]  ;;  %v16678_v58 = vcombine.high %v636_v43, %v640_v44  ;;  %v16677_v62 = vcombine.low %v636_v43, %v640_v44  ;;  %v16668_v44 = vcombine.high %v623_v33, %v627_v36 }
 0x1ca   : > { %v16680_v59 = vcombine.high %v637_v0, %v641_v49  ;;  %v16679_v63 = vcombine.low %v637_v0, %v641_v49  ;;  %v16667_v49 = vcombine.low %v623_v33, %v627_v36  ;;  %v1847_v33 = vld [vmem:[#allocation6 + $0x4c8] sm:$0xff] }
 0x1cb   : > { %1193 = vmatpush1.bf16.msra.mxu0 %v16617_v54  ;;  %1246 = vmatpush1.bf16.msra.mxu1 %v16619_v57  ;;  %v644_v54 = vld [vmem:[#allocation6 + $0x1c0] sm:$0xff]  ;;  %v1851_v36 = vld [vmem:[#allocation6 + $0x4e8] sm:$0xff] }
 0x1cc   : > { %1194 = vmatprep.subr.bf16.mxu0 %v16626_v60  ;;  %1247 = vmatprep.subr.bf16.mxu1 %v16628_v61  ;;  %v648_v57 = vld [vmem:[#allocation6 + $0x1e0] sm:$0xff]  ;;  %v645_v60 = vld [vmem:[#allocation6 + $0x1c8] sm:$0xff] }
 0x1cd   : > { %v649_v61 = vld [vmem:[#allocation6 + $0x1e8] sm:$0xff]  ;;  %v16686_v4 = vcombine.high %v644_v54, %v648_v57  ;;  %v16685_v9 = vcombine.low %v644_v54, %v648_v57 }
 0x1ce   : > { %v16688_v5 = vcombine.high %v645_v60, %v649_v61  ;;  %v16687_v10 = vcombine.low %v645_v60, %v649_v61 }
 0x1cf   : > { %1195 = vmatpush1.bf16.msra.mxu0 %v16625_v1  ;;  %1248 = vmatpush1.bf16.msra.mxu1 %v16627_v3  ;;  %v590_v1 = vld [vmem:[#allocation6 + $0x10] sm:$0xff] }
 0x1d0   : > { %1608 = vmatprep.subr.bf16.mxu0 %v16630_v6  ;;  %1661 = vmatprep.subr.bf16.mxu1 %v16632_v7  ;;  %v594_v3 = vld [vmem:[#allocation6 + $0x30] sm:$0xff]  ;;  %v591_v6 = vld [vmem:[#allocation6 + $0x18] sm:$0xff] }
 0x1d1   : > { %v595_v7 = vld [vmem:[#allocation6 + $0x38] sm:$0xff] }
 0x1d2   : > { %1213 = vmatmul.mubr.bf16.vlgmr.msra.gmra.mrb[8].mxu0 %v21849_v2  ;;  %1266 = vmatmul.mubr.bf16.vlgmr.msra.gmra.mrb[8].mxu1 %v21849_v2  ;;  %v16645_v2 = vcombine.low %v604_v13, %v608_v14  ;;  %v16634_v13 = vcombine.high %v590_v1, %v594_v3  ;;  %v16636_v14 = vcombine.high %v591_v6, %v595_v7 }
 0x1d3   : > { %1609 = vmatpush1.bf16.msra.mxu0 %v16629_v11  ;;  %1662 = vmatpush1.bf16.msra.mxu1 %v16631_v12  ;;  %v598_v11 = vld [vmem:[#allocation6 + $0x50] sm:$0xff] }
 0x1d4   : > { %1610 = vmatprep.subr.bf16.mxu0 %v16638_v47  ;;  %1663 = vmatprep.subr.bf16.mxu1 %v16640_v48  ;;  %v602_v12 = vld [vmem:[#allocation6 + $0x70] sm:$0xff]  ;;  %v16633_v47 = vcombine.low %v590_v1, %v594_v3  ;;  %v16635_v48 = vcombine.low %v591_v6, %v595_v7 }
 0x1d5   : > { %1222 = vmatprep.mubr.bf16.mxu0 %v21876_v22  ;;  %1275 = vmatprep.mubr.bf16.mxu1 %v21876_v22  ;;  %v16641_v19 = vcombine.low %v598_v11, %v602_v12 }
 0x1d7   : > { %1611 = vmatpush1.bf16.msra.mxu0 %v16637_v55  ;;  %1664 = vmatpush1.bf16.msra.mxu1 %v16639_v51  ;;  %v606_v55 = vld [vmem:[#allocation6 + $0x90] sm:$0xff] }
 0x1d8   : > { %1612 = vmatprep.subr.bf16.mxu0 %v16646_v17  ;;  %1665 = vmatprep.subr.bf16.mxu1 %v16648_v18  ;;  %v610_v51 = vld [vmem:[#allocation6 + $0xb0] sm:$0xff]  ;;  %v16642_v17 = vcombine.high %v598_v11, %v602_v12  ;;  %v16644_v18 = vcombine.high %v599_v15, %v603_v16 }
 0x1d9   : > { %v16650_v25 = vcombine.high %v606_v55, %v610_v51 }
 0x1da   : > { %1223 = vmatmul.mubr.bf16.gmra.mrb[12].mxu0 %v21868_v23  ;;  %1276 = vmatmul.mubr.bf16.gmra.mrb[12].mxu1 %v21868_v23  ;;  %v16663_v23 = vcombine.low %v621_v27, %v625_v28  ;;  %v615_v27 = vld [vmem:[#allocation6 + $0xd8] sm:$0xff] }
 0x1db   : > { %1613 = vmatpush1.bf16.msra.mxu0 %v16645_v2  ;;  %1666 = vmatpush1.bf16.msra.mxu1 %v16647_v24  ;;  %v614_v2 = vld [vmem:[#allocation6 + $0xd0] sm:$0xff]  ;;  %v619_v28 = vld [vmem:[#allocation6 + $0xf8] sm:$0xff] }
 0x1dc   : > { %1614 = vmatprep.subr.bf16.mxu0 %v16654_v29  ;;  %1667 = vmatprep.subr.bf16.mxu1 %v16656_v30  ;;  %v618_v24 = vld [vmem:[#allocation6 + $0xf0] sm:$0xff]  ;;  %v16649_v29 = vcombine.low %v606_v55, %v610_v51  ;;  %v16651_v30 = vcombine.low %v607_v52, %v611_v56  ;;  %v16659_v41 = vcombine.low %v615_v27, %v619_v28  ;;  %v1831_v52 = vld [vmem:[#allocation6 + $0x448] sm:$0xff] }
 0x1dd   : > { %1640 = vmatprep.mubr.bf16.mxu0 %v21876_v22  ;;  %1693 = vmatprep.mubr.bf16.mxu1 %v21876_v22  ;;  %v16657_v40 = vcombine.low %v614_v2, %v618_v24  ;;  %v1835_v56 = vld [vmem:[#allocation6 + $0x468] sm:$0xff] }
 0x1df   : > { %1615 = vmatpush1.bf16.msra.mxu0 %v16653_v31  ;;  %1668 = vmatpush1.bf16.msra.mxu1 %v16655_v32  ;;  %v622_v31 = vld [vmem:[#allocation6 + $0x110] sm:$0xff] }
 0x1e0   : > { %1616 = vmatprep.subr.bf16.mxu0 %v16662_v37  ;;  %1669 = vmatprep.subr.bf16.mxu1 %v16664_v38  ;;  %v626_v32 = vld [vmem:[#allocation6 + $0x130] sm:$0xff]  ;;  %v16658_v37 = vcombine.high %v614_v2, %v618_v24  ;;  %v16660_v38 = vcombine.high %v615_v27, %v619_v28  ;;  %v1839_v2 = vld [vmem:[#allocation6 + $0x488] sm:$0xff]  ;;  %v16704_v28 = vcombine.low %v1831_v52, %v1835_v56 }
 0x1e1   : > { %v16666_v43 = vcombine.high %v622_v31, %v626_v32  ;;  %v16665_v0 = vcombine.low %v622_v31, %v626_v32  ;;  %v1843_v24 = vld [vmem:[#allocation6 + $0x4a8] sm:$0xff] }
 0x1e2   : > { %v16713_v32 = vcombine.high %v1839_v2, %v1843_v24 }
 0x1e3   : > { %1617 = vmatpush1.bf16.msra.mxu0 %v16661_v42  ;;  %1670 = vmatpush1.bf16.msra.mxu1 %v16663_v23  ;;  %v630_v42 = vld [vmem:[#allocation6 + $0x150] sm:$0xff] }
 0x1e4   : > { %1618 = vmatprep.subr.bf16.mxu0 %v16670_v45  ;;  %1671 = vmatprep.subr.bf16.mxu1 %v16672_v46  ;;  %v634_v23 = vld [vmem:[#allocation6 + $0x170] sm:$0xff]  ;;  %v631_v45 = vld [vmem:[#allocation6 + $0x158] sm:$0xff] }
 0x1e5   : > { %v635_v46 = vld [vmem:[#allocation6 + $0x178] sm:$0xff]  ;;  %v16674_v54 = vcombine.high %v630_v42, %v634_v23  ;;  %v16673_v60 = vcombine.low %v630_v42, %v634_v23  ;;  %v1859_v42 = vld [vmem:[#allocation6 + $0x528] sm:$0xff] }
 0x1e6   : > { %v16676_v57 = vcombine.high %v631_v45, %v635_v46  ;;  %v16675_v61 = vcombine.low %v631_v45, %v635_v46  ;;  %v16720_v45 = vcombine.low %v1847_v33, %v1851_v36  ;;  %v1862_v46 = vld [vmem:[#allocation6 + $0x540] sm:$0xff] }
 0x1e7   : > { %1619 = vmatpush1.bf16.msra.mxu0 %v16669_v50  ;;  %1672 = vmatpush1.bf16.msra.mxu1 %v16671_v53  ;;  %v638_v50 = vld [vmem:[#allocation6 + $0x190] sm:$0xff] }
 0x1e8   : > { %1620 = vmatprep.subr.bf16.mxu0 %v16678_v58  ;;  %1673 = vmatprep.subr.bf16.mxu1 %v16680_v59  ;;  %v642_v53 = vld [vmem:[#allocation6 + $0x1b0] sm:$0xff]  ;;  %v639_v58 = vld [vmem:[#allocation6 + $0x198] sm:$0xff] }
 0x1e9   : > { %v643_v59 = vld [vmem:[#allocation6 + $0x1b8] sm:$0xff]  ;;  %v16682_v1 = vcombine.high %v638_v50, %v642_v53  ;;  %v16681_v6 = vcombine.low %v638_v50, %v642_v53  ;;  %v1863_v53 = vld [vmem:[#allocation6 + $0x548] sm:$0xff] }
 0x1ea   : > { %v16684_v3 = vcombine.high %v639_v58, %v643_v59  ;;  %v16683_v7 = vcombine.low %v639_v58, %v643_v59  ;;  %v1870_v59 = vld [vmem:[#allocation6 + $0x580] sm:$0xff] }
 0x1eb   : > { %1621 = vmatpush1.bf16.msra.mxu0 %v16677_v62  ;;  %1674 = vmatpush1.bf16.msra.mxu1 %v16679_v63  ;;  %v646_v62 = vld [vmem:[#allocation6 + $0x1d0] sm:$0xff] }
 0x1ec   : > { %1622 = vmatprep.subr.bf16.mxu0 %v16686_v4  ;;  %1675 = vmatprep.subr.bf16.mxu1 %v16688_v5  ;;  %v650_v63 = vld [vmem:[#allocation6 + $0x1f0] sm:$0xff]  ;;  %v647_v4 = vld [vmem:[#allocation6 + $0x1d8] sm:$0xff] }
 0x1ed   : > { %v651_v5 = vld [vmem:[#allocation6 + $0x1f8] sm:$0xff]  ;;  %v16690_v11 = vcombine.high %v646_v62, %v650_v63  ;;  %v16689_v15 = vcombine.low %v646_v62, %v650_v63  ;;  %v1871_v63 = vld [vmem:[#allocation6 + $0x588] sm:$0xff] }
 0x1ee   : > { %v16692_v12 = vcombine.high %v647_v4, %v651_v5  ;;  %v16691_v16 = vcombine.low %v647_v4, %v651_v5  ;;  %v1878_v5 = vld [vmem:[#allocation6 + $0x5c0] sm:$0xff] }
 0x1ef   : > { %1623 = vmatpush1.bf16.msra.mxu0 %v16685_v9  ;;  %1676 = vmatpush1.bf16.msra.mxu1 %v16687_v10  ;;  %v1822_v9 = vld [vmem:[#allocation6 + $0x400] sm:$0xff] }
 0x1f0   : > { %1714 = vmatprep.subr.bf16.mxu0 %v16634_v13  ;;  %1767 = vmatprep.subr.bf16.mxu1 %v16636_v14  ;;  %v1826_v10 = vld [vmem:[#allocation6 + $0x420] sm:$0xff]  ;;  %v1823_v13 = vld [vmem:[#allocation6 + $0x408] sm:$0xff] }
 0x1f1   : > { %v1827_v14 = vld [vmem:[#allocation6 + $0x428] sm:$0xff]  ;;  %v16695_v55 = vcombine.high %v1822_v9, %v1826_v10 }
 0x1f2   : > { %1641 = vmatmul.mubr.bf16.vlgmr.msra.gmra.mrb[0].mxu0 %v21836_v34  ;;  %1694 = vmatmul.mubr.bf16.vlgmr.msra.gmra.mrb[0].mxu1 %v21836_v34  ;;  %v16697_v51 = vcombine.high %v1823_v13, %v1827_v14 }
 0x1f3   : > { %1715 = vmatpush1.bf16.msra.mxu0 %v16633_v47  ;;  %1768 = vmatpush1.bf16.msra.mxu1 %v16635_v48  ;;  %v1830_v47 = vld [vmem:[#allocation6 + $0x440] sm:$0xff] }
 0x1f4   : > { %1716 = vmatprep.subr.bf16.mxu0 %v16642_v17  ;;  %1769 = vmatprep.subr.bf16.mxu1 %v16644_v18  ;;  %v1834_v48 = vld [vmem:[#allocation6 + $0x460] sm:$0xff]  ;;  %v16694_v17 = vcombine.low %v1822_v9, %v1826_v10  ;;  %v16696_v18 = vcombine.low %v1823_v13, %v1827_v14  ;;  %v1879_v10 = vld [vmem:[#allocation6 + $0x5c8] sm:$0xff]  ;;  %v1824_v14 = vld [vmem:[#allocation6 + $0x410] sm:$0xff] }
 0x1f5   : > { %1650 = vmatprep.mubr.bf16.mxu0 %v21876_v22  ;;  %1703 = vmatprep.mubr.bf16.mxu1 %v21876_v22  ;;  %v16702_v27 = vcombine.low %v1830_v47, %v1834_v48 }
 0x1f7   : > { %1717 = vmatpush1.bf16.msra.mxu0 %v16641_v19  ;;  %1770 = vmatpush1.bf16.msra.mxu1 %v16643_v21  ;;  %v1838_v19 = vld [vmem:[#allocation6 + $0x480] sm:$0xff] }
 0x1f8   : > { %1718 = vmatprep.subr.bf16.mxu0 %v16650_v25  ;;  %1771 = vmatprep.subr.bf16.mxu1 %v16652_v26  ;;  %v1842_v21 = vld [vmem:[#allocation6 + $0x4a0] sm:$0xff]  ;;  %v16703_v25 = vcombine.high %v1830_v47, %v1834_v48  ;;  %v16705_v26 = vcombine.high %v1831_v52, %v1835_v56  ;;  %v1825_v48 = vld [vmem:[#allocation6 + $0x418] sm:$0xff]  ;;  %v1832_v56 = vld [vmem:[#allocation6 + $0x450] sm:$0xff] }
 0x1f9   : > { %v16711_v31 = vcombine.high %v1838_v19, %v1842_v21 }
 0x1fa   : > { %1651 = vmatmul.mubr.bf16.gmra.mrb[4].mxu0 %v21841_v39  ;;  %1704 = vmatmul.mubr.bf16.gmra.mrb[4].mxu1 %v21841_v39 }
 0x1fb   : > { %1719 = vmatpush1.bf16.msra.mxu0 %v16649_v29  ;;  %1772 = vmatpush1.bf16.msra.mxu1 %v16651_v30  ;;  %v1846_v29 = vld [vmem:[#allocation6 + $0x4c0] sm:$0xff] }
 0x1fc   : > { %1720 = vmatprep.subr.bf16.mxu0 %v16658_v37  ;;  %1773 = vmatprep.subr.bf16.mxu1 %v16660_v38  ;;  %v1850_v30 = vld [vmem:[#allocation6 + $0x4e0] sm:$0xff]  ;;  %v16710_v37 = vcombine.low %v1838_v19, %v1842_v21  ;;  %v1833_v21 = vld [vmem:[#allocation6 + $0x458] sm:$0xff] }
 0x1fd   : > { %1746 = vmatprep.mubr.bf16.mxu0 %v21876_v22  ;;  %1799 = vmatprep.mubr.bf16.mxu1 %v21876_v22  ;;  %v1854_v38 = vld [vmem:[#allocation6 + $0x500] sm:$0xff]  ;;  %v16719_v23 = vcombine.high %v1846_v29, %v1850_v30 }
 0x1ff   : > { %1721 = vmatpush1.bf16.msra.mxu0 %v16657_v40  ;;  %1774 = vmatpush1.bf16.msra.mxu1 %v16659_v41  ;;  %v1858_v40 = vld [vmem:[#allocation6 + $0x520] sm:$0xff]  ;;  %v1855_v41 = vld [vmem:[#allocation6 + $0x508] sm:$0xff] }
 0x200   : > { %1722 = vmatprep.subr.bf16.mxu0 %v16666_v43  ;;  %1775 = vmatprep.subr.bf16.mxu1 %v16668_v44  ;;  %v16721_v43 = vcombine.high %v1847_v33, %v1851_v36  ;;  %v16718_v44 = vcombine.low %v1846_v29, %v1850_v30  ;;  %v16729_v50 = vcombine.high %v1855_v41, %v1859_v42  ;;  %v1844_v29 = vld [vmem:[#allocation6 + $0x4b0] sm:$0xff]  ;;  %v1841_v30 = vld [vmem:[#allocation6 + $0x498] sm:$0xff] }
 0x201   : > { %v16728_v58 = vcombine.low %v1855_v41, %v1859_v42  ;;  %v1849_v42 = vld [vmem:[#allocation6 + $0x4d8] sm:$0xff] }
 0x203   : > { %1723 = vmatpush1.bf16.msra.mxu0 %v16665_v0  ;;  %1776 = vmatpush1.bf16.msra.mxu1 %v16667_v49  ;;  %v1866_v0 = vld [vmem:[#allocation6 + $0x560] sm:$0xff]  ;;  %v16727_v49 = vcombine.high %v1854_v38, %v1858_v40 }
 0x204   : > { %1724 = vmatprep.subr.bf16.mxu0 %v16674_v54  ;;  %1777 = vmatprep.subr.bf16.mxu1 %v16676_v57  ;;  %v1867_v54 = vld [vmem:[#allocation6 + $0x568] sm:$0xff]  ;;  %v16726_v57 = vcombine.low %v1854_v38, %v1858_v40  ;;  %v1852_v38 = vld [vmem:[#allocation6 + $0x4f0] sm:$0xff] }
 0x205   : > { %v16737_v62 = vcombine.high %v1863_v53, %v1867_v54  ;;  %v16736_v4 = vcombine.low %v1863_v53, %v1867_v54  ;;  %v1861_v53 = vld [vmem:[#allocation6 + $0x538] sm:$0xff] }
 0x207   : > { %1725 = vmatpush1.bf16.msra.mxu0 %v16673_v60  ;;  %1778 = vmatpush1.bf16.msra.mxu1 %v16675_v61  ;;  %v1874_v60 = vld [vmem:[#allocation6 + $0x5a0] sm:$0xff]  ;;  %v16735_v61 = vcombine.high %v1862_v46, %v1866_v0 }
 0x208   : > { %1726 = vmatprep.subr.bf16.mxu0 %v16682_v1  ;;  %1779 = vmatprep.subr.bf16.mxu1 %v16684_v3  ;;  %v1875_v1 = vld [vmem:[#allocation6 + $0x5a8] sm:$0xff]  ;;  %v16734_v3 = vcombine.low %v1862_v46, %v1866_v0  ;;  %v1856_v0 = vld [vmem:[#allocation6 + $0x510] sm:$0xff] }
 0x209   : > { %v16745_v9 = vcombine.high %v1871_v63, %v1875_v1  ;;  %v16744_v13 = vcombine.low %v1871_v63, %v1875_v1  ;;  %v1865_v1 = vld [vmem:[#allocation6 + $0x558] sm:$0xff] }
 0x20b   : > { %1727 = vmatpush1.bf16.msra.mxu0 %v16681_v6  ;;  %1780 = vmatpush1.bf16.msra.mxu1 %v16683_v7  ;;  %v1882_v6 = vld [vmem:[#allocation6 + $0x5e0] sm:$0xff]  ;;  %v16743_v7 = vcombine.high %v1870_v59, %v1874_v60 }
 0x20c   : > { %1728 = vmatprep.subr.bf16.mxu0 %v16690_v11  ;;  %1781 = vmatprep.subr.bf16.mxu1 %v16692_v12  ;;  %v1883_v11 = vld [vmem:[#allocation6 + $0x5e8] sm:$0xff]  ;;  %v16742_v12 = vcombine.low %v1870_v59, %v1874_v60  ;;  %v1864_v60 = vld [vmem:[#allocation6 + $0x550] sm:$0xff] }
 0x20d   : > { %v16753_v47 = vcombine.high %v1879_v10, %v1883_v11  ;;  %v16752_v52 = vcombine.low %v1879_v10, %v1883_v11 }
 0x20f   : > { %1729 = vmatpush1.bf16.msra.mxu0 %v16689_v15  ;;  %1782 = vmatpush1.bf16.msra.mxu1 %v16691_v16  ;;  %v1828_v15 = vld [vmem:[#allocation6 + $0x430] sm:$0xff]  ;;  %v16751_v16 = vcombine.high %v1878_v5, %v1882_v6 }
 0x210   : > { %2217 = vmatprep.subr.bf16.mxu0 %v16695_v55  ;;  %2270 = vmatprep.subr.bf16.mxu1 %v16697_v51  ;;  %v1829_v55 = vld [vmem:[#allocation6 + $0x438] sm:$0xff]  ;;  %v16750_v51 = vcombine.low %v1878_v5, %v1882_v6 }
 0x211   : > { %v16701_v19 = vcombine.high %v1825_v48, %v1829_v55 }
 0x212   : > { %1747 = vmatmul.mubr.bf16.vlgmr.msra.gmra.mrb[8].mxu0 %v21836_v34  ;;  %1800 = vmatmul.mubr.bf16.vlgmr.msra.gmra.mrb[8].mxu1 %v21836_v34  ;;  %v16712_v34 = vcombine.low %v1839_v2, %v1843_v24  ;;  %v1837_v2 = vld [vmem:[#allocation6 + $0x478] sm:$0xff]  ;;  %v1891_v24 = vrot.slane %v21841_v39, 1 }
 0x213   : > { %2218 = vmatpush1.bf16.msra.mxu0 %v16694_v17  ;;  %2271 = vmatpush1.bf16.msra.mxu1 %v16696_v18  ;;  %v1836_v17 = vld [vmem:[#allocation6 + $0x470] sm:$0xff]  ;;  %v16699_v18 = vcombine.high %v1824_v14, %v1828_v15  ;;  %v16709_v33 = vcombine.high %v1833_v21, %v1837_v2 }
 0x214   : > { %2219 = vmatprep.subr.bf16.mxu0 %v16703_v25  ;;  %2272 = vmatprep.subr.bf16.mxu1 %v16705_v26  ;;  %v1890_v25 = vrot.slane %v21838_v35, 1  ;;  %v16698_v26 = vcombine.low %v1824_v14, %v1828_v15  ;;  %v16706_v35 = vcombine.low %v1832_v56, %v1836_v17 }
 0x215   : > { %1756 = vmatprep.mubr.bf16.mxu0 %v21876_v22  ;;  %1809 = vmatprep.mubr.bf16.mxu1 %v21876_v22 }
 0x216   : > { %v21903_v36 = vsel %vm23146_vm8, %v1890_v25, %v1891_v24  ;;  %v2468_v25 = vld [vmem:[#allocation6 + $0x628] sm:$0xff] }
 0x217   : > { %2220 = vmatpush1.bf16.msra.mxu0 %v16702_v27  ;;  %2273 = vmatpush1.bf16.msra.mxu1 %v16704_v28  ;;  %v16700_v27 = vcombine.low %v1825_v48, %v1829_v55  ;;  %v1840_v28 = vld [vmem:[#allocation6 + $0x490] sm:$0xff] }
 0x218   : > { %2221 = vmatprep.subr.bf16.mxu0 %v16711_v31  ;;  %2274 = vmatprep.subr.bf16.mxu1 %v16713_v32  ;;  %v1845_v31 = vld [vmem:[#allocation6 + $0x4b8] sm:$0xff]  ;;  %v16707_v32 = vcombine.high %v1832_v56, %v1836_v17  ;;  %v16715_v40 = vcombine.high %v1840_v28, %v1844_v29 }
 0x219   : > { %v16717_v41 = vcombine.high %v1841_v30, %v1845_v31  ;;  %v16716_v46 = vcombine.low %v1841_v30, %v1845_v31 }
 0x21a   : > { %1757 = vmatmul.mubr.bf16.gmra.mrb[12].mxu0 %v21841_v39  ;;  %1810 = vmatmul.mubr.bf16.gmra.mrb[12].mxu1 %v21841_v39 }
 0x21b   : > { %2222 = vmatpush1.bf16.msra.mxu0 %v16710_v37  ;;  %2275 = vmatpush1.bf16.msra.mxu1 %v16712_v34  ;;  %v16708_v37 = vcombine.low %v1833_v21, %v1837_v2  ;;  %v1848_v34 = vld [vmem:[#allocation6 + $0x4d0] sm:$0xff] }
 0x21c   : > { %2223 = vmatprep.subr.bf16.mxu0 %v16719_v23  ;;  %2276 = vmatprep.subr.bf16.mxu1 %v16721_v43  ;;  %v1853_v23 = vld [vmem:[#allocation6 + $0x4f8] sm:$0xff]  ;;  %v21018_v43 = vld [vmem:[#allocation2 + $0x10] ss:$0 sps:$4 sm:$0x11]   ;;  %v16723_v54 = vcombine.high %v1848_v34, %v1852_v38 }
 0x21d   : > { %2249 = vmatprep.mubr.bf16.mxu0 %v21876_v22  ;;  %2302 = vmatprep.mubr.bf16.mxu1 %v21876_v22  ;;  %v16724_v59 = vcombine.low %v1849_v42, %v1853_v23 }
 0x21f   : > { %2224 = vmatpush1.bf16.msra.mxu0 %v16718_v44  ;;  %2277 = vmatpush1.bf16.msra.mxu1 %v16720_v45  ;;  %v1893_v44 = vrot.slane %v21018_v43, 1  ;;  %v16714_v45 = vcombine.low %v1840_v28, %v1844_v29  ;;  %v2471_v28 = vld [vmem:[#allocation6 + $0x640] sm:$0xff] }
 0x220   : > { %2225 = vmatprep.subr.bf16.mxu0 %v16727_v49  ;;  %2278 = vmatprep.subr.bf16.mxu1 %v16729_v50  ;;  %v1860_v49 = vld [vmem:[#allocation6 + $0x530] sm:$0xff]  ;;  %v1857_v50 = vld [vmem:[#allocation6 + $0x518] sm:$0xff]  ;;  %v2475_v29 = vld [vmem:[#allocation6 + $0x660] sm:$0xff] }
 0x221   : > { %v16733_v63 = vcombine.high %v1857_v50, %v1861_v53  ;;  %v16730_v5 = vcombine.low %v1856_v0, %v1860_v49  ;;  %v16732_v6 = vcombine.low %v1857_v50, %v1861_v53  ;;  %v16767_v43 = vcombine.low %v2471_v28, %v2475_v29 }
 0x223   : > { %2226 = vmatpush1.bf16.msra.mxu0 %v16726_v57  ;;  %2279 = vmatpush1.bf16.msra.mxu1 %v16728_v58  ;;  %v16725_v57 = vcombine.high %v1849_v42, %v1853_v23  ;;  %v21910_v58 = vsel %vm23146_vm8, %v1891_v24, %v1893_v44  ;;  %v2464_v24 = vld [vmem:[#allocation6 + $0x608] sm:$0xff]  ;;  %v16768_v42 = vcombine.high %v2471_v28, %v2475_v29  ;;  %vm23155_vm8 = vcmask 1040896  }
 0x224   : > { %2227 = vmatprep.subr.bf16.mxu0 %v16735_v61  ;;  %2280 = vmatprep.subr.bf16.mxu1 %v16737_v62  ;;  %v1868_v61 = vld [vmem:[#allocation6 + $0x570] sm:$0xff]  ;;  %v16731_v62 = vcombine.high %v1856_v0, %v1860_v49  ;;  %v16762_v31 = vcombine.high %v2464_v24, %v2468_v25  ;;  %v2488_v0 = vld [vmem:[#allocation6 + $0x6c8] sm:$0xff]  ;;  %vm22215_vm13 = vmand %vm23155_vm8, %vm23154_vm0 }
 0x225   : > { %v16739_v10 = vcombine.high %v1864_v60, %v1868_v61  ;;  %v16738_v14 = vcombine.low %v1864_v60, %v1868_v61  ;;  %v2492_v49 = vld [vmem:[#allocation6 + $0x6e8] sm:$0xff]  ;;  %vm22236_vm8 = vmand %vm23159_vm15, %vm23156_vm6  ;;  %vm23169_vm15 = vsmask.f32 7950 }
 0x226   : > { %v2500_v60 = vld [vmem:[#allocation6 + $0x728] sm:$0xff] }
 0x227   : > { %2228 = vmatpush1.bf16.msra.mxu0 %v16734_v3  ;;  %2281 = vmatpush1.bf16.msra.mxu1 %v16736_v4  ;;  %v1869_v3 = vld [vmem:[#allocation6 + $0x578] sm:$0xff]  ;;  %v21914_v4 = vld [vmem:[#allocation3] sm:$0xff]  ;;  %v21926_v28 = vld [vmem:[#allocation2 + $0x10] ss:$0 sps:$4 sm:$0x33]  }
 0x228   : > { %2229 = vmatprep.subr.bf16.mxu0 %v16743_v7  ;;  %2282 = vmatprep.subr.bf16.mxu1 %v16745_v9  ;;  %v1872_v7 = vld [vmem:[#allocation6 + $0x590] sm:$0xff]  ;;  %v16741_v11 = vcombine.high %v1865_v1, %v1869_v3  ;;  %v16740_v15 = vcombine.low %v1865_v1, %v1869_v3  ;;  %v16785_v1 = vcombine.low %v2488_v0, %v2492_v49  ;;  %v2503_v3 = vld [vmem:[#allocation6 + $0x740] sm:$0xff] }
 0x229   : > { %v1876_v9 = vld [vmem:[#allocation6 + $0x5b0] sm:$0xff] }
 0x22a   : > { %v16747_v48 = vcombine.high %v1872_v7, %v1876_v9  ;;  %v16746_v56 = vcombine.low %v1872_v7, %v1876_v9  ;;  %v2508_v7 = vld [vmem:[#allocation6 + $0x768] sm:$0xff] }
 0x22b   : > { %2230 = vmatpush1.bf16.msra.mxu0 %v16742_v12  ;;  %2283 = vmatpush1.bf16.msra.mxu1 %v16744_v13  ;;  %v1873_v12 = vld [vmem:[#allocation6 + $0x598] sm:$0xff] }
 0x22c   : > { %2231 = vmatprep.subr.bf16.mxu0 %v16751_v16  ;;  %2284 = vmatprep.subr.bf16.mxu1 %v16753_v47  ;;  %v1877_v13 = vld [vmem:[#allocation6 + $0x5b8] sm:$0xff]  ;;  %v1880_v16 = vld [vmem:[#allocation6 + $0x5d0] sm:$0xff] }
 0x22d   : > { %v1884_v47 = vld [vmem:[#allocation6 + $0x5f0] sm:$0xff]  ;;  %v16749_v55 = vcombine.high %v1873_v12, %v1877_v13  ;;  %v16748_v17 = vcombine.low %v1873_v12, %v1877_v13  ;;  %v2511_v12 = vld [vmem:[#allocation6 + $0x780] sm:$0xff] }
 0x22e   : > { %v16755_v21 = vcombine.high %v1880_v16, %v1884_v47  ;;  %v2515_v13 = vld [vmem:[#allocation6 + $0x7a0] sm:$0xff] }
 0x22f   : > { %2232 = vmatpush1.bf16.msra.mxu0 %v16750_v51  ;;  %2285 = vmatpush1.bf16.msra.mxu1 %v16752_v52  ;;  %v1881_v51 = vld [vmem:[#allocation6 + $0x5d8] sm:$0xff] }
 0x230   : > { %2323 = vmatprep.subr.bf16.mxu0 %v16699_v18  ;;  %2376 = vmatprep.subr.bf16.mxu1 %v16701_v19  ;;  %v1885_v52 = vld [vmem:[#allocation6 + $0x5f8] sm:$0xff]  ;;  %v2463_v18 = vld [vmem:[#allocation6 + $0x600] sm:$0xff] }
 0x231   : > { %v2467_v19 = vld [vmem:[#allocation6 + $0x620] sm:$0xff]  ;;  %v16757_v2 = vcombine.high %v1881_v51, %v1885_v52 }
 0x232   : > { %2250 = vmatmul.mubr.bf16.vlgmr.msra.gmra.mrb[0].mxu0 %v21903_v36  ;;  %2303 = vmatmul.mubr.bf16.vlgmr.msra.gmra.mrb[0].mxu1 %v21903_v36  ;;  %v16760_v30 = vcombine.high %v2463_v18, %v2467_v19 }
 0x233   : > { %2324 = vmatpush1.bf16.msra.mxu0 %v16698_v26  ;;  %2377 = vmatpush1.bf16.msra.mxu1 %v16700_v27  ;;  %v16754_v26 = vcombine.low %v1880_v16, %v1884_v47  ;;  %v16756_v27 = vcombine.low %v1881_v51, %v1885_v52  ;;  %v2519_v51 = vld [vmem:[#allocation6 + $0x7c0] sm:$0xff] }
 0x234   : > { %2325 = vmatprep.subr.bf16.mxu0 %v16707_v32  ;;  %2378 = vmatprep.subr.bf16.mxu1 %v16709_v33  ;;  %v2472_v32 = vld [vmem:[#allocation6 + $0x648] sm:$0xff]  ;;  %v2523_v52 = vld [vmem:[#allocation6 + $0x7e0] sm:$0xff] }
 0x235   : > { %2259 = vmatprep.mubr.bf16.mxu0 %v21876_v22  ;;  %2312 = vmatprep.mubr.bf16.mxu1 %v21876_v22  ;;  %v16722_v22 = vcombine.low %v1848_v34, %v1852_v38  ;;  %v2476_v33 = vld [vmem:[#allocation6 + $0x668] sm:$0xff]  ;;  %v2479_v34 = vld [vmem:[#allocation6 + $0x680] sm:$0xff]  ;;  %v16816_v29 = vcombine.high %v2519_v51, %v2523_v52 }
 0x236   : > { %v2483_v38 = vld [vmem:[#allocation6 + $0x6a0] sm:$0xff]  ;;  %v16770_v23 = vcombine.high %v2472_v32, %v2476_v33  ;;  %v16769_v44 = vcombine.low %v2472_v32, %v2476_v33  ;;  %v2473_v33 = vld [vmem:[#allocation6 + $0x650] sm:$0xff] }
 0x237   : > { %2326 = vmatpush1.bf16.msra.mxu0 %v16706_v35  ;;  %2379 = vmatpush1.bf16.msra.mxu1 %v16708_v37  ;;  %v16759_v35 = vcombine.low %v2463_v18, %v2467_v19  ;;  %v16761_v37 = vcombine.low %v2464_v24, %v2468_v25  ;;  %v16776_v50 = vcombine.high %v2479_v34, %v2483_v38  ;;  %v2465_v24 = vld [vmem:[#allocation6 + $0x610] sm:$0xff] }
 0x238   : > { %2327 = vmatprep.subr.bf16.mxu0 %v16715_v40  ;;  %2380 = vmatprep.subr.bf16.mxu1 %v16717_v41  ;;  %v2480_v40 = vld [vmem:[#allocation6 + $0x688] sm:$0xff]  ;;  %v16808_v18 = vcombine.high %v2511_v12, %v2515_v13  ;;  %v2469_v25 = vld [vmem:[#allocation6 + $0x630] sm:$0xff] }
 0x239   : > { %v2484_v41 = vld [vmem:[#allocation6 + $0x6a8] sm:$0xff] }
 0x23a   : > { %2260 = vmatmul.mubr.bf16.gmra.mrb[4].mxu0 %v21910_v58  ;;  %2313 = vmatmul.mubr.bf16.gmra.mrb[4].mxu1 %v21910_v58  ;;  %v16778_v53 = vcombine.high %v2480_v40, %v2484_v41 }
 0x23b   : > { %2328 = vmatpush1.bf16.msra.mxu0 %v16714_v45  ;;  %2381 = vmatpush1.bf16.msra.mxu1 %v16716_v46  ;;  %v2487_v45 = vld [vmem:[#allocation6 + $0x6c0] sm:$0xff] }
 0x23c   : > { %2329 = vmatprep.subr.bf16.mxu0 %v16723_v54  ;;  %2382 = vmatprep.subr.bf16.mxu1 %v16725_v57  ;;  %v2491_v46 = vld [vmem:[#allocation6 + $0x6e0] sm:$0xff]  ;;  %v16775_v54 = vcombine.low %v2479_v34, %v2483_v38  ;;  %v2478_v34 = vld [vmem:[#allocation6 + $0x678] sm:$0xff]  ;;  %v16764_v38 = vcombine.high %v2465_v24, %v2469_v25 }
 0x23d   : > { %2355 = vmatprep.mubr.bf16.mxu0 %v21914_v4  ;;  %2408 = vmatprep.mubr.bf16.mxu1 %v21914_v4  ;;  %v2495_v57 = vld [vmem:[#allocation6 + $0x700] sm:$0xff]  ;;  %v16784_v61 = vcombine.high %v2487_v45, %v2491_v46 }
 0x23f   : > { %2330 = vmatpush1.bf16.msra.mxu0 %v16722_v22  ;;  %2383 = vmatpush1.bf16.msra.mxu1 %v16724_v59  ;;  %v2499_v22 = vld [vmem:[#allocation6 + $0x720] sm:$0xff]  ;;  %v2496_v59 = vld [vmem:[#allocation6 + $0x708] sm:$0xff] }
 0x240   : > { %2331 = vmatprep.subr.bf16.mxu0 %v16731_v62  ;;  %2384 = vmatprep.subr.bf16.mxu1 %v16733_v63  ;;  %v16786_v62 = vcombine.high %v2488_v0, %v2492_v49  ;;  %v16783_v63 = vcombine.low %v2487_v45, %v2491_v46  ;;  %v16792_v9 = vcombine.high %v2495_v57, %v2499_v22  ;;  %v2485_v45 = vld [vmem:[#allocation6 + $0x6b0] sm:$0xff]  ;;  %v2482_v46 = vld [vmem:[#allocation6 + $0x698] sm:$0xff] }
 0x241   : > { %v2486_v0 = vld [vmem:[#allocation6 + $0x6b8] sm:$0xff] }
 0x243   : > { %2332 = vmatpush1.bf16.msra.mxu0 %v16730_v5  ;;  %2385 = vmatpush1.bf16.msra.mxu1 %v16732_v6  ;;  %v2507_v5 = vld [vmem:[#allocation6 + $0x760] sm:$0xff]  ;;  %v2504_v6 = vld [vmem:[#allocation6 + $0x748] sm:$0xff] }
 0x244   : > { %2333 = vmatprep.subr.bf16.mxu0 %v16739_v10  ;;  %2386 = vmatprep.subr.bf16.mxu1 %v16741_v11  ;;  %v16794_v10 = vcombine.high %v2496_v59, %v2500_v60  ;;  %v16791_v11 = vcombine.low %v2495_v57, %v2499_v22  ;;  %v16800_v16 = vcombine.high %v2503_v3, %v2507_v5  ;;  %v2489_v22 = vld [vmem:[#allocation6 + $0x6d0] sm:$0xff] }
 0x245   : > { %v16802_v47 = vcombine.high %v2504_v6, %v2508_v7 }
 0x247   : > { %2334 = vmatpush1.bf16.msra.mxu0 %v16738_v14  ;;  %2387 = vmatpush1.bf16.msra.mxu1 %v16740_v15  ;;  %v2512_v14 = vld [vmem:[#allocation6 + $0x788] sm:$0xff] }
 0x248   : > { %2335 = vmatprep.subr.bf16.mxu0 %v16747_v48  ;;  %2388 = vmatprep.subr.bf16.mxu1 %v16749_v55  ;;  %v2516_v15 = vld [vmem:[#allocation6 + $0x7a8] sm:$0xff]  ;;  %v16799_v48 = vcombine.low %v2503_v3, %v2507_v5  ;;  %v16801_v55 = vcombine.low %v2504_v6, %v2508_v7  ;;  %v16781_v5 = vcombine.low %v2482_v46, %v2486_v0  ;;  %v2497_v6 = vld [vmem:[#allocation6 + $0x710] sm:$0xff] }
 0x249   : > { %v16810_v19 = vcombine.high %v2512_v14, %v2516_v15  ;;  %v2501_v7 = vld [vmem:[#allocation6 + $0x730] sm:$0xff] }
 0x24b   : > { %2336 = vmatpush1.bf16.msra.mxu0 %v16746_v56  ;;  %2389 = vmatpush1.bf16.msra.mxu1 %v16748_v17  ;;  %v2520_v56 = vld [vmem:[#allocation6 + $0x7c8] sm:$0xff] }
 0x24c   : > { %2337 = vmatprep.subr.bf16.mxu0 %v16755_v21  ;;  %2390 = vmatprep.subr.bf16.mxu1 %v16757_v2  ;;  %v2524_v17 = vld [vmem:[#allocation6 + $0x7e8] sm:$0xff]  ;;  %v16807_v21 = vcombine.low %v2511_v12, %v2515_v13  ;;  %v16809_v2 = vcombine.low %v2512_v14, %v2516_v15  ;;  %v2505_v15 = vld [vmem:[#allocation6 + $0x750] sm:$0xff] }
 0x24d   : > { %v16817_v32 = vcombine.low %v2520_v56, %v2524_v17 }
 0x24f   : > { %2338 = vmatpush1.bf16.msra.mxu0 %v16754_v26  ;;  %2391 = vmatpush1.bf16.msra.mxu1 %v16756_v27  ;;  %v2466_v26 = vld [vmem:[#allocation6 + $0x618] sm:$0xff] }
 0x250   : > { %2874 = vmatprep.subr.bf16.mxu0 %v16760_v30  ;;  %2927 = vmatprep.subr.bf16.mxu1 %v16762_v31  ;;  %v2470_v27 = vld [vmem:[#allocation6 + $0x638] sm:$0xff]  ;;  %v16818_v30 = vcombine.high %v2520_v56, %v2524_v17  ;;  %v16815_v31 = vcombine.low %v2519_v51, %v2523_v52  ;;  %v2513_v56 = vld [vmem:[#allocation6 + $0x790] sm:$0xff] }
 0x251   : > { %v2517_v17 = vld [vmem:[#allocation6 + $0x7b0] sm:$0xff] }
 0x252   : > { %2356 = vmatmul.mubr.bf16.vlgmr.msra.gmra.mrb[8].mxu0 %v21903_v36  ;;  %2409 = vmatmul.mubr.bf16.vlgmr.msra.gmra.mrb[8].mxu1 %v21903_v36  ;;  %v16777_v36 = vcombine.low %v2480_v40, %v2484_v41  ;;  %v16766_v40 = vcombine.high %v2466_v26, %v2470_v27  ;;  %v2544_v41 = vshrl.u32 %v21926_v28, 16 }
 0x253   : > { %2875 = vmatpush1.bf16.msra.mxu0 %v16759_v35  ;;  %2928 = vmatpush1.bf16.msra.mxu1 %v16761_v37  ;;  %v2477_v35 = vld [vmem:[#allocation6 + $0x670] sm:$0xff]  ;;  %v2474_v37 = vld [vmem:[#allocation6 + $0x658] sm:$0xff] }
 0x254   : > { %2876 = vmatprep.subr.bf16.mxu0 %v16768_v42  ;;  %2929 = vmatprep.subr.bf16.mxu1 %v16770_v23  ;;  %v2547_v42 = vshll.u32 %v21926_v28, 16  ;;  %v16763_v23 = vcombine.low %v2465_v24, %v2469_v25  ;;  %v16772_v49 = vcombine.high %v2473_v33, %v2477_v35  ;;  %v16773_v57 = vcombine.low %v2474_v37, %v2478_v34 }
 0x255   : > { %2365 = vmatprep.mubr.bf16.mxu0 %v21914_v4  ;;  %2418 = vmatprep.mubr.bf16.mxu1 %v21914_v4 }
 0x257   : > { %2877 = vmatpush1.bf16.msra.mxu0 %v16767_v43  ;;  %2930 = vmatpush1.bf16.msra.mxu1 %v16769_v44  ;;  %v16765_v43 = vcombine.low %v2466_v26, %v2470_v27  ;;  %v2481_v44 = vld [vmem:[#allocation6 + $0x690] sm:$0xff] }
 0x258   : > { %2878 = vmatprep.subr.bf16.mxu0 %v16776_v50  ;;  %2931 = vmatprep.subr.bf16.mxu1 %v16778_v53  ;;  %v16774_v50 = vcombine.high %v2474_v37, %v2478_v34  ;;  %v2546_v53 = vrot.slane %v2544_v41, 1  ;;  %v16779_v3 = vcombine.low %v2481_v44, %v2485_v45  ;;  %v2521_v26 = vld [vmem:[#allocation6 + $0x7d0] sm:$0xff]  ;;  %v3124_v37 = vld [vmem:[#allocation6 + $0x820] sm:$0xff]  ;;  %v3121_v34 = vld [vmem:[#allocation6 + $0x808] sm:$0xff] }
 0x259   : > { %v2525_v27 = vld [vmem:[#allocation6 + $0x7f0] sm:$0xff] }
 0x25a   : > { %2366 = vmatmul.mubr.bf16.gmra.mrb[12].mxu0 %v21910_v58  ;;  %2419 = vmatmul.mubr.bf16.gmra.mrb[12].mxu1 %v21910_v58  ;;  %v16793_v58 = vcombine.low %v2496_v59, %v2500_v60  ;;  %v2493_v59 = vld [vmem:[#allocation6 + $0x6f0] sm:$0xff]  ;;  %v2490_v60 = vld [vmem:[#allocation6 + $0x6d8] sm:$0xff] }
 0x25b   : > { %2879 = vmatpush1.bf16.msra.mxu0 %v16775_v54  ;;  %2932 = vmatpush1.bf16.msra.mxu1 %v16777_v36  ;;  %v2549_v54 = vrot.slane %v2547_v42, 2  ;;  %v16771_v36 = vcombine.low %v2473_v33, %v2477_v35  ;;  %v16787_v13 = vcombine.low %v2489_v22, %v2493_v59  ;;  %v3120_v35 = vld [vmem:[#allocation6 + $0x800] sm:$0xff]  ;;  %v16819_v42 = vcombine.low %v2521_v26, %v2525_v27 }
 0x25c   : > { %2880 = vmatprep.subr.bf16.mxu0 %v16784_v61  ;;  %2933 = vmatprep.subr.bf16.mxu1 %v16786_v62  ;;  %v2494_v61 = vld [vmem:[#allocation6 + $0x6f8] sm:$0xff]  ;;  %v16780_v62 = vcombine.high %v2481_v44, %v2485_v45  ;;  %v3132_v44 = vld [vmem:[#allocation6 + $0x860] sm:$0xff]  ;;  %v3129_v45 = vld [vmem:[#allocation6 + $0x848] sm:$0xff] }
 0x25d   : > { %2906 = vmatprep.mubr.bf16.mxu0 %v21914_v4  ;;  %2959 = vmatprep.mubr.bf16.mxu1 %v21914_v4  ;;  %v16789_v14 = vcombine.low %v2490_v60, %v2494_v61 }
 0x25f   : > { %2881 = vmatpush1.bf16.msra.mxu0 %v16783_v63  ;;  %2934 = vmatpush1.bf16.msra.mxu1 %v16785_v1  ;;  %v16782_v63 = vcombine.high %v2482_v46, %v2486_v0  ;;  %v2550_v1 = vor.u32 %v2549_v54, %v2546_v53  ;;  %v3133_v46 = vld [vmem:[#allocation6 + $0x868] sm:$0xff]  ;;  %v16825_v0 = vcombine.high %v3120_v35, %v3124_v37  ;;  %v3136_v54 = vld [vmem:[#allocation6 + $0x880] sm:$0xff] }
 0x260   : > { %2882 = vmatprep.subr.bf16.mxu0 %v16792_v9  ;;  %2935 = vmatprep.subr.bf16.mxu1 %v16794_v10  ;;  %v2498_v9 = vld [vmem:[#allocation6 + $0x718] sm:$0xff] }
 0x261   : > { %v2502_v10 = vld [vmem:[#allocation6 + $0x738] sm:$0xff]  ;;  %v21936_v12 = vsel %vm23149_vm7, %v21851_v8, %v2550_v1  ;;  %v16795_v8 = vcombine.low %v2497_v6, %v2501_v7  ;;  %v3148_v1 = vld [vmem:[#allocation6 + $0x8e0] sm:$0xff]  ;;  %vm4339_vm7 = vsmask.f32 4352 }
 0x262   : > { %v16798_v51 = vcombine.high %v2498_v9, %v2502_v10  ;;  %v16797_v52 = vcombine.low %v2498_v9, %v2502_v10  ;;  %v21944_v9 = vld [vmem:[#allocation3] sm:$0xff] }
 0x263   : > { %2883 = vmatpush1.bf16.msra.mxu0 %v16791_v11  ;;  %2936 = vmatpush1.bf16.msra.mxu1 %v16793_v58  ;;  %v16788_v11 = vcombine.high %v2489_v22, %v2493_v59  ;;  %v16790_v58 = vcombine.high %v2490_v60, %v2494_v61  ;;  %v3141_v22 = vld [vmem:[#allocation6 + $0x8a8] sm:$0xff]  ;;  %v16835_v60 = vcombine.high %v3129_v45, %v3133_v46 }
 0x264   : > { %2884 = vmatprep.subr.bf16.mxu0 %v16800_v16  ;;  %2937 = vmatprep.subr.bf16.mxu1 %v16802_v47  ;;  %v2509_v16 = vld [vmem:[#allocation6 + $0x770] sm:$0xff]  ;;  %v2506_v47 = vld [vmem:[#allocation6 + $0x758] sm:$0xff] }
 0x265   : > { %v16803_v24 = vcombine.low %v2505_v15, %v2509_v16 }
 0x267   : > { %2885 = vmatpush1.bf16.msra.mxu0 %v16799_v48  ;;  %2938 = vmatpush1.bf16.msra.mxu1 %v16801_v55  ;;  %v2510_v48 = vld [vmem:[#allocation6 + $0x778] sm:$0xff]  ;;  %v16796_v55 = vcombine.high %v2497_v6, %v2501_v7 }
 0x268   : > { %2886 = vmatprep.subr.bf16.mxu0 %v16808_v18  ;;  %2939 = vmatprep.subr.bf16.mxu1 %v16810_v19  ;;  %v2514_v18 = vld [vmem:[#allocation6 + $0x798] sm:$0xff]  ;;  %v16805_v25 = vcombine.low %v2506_v47, %v2510_v48 }
 0x269   : > { %v2518_v19 = vld [vmem:[#allocation6 + $0x7b8] sm:$0xff] }
 0x26a   : > { %v16813_v33 = vcombine.low %v2514_v18, %v2518_v19 }
 0x26b   : > { %2887 = vmatpush1.bf16.msra.mxu0 %v16807_v21  ;;  %2940 = vmatpush1.bf16.msra.mxu1 %v16809_v2  ;;  %v16804_v21 = vcombine.high %v2505_v15, %v2509_v16  ;;  %v16806_v2 = vcombine.high %v2506_v47, %v2510_v48 }
 0x26c   : > { %2888 = vmatprep.subr.bf16.mxu0 %v16816_v29  ;;  %2941 = vmatprep.subr.bf16.mxu1 %v16818_v30  ;;  %v2522_v29 = vld [vmem:[#allocation6 + $0x7d8] sm:$0xff]  ;;  %v16812_v30 = vcombine.high %v2513_v56, %v2517_v17 }
 0x26f   : > { %2889 = vmatpush1.bf16.msra.mxu0 %v16815_v31  ;;  %2942 = vmatpush1.bf16.msra.mxu1 %v16817_v32  ;;  %v16814_v31 = vcombine.high %v2514_v18, %v2518_v19  ;;  %v16811_v32 = vcombine.low %v2513_v56, %v2517_v17  ;;  %v3168_v19 = vld [vmem:[#allocation6 + $0x980] sm:$0xff] }
 0x270   : > { %2980 = vmatprep.subr.bf16.mxu0 %v16764_v38  ;;  %3033 = vmatprep.subr.bf16.mxu1 %v16766_v40  ;;  %v3125_v38 = vld [vmem:[#allocation6 + $0x828] sm:$0xff]  ;;  %v16820_v40 = vcombine.high %v2521_v26, %v2525_v27 }
 0x271   : > { %v16826_v53 = vcombine.low %v3121_v34, %v3125_v38 }
 0x272   : > { %2907 = vmatmul.mubr.bf16.vlgmr.msra.gmra.mrb[0].mxu0 %v21865_v20  ;;  %2960 = vmatmul.mubr.bf16.vlgmr.msra.gmra.mrb[0].mxu1 %v21865_v20 }
 0x273   : > { %2981 = vmatpush1.bf16.msra.mxu0 %v16763_v23  ;;  %3034 = vmatpush1.bf16.msra.mxu1 %v16765_v43  ;;  %v3128_v43 = vld [vmem:[#allocation6 + $0x840] sm:$0xff] }
 0x274   : > { %2982 = vmatprep.subr.bf16.mxu0 %v16772_v49  ;;  %3035 = vmatprep.subr.bf16.mxu1 %v16774_v50  ;;  %v16827_v49 = vcombine.high %v3121_v34, %v3125_v38  ;;  %v16824_v50 = vcombine.low %v3120_v35, %v3124_v37  ;;  %v16833_v59 = vcombine.high %v3128_v43, %v3132_v44  ;;  %v3122_v38 = vld [vmem:[#allocation6 + $0x810] sm:$0xff] }
 0x275   : > { %2916 = vmatprep.mubr.bf16.mxu0 %v21914_v4  ;;  %2969 = vmatprep.mubr.bf16.mxu1 %v21914_v4  ;;  %v16832_v61 = vcombine.low %v3128_v43, %v3132_v44  ;;  %v3118_v44 = vld [vmem:[#allocation2] sm:$0xc] }
 0x277   : > { %2983 = vmatpush1.bf16.msra.mxu0 %v16771_v36  ;;  %3036 = vmatpush1.bf16.msra.mxu1 %v16773_v57  ;;  %v3140_v36 = vld [vmem:[#allocation6 + $0x8a0] sm:$0xff]  ;;  %v3137_v57 = vld [vmem:[#allocation6 + $0x888] sm:$0xff] }
 0x278   : > { %2984 = vmatprep.subr.bf16.mxu0 %v16780_v62  ;;  %3037 = vmatprep.subr.bf16.mxu1 %v16782_v63  ;;  %v16834_v62 = vcombine.low %v3129_v45, %v3133_v46  ;;  %v3144_v63 = vld [vmem:[#allocation6 + $0x8c0] sm:$0xff]  ;;  %v16841_v6 = vcombine.high %v3136_v54, %v3140_v36  ;;  %v16843_v7 = vcombine.high %v3137_v57, %v3141_v22 }
 0x279   : > { %v16842_v10 = vcombine.low %v3137_v57, %v3141_v22  ;;  %v16849_v15 = vcombine.high %v3144_v63, %v3148_v1  ;;  %v16848_v47 = vcombine.low %v3144_v63, %v3148_v1  ;;  %v3138_v63 = vld [vmem:[#allocation6 + $0x890] sm:$0xff] }
 0x27a   : > { %2917 = vmatmul.mubr.bf16.gmra.mrb[4].mxu0 %v21936_v12  ;;  %2970 = vmatmul.mubr.bf16.gmra.mrb[4].mxu1 %v21936_v12  ;;  %v3142_v1 = vld [vmem:[#allocation6 + $0x8b0] sm:$0xff] }
 0x27b   : > { %2985 = vmatpush1.bf16.msra.mxu0 %v16779_v3  ;;  %3038 = vmatpush1.bf16.msra.mxu1 %v16781_v5  ;;  %v3145_v3 = vld [vmem:[#allocation6 + $0x8c8] sm:$0xff] }
 0x27c   : > { %2986 = vmatprep.subr.bf16.mxu0 %v16788_v11  ;;  %3039 = vmatprep.subr.bf16.mxu1 %v16790_v58  ;;  %v3149_v5 = vld [vmem:[#allocation6 + $0x8e8] sm:$0xff]  ;;  %v3152_v11 = vld [vmem:[#allocation6 + $0x900] sm:$0xff] }
 0x27d   : > { %3012 = vmatprep.mubr.bf16.mxu0 %v21914_v4  ;;  %3065 = vmatprep.mubr.bf16.mxu1 %v21914_v4  ;;  %v2526_v4 = vld [vmem:[#allocation6 + $0x7f8] sm:$0xff]  ;;  %v3156_v58 = vld [vmem:[#allocation6 + $0x920] sm:$0xff]  ;;  %v16851_v16 = vcombine.high %v3145_v3, %v3149_v5  ;;  %v16850_v48 = vcombine.low %v3145_v3, %v3149_v5 }
 0x27e   : > { %v16822_v41 = vcombine.high %v2522_v29, %v2526_v4  ;;  %v16821_v23 = vcombine.low %v2522_v29, %v2526_v4  ;;  %v16857_v56 = vcombine.high %v3152_v11, %v3156_v58  ;;  %v16856_v18 = vcombine.low %v3152_v11, %v3156_v58  ;;  %v3176_v4 = vld [vmem:[#allocation6 + $0x9c0] sm:$0xff]  ;;  %v3139_v3 = vld [vmem:[#allocation6 + $0x898] sm:$0xff]  ;;  %v3146_v11 = vld [vmem:[#allocation6 + $0x8d0] sm:$0xff] }
 0x27f   : > { %2987 = vmatpush1.bf16.msra.mxu0 %v16787_v13  ;;  %3040 = vmatpush1.bf16.msra.mxu1 %v16789_v14  ;;  %v3153_v13 = vld [vmem:[#allocation6 + $0x908] sm:$0xff]  ;;  %v3143_v5 = vld [vmem:[#allocation6 + $0x8b8] sm:$0xff]  ;;  %v3150_v58 = vld [vmem:[#allocation6 + $0x8f0] sm:$0xff] }
 0x280   : > { %2988 = vmatprep.subr.bf16.mxu0 %v16796_v55  ;;  %3041 = vmatprep.subr.bf16.mxu1 %v16798_v51  ;;  %v3157_v14 = vld [vmem:[#allocation6 + $0x928] sm:$0xff]  ;;  %v3160_v55 = vld [vmem:[#allocation6 + $0x940] sm:$0xff] }
 0x281   : > { %v3164_v51 = vld [vmem:[#allocation6 + $0x960] sm:$0xff]  ;;  %v16859_v17 = vcombine.high %v3153_v13, %v3157_v14 }
 0x282   : > { %v16864_v27 = vcombine.low %v3160_v55, %v3164_v51 }
 0x283   : > { %2989 = vmatpush1.bf16.msra.mxu0 %v16795_v8  ;;  %3042 = vmatpush1.bf16.msra.mxu1 %v16797_v52  ;;  %v3161_v8 = vld [vmem:[#allocation6 + $0x948] sm:$0xff] }
 0x284   : > { %2990 = vmatprep.subr.bf16.mxu0 %v16804_v21  ;;  %3043 = vmatprep.subr.bf16.mxu1 %v16806_v2  ;;  %v3165_v52 = vld [vmem:[#allocation6 + $0x968] sm:$0xff]  ;;  %v3172_v21 = vld [vmem:[#allocation6 + $0x9a0] sm:$0xff] }
 0x285   : > { %v3169_v2 = vld [vmem:[#allocation6 + $0x988] sm:$0xff]  ;;  %v16867_v26 = vcombine.high %v3161_v8, %v3165_v52  ;;  %v16866_v29 = vcombine.low %v3161_v8, %v3165_v52  ;;  %v16872_v37 = vcombine.low %v3168_v19, %v3172_v21  ;;  %v3158_v8 = vld [vmem:[#allocation6 + $0x930] sm:$0xff]  ;;  %v3155_v52 = vld [vmem:[#allocation6 + $0x918] sm:$0xff] }
 0x287   : > { %2991 = vmatpush1.bf16.msra.mxu0 %v16803_v24  ;;  %3044 = vmatpush1.bf16.msra.mxu1 %v16805_v25  ;;  %v3173_v24 = vld [vmem:[#allocation6 + $0x9a8] sm:$0xff]  ;;  %v16865_v25 = vcombine.high %v3160_v55, %v3164_v51  ;;  %v16846_v55 = vcombine.low %v3139_v3, %v3143_v5  ;;  %v3154_v51 = vld [vmem:[#allocation6 + $0x910] sm:$0xff] }
 0x288   : > { %2992 = vmatprep.subr.bf16.mxu0 %v16812_v30  ;;  %3045 = vmatprep.subr.bf16.mxu1 %v16814_v31  ;;  %v3180_v30 = vld [vmem:[#allocation6 + $0x9e0] sm:$0xff]  ;;  %v3177_v31 = vld [vmem:[#allocation6 + $0x9c8] sm:$0xff]  ;;  %v16875_v35 = vcombine.high %v3169_v2, %v3173_v24  ;;  %v16874_v34 = vcombine.low %v3169_v2, %v3173_v24  ;;  %v3166_v2 = vld [vmem:[#allocation6 + $0x970] sm:$0xff] }
 0x289   : > { %v16880_v45 = vcombine.low %v3176_v4, %v3180_v30  ;;  %v3163_v24 = vld [vmem:[#allocation6 + $0x958] sm:$0xff] }
 0x28b   : > { %2993 = vmatpush1.bf16.msra.mxu0 %v16811_v32  ;;  %3046 = vmatpush1.bf16.msra.mxu1 %v16813_v33  ;;  %v3181_v32 = vld [vmem:[#allocation6 + $0x9e8] sm:$0xff]  ;;  %v16873_v33 = vcombine.high %v3168_v19, %v3172_v21  ;;  %v16852_v19 = vcombine.low %v3146_v11, %v3150_v58  ;;  %v3162_v21 = vld [vmem:[#allocation6 + $0x950] sm:$0xff] }
 0x28c   : > { %2994 = vmatprep.subr.bf16.mxu0 %v16820_v40  ;;  %3047 = vmatprep.subr.bf16.mxu1 %v16822_v41  ;;  %v3126_v40 = vld [vmem:[#allocation6 + $0x830] sm:$0xff]  ;;  %v3123_v41 = vld [vmem:[#allocation6 + $0x818] sm:$0xff]  ;;  %v16883_v43 = vcombine.high %v3177_v31, %v3181_v32  ;;  %v16882_v46 = vcombine.low %v3177_v31, %v3181_v32 }
 0x28d   : > { %v16829_v57 = vcombine.high %v3122_v38, %v3126_v40  ;;  %v3174_v31 = vld [vmem:[#allocation6 + $0x9b0] sm:$0xff]  ;;  %v3171_v32 = vld [vmem:[#allocation6 + $0x998] sm:$0xff] }
 0x28f   : > { %2995 = vmatpush1.bf16.msra.mxu0 %v16819_v42  ;;  %3048 = vmatpush1.bf16.msra.mxu1 %v16821_v23  ;;  %v3127_v42 = vld [vmem:[#allocation6 + $0x838] sm:$0xff]  ;;  %v16881_v23 = vcombine.high %v3176_v4, %v3180_v30  ;;  %v3170_v30 = vld [vmem:[#allocation6 + $0x990] sm:$0xff] }
 0x290   : > { %3515 = vmatprep.subr.bf16.mxu0 %v16825_v0  ;;  %3568 = vmatprep.subr.bf16.mxu1 %v16827_v49  ;;  %v21021_v0 = vld [vmem:[#allocation2 + $0x4] sm:$0xf]  ;;  %v16831_v22 = vcombine.high %v3123_v41, %v3127_v42 }
 0x291   : > { %v16823_v49 = vcombine.low %v3118_v44, %v21021_v0 }
 0x292   : > { %3013 = vmatmul.mubr.bf16.vlgmr.msra.gmra.mrb[8].mxu0 %v21865_v20  ;;  %3066 = vmatmul.mubr.bf16.vlgmr.msra.gmra.mrb[8].mxu1 %v21865_v20  ;;  %v16840_v20 = vcombine.low %v3136_v54, %v3140_v36  ;;  %v3131_v54 = vld [vmem:[#allocation6 + $0x858] sm:$0xff] }
 0x293   : > { %3516 = vmatpush1.bf16.msra.mxu0 %v16824_v50  ;;  %3569 = vmatpush1.bf16.msra.mxu1 %v16826_v53  ;;  %v3130_v50 = vld [vmem:[#allocation6 + $0x850] sm:$0xff]  ;;  %v3135_v36 = vld [vmem:[#allocation6 + $0x878] sm:$0xff] }
 0x294   : > { %3517 = vmatprep.subr.bf16.mxu0 %v16833_v59  ;;  %3570 = vmatprep.subr.bf16.mxu1 %v16835_v60  ;;  %v3134_v53 = vld [vmem:[#allocation6 + $0x870] sm:$0xff]  ;;  %v3189_v59 = vrot.slane %v21841_v39, 2  ;;  %v3188_v60 = vrot.slane %v16823_v49, 2 }
 0x295   : > { %3022 = vmatprep.mubr.bf16.mxu0 %v21944_v9  ;;  %3075 = vmatprep.mubr.bf16.mxu1 %v21944_v9  ;;  %v16836_v39 = vcombine.low %v3130_v50, %v3134_v53 }
 0x297   : > { %3518 = vmatpush1.bf16.msra.mxu0 %v16832_v61  ;;  %3571 = vmatpush1.bf16.msra.mxu1 %v16834_v62  ;;  %v16828_v61 = vcombine.low %v3122_v38, %v3126_v40  ;;  %v16830_v62 = vcombine.low %v3123_v41, %v3127_v42  ;;  %v3178_v40 = vld [vmem:[#allocation6 + $0x9d0] sm:$0xff]  ;;  %v3179_v42 = vld [vmem:[#allocation6 + $0x9d8] sm:$0xff] }
 0x298   : > { %3519 = vmatprep.subr.bf16.mxu0 %v16841_v6  ;;  %3572 = vmatprep.subr.bf16.mxu1 %v16843_v7  ;;  %v16837_v6 = vcombine.high %v3130_v50, %v3134_v53  ;;  %v16839_v7 = vcombine.high %v3131_v54, %v3135_v36  ;;  %v3182_v41 = vld [vmem:[#allocation6 + $0x9f0] sm:$0xff] }
 0x299   : > { %v16885_v0 = vcombine.high %v3178_v40, %v3182_v41  ;;  %v16884_v50 = vcombine.low %v3178_v40, %v3182_v41 }
 0x29a   : > { %3023 = vmatmul.mubr.bf16.gmra.mrb[12].mxu0 %v21936_v12  ;;  %3076 = vmatmul.mubr.bf16.gmra.mrb[12].mxu1 %v21936_v12  ;;  %v16858_v12 = vcombine.low %v3153_v13, %v3157_v14  ;;  %v3147_v13 = vld [vmem:[#allocation6 + $0x8d8] sm:$0xff] }
 0x29b   : > { %3520 = vmatpush1.bf16.msra.mxu0 %v16840_v20  ;;  %3573 = vmatpush1.bf16.msra.mxu1 %v16842_v10  ;;  %v21954_v20 = vsel %vm23145_vm9, %v3188_v60, %v3189_v59  ;;  %v16838_v10 = vcombine.low %v3131_v54, %v3135_v36  ;;  %v3151_v14 = vld [vmem:[#allocation6 + $0x8f8] sm:$0xff]  ;;  %v18989_v54 = vld [vmem:[#allocation11 + $0x500] ss:$16 sps:$4 sm:$0xff]   ;;  %v19000_v60 = vld [vmem:[#allocation11 + $0x52c] ss:$16 sps:$4 sm:$0xff]  }
 0x29c   : > { %3521 = vmatprep.subr.bf16.mxu0 %v16849_v15  ;;  %3574 = vmatprep.subr.bf16.mxu1 %v16851_v16  ;;  %v16845_v15 = vcombine.high %v3138_v63, %v3142_v1  ;;  %v16847_v16 = vcombine.high %v3139_v3, %v3143_v5  ;;  %v18991_v36 = vld [vmem:[#allocation11 + $0x504] ss:$16 sps:$4 sm:$0xff]   ;;  %v19004_v3 = vld [vmem:[#allocation11 + $0x548] ss:$16 sps:$4 sm:$0xff]  }
 0x29d   : > { %3547 = vmatprep.mubr.bf16.mxu0 %v21944_v9  ;;  %3600 = vmatprep.mubr.bf16.mxu1 %v21944_v9  ;;  %v19009_v5 = vld [vmem:[#allocation11 + $0x564] ss:$16 sps:$4 sm:$0xff]  }
 0x29f   : > { %3522 = vmatpush1.bf16.msra.mxu0 %v16848_v47  ;;  %3575 = vmatpush1.bf16.msra.mxu1 %v16850_v48  ;;  %v3191_v47 = vrot.slane %v21926_v28, 2  ;;  %v16844_v48 = vcombine.low %v3138_v63, %v3142_v1  ;;  %v16854_v28 = vcombine.low %v3147_v13, %v3151_v14  ;;  %v19003_v63 = vld [vmem:[#allocation11 + $0x544] ss:$16 sps:$4 sm:$0xff]   ;;  %v19006_v1 = vld [vmem:[#allocation11 + $0x54c] ss:$16 sps:$4 sm:$0xff]  }
 0x2a0   : > { %3523 = vmatprep.subr.bf16.mxu0 %v16857_v56  ;;  %3576 = vmatprep.subr.bf16.mxu1 %v16859_v17  ;;  %v3159_v56 = vld [vmem:[#allocation6 + $0x938] sm:$0xff]  ;;  %v16853_v17 = vcombine.high %v3146_v11, %v3150_v58  ;;  %v19013_v11 = vld [vmem:[#allocation11 + $0x580] ss:$16 sps:$4 sm:$0xff]  }
 0x2a1   : > { %v16862_v4 = vcombine.low %v3155_v52, %v3159_v56  ;;  %v19016_v58 = vld [vmem:[#allocation11 + $0x588] ss:$16 sps:$4 sm:$0xff]  }
 0x2a3   : > { %3524 = vmatpush1.bf16.msra.mxu0 %v16856_v18  ;;  %3577 = vmatpush1.bf16.msra.mxu1 %v16858_v12  ;;  %v16855_v18 = vcombine.high %v3147_v13, %v3151_v14  ;;  %v3192_v12 = vsel %vm23145_vm9, %v3189_v59, %v3191_v47  ;;  %v18997_v59 = vld [vmem:[#allocation11 + $0x524] ss:$16 sps:$4 sm:$0xff]   ;;  %v19024_v14 = vld [vmem:[#allocation11 + $0x5ac] ss:$16 sps:$4 sm:$0xff]   ;;  %vm22195_vm9 = vmand %vm23152_vm2, %vm3888_vm3  ;;  %vm23157_vm3 = vsmask.f32 3328 }
 0x2a4   : > { %3525 = vmatprep.subr.bf16.mxu0 %v16865_v25  ;;  %3578 = vmatprep.subr.bf16.mxu1 %v16867_v26  ;;  %v3167_v25 = vld [vmem:[#allocation6 + $0x978] sm:$0xff]  ;;  %v16861_v26 = vcombine.high %v3154_v51, %v3158_v8  ;;  %vm22207_vm12 = vmor %vm22195_vm9, %vm3886_vm5  ;;  %vm23161_vm2 = vcmask 523264  }
 0x2a5   : > { %v16870_v38 = vcombine.low %v3163_v24, %v3167_v25  ;;  %v19021_v13 = vld [vmem:[#allocation11 + $0x5a4] ss:$16 sps:$4 sm:$0xff]   ;;  %vm22223_vm5 = vmand %vm23158_vm1, %vm4339_vm7 }
 0x2a6   : > { %vm4189_vm0 = vmand %vm23160_vm14, %vm23157_vm3  ;;  %vm23247_vm14 = vcmask 1046534   ;;  %vm23250_vm3 = vcmask 523264  }
 0x2a7   : > { %3526 = vmatpush1.bf16.msra.mxu0 %v16864_v27  ;;  %3579 = vmatpush1.bf16.msra.mxu1 %v16866_v29  ;;  %v16863_v27 = vcombine.high %v3155_v52, %v3159_v56  ;;  %v16860_v29 = vcombine.low %v3154_v51, %v3158_v8  ;;  %vm22254_vm7 = vmor %vm22223_vm5, %vm22215_vm13  ;;  %vm23166_vm13 = vsmask.f32 7946 }
 0x2a8   : > { %3527 = vmatprep.subr.bf16.mxu0 %v16873_v33  ;;  %3580 = vmatprep.subr.bf16.mxu1 %v16875_v35  ;;  %v3175_v33 = vld [vmem:[#allocation6 + $0x9b8] sm:$0xff]  ;;  %v16869_v35 = vcombine.high %v3162_v21, %v3166_v2  ;;  %vm22263_vm6 = vmor %vm22236_vm8, %vm4189_vm0  ;;  %vm4118_vm0 = vsmask.f32 7962 }
 0x2a9   : > { %v16879_v44 = vcombine.high %v3171_v32, %v3175_v33  ;;  %vm22287_vm1 = vmand %vm4036_vm10, %vm23166_vm13  ;;  %vm23252_vm10 = vcmask 1041921  }
 0x2ab   : > { %3528 = vmatpush1.bf16.msra.mxu0 %v16872_v37  ;;  %3581 = vmatpush1.bf16.msra.mxu1 %v16874_v34  ;;  %v16871_v37 = vcombine.high %v3163_v24, %v3167_v25  ;;  %v16868_v34 = vcombine.low %v3162_v21, %v3166_v2 }
 0x2ac   : > { %3529 = vmatprep.subr.bf16.mxu0 %v16881_v23  ;;  %3582 = vmatprep.subr.bf16.mxu1 %v16883_v43  ;;  %v3183_v23 = vld [vmem:[#allocation6 + $0x9f8] sm:$0xff]  ;;  %v16877_v43 = vcombine.high %v3170_v30, %v3174_v31 }
 0x2ad   : > { %v16887_v49 = vcombine.high %v3179_v42, %v3183_v23  ;;  %v16886_v53 = vcombine.low %v3179_v42, %v3183_v23 }
 0x2af   : > { %3530 = vmatpush1.bf16.msra.mxu0 %v16880_v45  ;;  %3583 = vmatpush1.bf16.msra.mxu1 %v16882_v46  ;;  %v16876_v45 = vcombine.low %v3170_v30, %v3174_v31  ;;  %v16878_v46 = vcombine.low %v3171_v32, %v3175_v33  ;;  %v3775_v30 = vld [vmem:[#allocation9] sm:$0xf] }
 0x2b0   : > { %3621 = vmatprep.subr.bf16.mxu0 %v16829_v57  ;;  %3674 = vmatprep.subr.bf16.mxu1 %v16831_v22  ;;  %v18992_v57 = vld [vmem:[#allocation11 + $0x508] ss:$16 sps:$4 sm:$0xff]   ;;  %v18994_v22 = vld [vmem:[#allocation11 + $0x50c] ss:$16 sps:$4 sm:$0xff]  }
 0x2b2   : > { %3548 = vmatmul.mubr.bf16.vlgmr.msra.gmra.mrb[0].mxu0 %v21954_v20  ;;  %3601 = vmatmul.mubr.bf16.vlgmr.msra.gmra.mrb[0].mxu1 %v21954_v20 }
 0x2b3   : > { %3622 = vmatpush1.bf16.msra.mxu0 %v16828_v61  ;;  %3675 = vmatpush1.bf16.msra.mxu1 %v16830_v62  ;;  %v18995_v61 = vld [vmem:[#allocation11 + $0x520] ss:$16 sps:$4 sm:$0xff]   ;;  %v18998_v62 = vld [vmem:[#allocation11 + $0x528] ss:$16 sps:$4 sm:$0xff]  }
 0x2b4   : > { %3623 = vmatprep.subr.bf16.mxu0 %v16837_v6  ;;  %3676 = vmatprep.subr.bf16.mxu1 %v16839_v7  ;;  %v19012_v6 = vld [vmem:[#allocation11 + $0x56c] ss:$16 sps:$4 sm:$0xff]   ;;  %v19007_v7 = vld [vmem:[#allocation11 + $0x560] ss:$16 sps:$4 sm:$0xff]  }
 0x2b5   : > { %3557 = vmatprep.mubr.bf16.mxu0 %v21944_v9  ;;  %3610 = vmatprep.mubr.bf16.mxu1 %v21944_v9 }
 0x2b7   : > { %3624 = vmatpush1.bf16.msra.mxu0 %v16836_v39  ;;  %3677 = vmatpush1.bf16.msra.mxu1 %v16838_v10  ;;  %v19015_v39 = vld [vmem:[#allocation11 + $0x584] ss:$16 sps:$4 sm:$0xff]   ;;  %v19018_v10 = vld [vmem:[#allocation11 + $0x58c] ss:$16 sps:$4 sm:$0xff]  }
 0x2b8   : > { %3625 = vmatprep.subr.bf16.mxu0 %v16845_v15  ;;  %3678 = vmatprep.subr.bf16.mxu1 %v16847_v16  ;;  %v19019_v15 = vld [vmem:[#allocation11 + $0x5a0] ss:$16 sps:$4 sm:$0xff]   ;;  %v19022_v16 = vld [vmem:[#allocation11 + $0x5a8] ss:$16 sps:$4 sm:$0xff]  }
 0x2ba   : > { %3558 = vmatmul.mubr.bf16.gmra.mrb[4].mxu0 %v3192_v12  ;;  %3611 = vmatmul.mubr.bf16.gmra.mrb[4].mxu1 %v3192_v12 }
 0x2bb   : > { %3626 = vmatpush1.bf16.msra.mxu0 %v16844_v48  ;;  %3679 = vmatpush1.bf16.msra.mxu1 %v16846_v55 }
 0x2bc   : > { %3627 = vmatprep.subr.bf16.mxu0 %v16853_v17  ;;  %3680 = vmatprep.subr.bf16.mxu1 %v16855_v18 }
 0x2bd   : > { %3653 = vmatprep.mubr.bf16.mxu0 %v21944_v9  ;;  %3706 = vmatprep.mubr.bf16.mxu1 %v21944_v9 }
 0x2bf   : > { %3628 = vmatpush1.bf16.msra.mxu0 %v16852_v19  ;;  %3681 = vmatpush1.bf16.msra.mxu1 %v16854_v28 }
 0x2c0   : > { %3629 = vmatprep.subr.bf16.mxu0 %v16861_v26  ;;  %3682 = vmatprep.subr.bf16.mxu1 %v16863_v27  ;;  %v3777_v26 = vlaneseq }
 0x2c2   : > { %v3778_v27 = vshrl.u32 %v3777_v26, 7 }
 0x2c3   : > { %3630 = vmatpush1.bf16.msra.mxu0 %v16860_v29  ;;  %3683 = vmatpush1.bf16.msra.mxu1 %v16862_v4 }
 0x2c4   : > { %3631 = vmatprep.subr.bf16.mxu0 %v16869_v35  ;;  %3684 = vmatprep.subr.bf16.mxu1 %v16871_v37  ;;  %v21980_v29 = vsub.s32 0, %v3778_v27  ;;  %v21982_v4 = vsub.s32 2, %v3778_v27  ;;  %v21984_v31 = vsub.s32 1, %v3778_v27  ;;  %v21986_v32 = vsub.s32 3, %v3778_v27 }
 0x2c6   : > { %v3780_v33 = vrot.slane %v3775_v30, %v21980_v29  ;;  %v3788_v35 = vrot.slane %v3775_v30, %v21982_v4  ;;  %v3792_v40 = vrot.slane %v3775_v30, %v21986_v32 }
 0x2c7   : > { %3632 = vmatpush1.bf16.msra.mxu0 %v16868_v34  ;;  %3685 = vmatpush1.bf16.msra.mxu1 %v16870_v38  ;;  %v3784_v38 = vrot.slane %v3775_v30, %v21984_v31 }
 0x2c8   : > { %3633 = vmatprep.subr.bf16.mxu0 %v16877_v43  ;;  %3686 = vmatprep.subr.bf16.mxu1 %v16879_v44 }
 0x2cb   : > { %3634 = vmatpush1.bf16.msra.mxu0 %v16876_v45  ;;  %3687 = vmatpush1.bf16.msra.mxu1 %v16878_v46 }
 0x2cc   : > { %3635 = vmatprep.subr.bf16.mxu0 %v16885_v0  ;;  %3688 = vmatprep.subr.bf16.mxu1 %v16887_v49 }
 0x2cf   : > { %3636 = vmatpush1.bf16.msra.mxu0 %v16884_v50  ;;  %3689 = vmatpush1.bf16.msra.mxu1 %v16886_v53 }
 0x2d0   : > { %6183 = vmatprep.subr.bf16.mxu0 %v18991_v36  ;;  %6312 = vmatprep.subr.bf16.mxu1 %v18994_v22 }
 0x2d2   : > { %3654 = vmatmul.mubr.bf16.vlgmr.msra.gmra.mrb[8].mxu0 %v21954_v20  ;;  %3707 = vmatmul.mubr.bf16.vlgmr.msra.gmra.mrb[8].mxu1 %v21954_v20  ;;  %v19010_v20 = vld [vmem:[#allocation11 + $0x568] ss:$16 sps:$4 sm:$0xff]  }
 0x2d3   : > { %3663 = vmatprep.mubr.bf16.mxu0 %v21944_v9  ;;  %3716 = vmatprep.mubr.bf16.mxu1 %v21944_v9  ;;  %v19001_v9 = vld [vmem:[#allocation11 + $0x540] ss:$16 sps:$4 sm:$0xff]  }
 0x2d4   : > { %6184 = vmatpush1.bf16.msra.mxu0 %v18989_v54  ;;  %6313 = vmatpush1.bf16.msra.mxu1 %v18992_v57 }
 0x2d5   : > { %6185 = vmatprep.subr.bf16.mxu0 %v18997_v59  ;;  %6314 = vmatprep.subr.bf16.mxu1 %v19000_v60 }
 0x2d8   : > { %6186 = vmatpush1.bf16.msra.mxu0 %v18995_v61  ;;  %6315 = vmatpush1.bf16.msra.mxu1 %v18998_v62 }
 0x2d9   : > { %6187 = vmatprep.subr.bf16.mxu0 %v19003_v63  ;;  %6316 = vmatprep.subr.bf16.mxu1 %v19006_v1 }
 0x2da   : > { %3664 = vmatmul.mubr.bf16.gmra.mrb[12].mxu0 %v3192_v12  ;;  %3717 = vmatmul.mubr.bf16.gmra.mrb[12].mxu1 %v3192_v12 }
 0x2dc   : > { %6188 = vmatpush1.bf16.msra.mxu0 %v19001_v9  ;;  %6317 = vmatpush1.bf16.msra.mxu1 %v19004_v3 }
 0x2dd   : > { %6189 = vmatprep.subr.bf16.mxu0 %v19009_v5  ;;  %6318 = vmatprep.subr.bf16.mxu1 %v19012_v6 }
 0x2e0   : > { %6190 = vmatpush1.bf16.msra.mxu0 %v19007_v7  ;;  %6319 = vmatpush1.bf16.msra.mxu1 %v19010_v20 }
 0x2e1   : > { %6191 = vmatprep.subr.bf16.mxu0 %v19015_v39  ;;  %6320 = vmatprep.subr.bf16.mxu1 %v19018_v10 }
 0x2e4   : > { %6192 = vmatpush1.bf16.msra.mxu0 %v19013_v11  ;;  %6321 = vmatpush1.bf16.msra.mxu1 %v19016_v58 }
 0x2e5   : > { %6193 = vmatprep.subr.bf16.mxu0 %v19021_v13  ;;  %6322 = vmatprep.subr.bf16.mxu1 %v19024_v14 }
 0x2e8   : > { %6194 = vmatpush1.bf16.msra.mxu0 %v19019_v15  ;;  %6323 = vmatpush1.bf16.msra.mxu1 %v19022_v16 }
 0x385   : > { %v3549_v47 = vpop.f32.mrb[0].mxu0  ;;  %v3602_v48 = vpop.f32.mrb[0].mxu1 }
 0x386   : > { %v3551_v55 = vpop.f32.mrb[1].mxu0  ;;  %v3604_v51 = vpop.f32.mrb[1].mxu1 }
 0x387   : > { %v3553_v8 = vpop.f32.mrb[2].mxu0  ;;  %v3606_v52 = vpop.f32.mrb[2].mxu1 }
 0x388   : > { %v3555_v56 = vpop.f32.mrb[3].mxu0  ;;  %v3608_v17 = vpop.f32.mrb[3].mxu1 }
 0x38d   : > { %v3559_v18 = vpop.f32.mrb[4].mxu0  ;;  %v3612_v12 = vpop.f32.mrb[4].mxu1 }
 0x38e   : > { %v21968_v19 = vpop.f32.mrb[5].mxu0  ;;  %v21970_v28 = vpop.f32.mrb[5].mxu1 }
 0x38f   : > { %v21972_v21 = vpop.f32.mrb[6].mxu0  ;;  %v21974_v2 = vpop.f32.mrb[6].mxu1 }
 0x390   : > { %v21976_v24 = vpop.f32.mrb[7].mxu0  ;;  %v21978_v25 = vpop.f32.mrb[7].mxu1 }
 0x3a5   : > { %v3655_v37 = vpop.f32.mrb[8].mxu0  ;;  %v3708_v34 = vpop.f32.mrb[8].mxu1 }
 0x3a6   : > { %v3759_v41 = vmax.f32 %v3549_v47, %v3655_v37  ;;  %v3761_v42 = vmax.f32 %v3602_v48, %v3708_v34  ;;  %v3657_v23 = vpop.f32.mrb[9].mxu0  ;;  %v3710_v43 = vpop.f32.mrb[9].mxu1 }
 0x3a7   : > { %v3760_v44 = vmax.f32 %v3551_v55, %v3657_v23  ;;  %v3762_v45 = vmax.f32 %v3604_v51, %v3710_v43  ;;  %v3659_v46 = vpop.f32.mrb[10].mxu0  ;;  %v3712_v0 = vpop.f32.mrb[10].mxu1 }
 0x3a8   : > { %v3797_v49 = vadd.f32 %v3780_v33, %v3759_v41  ;;  %v3799_v50 = vadd.f32 %v3788_v35, %v3761_v42  ;;  %v3763_v53 = vmax.f32 %v3553_v8, %v3659_v46  ;;  %v3765_v54 = vmax.f32 %v3606_v52, %v3712_v0  ;;  %v3661_v36 = vpop.f32.mrb[11].mxu0  ;;  %v3714_v57 = vpop.f32.mrb[11].mxu1 }
 0x3a9   : > { %v3798_v22 = vadd.f32 %v3784_v38, %v3760_v44  ;;  %v3800_v59 = vadd.f32 %v3792_v40, %v3762_v45  ;;  %v3764_v60 = vmax.f32 %v3555_v56, %v3661_v36  ;;  %v3766_v61 = vmax.f32 %v3608_v17, %v3714_v57 }
 0x3aa   : > { %3813 = vst [vmem:[#allocation5] sm:$0xff] %v3797_v49  ;;  %3815 = vst [vmem:[#allocation5 + $0x10] sm:$0xff] %v3799_v50  ;;  %v3801_v62 = vadd.f32 %v3780_v33, %v3763_v53  ;;  %v3803_v63 = vadd.f32 %v3788_v35, %v3765_v54 }
 0x3ab   : > { %3814 = vst [vmem:[#allocation5 + $0x8] sm:$0xff] %v3798_v22  ;;  %3816 = vst [vmem:[#allocation5 + $0x18] sm:$0xff] %v3800_v59  ;;  %v3802_v1 = vadd.f32 %v3784_v38, %v3764_v60  ;;  %v3804_v9 = vadd.f32 %v3792_v40, %v3766_v61 }
 0x3ac   : > { %3817 = vst [vmem:[#allocation5 + $0x20] sm:$0xff] %v3801_v62  ;;  %3819 = vst [vmem:[#allocation5 + $0x30] sm:$0xff] %v3803_v63 }
 0x3ad   : > { %3818 = vst [vmem:[#allocation5 + $0x28] sm:$0xff] %v3802_v1  ;;  %3820 = vst [vmem:[#allocation5 + $0x38] sm:$0xff] %v3804_v9  ;;  %v3665_v3 = vpop.f32.mrb[12].mxu0  ;;  %v3718_v5 = vpop.f32.mrb[12].mxu1 }
 0x3ae   : > { %v3767_v6 = vmax.f32 %v3559_v18, %v3665_v3  ;;  %v3769_v7 = vmax.f32 %v3612_v12, %v3718_v5  ;;  %v3667_v20 = vpop.f32.mrb[13].mxu0  ;;  %v3720_v39 = vpop.f32.mrb[13].mxu1  ;;  %v19025_v3 = vld [vmem:[#allocation11 + $0x5c0] ss:$16 sps:$4 sm:$0xff]  }
 0x3af   : > { %v3768_v10 = vmax.f32 %v21968_v19, %v3667_v20  ;;  %v3770_v11 = vmax.f32 %v21970_v28, %v3720_v39  ;;  %v3669_v58 = vpop.f32.mrb[14].mxu0  ;;  %v3722_v13 = vpop.f32.mrb[14].mxu1 }
 0x3b0   : > { %v3805_v14 = vadd.f32 %v3780_v33, %v3767_v6  ;;  %v3807_v15 = vadd.f32 %v3788_v35, %v3769_v7  ;;  %v3771_v16 = vmax.f32 %v21972_v21, %v3669_v58  ;;  %v3773_v47 = vmax.f32 %v21974_v2, %v3722_v13  ;;  %v3671_v48 = vpop.f32.mrb[15].mxu0  ;;  %v3724_v55 = vpop.f32.mrb[15].mxu1 }
 0x3b1   : > { %v3806_v51 = vadd.f32 %v3784_v38, %v3768_v10  ;;  %v3808_v8 = vadd.f32 %v3792_v40, %v3770_v11  ;;  %v3772_v52 = vmax.f32 %v21976_v24, %v3671_v48  ;;  %v3774_v56 = vmax.f32 %v21978_v25, %v3724_v55 }
 0x3b2   : > { %3821 = vst [vmem:[#allocation5 + $0x40] sm:$0xff] %v3805_v14  ;;  %3823 = vst [vmem:[#allocation5 + $0x50] sm:$0xff] %v3807_v15  ;;  %v3809_v17 = vadd.f32 %v3780_v33, %v3771_v16  ;;  %v3811_v18 = vadd.f32 %v3788_v35, %v3773_v47  ;;  %v3983_v12 = vld [vmem:[#allocation5 + $0x4] ss:$8 sm:$0xf] }
 0x3b3   : > { %v3985_v19 = vld [vmem:[#allocation5 + $0x5] ss:$8 sm:$0xf]  ;;  %3822 = vst [vmem:[#allocation5 + $0x48] sm:$0xff] %v3806_v51  ;;  %3824 = vst [vmem:[#allocation5 + $0x58] sm:$0xff] %v3808_v8  ;;  %v3810_v28 = vadd.f32 %v3784_v38, %v3772_v52  ;;  %v3812_v21 = vadd.f32 %v3792_v40, %v3774_v56 }
 0x3b4   : > { %v21998_v26 = vmax.f32 %v3983_v12, %v3985_v19  ;;  %v3829_v2 = vld [vmem:[#allocation5] ss:$8 sm:$0xf]  ;;  %v3831_v27 = vld [vmem:[#allocation5 + $0x1] ss:$8 sm:$0xf] }
 0x3b5   : > { %3825 = vst [vmem:[#allocation5 + $0x60] sm:$0xff] %v3809_v17  ;;  %3827 = vst [vmem:[#allocation5 + $0x70] sm:$0xff] %v3811_v18  ;;  %v22000_v30 = vmax.f32 %v3829_v2, %v3831_v27  ;;  %v4285_v24 = vld [vmem:[#allocation5 + $0x24] ss:$8 sm:$0xf] }
 0x3b6   : > { %v4287_v25 = vld [vmem:[#allocation5 + $0x25] ss:$8 sm:$0xf]  ;;  %3826 = vst [vmem:[#allocation5 + $0x68] sm:$0xff] %v3810_v28  ;;  %3828 = vst [vmem:[#allocation5 + $0x78] sm:$0xff] %v3812_v21  ;;  %v3991_v33 = vrot.slane %v21998_v26, %v21980_v29  ;;  %v3995_v35 = vrot.slane %v21998_v26, %v21984_v31 }
 0x3b7   : > { %v22006_v37 = vmax.f32 %v4285_v24, %v4287_v25  ;;  %v4134_v34 = vld [vmem:[#allocation5 + $0x20] ss:$8 sm:$0xf]  ;;  %v4136_v38 = vld [vmem:[#allocation5 + $0x21] ss:$8 sm:$0xf]  ;;  %v3837_v40 = vrot.slane %v22000_v30, %v21980_v29  ;;  %v3841_v41 = vrot.slane %v22000_v30, %v21984_v31 }
 0x3b8   : > { %v22012_v42 = vmax.f32 %v4134_v34, %v4136_v38  ;;  %v4208_v23 = vld [vmem:[#allocation5 + $0x22] ss:$8 sm:$0xf]  ;;  %v4210_v43 = vld [vmem:[#allocation5 + $0x23] ss:$8 sm:$0xf]  ;;  %v18328_v44 = vpack.c.bf16 %v3995_v35, %v3991_v33 }
 0x3b9   : > { %v4293_v45 = vrot.slane %v22006_v37, %v21980_v29  ;;  %v22016_v46 = vmax.f32 %v4208_v23, %v4210_v43  ;;  %v4356_v0 = vld [vmem:[#allocation5 + $0x26] ss:$8 sm:$0xf]  ;;  %v4358_v49 = vld [vmem:[#allocation5 + $0x27] ss:$8 sm:$0xf]  ;;  %v18324_v50 = vpack.c.bf16 %v3841_v41, %v3837_v40  ;;  %v4297_v60 = vrot.slane %v22006_v37, %v21984_v31 }
 0x3ba   : > { %v4142_v53 = vrot.slane %v22012_v42, %v21980_v29  ;;  %v4146_v54 = vrot.slane %v22012_v42, %v21984_v31  ;;  %v22022_v36 = vmax.f32 %v4356_v0, %v4358_v49  ;;  %v3906_v57 = vld [vmem:[#allocation5 + $0x2] ss:$8 sm:$0xf]  ;;  %v3908_v22 = vld [vmem:[#allocation5 + $0x3] ss:$8 sm:$0xf] }
 0x3bb   : > { %v4022_v59 = vrot.slane %v18328_v44, 6  ;;  %v4216_v61 = vrot.slane %v22016_v46, %v21980_v29  ;;  %v4220_v62 = vrot.slane %v22016_v46, %v21984_v31  ;;  %v3868_v63 = vrot.slane %v18324_v50, 7  ;;  %v4563_v9 = vld [vmem:[#allocation5 + $0x44] ss:$8 sm:$0xf] }
 0x3bc   : > { %v18332_v1 = vpack.c.bf16 %v4146_v54, %v4142_v53  ;;  %v4565_v5 = vld [vmem:[#allocation5 + $0x45] ss:$8 sm:$0xf]  ;;  %v4431_v6 = vld [vmem:[#allocation5 + $0x40] ss:$8 sm:$0xf]  ;;  %v4364_v7 = vrot.slane %v22022_v36, %v21980_v29  ;;  %v22033_v20 = vmax.f32 %v3906_v57, %v3908_v22  ;;  %v4368_v13 = vrot.slane %v22022_v36, %v21984_v31 }
 0x3bd   : > { %4024 = vrot.lane.b32.xlu0 %v4022_v59, %s21412_s22  ;;  %3870 = vrot.lane.b32.xlu1 %v3868_v63, %s21412_s22  ;;  %v22036_v10 = vmax.f32 %v4563_v9, %v4565_v5  ;;  %v4433_v11 = vld [vmem:[#allocation5 + $0x41] ss:$8 sm:$0xf]  ;;  %v18334_v58 = vpack.c.bf16 %v4220_v62, %v4216_v61  ;;  %v18336_v15 = vpack.c.bf16 %v4297_v60, %v4293_v45  ;;  %v4827_v47 = vld [vmem:[#allocation5 + $0x64] ss:$8 sm:$0xf] }
 0x3be   : > { %v4173_v39 = vrot.slane %v18332_v1, 5  ;;  %v19027_v14 = vld [vmem:[#allocation11 + $0x5c4] ss:$16 sps:$4 sm:$0xff]   ;;  %v22040_v16 = vmax.f32 %v4431_v6, %v4433_v11  ;;  %v4829_v48 = vld [vmem:[#allocation5 + $0x65] ss:$8 sm:$0xf]  ;;  %v3914_v55 = vrot.slane %v22033_v20, %v21980_v29  ;;  %v3918_v12 = vrot.slane %v22033_v20, %v21984_v31 }
 0x3bf   : > { %v4057_v51 = vld [vmem:[#allocation5 + $0x6] ss:$8 sm:$0xf]  ;;  %v4571_v8 = vrot.slane %v22036_v10, %v21980_v29  ;;  %v4575_v52 = vrot.slane %v22036_v10, %v21984_v31  ;;  %v22048_v56 = vmax.f32 %v4827_v47, %v4829_v48  ;;  %v4695_v17 = vld [vmem:[#allocation5 + $0x60] ss:$8 sm:$0xf]  ;;  %6195 = vmatprep.subr.bf16.mxu0 %v19027_v14  ;;  %v18338_v33 = vpack.c.bf16 %v4368_v13, %v4364_v7 }
 0x3c0   : > { %v4697_v18 = vld [vmem:[#allocation5 + $0x61] ss:$8 sm:$0xf]  ;;  %v4439_v19 = vrot.slane %v22040_v16, %v21980_v29  ;;  %v4443_v28 = vrot.slane %v22040_v16, %v21984_v31  ;;  %v4059_v2 = vld [vmem:[#allocation5 + $0x7] ss:$8 sm:$0xf]  ;;  %6196 = vmatpush1.bf16.msra.mxu0 %v19025_v3  ;;  %v18326_v0 = vpack.c.bf16 %v3918_v12, %v3914_v55 }
 0x3c1   : > { %4324 = vrot.lane.b32.xlu0 %v18336_v15, %s21412_s22  ;;  %v22057_v21 = vmax.f32 %v4695_v17, %v4697_v18  ;;  %v19028_v27 = vld [vmem:[#allocation11 + $0x5c8] ss:$16 sps:$4 sm:$0xff]   ;;  %4175 = vrot.lane.b32.xlu1 %v4173_v39, %s21412_s22  ;;  %v18344_v24 = vpack.c.bf16 %v4575_v52, %v4571_v8  ;;  %v4248_v25 = vshll.u32 %v18334_v58, 16  ;;  %v4758_v35 = vld [vmem:[#allocation5 + $0x62] ss:$8 sm:$0xf]  ;;  %v4835_v40 = vrot.slane %v22048_v56, %v21980_v29 }
 0x3c2   : > { %v19030_v34 = vld [vmem:[#allocation11 + $0x5cc] ss:$16 sps:$4 sm:$0xff]   ;;  %v18340_v38 = vpack.c.bf16 %v4443_v28, %v4439_v19  ;;  %v4839_v45 = vrot.slane %v22048_v56, %v21984_v31  ;;  %v22068_v49 = vmax.f32 %v4057_v51, %v4059_v2  ;;  %v19031_v59 = vld [vmem:[#allocation11 + $0x5e0] ss:$16 sps:$4 sm:$0xff]   ;;  %v3946_v60 = vshll.u32 %v18326_v0, 16 }
 0x3c3   : > { %v4703_v41 = vrot.slane %v22057_v21, %v21980_v29  ;;  %v4707_v23 = vrot.slane %v22057_v21, %v21984_v31  ;;  %v4760_v43 = vld [vmem:[#allocation5 + $0x63] ss:$8 sm:$0xf]  ;;  %v4602_v44 = vrot.slane %v18344_v24, 6  ;;  %6324 = vmatprep.subr.bf16.mxu1 %v19030_v34  ;;  %v4250_v3 = vrot.slane %v4248_v25, 5 }
 0x3c4   : > { %v4494_v50 = vld [vmem:[#allocation5 + $0x42] ss:$8 sm:$0xf]  ;;  %v4470_v53 = vrot.slane %v18340_v38, 7  ;;  %v22070_v57 = vmax.f32 %v4758_v35, %v4760_v43  ;;  %6325 = vmatpush1.bf16.msra.mxu1 %v19028_v27  ;;  %v4065_v61 = vrot.slane %v22068_v49, %v21980_v29  ;;  %v4069_v62 = vrot.slane %v22068_v49, %v21984_v31  ;;  %v19034_v47 = vld [vmem:[#allocation11 + $0x5e8] ss:$16 sps:$4 sm:$0xff]  }
 0x3c5   : > { %v18348_v54 = vpack.c.bf16 %v4707_v23, %v4703_v41  ;;  %v4496_v22 = vld [vmem:[#allocation5 + $0x43] ss:$8 sm:$0xf]  ;;  %4604 = vrot.lane.b32.xlu0 %v4602_v44, %s21412_s22  ;;  %v4626_v1 = vld [vmem:[#allocation5 + $0x46] ss:$8 sm:$0xf]  ;;  %v18352_v11 = vpack.c.bf16 %v4839_v45, %v4835_v40  ;;  %v3845_v24 = vrot.slane %v22000_v30, %v21982_v4  ;;  %v3849_v40 = vrot.slane %v22000_v30, %v21986_v32 }
 0x3c6   : > { %v22077_v63 = vmax.f32 %v4494_v50, %v4496_v22  ;;  %v19033_v9 = vld [vmem:[#allocation11 + $0x5e4] ss:$16 sps:$4 sm:$0xff]   ;;  %4472 = vrot.lane.b32.xlu1 %v4470_v53, %s21412_s22  ;;  %v4396_v5 = vshll.u32 %v18338_v33, 16  ;;  %v4766_v6 = vrot.slane %v22070_v57, %v21980_v29  ;;  %v4770_v7 = vrot.slane %v22070_v57, %v21984_v31  ;;  %v4628_v39 = vld [vmem:[#allocation5 + $0x47] ss:$8 sm:$0xf] }
 0x3c7   : > { %v18330_v58 = vpack.c.bf16 %v4069_v62, %v4065_v61  ;;  %v4888_v15 = vld [vmem:[#allocation5 + $0x66] ss:$8 sm:$0xf]  ;;  %6197 = vmatprep.subr.bf16.mxu0 %v19033_v9  ;;  %v4734_v48 = vrot.slane %v18348_v54, 5  ;;  %v22088_v51 = vmax.f32 %v4626_v1, %v4628_v39  ;;  %v19036_v52 = vld [vmem:[#allocation11 + $0x5ec] ss:$16 sps:$4 sm:$0xff]   ;;  %v4150_v61 = vrot.slane %v22012_v42, %v21982_v4 }
 0x3c8   : > { %v4502_v13 = vrot.slane %v22077_v63, %v21980_v29  ;;  %v4506_v14 = vrot.slane %v22077_v63, %v21984_v31  ;;  %v18350_v55 = vpack.c.bf16 %v4770_v7, %v4766_v6  ;;  %v4890_v8 = vld [vmem:[#allocation5 + $0x67] ss:$8 sm:$0xf]  ;;  %6198 = vmatpush1.bf16.msra.mxu0 %v19031_v59  ;;  %v3948_v17 = vrot.slane %v3946_v60, 7  ;;  %6326 = vmatprep.subr.bf16.mxu1 %v19036_v52  ;;  %v19039_v33 = vld [vmem:[#allocation11 + $0x604] ss:$16 sps:$4 sm:$0xff]  }
 0x3c9   : > { %4866 = vrot.lane.b32.xlu0 %v18352_v11, %s21412_s22  ;;  %v4097_v18 = vshll.u32 %v18330_v58, 16  ;;  %v22091_v19 = vmax.f32 %v4888_v15, %v4890_v8  ;;  %v4634_v2 = vrot.slane %v22088_v51, %v21980_v29  ;;  %v4638_v27 = vrot.slane %v22088_v51, %v21984_v31  ;;  %v19037_v25 = vld [vmem:[#allocation11 + $0x600] ss:$16 sps:$4 sm:$0xff]   ;;  %6327 = vmatpush1.bf16.msra.mxu1 %v19034_v47  ;;  %v19040_v41 = vld [vmem:[#allocation11 + $0x608] ss:$16 sps:$4 sm:$0xff]  }
 0x3ca   : > { %v18342_v12 = vpack.c.bf16 %v4506_v14, %v4502_v13  ;;  %4736 = vrot.lane.b32.xlu1 %v4734_v48, %s21412_s22  ;;  %v4798_v28 = vshll.u32 %v18350_v55, 16  ;;  %v18949_v35 = vpack.i.bf16 %v4396_v5, %v4250_v3  ;;  %v19042_v23 = vld [vmem:[#allocation11 + $0x60c] ss:$16 sps:$4 sm:$0xff]   ;;  %6199 = vmatprep.subr.bf16.mxu0 %v19039_v33  ;;  %v19045_v50 = vld [vmem:[#allocation11 + $0x624] ss:$16 sps:$4 sm:$0xff]   ;;  %v18325_v60 = vpack.c.bf16 %v3849_v40, %v3845_v24 }
 0x3cb   : > { %v4099_v34 = vrot.slane %v4097_v18, 6  ;;  %v18346_v43 = vpack.c.bf16 %v4638_v27, %v4634_v2  ;;  %v4896_v45 = vrot.slane %v22091_v19, %v21980_v29  ;;  %v4900_v0 = vrot.slane %v22091_v19, %v21984_v31  ;;  %6328 = vmatprep.subr.bf16.mxu1 %v19042_v23  ;;  %v19043_v30 = vld [vmem:[#allocation11 + $0x620] ss:$16 sps:$4 sm:$0xff]   ;;  %v19048_v22 = vld [vmem:[#allocation11 + $0x62c] ss:$16 sps:$4 sm:$0xff]  }
 0x3cc   : > { %v4534_v38 = vshll.u32 %v18342_v12, 16  ;;  %6200 = vmatpush1.bf16.msra.mxu0 %v19037_v25  ;;  %v4800_v59 = vrot.slane %v4798_v28, 5  ;;  %v4154_v62 = vrot.slane %v22012_v42, %v21986_v32  ;;  %v19046_v1 = vld [vmem:[#allocation11 + $0x628] ss:$16 sps:$4 sm:$0xff]   ;;  %v19051_v9 = vld [vmem:[#allocation11 + $0x644] ss:$16 sps:$4 sm:$0xff]   ;;  %v3999_v5 = vrot.slane %v21998_v26, %v21982_v4 }
 0x3cd   : > { %18950 = vrot.lane.b32.xlu0 %v18949_v35, %s21412_s22  ;;  %v18944_v44 = vpack.i.bf16 %v4099_v34, %v3948_v17  ;;  %v4666_v54 = vshll.u32 %v18346_v43, 16  ;;  %6329 = vmatpush1.bf16.msra.mxu1 %v19040_v41  ;;  %v4003_v6 = vrot.slane %v21998_v26, %v21986_v32  ;;  %v18354_v7 = vpack.c.bf16 %v4900_v0, %v4896_v45  ;;  %v19054_v58 = vld [vmem:[#allocation11 + $0x64c] ss:$16 sps:$4 sm:$0xff]   ;;  %v19049_v47 = vld [vmem:[#allocation11 + $0x640] ss:$16 sps:$4 sm:$0xff]  }
 0x3ce   : > { %v4536_v53 = vrot.slane %v4534_v38, 7  ;;  %6201 = vmatprep.subr.bf16.mxu0 %v19045_v50  ;;  %6330 = vmatprep.subr.bf16.mxu1 %v19048_v22  ;;  %v4447_v39 = vrot.slane %v22040_v16, %v21982_v4  ;;  %v4451_v42 = vrot.slane %v22040_v16, %v21986_v32  ;;  %v3922_v11 = vrot.slane %v22033_v20, %v21982_v4  ;;  %v19052_v16 = vld [vmem:[#allocation11 + $0x648] ss:$16 sps:$4 sm:$0xff]   ;;  %v19057_v8 = vld [vmem:[#allocation11 + $0x664] ss:$16 sps:$4 sm:$0xff]  }
 0x3cf   : > { %18945 = vrot.lane.b32.xlu1 %v18944_v44, %s21412_s22  ;;  %v4668_v3 = vrot.slane %v4666_v54, 6  ;;  %v3926_v14 = vrot.slane %v22033_v20, %v21986_v32  ;;  %v4073_v26 = vrot.slane %v22068_v49, %v21982_v4  ;;  %v4077_v15 = vrot.slane %v22068_v49, %v21986_v32  ;;  %v19060_v17 = vld [vmem:[#allocation11 + $0x66c] ss:$16 sps:$4 sm:$0xff]   ;;  %v19055_v24 = vld [vmem:[#allocation11 + $0x660] ss:$16 sps:$4 sm:$0xff]  }
 0x3d0   : > { %6202 = vmatpush1.bf16.msra.mxu0 %v19043_v30  ;;  %v3869_v48 = vrot.slane %v18325_v60, 7  ;;  %v18333_v55 = vpack.c.bf16 %v4154_v62, %v4150_v61  ;;  %v18329_v52 = vpack.c.bf16 %v4003_v6, %v3999_v5  ;;  %v4928_v20 = vshll.u32 %v18354_v7, 16  ;;  %v19063_v38 = vld [vmem:[#allocation11 + $0x684] ss:$16 sps:$4 sm:$0xff]   ;;  %v19066_v41 = vld [vmem:[#allocation11 + $0x68c] ss:$16 sps:$4 sm:$0xff]  }
 0x3d1   : > { %4805 = vrot.lane.b32.xlu0 %v4800_v59, %s21412_s22  ;;  %v18954_v13 = vpack.i.bf16 %v4668_v3, %v4536_v53  ;;  %6331 = vmatpush1.bf16.msra.mxu1 %v19046_v1  ;;  %v18341_v18 = vpack.c.bf16 %v4451_v42, %v4447_v39  ;;  %v4711_v12 = vrot.slane %v22057_v21, %v21982_v4  ;;  %v19061_v53 = vld [vmem:[#allocation11 + $0x680] ss:$16 sps:$4 sm:$0xff]   ;;  %v19064_v59 = vld [vmem:[#allocation11 + $0x688] ss:$16 sps:$4 sm:$0xff]   ;;  %v19069_v60 = vld [vmem:[#allocation11 + $0x6a4] ss:$16 sps:$4 sm:$0xff]  }
 0x3d2   : > { %6203 = vmatprep.subr.bf16.mxu0 %v19051_v9  ;;  %6332 = vmatprep.subr.bf16.mxu1 %v19054_v58  ;;  %v4715_v49 = vrot.slane %v22057_v21, %v21986_v32  ;;  %v18327_v28 = vpack.c.bf16 %v3926_v14, %v3922_v11  ;;  %v18331_v2 = vpack.c.bf16 %v4077_v15, %v4073_v26  ;;  %v4174_v25 = vrot.slane %v18333_v55, 5  ;;  %v19058_v21 = vld [vmem:[#allocation11 + $0x668] ss:$16 sps:$4 sm:$0xff]   ;;  %v19067_v9 = vld [vmem:[#allocation11 + $0x6a0] ss:$16 sps:$4 sm:$0xff]  }
 0x3d3   : > { %18955 = vrot.lane.b32.xlu1 %v18954_v13, %s21412_s22  ;;  %v4510_v27 = vrot.slane %v22077_v63, %v21982_v4  ;;  %v4514_v33 = vrot.slane %v22077_v63, %v21986_v32  ;;  %v4642_v35 = vrot.slane %v22088_v51, %v21982_v4  ;;  %v4646_v34 = vrot.slane %v22088_v51, %v21986_v32  ;;  %v19070_v3 = vld [vmem:[#allocation11 + $0x6a8] ss:$16 sps:$4 sm:$0xff]   ;;  %v19075_v42 = vld [vmem:[#allocation11 + $0x6c4] ss:$16 sps:$4 sm:$0xff]   ;;  %v19073_v55 = vld [vmem:[#allocation11 + $0x6c0] ss:$16 sps:$4 sm:$0xff]  }
 0x3d4   : > { %6204 = vmatpush1.bf16.msra.mxu0 %v19049_v47  ;;  %v4023_v40 = vrot.slane %v18329_v52, 6  ;;  %v4301_v63 = vrot.slane %v22006_v37, %v21982_v4  ;;  %v4305_v23 = vrot.slane %v22006_v37, %v21986_v32  ;;  %v4579_v51 = vrot.slane %v22036_v10, %v21982_v4 }
 0x3d5   : > { %3872 = vrot.lane.b32.xlu0 %v3869_v48, %s21412_s22  ;;  %6333 = vmatpush1.bf16.msra.mxu1 %v19052_v16  ;;  %v4583_v43 = vrot.slane %v22036_v10, %v21986_v32  ;;  %v4471_v44 = vrot.slane %v18341_v18, 7  ;;  %v18349_v45 = vpack.c.bf16 %v4715_v49, %v4711_v12  ;;  %v4224_v0 = vrot.slane %v22016_v46, %v21982_v4  ;;  %v19072_v10 = vld [vmem:[#allocation11 + $0x6ac] ss:$16 sps:$4 sm:$0xff]  }
 0x3d6   : > { %6205 = vmatprep.subr.bf16.mxu0 %v19057_v8  ;;  %6334 = vmatprep.subr.bf16.mxu1 %v19060_v17  ;;  %v4228_v50 = vrot.slane %v22016_v46, %v21986_v32  ;;  %v3950_v54 = vshll.u32 %v18327_v28, 16  ;;  %v4101_v30 = vshll.u32 %v18331_v2, 16  ;;  %v18343_v22 = vpack.c.bf16 %v4514_v33, %v4510_v27  ;;  %v19078_v16 = vld [vmem:[#allocation11 + $0x6cc] ss:$16 sps:$4 sm:$0xff]   ;;  %v19079_v28 = vld [vmem:[#allocation11 + $0x6e0] ss:$16 sps:$4 sm:$0xff]  }
 0x3d7   : > { %4933 = vrot.lane.b32.xlu1 %v4928_v20, %s21412_s22  ;;  %v18347_v37 = vpack.c.bf16 %v4646_v34, %v4642_v35  ;;  %v18345_v61 = vpack.c.bf16 %v4583_v43, %v4579_v51  ;;  %v18337_v62 = vpack.c.bf16 %v4305_v23, %v4301_v63  ;;  %v4735_v1 = vrot.slane %v18349_v45, 5  ;;  %v19084_v2 = vld [vmem:[#allocation11 + $0x6ec] ss:$16 sps:$4 sm:$0xff]  }
 0x3d8   : > { %6206 = vmatpush1.bf16.msra.mxu0 %v19055_v24  ;;  %v18335_v46 = vpack.c.bf16 %v4228_v50, %v4224_v0  ;;  %v3952_v5 = vrot.slane %v3950_v54, 7  ;;  %v4103_v6 = vrot.slane %v4101_v30, 6  ;;  %v4538_v7 = vshll.u32 %v18343_v22, 16  ;;  %v19090_v33 = vld [vmem:[#allocation11 + $0x70c] ss:$16 sps:$4 sm:$0xff]  }
 0x3d9   : > { %4177 = vrot.lane.b32.xlu0 %v4174_v25, %s21412_s22  ;;  %6335 = vmatpush1.bf16.msra.mxu1 %v19058_v21  ;;  %v4670_v39 = vshll.u32 %v18347_v37, 16  ;;  %v4372_v11 = vrot.slane %v22022_v36, %v21982_v4  ;;  %v4376_v58 = vrot.slane %v22022_v36, %v21986_v32  ;;  %v4603_v13 = vrot.slane %v18345_v61, 6  ;;  %v19087_v25 = vld [vmem:[#allocation11 + $0x704] ss:$16 sps:$4 sm:$0xff]  }
 0x3da   : > { %6207 = vmatprep.subr.bf16.mxu0 %v19063_v38  ;;  %6336 = vmatprep.subr.bf16.mxu1 %v19066_v41  ;;  %v4843_v14 = vrot.slane %v22048_v56, %v21982_v4  ;;  %v4847_v26 = vrot.slane %v22048_v56, %v21986_v32  ;;  %v4252_v15 = vshll.u32 %v18335_v46, 16  ;;  %v4904_v47 = vrot.slane %v22091_v19, %v21982_v4  ;;  %v19076_v56 = vld [vmem:[#allocation11 + $0x6c8] ss:$16 sps:$4 sm:$0xff]  }
 0x3db   : > { %4026 = vrot.lane.b32.xlu1 %v4023_v40, %s21412_s22  ;;  %v4774_v48 = vrot.slane %v22070_v57, %v21982_v4  ;;  %v4778_v36 = vrot.slane %v22070_v57, %v21986_v32  ;;  %v18959_v8 = vpack.i.bf16 %v4103_v6, %v3952_v5  ;;  %v4540_v52 = vrot.slane %v4538_v7, 7  ;;  %v19081_v4 = vld [vmem:[#allocation11 + $0x6e4] ss:$16 sps:$4 sm:$0xff]  }
 0x3dc   : > { %6208 = vmatpush1.bf16.msra.mxu0 %v19061_v53  ;;  %v4672_v17 = vrot.slane %v4670_v39, 6  ;;  %v4908_v20 = vrot.slane %v22091_v19, %v21986_v32  ;;  %v18339_v18 = vpack.c.bf16 %v4376_v58, %v4372_v11  ;;  %v18353_v57 = vpack.c.bf16 %v4847_v26, %v4843_v14  ;;  %v19082_v32 = vld [vmem:[#allocation11 + $0x6e8] ss:$16 sps:$4 sm:$0xff]   ;;  %v4616_v58 = vld [vmem:[#allocation3 + $0x14] sm:$0x44] }
 0x3dd   : > { %4474 = vrot.lane.b32.xlu0 %v4471_v44, %s21412_s22  ;;  %6337 = vmatpush1.bf16.msra.mxu1 %v19064_v59  ;;  %v4254_v12 = vrot.slane %v4252_v15, 5  ;;  %v18351_v49 = vpack.c.bf16 %v4778_v36, %v4774_v48  ;;  %v23227_v40 = vmov 0  ;;  %v23229_v41 = vmov 0  ;;  %v4042_v44 = vld [vmem:[#allocation3] sm:$0x44] }
 0x3de   : > { %6209 = vmatprep.subr.bf16.mxu0 %v19069_v60  ;;  %6338 = vmatprep.subr.bf16.mxu1 %v19072_v10  ;;  %v18969_v27 = vpack.i.bf16 %v4672_v17, %v4540_v52  ;;  %v18355_v24 = vpack.c.bf16 %v4908_v20, %v4904_v47  ;;  %v4399_v19 = vshll.u32 %v18339_v18, 16  ;;  %v23228_v40 = vsel %vm22188_vm4, 4294967295, %v23227_v40  ;;  %v3891_v53 = vld [vmem:[#allocation3] sm:$0x22]  ;;  %v4484_v15 = vld [vmem:[#allocation3 + $0x14] sm:$0x22] }
 0x3df   : > { %4326 = vrot.lane.b32.xlu1 %v18337_v62, %s21412_s22  ;;  %v4802_v34 = vshll.u32 %v18351_v49, 16  ;;  %v23230_v41 = vsel %vm22195_vm9, 4294967295, %v23229_v41  ;;  %v23231_v63 = vmov 0  ;;  %v23233_v23 = vmov 0  ;;  %v4342_v62 = vld [vmem:[#allocation3 + $0x14] sm:$0x11] }
 0x3e0   : > { %6210 = vmatpush1.bf16.msra.mxu0 %v19067_v9  ;;  %v18964_v35 = vpack.i.bf16 %v4399_v19, %v4254_v12  ;;  %v4931_v21 = vshll.u32 %v18355_v24, 16  ;;  %v23232_v63 = vsel %vm22201_vm11, 4294967295, %v23231_v63  ;;  %v23234_v23 = vsel %vm22207_vm12, 4294967295, %v23233_v23  ;;  %v4878_v20 = vld [vmem:[#allocation3 + $0x28] sm:$0x11] }
 0x3e1   : > { %4738 = vrot.lane.b32.xlu0 %v4735_v1, %s21412_s22  ;;  %6339 = vmatpush1.bf16.msra.mxu1 %v19070_v3  ;;  %v4804_v38 = vrot.slane %v4802_v34, 5  ;;  %v23237_v50 = vmov 0  ;;  %v23239_v22 = vmov 0  ;;  %v23241_v61 = vmov 0  ;;  %v4193_v3 = vld [vmem:[#allocation3] sm:$0x88] }
 0x3e2   : > { %6211 = vmatprep.subr.bf16.mxu0 %v19075_v42  ;;  %6340 = vmatprep.subr.bf16.mxu1 %v19078_v16  ;;  %v23238_v50 = vsel %vm22223_vm5, 4294967295, %v23237_v50  ;;  %v23240_v22 = vsel %vm22236_vm8, 4294967295, %v23239_v22  ;;  %v23242_v61 = vsel %vm22254_vm7, 4294967295, %v23241_v61  ;;  %v23243_v9 = vmov 0 }
 0x3e3   : > { %4606 = vrot.lane.b32.xlu1 %v4603_v13, %s21412_s22  ;;  %v23244_v9 = vsel %vm22263_vm6, 4294967295, %v23243_v9  ;;  %v23248_v48 = vmov 0  ;;  %vm4269_vm5 = vsmask.f32 7966  ;;  %vm23251_vm4 = vsmask.f32 7942 }
 0x3e4   : > { %6212 = vmatpush1.bf16.msra.mxu0 %v19073_v55  ;;  %vm22303_vm13 = vmand %vm23252_vm10, %vm23251_vm4  ;;  %v23253_v55 = vmov 0  ;;  %vm23256_vm4 = vcmask 1043971   ;;  %vm4415_vm10 = vsmask.f32 7954  ;;  %v23260_v49 = vmov 0 }
 0x3e5   : > { %18960 = vrot.lane.b32.xlu0 %v18959_v8, %s21412_s22  ;;  %6341 = vmatpush1.bf16.msra.mxu1 %v19076_v56  ;;  %v23254_v55 = vsel %vm22303_vm13, 4294967295, %v23253_v55  ;;  %v23269_v19 = vmov 0 }
 0x3e6   : > { %6213 = vmatprep.subr.bf16.mxu0 %v19081_v4  ;;  %6342 = vmatprep.subr.bf16.mxu1 %v19084_v2 }
 0x3e7   : > { %4868 = vrot.lane.b32.xlu1 %v18353_v57, %s21412_s22  ;;  %v4748_v57 = vld [vmem:[#allocation3 + $0x14] sm:$0x88] }
 0x3e8   : > { %6214 = vmatpush1.bf16.msra.mxu0 %v19079_v28 }
 0x3e9   : > { %18970 = vrot.lane.b32.xlu0 %v18969_v27, %s21412_s22  ;;  %6343 = vmatpush1.bf16.msra.mxu1 %v19082_v32 }
 0x3ea   : > { %6226 = vmatprep.subr.bf16.mxu0 %v19087_v25  ;;  %6355 = vmatprep.subr.bf16.mxu1 %v19090_v33  ;;  %v23272_v25 = vmov 0 }
 0x3eb   : > { %18965 = vrot.lane.b32.xlu1 %v18964_v35, %s21412_s22 }
 0x3ed   : > { %4935 = vrot.lane.b32.xlu0 %v4931_v21, %s21412_s22 }
 0x3ef   : > { %4807 = vrot.lane.b32.xlu1 %v4804_v38, %s21412_s22  ;;  %v23274_v38 = vmov 0 }
 0x42f   : > { %v22211_v51 = vpop.permute.xlu0 %4024  ;;  %v22220_v0 = vpop.permute.xlu1 %3870 }
 0x430   : > { %v4028_v45 = vrot.slane %v22211_v51, 4  ;;  %v3874_v54 = vrot.slane %v22220_v0, 4 }
 0x432   : > { %v4030_v30 = vsel %vm23161_vm2, %v4028_v45, %v22211_v51  ;;  %v3877_v59 = vsel %vm23161_vm2, %v3874_v54, %v22220_v0  ;;  %v23304_v0 = vmov 0 }
 0x433   : > { %v4043_v37 = vsel %vm22201_vm11, %v4030_v30, %v4042_v44  ;;  %v22246_v60 = vpop.permute.xlu0 %4324  ;;  %v3892_v10 = vsel %vm22207_vm12, %v3877_v59, %v3891_v53  ;;  %v22259_v46 = vpop.permute.xlu1 %4175  ;;  %v23278_v59 = vmov 0 }
 0x434   : > { %4044 = vst [vmem:[#allocation3] sm:$0x44] %v4043_v37  ;;  %v4328_v1 = vrot.slane %v22246_v60, 4  ;;  %3893 = vst [vmem:[#allocation3] sm:$0x22] %v3892_v10  ;;  %v4179_v5 = vrot.slane %v22259_v46, 4 }
 0x435   : > { %v23276_v37 = vmov 0 }
 0x436   : > { %v4330_v6 = vsel %vm23161_vm2, %v4328_v1, %v22246_v60  ;;  %v4181_v39 = vsel %vm23161_vm2, %v4179_v5, %v22259_v46  ;;  %vm22293_vm2 = vmand %vm23247_vm14, %vm4118_vm0  ;;  %vm23259_vm0 = vcmask 1047559  }
 0x437   : > { %v4343_v7 = vsel %vm22254_vm7, %v4330_v6, %v4342_v62  ;;  %v4194_v42 = vsel %vm22263_vm6, %v4181_v39, %v4193_v3  ;;  %v22280_v11 = vpop.permute.xlu0 %4604  ;;  %v23249_v48 = vsel %vm22293_vm2, 4294967295, %v23248_v48  ;;  %vm23255_vm14 = vmmov %vm23250_vm3  ;;  %v23281_v62 = vmov 0 }
 0x438   : > { %4344 = vst [vmem:[#allocation3 + $0x14] sm:$0x11] %v4343_v7  ;;  %4195 = vst [vmem:[#allocation3] sm:$0x88] %v4194_v42  ;;  %v4608_v13 = vrot.slane %v22280_v11, 4  ;;  %v22283_v14 = vpop.permute.xlu1 %4472 }
 0x439   : > { %v4476_v47 = vrot.slane %v22283_v14, 4 }
 0x43a   : > { %v4610_v36 = vsel %vm23250_vm3, %v4608_v13, %v22280_v11  ;;  %vm22322_vm3 = vmand %vm23256_vm4, %vm23169_vm15  ;;  %vm23263_vm4 = vsmask.f32 7938  ;;  %vm23264_vm15 = vcmask 1040896  }
 0x43b   : > { %v4617_v16 = vsel %vm22201_vm11, %v4610_v36, %v4616_v58  ;;  %v4478_v8 = vsel %vm23255_vm14, %v4476_v47, %v22283_v14  ;;  %v22313_v52 = vpop.permute.xlu0 %4866  ;;  %vm3967_vm14 = vsmask.f32 7958  ;;  %vm23262_vm11 = vcmask 523264   ;;  %vm22339_vm8 = vmand %vm23264_vm15, %vm23263_vm4 }
 0x43c   : > { %4618 = vst [vmem:[#allocation3 + $0x14] sm:$0x44] %v4617_v16  ;;  %v4485_v17 = vsel %vm22207_vm12, %v4478_v8, %v4484_v15  ;;  %v4870_v56 = vrot.slane %v22313_v52, 4  ;;  %v22318_v18 = vpop.permute.xlu1 %4736  ;;  %vm22329_vm12 = vmand %vm23259_vm0, %vm4269_vm5  ;;  %vm23268_vm0 = vcmask 1044484   ;;  %v3970_v16 = vld [vmem:[#allocation3] sm:$0x22]  ;;  %vm23294_vm4 = vnez %v23230_v41 }
 0x43d   : > { %4486 = vst [vmem:[#allocation3 + $0x14] sm:$0x22] %v4485_v17  ;;  %v4740_v12 = vrot.slane %v22318_v18, 4  ;;  %v23261_v49 = vsel %vm22329_vm12, 4294967295, %v23260_v49  ;;  %vm23267_vm5 = vmmov %vm23262_vm11  ;;  %v4121_v8 = vld [vmem:[#allocation3] sm:$0x44] }
 0x43e   : > { %v4872_v28 = vsel %vm23262_vm11, %v4870_v56, %v22313_v52  ;;  %vm22350_vm9 = vmand %vm23268_vm0, %vm4415_vm10  ;;  %vm23271_vm11 = vcmask 1045509   ;;  %vm23175_vm10 = vcmask 1041409   ;;  %v4751_v41 = vld [vmem:[#allocation3 + $0x1c] sm:$0x88] }
 0x43f   : > { %v4879_v27 = vsel %vm22254_vm7, %v4872_v28, %v4878_v20  ;;  %v4742_v24 = vsel %vm23267_vm5, %v4740_v12, %v22318_v18  ;;  %v18951_v32 = vpop.permute.xlu0 %18950  ;;  %v23270_v19 = vsel %vm22350_vm9, 4294967295, %v23269_v19  ;;  %vm22355_vm13 = vmand %vm23271_vm11, %vm3967_vm14  ;;  %vm23280_vm5 = vnez %v23254_v55  ;;  %v4272_v42 = vld [vmem:[#allocation3] sm:$0x88]  ;;  %v4418_v58 = vld [vmem:[#allocation3 + $0x14] sm:$0x11] }
 0x440   : > { %v23273_v25 = vsel %vm22355_vm13, 4294967295, %v23272_v25  ;;  %4880 = vst [vmem:[#allocation3 + $0x28] sm:$0x11] %v4879_v27  ;;  %v4749_v33 = vsel %vm22263_vm6, %v4742_v24, %v4748_v57  ;;  %v18953_v35 = vunpack.i.h.bf16 %v18951_v32  ;;  %v18952_v34 = vunpack.i.l.bf16 %v18951_v32  ;;  %vm22365_vm15 = vmor %vm22329_vm12, %vm22322_vm3  ;;  %v3902_v32 = vld [vmem:[#allocation3 + $0x10] sm:$0x2] }
 0x441   : > { %4750 = vst [vmem:[#allocation3 + $0x14] sm:$0x88] %v4749_v33  ;;  %v18946_v21 = vpop.permute.xlu1 %18945  ;;  %v23275_v38 = vsel %vm22365_vm15, 4294967295, %v23274_v38  ;;  %vm22377_vm14 = vmor %vm22350_vm9, %vm22339_vm8  ;;  %vm23283_vm8 = vcmask 523264   ;;  %v23292_v24 = vmov 0  ;;  %vm23299_vm6 = vcmask 1043456  }
 0x442   : > { %v22369_v43 = vrot.slane %v18953_v35, 4  ;;  %v22371_v44 = vrot.slane %v18952_v34, 4  ;;  %v18948_v53 = vunpack.i.h.bf16 %v18946_v21  ;;  %v18947_v30 = vunpack.i.l.bf16 %v18946_v21  ;;  %vm22385_vm3 = vmor %vm22293_vm2, %vm22287_vm1 }
 0x443   : > { %v23277_v37 = vsel %vm22377_vm14, 4294967295, %v23276_v37  ;;  %v23279_v59 = vsel %vm22385_vm3, 4294967295, %v23278_v59  ;;  %v22389_v10 = vpop.permute.xlu0 %4805  ;;  %vm22395_vm0 = vmor %vm22355_vm13, %vm23280_vm5  ;;  %vm23285_vm1 = vsmask.f32 1280  ;;  %vm23303_vm12 = vcmask 519171  }
 0x444   : > { %v23282_v62 = vsel %vm22395_vm0, 4294967295, %v23281_v62  ;;  %v4407_v3 = vsel %vm23283_vm8, %v22369_v43, %v18953_v35  ;;  %vm23284_vm11 = vmmov %vm23283_vm8  ;;  %v22403_v7 = vrot.slane %v18948_v53, 4  ;;  %v22405_v39 = vrot.slane %v18947_v30, 4 }
 0x445   : > { %v4261_v6 = vsel %vm23284_vm11, %v22371_v44, %v18952_v34  ;;  %v4809_v15 = vrot.slane %v22389_v10, 4  ;;  %vm22412_vm5 = vmand %vm23175_vm10, %vm23285_vm1  ;;  %v4419_v55 = vsel %vm22377_vm14, %v4407_v3, %v4418_v58  ;;  %v18956_v4 = vpop.permute.xlu1 %18955  ;;  %vm23291_vm10 = vcmask 517121   ;;  %v3897_v3 = vld [vmem:[#allocation3 + $0x8] sm:$0x22] }
 0x446   : > { %v4273_v26 = vsel %vm22365_vm15, %v4261_v6, %v4272_v42  ;;  %v4110_v17 = vsel %vm23283_vm8, %v22403_v7, %v18948_v53  ;;  %vm23288_vm11 = vmmov %vm23283_vm8  ;;  %4420 = vst [vmem:[#allocation3 + $0x14] sm:$0x11] %v4419_v55  ;;  %v18958_v27 = vunpack.i.h.bf16 %v18956_v4  ;;  %v18957_v34 = vunpack.i.l.bf16 %v18956_v4 }
 0x447   : > { %v3959_v20 = vsel %vm23288_vm11, %v22405_v39, %v18947_v30  ;;  %4274 = vst [vmem:[#allocation3] sm:$0x88] %v4273_v26  ;;  %v4122_v57 = vsel %vm22385_vm3, %v4110_v17, %v4121_v8  ;;  %vm23289_vm1 = vmmov %vm23283_vm8  ;;  %vm23290_vm8 = vsmask.f32 1280  ;;  %v3873_v33 = vpop.permute.xlu0 %3872  ;;  %vm23328_vm13 = vcmask 516096  }
 0x448   : > { %v3971_v28 = vsel %vm22395_vm0, %v3959_v20, %v3970_v16  ;;  %v4811_v2 = vsel %vm23289_vm1, %v4809_v15, %v22389_v10  ;;  %vm22432_vm11 = vmand %vm23291_vm10, %vm23290_vm8  ;;  %4123 = vst [vmem:[#allocation3] sm:$0x44] %v4122_v57  ;;  %v4817_v35 = vld [vmem:[#allocation3 + $0x14] sm:$0x88]  ;;  %v3875_v21 = vrot.slane %v3873_v33, 4  ;;  %v22442_v30 = vrot.slane %v18958_v27, 4 }
 0x449   : > { %v23293_v24 = vsel %vm22432_vm11, 4294967295, %v23292_v24  ;;  %3972 = vst [vmem:[#allocation3] sm:$0x22] %v3971_v28  ;;  %v4818_v53 = vsel %vm22365_vm15, %v4811_v2, %v4817_v35  ;;  %vm23295_vm10 = vsmask.f32 3328  ;;  %vm23296_vm8 = vcmask 1043459   ;;  %v22457_v55 = vpop.permute.xlu1 %4933 }
 0x44a   : > { %vm22446_vm7 = vmand %vm23296_vm8, %vm23295_vm10  ;;  %4819 = vst [vmem:[#allocation3 + $0x14] sm:$0x88] %v4818_v53  ;;  %v22450_v42 = vrot.slane %v18957_v34, 4  ;;  %v3879_v58 = vsel %vm23299_vm6, %v3874_v54, %v3875_v21  ;;  %v3903_v26 = vsel %vm22432_vm11, %v3875_v21, %v3902_v32  ;;  %vm23184_vm1 = vcmask 1042434   ;;  %v4685_v16 = vld [vmem:[#allocation3 + $0x14] sm:$0x44] }
 0x44b   : > { %vm23300_vm15 = vcmask 523264   ;;  %3904 = vst [vmem:[#allocation3 + $0x10] sm:$0x2] %v3903_v26  ;;  %v4937_v20 = vrot.slane %v22457_v55, 4  ;;  %vm23302_vm8 = vsmask.f32 3328  ;;  %v4178_v4 = vpop.permute.xlu0 %4177 }
 0x44c   : > { %v4679_v8 = vsel %vm23300_vm15, %v22442_v30, %v18958_v27  ;;  %vm23301_vm10 = vmmov %vm23300_vm15  ;;  %v4204_v54 = vld [vmem:[#allocation3 + $0x10] sm:$0x8]  ;;  %v4553_v57 = vld [vmem:[#allocation3 + $0x14] sm:$0x22]  ;;  %v4180_v32 = vrot.slane %v4178_v4, 4 }
 0x44d   : > { %v3880_v17 = vsel %vm23301_vm10, %v3879_v58, %v3873_v33  ;;  %vm22465_vm9 = vmand %vm23303_vm12, %vm23302_vm8  ;;  %v4686_v28 = vsel %vm22385_vm3, %v4679_v8, %v4685_v16  ;;  %vm23308_vm12 = vnez %v23240_v22  ;;  %v4945_v35 = vld [vmem:[#allocation3 + $0x28] sm:$0x11]  ;;  %v4199_v21 = vld [vmem:[#allocation3 + $0x8] sm:$0x88]  ;;  %vm23309_vm6 = vsmask.f32 2304 }
 0x44e   : > { %v23305_v0 = vsel %vm22465_vm9, 4294967295, %v23304_v0  ;;  %vm23306_vm15 = vmmov %vm23301_vm10  ;;  %4687 = vst [vmem:[#allocation3 + $0x14] sm:$0x44] %v4686_v28  ;;  %vm23312_vm8 = vcmask 1043456   ;;  %v4205_v26 = vsel %vm22465_vm9, %v4180_v32, %v4204_v54  ;;  %v23315_v16 = vmov 0 }
 0x44f   : > { %v4547_v2 = vsel %vm23306_vm15, %v22450_v42, %v18957_v34  ;;  %vm23307_vm10 = vmor %vm23294_vm4, %vm22412_vm5  ;;  %v4939_v34 = vsel %vm23306_vm15, %v4937_v20, %v22457_v55  ;;  %v4182_v58 = vsel %vm23312_vm8, %v4179_v5, %v4180_v32  ;;  %vm23314_vm15 = vcmask 518146   ;;  %v4053_v8 = vld [vmem:[#allocation3 + $0x10] sm:$0x4]  ;;  %4206 = vst [vmem:[#allocation3 + $0x10] sm:$0x8] %v4205_v26  ;;  %v4475_v46 = vpop.permute.xlu0 %4474 }
 0x450   : > { %v3898_v27 = vsel %vm23307_vm10, %v3880_v17, %v3897_v3  ;;  %v4554_v33 = vsel %vm22395_vm0, %v4547_v2, %v4553_v57  ;;  %vm22490_vm10 = vmand %vm23184_vm1, %vm23309_vm6  ;;  %v4946_v3 = vsel %vm22377_vm14, %v4939_v34, %v4945_v35  ;;  %v4027_v17 = vpop.permute.xlu1 %4026  ;;  %v4490_v2 = vld [vmem:[#allocation3 + $0x24] sm:$0x2]  ;;  %v4048_v54 = vld [vmem:[#allocation3 + $0x8] sm:$0x44]  ;;  %vm23321_vm1 = vsmask.f32 256 }
 0x451   : > { %3899 = vst [vmem:[#allocation3 + $0x8] sm:$0x22] %v3898_v27  ;;  %4555 = vst [vmem:[#allocation3 + $0x14] sm:$0x22] %v4554_v33  ;;  %v4029_v28 = vrot.slane %v4027_v17, 4  ;;  %v4477_v27 = vrot.slane %v4475_v46, 4 }
 0x452   : > { %vm23313_vm0 = vmmov %vm23309_vm6  ;;  %4947 = vst [vmem:[#allocation3 + $0x28] sm:$0x11] %v4946_v3  ;;  %vm23317_vm6 = vcmask 523264   ;;  %v4487_v33 = vld [vmem:[#allocation3 + $0x1c] sm:$0x22]  ;;  %vm23322_vm14 = vcmask 1040384  }
 0x453   : > { %vm22503_vm3 = vmand %vm23314_vm15, %vm23313_vm0  ;;  %v4183_v57 = vsel %vm23317_vm6, %v4182_v58, %v4178_v4  ;;  %vm23319_vm0 = vnez %v23228_v40  ;;  %vm23320_vm6 = vcmask 1043456   ;;  %v4491_v51 = vsel %vm22432_vm11, %v4477_v27, %v4490_v2  ;;  %v4352_v3 = vld [vmem:[#allocation3 + $0x24] sm:$0x1] }
 0x454   : > { %v23316_v16 = vsel %vm22503_vm3, 4294967295, %v23315_v16  ;;  %vm23318_vm8 = vmor %vm23308_vm12, %vm22446_vm7  ;;  %v4031_v4 = vsel %vm23320_vm6, %v4028_v45, %v4029_v28  ;;  %v4054_v32 = vsel %vm22503_vm3, %v4029_v28, %v4053_v8  ;;  %v23329_v45 = vmov 0  ;;  %v4327_v58 = vpop.permute.xlu1 %4326  ;;  %4492 = vst [vmem:[#allocation3 + $0x24] sm:$0x2] %v4491_v51  ;;  %v4754_v8 = vld [vmem:[#allocation3 + $0x24] sm:$0x8] }
 0x455   : > { %v4200_v5 = vsel %vm23318_vm8, %v4183_v57, %v4199_v21  ;;  %vm22524_vm2 = vmand %vm23322_vm14, %vm23321_vm1  ;;  %vm23325_vm8 = vcmask 523264   ;;  %4055 = vst [vmem:[#allocation3 + $0x10] sm:$0x4] %v4054_v32  ;;  %v4347_v28 = vld [vmem:[#allocation3 + $0x1c] sm:$0x11] }
 0x456   : > { %4201 = vst [vmem:[#allocation3 + $0x8] sm:$0x88] %v4200_v5  ;;  %v4032_v34 = vsel %vm23325_vm8, %v4031_v4, %v4027_v17  ;;  %vm23326_vm15 = vmmov %vm23320_vm6  ;;  %v4739_v17 = vpop.permute.xlu0 %4738  ;;  %v4622_v32 = vld [vmem:[#allocation3 + $0x24] sm:$0x4] }
 0x457   : > { %v4479_v21 = vsel %vm23326_vm15, %v4476_v47, %v4477_v27  ;;  %vm23327_vm6 = vmmov %vm23321_vm1  ;;  %v4329_v47 = vrot.slane %v4327_v58, 4  ;;  %vm23334_vm15 = vnez %v23238_v50  ;;  %v4741_v2 = vrot.slane %v4739_v17, 4 }
 0x458   : > { %vm22536_vm3 = vmand %vm23328_vm13, %vm23327_vm6  ;;  %vm23335_vm6 = vcmask 1043456   ;;  %v22560_v36 = vld [vmem:[#allocation3 + $0x14] sm:$0xff] }
 0x459   : > { %v23330_v45 = vsel %vm22536_vm3, 4294967295, %v23329_v45  ;;  %vm23331_vm14 = vmor %vm23319_vm0, %vm22490_vm10  ;;  %v4353_v5 = vsel %vm22536_vm3, %v4329_v47, %v4352_v3 }
 0x45a   : > { %v4049_v26 = vsel %vm23331_vm14, %v4032_v34, %v4048_v54  ;;  %vm23332_vm1 = vmmov %vm23325_vm8  ;;  %v4954_v54 = vld [vmem:[#allocation3] sm:$0xff]  ;;  %4354 = vst [vmem:[#allocation3 + $0x24] sm:$0x1] %v4353_v5  ;;  %v5120_v34 = vld [vmem:[#allocation3 + $0x28] sm:$0x11] }
 0x45b   : > { %v4480_v14 = vsel %vm23332_vm1, %v4479_v21, %v4475_v46  ;;  %4050 = vst [vmem:[#allocation3 + $0x8] sm:$0x44] %v4049_v26  ;;  %vm23333_vm13 = vmor %vm23294_vm4, %vm22412_vm5  ;;  %v4331_v46 = vsel %vm23335_vm6, %v4328_v1, %v4329_v47  ;;  %vm23336_vm4 = vsmask.f32 7942  ;;  %vm23337_vm5 = vcmask 1041409  }
 0x45c   : > { %v4488_v57 = vsel %vm23333_vm13, %v4480_v14, %v4487_v33  ;;  %vm23193_vm8 = vmor %vm23334_vm15, %vm22524_vm2  ;;  %v4332_v4 = vsel %vm23332_vm1, %v4331_v46, %v4327_v58  ;;  %v4755_v1 = vsel %vm22465_vm9, %v4741_v2, %v4754_v8  ;;  %v4607_v33 = vpop.permute.xlu1 %4606  ;;  %v22575_v21 = vcombine.low %v4954_v54, %v22560_v36  ;;  %v18961_v58 = vpop.permute.xlu0 %18960  ;;  %v4619_v47 = vld [vmem:[#allocation3 + $0x1c] sm:$0x44]  ;;  %v4884_v46 = vld [vmem:[#allocation3 + $0x38] sm:$0x1] }
 0x45d   : > { %4489 = vst [vmem:[#allocation3 + $0x1c] sm:$0x22] %v4488_v57  ;;  %vm22564_vm14 = vmand %vm23337_vm5, %vm23336_vm4  ;;  %vm23342_vm4 = vcmask 1042434   ;;  %v4348_v18 = vsel %vm23193_vm8, %v4332_v4, %v4347_v28  ;;  %v4609_v3 = vrot.slane %v4607_v33, 4  ;;  %v22590_v26 = vcombine.high %v4954_v54, %v22560_v36 }
 0x45e   : > { %vm23340_vm13 = vmmov %vm23335_vm6  ;;  %vm23341_vm6 = vsmask.f32 7946  ;;  %4756 = vst [vmem:[#allocation3 + $0x24] sm:$0x8] %v4755_v1  ;;  %v18962_v57 = vunpack.i.l.bf16 %v18961_v58  ;;  %v22603_v28 = vcombine.low %v5120_v34, %v5120_v34  ;;  %vm23351_vm8 = vnez %v23316_v16  ;;  %v11560_v16 = vld [vmem:[#allocation4 + $0x8] sm:$0x8] }
 0x45f   : > { %v4743_v60 = vsel %vm23340_vm13, %v4740_v12, %v4741_v2  ;;  %vm22579_vm5 = vmand %vm23342_vm4, %vm23341_vm6  ;;  %4349 = vst [vmem:[#allocation3 + $0x1c] sm:$0x11] %v4348_v18  ;;  %vm23346_vm6 = vsmask.f32 7942  ;;  %vm23347_vm4 = vcmask 517121   ;;  %v4623_v6 = vsel %vm23351_vm8, %v4609_v3, %v4622_v32 }
 0x460   : > { %v4744_v12 = vsel %vm23332_vm1, %v4743_v60, %v4739_v17  ;;  %vm23345_vm13 = vmor %vm23308_vm12, %vm22446_vm7  ;;  %v18963_v17 = vunpack.i.h.bf16 %v18961_v58  ;;  %vm23350_vm1 = vcmask 1043456   ;;  %vm23352_vm7 = vsmask.f32 7946  ;;  %4624 = vst [vmem:[#allocation3 + $0x24] sm:$0x4] %v4623_v6  ;;  %v4869_v60 = vpop.permute.xlu1 %4868  ;;  %v18971_v18 = vpop.permute.xlu0 %18970 }
 0x461   : > { %v4752_v14 = vsel %vm23345_vm13, %v4744_v12, %v4751_v41  ;;  %vm22599_vm9 = vmand %vm23347_vm4, %vm23346_vm6  ;;  %v4611_v22 = vsel %vm23350_vm1, %v4608_v13, %v4609_v3  ;;  %vm23353_vm12 = vcmask 518146   ;;  %v23354_v2 = vmov 0  ;;  %v3979_v13 = vld [vmem:[#allocation3 + $0x10] sm:$0x2] }
 0x462   : > { %4753 = vst [vmem:[#allocation3 + $0x1c] sm:$0x88] %v4752_v14  ;;  %vm22612_vm13 = vmand %vm23353_vm12, %vm23352_vm7  ;;  %v22616_v5 = vcombine.high %v5120_v34, %v5120_v34  ;;  %v5331_v41 = vshrl.u32 %v22590_v26, 16  ;;  %vm23356_vm6 = vnez %v23273_v25  ;;  %vm23357_vm1 = vcmask 523264   ;;  %v4130_v34 = vld [vmem:[#allocation3 + $0x10] sm:$0x4] }
 0x463   : > { %v23355_v2 = vsel %vm22612_vm13, 4294967295, %v23354_v2  ;;  %vm23195_vm4 = vmor %vm23356_vm6, %vm22564_vm14  ;;  %v4612_v11 = vsel %vm23357_vm1, %v4611_v22, %v4607_v33  ;;  %v4109_v54 = vrot.slane %v18963_v17, 4  ;;  %v3958_v4 = vrot.slane %v18962_v57, 4  ;;  %v3975_v22 = vld [vmem:[#allocation3 + $0x8] sm:$0x22] }
 0x464   : > { %v5333_v1 = vshll.u32 %v22590_v26, 16  ;;  %vm23358_vm7 = vnez %v23249_v48  ;;  %vm23359_vm11 = vmor %vm23319_vm0, %vm22490_vm10  ;;  %v4871_v33 = vrot.slane %v4869_v60, 4  ;;  %v5338_v12 = vshll.u32 %v22616_v5, 16 }
 0x465   : > { %v4620_v32 = vsel %vm23359_vm11, %v4612_v11, %v4619_v47  ;;  %v5319_v3 = vshrl.u32 %v22575_v21, 16  ;;  %vm23360_vm1 = vcmask 1043456   ;;  %v3980_v14 = vsel %vm22599_vm9, %v3958_v4, %v3979_v13  ;;  %v4881_v47 = vld [vmem:[#allocation3 + $0x30] sm:$0x11] }
 0x466   : > { %4621 = vst [vmem:[#allocation3 + $0x1c] sm:$0x44] %v4620_v32  ;;  %v3960_v58 = vsel %vm23360_vm1, %v22405_v39, %v3958_v4  ;;  %vm23361_vm12 = vmmov %vm23360_vm1  ;;  %v4131_v53 = vsel %vm22612_vm13, %v4109_v54, %v4130_v34  ;;  %vm23362_vm11 = vcmask 523264   ;;  %v4126_v32 = vld [vmem:[#allocation3 + $0x8] sm:$0x44]  ;;  %v4885_v13 = vsel %vm22536_vm3, %v4871_v33, %v4884_v46 }
 0x467   : > { %v4111_v40 = vsel %vm23361_vm12, %v22403_v7, %v4109_v54  ;;  %v3961_v6 = vsel %vm23362_vm11, %v3960_v58, %v18962_v57  ;;  %3981 = vst [vmem:[#allocation3 + $0x10] sm:$0x2] %v3980_v14  ;;  %vm23363_vm10 = vmmov %vm23362_vm11  ;;  %v18973_v52 = vunpack.i.h.bf16 %v18971_v18  ;;  %v18972_v54 = vunpack.i.l.bf16 %v18971_v18  ;;  %v4691_v18 = vld [vmem:[#allocation3 + $0x24] sm:$0x4] }
 0x468   : > { %v4112_v11 = vsel %vm23363_vm10, %v4111_v40, %v18963_v17  ;;  %4132 = vst [vmem:[#allocation3 + $0x10] sm:$0x4] %v4131_v53  ;;  %vm23364_vm0 = vmmov %vm23360_vm1  ;;  %v3976_v7 = vsel %vm23195_vm4, %v3961_v6, %v3975_v22  ;;  %v5335_v58 = vrot.slane %v5333_v1, 1  ;;  %v5340_v14 = vrot.slane %v5338_v12, 1  ;;  %v4559_v1 = vld [vmem:[#allocation3 + $0x24] sm:$0x2] }
 0x469   : > { %v4873_v39 = vsel %vm23364_vm0, %v4870_v56, %v4871_v33  ;;  %vm23365_vm12 = vmor %vm23358_vm7, %vm22579_vm5  ;;  %4886 = vst [vmem:[#allocation3 + $0x38] sm:$0x1] %v4885_v13  ;;  %v18966_v56 = vpop.permute.xlu1 %18965  ;;  %vm23369_vm0 = vcmask 516096   ;;  %v4678_v33 = vrot.slane %v18973_v52, 4  ;;  %v5321_v40 = vshll.u32 %v22575_v21, 16 }
 0x46a   : > { %v4127_v17 = vsel %vm23365_vm12, %v4112_v11, %v4126_v32  ;;  %vm23366_vm1 = vmmov %vm23363_vm10  ;;  %3977 = vst [vmem:[#allocation3 + $0x8] sm:$0x22] %v3976_v7  ;;  %vm23368_vm10 = vsmask.f32 7938  ;;  %v18968_v34 = vunpack.i.h.bf16 %v18966_v56  ;;  %v4546_v35 = vrot.slane %v18972_v54, 4 }
 0x46b   : > { %v4874_v57 = vsel %vm23366_vm1, %v4873_v39, %v4869_v60  ;;  %4128 = vst [vmem:[#allocation3 + $0x8] sm:$0x44] %v4127_v17  ;;  %vm23367_vm11 = vmor %vm23334_vm15, %vm22524_vm2  ;;  %v18967_v60 = vunpack.i.l.bf16 %v18966_v56  ;;  %vm23373_vm1 = vcmask 1040384   ;;  %v5326_v22 = vshll.u32 %v22603_v28, 16  ;;  %v4427_v56 = vld [vmem:[#allocation3 + $0x24] sm:$0x1] }
 0x46c   : > { %v4882_v46 = vsel %vm23367_vm11, %v4874_v57, %v4881_v47  ;;  %vm22669_vm4 = vmand %vm23369_vm0, %vm23368_vm10  ;;  %v4406_v53 = vrot.slane %v18968_v34, 4  ;;  %vm23376_vm2 = vsmask.f32 7950  ;;  %vm23377_vm15 = vcmask 1043459   ;;  %v19104_v6 = vld [vmem:[#allocation11 + $0x748] ss:$16 sps:$4 sm:$0xff]  }
 0x46d   : > { %4883 = vst [vmem:[#allocation3 + $0x30] sm:$0x11] %v4882_v46  ;;  %vm23372_vm12 = vmmov %vm23368_vm10  ;;  %v4260_v47 = vrot.slane %v18967_v60, 4  ;;  %vm23380_vm10 = vcmask 1043456   ;;  %v4692_v11 = vsel %vm22612_vm13, %v4678_v33, %v4691_v18  ;;  %v5336_v39 = vor.u32 %v5335_v58, %v5331_v41  ;;  %v19085_v41 = vld [vmem:[#allocation11 + $0x700] ss:$16 sps:$4 sm:$0xff]  }
 0x46e   : > { %vm22676_vm3 = vmand %vm23373_vm1, %vm23372_vm12  ;;  %v4680_v12 = vsel %vm23380_vm10, %v22442_v30, %v4678_v33  ;;  %vm23382_vm12 = vcmask 519171   ;;  %v5323_v13 = vrot.slane %v5321_v40, 1  ;;  %v4560_v17 = vsel %vm22599_vm9, %v4546_v35, %v4559_v1  ;;  %v4688_v30 = vld [vmem:[#allocation3 + $0x1c] sm:$0x44]  ;;  %4693 = vst [vmem:[#allocation3 + $0x24] sm:$0x4] %v4692_v11 }
 0x46f   : > { %vm22683_vm11 = vmand %vm23377_vm15, %vm23376_vm2  ;;  %vm23386_vm15 = vcmask 523264   ;;  %v4556_v33 = vld [vmem:[#allocation3 + $0x1c] sm:$0x22]  ;;  %4561 = vst [vmem:[#allocation3 + $0x24] sm:$0x2] %v4560_v17  ;;  %v5328_v27 = vrot.slane %v5326_v22, 1 }
 0x470   : > { %vm23381_vm0 = vmmov %vm23376_vm2  ;;  %v4681_v57 = vsel %vm23386_vm15, %v4680_v12, %v18973_v52  ;;  %v4281_v58 = vld [vmem:[#allocation3 + $0x10] sm:$0x8]  ;;  %v4423_v1 = vld [vmem:[#allocation3 + $0x1c] sm:$0x11]  ;;  %v5324_v25 = vor.u32 %v5323_v13, %v5319_v3  ;;  %v7682_v50 = vrot.slane %v22603_v28, 1 }
 0x471   : > { %vm22693_vm1 = vmand %vm23382_vm12, %vm23381_vm0  ;;  %vm23388_vm0 = vnez %v23270_v19  ;;  %v19088_v18 = vld [vmem:[#allocation11 + $0x708] ss:$16 sps:$4 sm:$0xff]   ;;  %v19097_v17 = vld [vmem:[#allocation11 + $0x724] ss:$16 sps:$4 sm:$0xff]  }
 0x472   : > { %vm23385_vm2 = vmmov %vm23380_vm10  ;;  %v7504_v12 = vld [vmem:[#allocation3] sm:$0xee] }
 0x473   : > { %v4548_v7 = vsel %vm23385_vm2, %v22450_v42, %v4546_v35  ;;  %vm23387_vm10 = vmmov %vm23385_vm2  ;;  %v4936_v35 = vpop.permute.xlu0 %4935  ;;  %v19100_v3 = vld [vmem:[#allocation11 + $0x72c] ss:$16 sps:$4 sm:$0xff]   ;;  %v22745_v22 = vcombine.high %v7504_v12, %v22560_v36 }
 0x474   : > { %v4408_v46 = vsel %vm23387_vm10, %v22369_v43, %v4406_v53  ;;  %vm23389_vm13 = vmmov %vm23386_vm15  ;;  %v4428_v43 = vsel %vm22669_vm4, %v4406_v53, %v4427_v56  ;;  %vm23392_vm10 = vnez %v23261_v49  ;;  %v19101_v49 = vld [vmem:[#allocation11 + $0x740] ss:$16 sps:$4 sm:$0xff]  }
 0x475   : > { %v4549_v42 = vsel %vm23389_vm13, %v4548_v7, %v18972_v54  ;;  %vm23390_vm2 = vmor %vm23358_vm7, %vm22579_vm5  ;;  %v4808_v54 = vpop.permute.xlu1 %4807  ;;  %4429 = vst [vmem:[#allocation3 + $0x24] sm:$0x1] %v4428_v43  ;;  %vm23395_vm7 = vsmask.f32 7424  ;;  %v4820_v43 = vld [vmem:[#allocation3 + $0x1c] sm:$0x88] }
 0x476   : > { %v4689_v52 = vsel %vm23390_vm2, %v4681_v57, %v4688_v30  ;;  %vm23391_vm15 = vmmov %vm23389_vm13  ;;  %vm23394_vm13 = vcmask 1043456   ;;  %v5341_v53 = vsel %vm23395_vm7, %v5336_v39, %v5340_v14  ;;  %v4277_v14 = vld [vmem:[#allocation3 + $0x8] sm:$0x88]  ;;  %v4938_v39 = vrot.slane %v4936_v35, 4  ;;  %v4948_v57 = vld [vmem:[#allocation3 + $0x30] sm:$0x11] }
 0x477   : > { %v4409_v40 = vsel %vm23391_vm15, %v4408_v46, %v18968_v34  ;;  %vm4276_vm12 = vmor %vm23392_vm10, %vm22683_vm11  ;;  %4690 = vst [vmem:[#allocation3 + $0x1c] sm:$0x44] %v4689_v52  ;;  %v4262_v51 = vsel %vm23394_vm13, %v22371_v44, %v4260_v47  ;;  %v4282_v34 = vsel %vm22693_vm1, %v4260_v47, %v4281_v58  ;;  %6215 = vmatprep.mubr.bf16.mxu0 %v5341_v53  ;;  %v4951_v47 = vld [vmem:[#allocation3 + $0x38] sm:$0x1]  ;;  %v4810_v7 = vrot.slane %v4808_v54, 4 }
 0x478   : > { %vm23393_vm5 = vmor %vm23356_vm6, %vm22564_vm14  ;;  %4283 = vst [vmem:[#allocation3 + $0x10] sm:$0x8] %v4282_v34  ;;  %6344 = vmatprep.mubr.bf16.mxu1 %v5341_v53  ;;  %v22749_v30 = vcombine.low %v7504_v12, %v22560_v36  ;;  %v4952_v46 = vsel %vm22669_vm4, %v4938_v39, %v4951_v47  ;;  %v19095_v52 = vld [vmem:[#allocation11 + $0x720] ss:$16 sps:$4 sm:$0xff]   ;;  %v7684_v58 = vrot.slane %v22745_v22, 1 }
 0x479   : > { %v4557_v48 = vsel %vm23393_vm5, %v4549_v42, %v4556_v33  ;;  %vm23396_vm2 = vmmov %vm23391_vm15  ;;  %v4823_v33 = vld [vmem:[#allocation3 + $0x24] sm:$0x8]  ;;  %4953 = vst [vmem:[#allocation3 + $0x38] sm:$0x1] %v4952_v46  ;;  %v19107_v53 = vld [vmem:[#allocation11 + $0x760] ss:$16 sps:$4 sm:$0xff]  }
 0x47a   : > { %4558 = vst [vmem:[#allocation3 + $0x1c] sm:$0x22] %v4557_v48  ;;  %v4263_v11 = vsel %vm23396_vm2, %v4262_v51, %v18967_v60  ;;  %vm23397_vm14 = vmor %vm23388_vm0, %vm22676_vm3  ;;  %v19098_v48 = vld [vmem:[#allocation11 + $0x728] ss:$16 sps:$4 sm:$0xff]   ;;  %v7685_v51 = vrot.slane %v22616_v5, 1  ;;  %v7681_v19 = vrot.slane %v22749_v30, 1 }
 0x47b   : > { %v4424_v44 = vsel %vm23397_vm14, %v4409_v40, %v4423_v1  ;;  %v4278_v60 = vsel %vm4276_vm12, %v4263_v11, %v4277_v14  ;;  %vm23398_vm6 = vmmov %vm23395_vm7  ;;  %v19112_v34 = vld [vmem:[#allocation11 + $0x76c] ss:$16 sps:$4 sm:$0xff]   ;;  %v19110_v1 = vld [vmem:[#allocation11 + $0x768] ss:$16 sps:$4 sm:$0xff]  }
 0x47c   : > { %4425 = vst [vmem:[#allocation3 + $0x1c] sm:$0x11] %v4424_v44  ;;  %v5329_v13 = vsel %vm23398_vm6, %v5324_v25, %v5328_v27  ;;  %4279 = vst [vmem:[#allocation3 + $0x8] sm:$0x88] %v4278_v60  ;;  %v19115_v12 = vld [vmem:[#allocation11 + $0x784] ss:$16 sps:$4 sm:$0xff]  }
 0x47d   : > { %6216 = vmatmul.mubr.bf16.vlgmr.msra.gmra.mrb[16].mxu0 %v5329_v13  ;;  %6345 = vmatmul.mubr.bf16.vlgmr.msra.gmra.mrb[16].mxu1 %v5329_v13  ;;  %vm23399_vm15 = vmmov %vm23394_vm13  ;;  %v19118_v11 = vld [vmem:[#allocation11 + $0x78c] ss:$16 sps:$4 sm:$0xff]   ;;  %v19113_v60 = vld [vmem:[#allocation11 + $0x780] ss:$16 sps:$4 sm:$0xff]  }
 0x47e   : > { %v4940_v56 = vsel %vm23399_vm15, %v4937_v20, %v4938_v39  ;;  %vm23400_vm5 = vmmov %vm23394_vm13  ;;  %6227 = vmatpush1.bf16.msra.mxu0 %v19085_v41  ;;  %6356 = vmatpush1.bf16.msra.mxu1 %v19088_v18  ;;  %v4824_v20 = vsel %vm22693_vm1, %v4810_v7, %v4823_v33  ;;  %v19103_v41 = vld [vmem:[#allocation11 + $0x744] ss:$16 sps:$4 sm:$0xff]  }
 0x47f   : > { %v4812_v42 = vsel %vm23400_vm5, %v4809_v15, %v4810_v7  ;;  %vm23401_vm13 = vmmov %vm23396_vm2  ;;  %4825 = vst [vmem:[#allocation3 + $0x24] sm:$0x8] %v4824_v20  ;;  %6228 = vmatprep.subr.bf16.mxu0 %v19097_v17  ;;  %6357 = vmatprep.subr.bf16.mxu1 %v19100_v3  ;;  %v19109_v18 = vld [vmem:[#allocation11 + $0x764] ss:$16 sps:$4 sm:$0xff]   ;;  %v7506_v17 = vld [vmem:[#allocation3 + $0x10] sm:$0xe] }
 0x480   : > { %v4941_v40 = vsel %vm23401_vm13, %v4940_v56, %v4936_v35  ;;  %vm23402_vm7 = vmmov %vm23396_vm2  ;;  %v19106_v35 = vld [vmem:[#allocation11 + $0x74c] ss:$16 sps:$4 sm:$0xff]   ;;  %v19116_v3 = vld [vmem:[#allocation11 + $0x788] ss:$16 sps:$4 sm:$0xff]  }
 0x481   : > { %v4813_v55 = vsel %vm23402_vm7, %v4812_v42, %v4808_v54  ;;  %vm23403_vm2 = vmmov %vm23397_vm14  ;;  %vm23404_vm14 = vcmask 1046528   ;;  %v19121_v33 = vld [vmem:[#allocation11 + $0x7a4] ss:$16 sps:$4 sm:$0xff]   ;;  %v19124_v42 = vld [vmem:[#allocation11 + $0x7ac] ss:$16 sps:$4 sm:$0xff]  }
 0x482   : > { %v4949_v10 = vsel %vm23403_vm2, %v4941_v40, %v4948_v57  ;;  %v4821_v15 = vsel %vm4276_vm12, %v4813_v55, %v4820_v43  ;;  %v22776_v5 = vsel %vm23404_vm14, %v7684_v58, %v7685_v51  ;;  %6229 = vmatpush1.bf16.msra.mxu0 %v19095_v52  ;;  %6358 = vmatpush1.bf16.msra.mxu1 %v19098_v48  ;;  %vm23405_vm3 = vmmov %vm23404_vm14  ;;  %v22804_v55 = vld [vmem:[#allocation3 + $0x38] ss:$0 sps:$4 sm:$0x11]  }
 0x483   : > { %4950 = vst [vmem:[#allocation3 + $0x30] sm:$0x11] %v4949_v10  ;;  %4822 = vst [vmem:[#allocation3 + $0x1c] sm:$0x88] %v4821_v15  ;;  %v22781_v54 = vsel %vm23405_vm3, %v7681_v19, %v7682_v50  ;;  %6230 = vmatprep.subr.bf16.mxu0 %v19103_v41  ;;  %6359 = vmatprep.subr.bf16.mxu1 %v19106_v35  ;;  %v22783_v25 = vld [vmem:[#allocation3 + $0x8] sm:$0xff] }
 0x484   : > { %v7505_v39 = vld [vmem:[#allocation3 + $0x8] sm:$0xee]  ;;  %v19122_v10 = vld [vmem:[#allocation11 + $0x7a8] ss:$16 sps:$4 sm:$0xff]   ;;  %vm23406_vm11 = vmmov %vm23405_vm3 }
 0x485   : > { %v19119_v48 = vld [vmem:[#allocation11 + $0x7a0] ss:$16 sps:$4 sm:$0xff]   ;;  %v19127_v50 = vld [vmem:[#allocation11 + $0x7c4] ss:$16 sps:$4 sm:$0xff]   ;;  %vm23407_vm0 = vmmov %vm23398_vm6  ;;  %vm23410_vm6 = vcmask 1045504  }
 0x486   : > { %6231 = vmatpush1.bf16.msra.mxu0 %v19101_v49  ;;  %6360 = vmatpush1.bf16.msra.mxu1 %v19104_v6  ;;  %v22787_v44 = vld [vmem:[#allocation3 + $0x24] sm:$0xf]  ;;  %vm23408_vm12 = vmmov %vm23405_vm3 }
 0x487   : > { %6232 = vmatprep.subr.bf16.mxu0 %v19109_v18  ;;  %6361 = vmatprep.subr.bf16.mxu1 %v19112_v34  ;;  %v22800_v46 = vcombine.low %v7506_v17, %v22787_v44  ;;  %v19130_v49 = vld [vmem:[#allocation11 + $0x7cc] ss:$16 sps:$4 sm:$0xff]   ;;  %vm23409_vm10 = vmmov %vm23405_vm3  ;;  %v19136_v17 = vld [vmem:[#allocation11 + $0x7e8] ss:$16 sps:$4 sm:$0xff]   ;;  %vm23417_vm3 = vsmask.f32 6400 }
 0x488   : > { %vm23411_vm15 = vmmov %vm23410_vm6 }
 0x489   : > { %v7693_v19 = vrot.slane %v22800_v46, 1  ;;  %vm23412_vm5 = vmmov %vm23410_vm6 }
 0x48a   : > { %v22785_v28 = vld [vmem:[#allocation3 + $0x1c] sm:$0xff]  ;;  %v5121_v27 = vld [vmem:[#allocation3 + $0x30] sm:$0x11]  ;;  %6233 = vmatpush1.bf16.msra.mxu0 %v19107_v53  ;;  %6362 = vmatpush1.bf16.msra.mxu1 %v19110_v1  ;;  %v7694_v53 = vrot.slane %v22804_v55, 1  ;;  %v19125_v1 = vld [vmem:[#allocation11 + $0x7c0] ss:$16 sps:$4 sm:$0xff]  }
 0x48b   : > { %v22791_v47 = vcombine.high %v22783_v25, %v22785_v28  ;;  %v16928_v14 = vcombine.high %v5121_v27, %v5121_v27  ;;  %v22794_v7 = vcombine.high %v7505_v39, %v22785_v28  ;;  %v22797_v56 = vcombine.low %v5121_v27, %v5121_v27  ;;  %6234 = vmatprep.subr.bf16.mxu0 %v19115_v12  ;;  %v19128_v12 = vld [vmem:[#allocation11 + $0x7c8] ss:$16 sps:$4 sm:$0xff]   ;;  %v19135_v27 = vld [vmem:[#allocation11 + $0x7e4] ss:$16 sps:$4 sm:$0xff]   ;;  %vm23413_vm13 = vmmov %vm23412_vm5 }
 0x48c   : > { %6363 = vmatprep.subr.bf16.mxu1 %v19118_v11  ;;  %v22807_v20 = vcombine.low %v7505_v39, %v22785_v28  ;;  %v22821_v11 = vsel %vm23409_vm10, %v7693_v19, %v7694_v53  ;;  %v8767_v39 = vld [vmem:[#allocation3 + $0x28] sm:$0x33]  ;;  %v19150_v19 = vld [vmem:[#allocation11 + $0x82c] ss:$16 sps:$4 sm:$0xff]   ;;  %vm23414_vm7 = vmmov %vm23412_vm5 }
 0x48d   : > { %v5357_v13 = vshll.u32 %v22791_v47, 16  ;;  %v5362_v57 = vshll.u32 %v16928_v14, 16  ;;  %v7690_v52 = vrot.slane %v22794_v7, 1  ;;  %v5355_v58 = vshrl.u32 %v22791_v47, 16  ;;  %vm23415_vm2 = vmmov %vm23407_vm0 }
 0x48e   : > { %v7691_v51 = vrot.slane %v16928_v14, 1  ;;  %6235 = vmatpush1.bf16.msra.mxu0 %v19113_v60  ;;  %6364 = vmatpush1.bf16.msra.mxu1 %v19116_v3  ;;  %v7687_v41 = vrot.slane %v22807_v20, 1  ;;  %v7688_v35 = vrot.slane %v22797_v56, 1  ;;  %v19138_v14 = vld [vmem:[#allocation11 + $0x7ec] ss:$16 sps:$4 sm:$0xff]   ;;  %vm23416_vm14 = vmmov %vm23407_vm0 }
 0x48f   : > { %v5359_v40 = vrot.slane %v5357_v13, 1  ;;  %v5364_v43 = vrot.slane %v5362_v57, 1  ;;  %6236 = vmatprep.subr.bf16.mxu0 %v19121_v33  ;;  %6365 = vmatprep.subr.bf16.mxu1 %v19124_v42  ;;  %v19133_v60 = vld [vmem:[#allocation11 + $0x7e0] ss:$16 sps:$4 sm:$0xff]   ;;  %v19141_v3 = vld [vmem:[#allocation11 + $0x804] ss:$16 sps:$4 sm:$0xff]   ;;  %v22823_v42 = vcombine.high %v8767_v39, %v8767_v39 }
 0x490   : > { %v22813_v6 = vsel %vm23406_vm11, %v7690_v52, %v7691_v51  ;;  %v22817_v34 = vsel %vm23408_vm12, %v7687_v41, %v7688_v35  ;;  %v19144_v13 = vld [vmem:[#allocation11 + $0x80c] ss:$16 sps:$4 sm:$0xff]   ;;  %v19142_v51 = vld [vmem:[#allocation11 + $0x808] ss:$16 sps:$4 sm:$0xff]   ;;  %v19147_v35 = vld [vmem:[#allocation11 + $0x824] ss:$16 sps:$4 sm:$0xff]  }
 0x491   : > { %v5360_v15 = vor.u32 %v5359_v40, %v5355_v58  ;;  %v8768_v57 = vld [vmem:[#allocation3 + $0x30] sm:$0x33]  ;;  %v10100_v33 = vld [vmem:[#allocation3] sm:$0xcc]  ;;  %v22826_v58 = vcombine.low %v8767_v39, %v8767_v39  ;;  %v10102_v41 = vld [vmem:[#allocation3 + $0x10] sm:$0xc] }
 0x492   : > { %6237 = vmatpush1.bf16.msra.mxu0 %v19119_v48  ;;  %6366 = vmatpush1.bf16.msra.mxu1 %v19122_v10  ;;  %v17581_v52 = vcombine.high %v10100_v33, %v22560_v36  ;;  %v17580_v40 = vcombine.low %v10100_v33, %v22560_v36  ;;  %v19139_v48 = vld [vmem:[#allocation11 + $0x800] ss:$16 sps:$4 sm:$0xff]   ;;  %v22829_v10 = vcombine.high %v8768_v57, %v8768_v57  ;;  %v19148_v39 = vld [vmem:[#allocation11 + $0x828] ss:$16 sps:$4 sm:$0xff]   ;;  %vm23418_vm11 = vmmov %vm23417_vm3 }
 0x493   : > { %v5365_v18 = vsel %vm23407_vm0, %v5360_v15, %v5364_v43  ;;  %6238 = vmatprep.subr.bf16.mxu0 %v19127_v50  ;;  %6367 = vmatprep.subr.bf16.mxu1 %v19130_v49  ;;  %v10101_v43 = vld [vmem:[#allocation3 + $0x8] sm:$0xcc]  ;;  %v22832_v50 = vcombine.low %v8768_v57, %v8768_v57  ;;  %v17584_v36 = vcombine.low %v10102_v41, %v22787_v44  ;;  %v19156_v57 = vld [vmem:[#allocation11 + $0x84c] ss:$16 sps:$4 sm:$0xff]   ;;  %vm23419_vm0 = vmmov %vm23417_vm3 }
 0x494   : > { %6258 = vmatprep.mubr.bf16.mxu0 %v5365_v18  ;;  %6387 = vmatprep.mubr.bf16.mxu1 %v5365_v18  ;;  %v17583_v15 = vcombine.high %v10101_v43, %v22785_v28  ;;  %v17582_v49 = vcombine.low %v10101_v43, %v22785_v28  ;;  %v19145_v18 = vld [vmem:[#allocation11 + $0x820] ss:$16 sps:$4 sm:$0xff]   ;;  %v10280_v53 = vrot.slane %v17581_v52, 2  ;;  %vm23420_vm12 = vmmov %vm23419_vm0 }
 0x495   : > { %v10289_v43 = vrot.slane %v17584_v36, 2  ;;  %v19157_v36 = vld [vmem:[#allocation11 + $0x860] ss:$16 sps:$4 sm:$0xff]   ;;  %vm23421_vm10 = vmmov %vm23419_vm0 }
 0x496   : > { %6239 = vmatpush1.bf16.msra.mxu0 %v19125_v1  ;;  %6368 = vmatpush1.bf16.msra.mxu1 %v19128_v12  ;;  %v10281_v1 = vrot.slane %v22823_v42, 2  ;;  %v19966_v12 = vld [vmem:[#allocation3 + $0x38] ss:$0 sps:$4 sm:$0x33]   ;;  %v10283_v52 = vrot.slane %v17582_v49, 2 }
 0x497   : > { %6240 = vmatprep.subr.bf16.mxu0 %v19135_v27  ;;  %6369 = vmatprep.subr.bf16.mxu1 %v19138_v14  ;;  %v10277_v27 = vrot.slane %v17580_v40, 2  ;;  %v10278_v14 = vrot.slane %v22826_v58, 2  ;;  %v10284_v40 = vrot.slane %v22832_v50, 2  ;;  %v10290_v41 = vrot.slane %v19966_v12, 2  ;;  %v19166_v12 = vld [vmem:[#allocation11 + $0x888] ss:$16 sps:$4 sm:$0xff]  }
 0x499   : > { %v22843_v33 = vsel %vm23411_vm15, %v10277_v27, %v10278_v14  ;;  %v22853_v49 = vsel %vm23414_vm7, %v10289_v43, %v10290_v41  ;;  %v19165_v27 = vld [vmem:[#allocation11 + $0x884] ss:$16 sps:$4 sm:$0xff]   ;;  %v19168_v14 = vld [vmem:[#allocation11 + $0x88c] ss:$16 sps:$4 sm:$0xff]   ;;  %v19175_v41 = vld [vmem:[#allocation11 + $0x8c0] ss:$16 sps:$4 sm:$0xff]   ;;  %vm23423_vm15 = vnez %v23232_v63  ;;  %vm23426_vm7 = vnez %v23234_v23 }
 0x49a   : > { %6241 = vmatpush1.bf16.msra.mxu0 %v19133_v60  ;;  %6370 = vmatpush1.bf16.msra.mxu1 %v19136_v17  ;;  %v19153_v60 = vld [vmem:[#allocation11 + $0x844] ss:$16 sps:$4 sm:$0xff]   ;;  %v22839_v17 = vsel %vm23410_vm6, %v10280_v53, %v10281_v1  ;;  %v19162_v53 = vld [vmem:[#allocation11 + $0x86c] ss:$16 sps:$4 sm:$0xff]   ;;  %v19160_v1 = vld [vmem:[#allocation11 + $0x868] ss:$16 sps:$4 sm:$0xff]  }
 0x49b   : > { %6242 = vmatprep.subr.bf16.mxu0 %v19141_v3  ;;  %6371 = vmatprep.subr.bf16.mxu1 %v19144_v13  ;;  %v10286_v3 = vrot.slane %v17583_v15, 2  ;;  %v10287_v13 = vrot.slane %v22829_v10, 2  ;;  %v19151_v15 = vld [vmem:[#allocation11 + $0x840] ss:$16 sps:$4 sm:$0xff]   ;;  %vm23422_vm6 = vcmask 523264  }
 0x49c   : > { %v11557_v63 = vld [vmem:[#allocation4] sm:$0x88] }
 0x49e   : > { %6243 = vmatpush1.bf16.msra.mxu0 %v19139_v48  ;;  %6372 = vmatpush1.bf16.msra.mxu1 %v19142_v51  ;;  %v22847_v48 = vsel %vm23412_vm5, %v10286_v3, %v10287_v13  ;;  %v22850_v51 = vsel %vm23413_vm13, %v10283_v52, %v10284_v40  ;;  %v22857_v3 = vcombine.low %v22783_v25, %v22785_v28  ;;  %v19169_v13 = vld [vmem:[#allocation11 + $0x8a0] ss:$16 sps:$4 sm:$0xff]   ;;  %v19177_v52 = vld [vmem:[#allocation11 + $0x8c4] ss:$16 sps:$4 sm:$0xff]   ;;  %v19180_v40 = vld [vmem:[#allocation11 + $0x8cc] ss:$16 sps:$4 sm:$0xff]  }
 0x49f   : > { %6244 = vmatprep.subr.bf16.mxu0 %v19147_v35  ;;  %6373 = vmatprep.subr.bf16.mxu1 %v19150_v19  ;;  %v19154_v35 = vld [vmem:[#allocation11 + $0x848] ss:$16 sps:$4 sm:$0xff]   ;;  %v19159_v19 = vld [vmem:[#allocation11 + $0x864] ss:$16 sps:$4 sm:$0xff]   ;;  %v5350_v28 = vshll.u32 %v22797_v56, 16  ;;  %vm23424_vm5 = vmmov %vm23422_vm6  ;;  %vm23425_vm13 = vnez %v23293_v24 }
 0x4a0   : > { %v5345_v43 = vshll.u32 %v22857_v3, 16  ;;  %v19200_v56 = vld [vmem:[#allocation11 + $0x92c] ss:$16 sps:$4 sm:$0xff]  }
 0x4a2   : > { %6245 = vmatpush1.bf16.msra.mxu0 %v19145_v18  ;;  %6374 = vmatpush1.bf16.msra.mxu1 %v19148_v39  ;;  %v19163_v18 = vld [vmem:[#allocation11 + $0x880] ss:$16 sps:$4 sm:$0xff]   ;;  %v19171_v39 = vld [vmem:[#allocation11 + $0x8a4] ss:$16 sps:$4 sm:$0xff]   ;;  %v5347_v25 = vrot.slane %v5345_v43, 1 }
 0x4a3   : > { %6246 = vmatprep.subr.bf16.mxu0 %v19153_v60  ;;  %6375 = vmatprep.subr.bf16.mxu1 %v19156_v57  ;;  %v19174_v60 = vld [vmem:[#allocation11 + $0x8ac] ss:$16 sps:$4 sm:$0xff]   ;;  %v19172_v57 = vld [vmem:[#allocation11 + $0x8a8] ss:$16 sps:$4 sm:$0xff]   ;;  %v19203_v43 = vld [vmem:[#allocation11 + $0x944] ss:$16 sps:$4 sm:$0xff]  }
 0x4a6   : > { %6247 = vmatpush1.bf16.msra.mxu0 %v19151_v15  ;;  %6376 = vmatpush1.bf16.msra.mxu1 %v19154_v35  ;;  %v19178_v15 = vld [vmem:[#allocation11 + $0x8c8] ss:$16 sps:$4 sm:$0xff]   ;;  %v19183_v35 = vld [vmem:[#allocation11 + $0x8e4] ss:$16 sps:$4 sm:$0xff]  }
 0x4a7   : > { %6248 = vmatprep.subr.bf16.mxu0 %v19159_v19  ;;  %6377 = vmatprep.subr.bf16.mxu1 %v19162_v53  ;;  %v19186_v19 = vld [vmem:[#allocation11 + $0x8ec] ss:$16 sps:$4 sm:$0xff]   ;;  %v19181_v53 = vld [vmem:[#allocation11 + $0x8e0] ss:$16 sps:$4 sm:$0xff]  }
 0x4aa   : > { %6249 = vmatpush1.bf16.msra.mxu0 %v19157_v36  ;;  %6378 = vmatpush1.bf16.msra.mxu1 %v19160_v1  ;;  %v19184_v36 = vld [vmem:[#allocation11 + $0x8e8] ss:$16 sps:$4 sm:$0xff]   ;;  %v5343_v1 = vshrl.u32 %v22857_v3, 16 }
 0x4ab   : > { %6250 = vmatprep.subr.bf16.mxu0 %v19165_v27  ;;  %6379 = vmatprep.subr.bf16.mxu1 %v19168_v14  ;;  %v19191_v27 = vld [vmem:[#allocation11 + $0x904] ss:$16 sps:$4 sm:$0xff]   ;;  %v19194_v14 = vld [vmem:[#allocation11 + $0x90c] ss:$16 sps:$4 sm:$0xff]  }
 0x4ae   : > { %6251 = vmatpush1.bf16.msra.mxu0 %v19163_v18  ;;  %6380 = vmatpush1.bf16.msra.mxu1 %v19166_v12  ;;  %v5348_v18 = vor.u32 %v5347_v25, %v5343_v1  ;;  %v5352_v12 = vrot.slane %v5350_v28, 1  ;;  %v19209_v25 = vld [vmem:[#allocation11 + $0x964] ss:$16 sps:$4 sm:$0xff]   ;;  %v19212_v28 = vld [vmem:[#allocation11 + $0x96c] ss:$16 sps:$4 sm:$0xff]  }
 0x4af   : > { %6252 = vmatprep.subr.bf16.mxu0 %v19171_v39  ;;  %6381 = vmatprep.subr.bf16.mxu1 %v19174_v60  ;;  %v19189_v39 = vld [vmem:[#allocation11 + $0x900] ss:$16 sps:$4 sm:$0xff]   ;;  %v19192_v60 = vld [vmem:[#allocation11 + $0x908] ss:$16 sps:$4 sm:$0xff]   ;;  %v19215_v1 = vld [vmem:[#allocation11 + $0x984] ss:$16 sps:$4 sm:$0xff]  }
 0x4b2   : > { %6253 = vmatpush1.bf16.msra.mxu0 %v19169_v13  ;;  %6382 = vmatpush1.bf16.msra.mxu1 %v19172_v57  ;;  %v19197_v13 = vld [vmem:[#allocation11 + $0x924] ss:$16 sps:$4 sm:$0xff]   ;;  %v5353_v57 = vsel %vm23415_vm2, %v5348_v18, %v5352_v12  ;;  %v19216_v18 = vld [vmem:[#allocation11 + $0x988] ss:$16 sps:$4 sm:$0xff]   ;;  %vm23428_vm2 = vnez %v23330_v45 }
 0x4b3   : > { %6254 = vmatprep.subr.bf16.mxu0 %v19177_v52  ;;  %6383 = vmatprep.subr.bf16.mxu1 %v19180_v40  ;;  %v19195_v52 = vld [vmem:[#allocation11 + $0x920] ss:$16 sps:$4 sm:$0xff]   ;;  %v19198_v40 = vld [vmem:[#allocation11 + $0x928] ss:$16 sps:$4 sm:$0xff]   ;;  %v19221_v12 = vld [vmem:[#allocation11 + $0x9a4] ss:$16 sps:$4 sm:$0xff]  }
 0x4b6   : > { %6255 = vmatpush1.bf16.msra.mxu0 %v19175_v41  ;;  %6384 = vmatpush1.bf16.msra.mxu1 %v19178_v15  ;;  %v19206_v41 = vld [vmem:[#allocation11 + $0x94c] ss:$16 sps:$4 sm:$0xff]   ;;  %v22863_v15 = vld [vmem:[#allocation4] sm:$0xff] }
 0x4b7   : > { %6256 = vmatprep.subr.bf16.mxu0 %v19183_v35  ;;  %6385 = vmatprep.subr.bf16.mxu1 %v19186_v19  ;;  %v19201_v35 = vld [vmem:[#allocation11 + $0x940] ss:$16 sps:$4 sm:$0xff]   ;;  %v19204_v19 = vld [vmem:[#allocation11 + $0x948] ss:$16 sps:$4 sm:$0xff]  }
 0x4ba   : > { %6257 = vmatpush1.bf16.msra.mxu0 %v19181_v53  ;;  %6386 = vmatpush1.bf16.msra.mxu1 %v19184_v36  ;;  %v19207_v53 = vld [vmem:[#allocation11 + $0x960] ss:$16 sps:$4 sm:$0xff]   ;;  %v19210_v36 = vld [vmem:[#allocation11 + $0x968] ss:$16 sps:$4 sm:$0xff]  }
 0x4bb   : > { %6269 = vmatprep.subr.bf16.mxu0 %v19191_v27  ;;  %6398 = vmatprep.subr.bf16.mxu1 %v19194_v14  ;;  %v19218_v27 = vld [vmem:[#allocation11 + $0x98c] ss:$16 sps:$4 sm:$0xff]   ;;  %v19213_v14 = vld [vmem:[#allocation11 + $0x980] ss:$16 sps:$4 sm:$0xff]  }
 0x4bd   : > { %6259 = vmatmul.mubr.bf16.vlgmr.msra.gmra.mrb[16].mxu0 %v5353_v57  ;;  %6388 = vmatmul.mubr.bf16.vlgmr.msra.gmra.mrb[16].mxu1 %v5353_v57  ;;  %v19222_v57 = vld [vmem:[#allocation11 + $0x9a8] ss:$16 sps:$4 sm:$0xff]  }
 0x4be   : > { %6270 = vmatpush1.bf16.msra.mxu0 %v19189_v39  ;;  %6399 = vmatpush1.bf16.msra.mxu1 %v19192_v60  ;;  %v19224_v39 = vld [vmem:[#allocation11 + $0x9ac] ss:$16 sps:$4 sm:$0xff]   ;;  %v4956_v60 = vld [vmem:[#allocation3 + $0x10] sm:$0xf] }
 0x4bf   : > { %6271 = vmatprep.subr.bf16.mxu0 %v19197_v13  ;;  %6400 = vmatprep.subr.bf16.mxu1 %v19200_v56  ;;  %v22868_v13 = vcombine.low %v4956_v60, %v22787_v44  ;;  %v19219_v56 = vld [vmem:[#allocation11 + $0x9a0] ss:$16 sps:$4 sm:$0xff]   ;;  %v19242_v60 = vld [vmem:[#allocation11 + $0x8] ss:$16 sps:$4 sm:$0xff]  }
 0x4c0   : > { %6301 = vmatprep.mubr.bf16.mxu0 %v22863_v15  ;;  %6430 = vmatprep.mubr.bf16.mxu1 %v22863_v15 }
 0x4c2   : > { %6272 = vmatpush1.bf16.msra.mxu0 %v19195_v52  ;;  %6401 = vmatpush1.bf16.msra.mxu1 %v19198_v40  ;;  %v19227_v52 = vld [vmem:[#allocation11 + $0x9c4] ss:$16 sps:$4 sm:$0xff]   ;;  %v19230_v40 = vld [vmem:[#allocation11 + $0x9cc] ss:$16 sps:$4 sm:$0xff]  }
 0x4c3   : > { %6273 = vmatprep.subr.bf16.mxu0 %v19203_v43  ;;  %6402 = vmatprep.subr.bf16.mxu1 %v19206_v41  ;;  %v5369_v43 = vshll.u32 %v22868_v13, 16  ;;  %v19225_v41 = vld [vmem:[#allocation11 + $0x9c0] ss:$16 sps:$4 sm:$0xff]  }
 0x4c5   : > { %v5371_v44 = vrot.slane %v5369_v43, 1  ;;  %v19253_v43 = vld [vmem:[#allocation11 + $0x44] ss:$16 sps:$4 sm:$0xff]  }
 0x4c6   : > { %6274 = vmatpush1.bf16.msra.mxu0 %v19201_v35  ;;  %6403 = vmatpush1.bf16.msra.mxu1 %v19204_v19  ;;  %v19228_v35 = vld [vmem:[#allocation11 + $0x9c8] ss:$16 sps:$4 sm:$0xff]   ;;  %v19233_v19 = vld [vmem:[#allocation11 + $0x9e4] ss:$16 sps:$4 sm:$0xff]  }
 0x4c7   : > { %6275 = vmatprep.subr.bf16.mxu0 %v19209_v25  ;;  %6404 = vmatprep.subr.bf16.mxu1 %v19212_v28  ;;  %v19236_v25 = vld [vmem:[#allocation11 + $0x9ec] ss:$16 sps:$4 sm:$0xff]   ;;  %v19231_v28 = vld [vmem:[#allocation11 + $0x9e0] ss:$16 sps:$4 sm:$0xff]  }
 0x4ca   : > { %6276 = vmatpush1.bf16.msra.mxu0 %v19207_v53  ;;  %6405 = vmatpush1.bf16.msra.mxu1 %v19210_v36  ;;  %v19234_v53 = vld [vmem:[#allocation11 + $0x9e8] ss:$16 sps:$4 sm:$0xff]   ;;  %v5367_v36 = vshrl.u32 %v22868_v13, 16 }
 0x4cb   : > { %6277 = vmatprep.subr.bf16.mxu0 %v19215_v1  ;;  %6406 = vmatprep.subr.bf16.mxu1 %v19218_v27  ;;  %v5374_v1 = vshll.u32 %v22804_v55, 16  ;;  %v19241_v27 = vld [vmem:[#allocation11 + $0x4] ss:$16 sps:$4 sm:$0xff]   ;;  %v19245_v55 = vld [vmem:[#allocation11 + $0x20] ss:$16 sps:$4 sm:$0xff]  }
 0x4ce   : > { %6278 = vmatpush1.bf16.msra.mxu0 %v19213_v14  ;;  %6407 = vmatpush1.bf16.msra.mxu1 %v19216_v18  ;;  %v19244_v14 = vld [vmem:[#allocation11 + $0xc] ss:$16 sps:$4 sm:$0xff]   ;;  %v5372_v18 = vor.u32 %v5371_v44, %v5367_v36  ;;  %v19265_v36 = vld [vmem:[#allocation11 + $0x84] ss:$16 sps:$4 sm:$0xff]  }
 0x4cf   : > { %6279 = vmatprep.subr.bf16.mxu0 %v19221_v12  ;;  %6408 = vmatprep.subr.bf16.mxu1 %v19224_v39  ;;  %v5376_v12 = vrot.slane %v5374_v1, 1  ;;  %v19239_v39 = vld [vmem:[#allocation11] ss:$16 sps:$4 sm:$0xff]   ;;  %v19262_v44 = vld [vmem:[#allocation11 + $0x6c] ss:$16 sps:$4 sm:$0xff]  }
 0x4d0   : > { %v19263_v1 = vld [vmem:[#allocation11 + $0x80] ss:$16 sps:$4 sm:$0xff]  }
 0x4d2   : > { %6280 = vmatpush1.bf16.msra.mxu0 %v19219_v56  ;;  %6409 = vmatpush1.bf16.msra.mxu1 %v19222_v57  ;;  %v5377_v56 = vsel %vm23416_vm14, %v5372_v18, %v5376_v12  ;;  %v19247_v57 = vld [vmem:[#allocation11 + $0x24] ss:$16 sps:$4 sm:$0xff]   ;;  %v19274_v18 = vld [vmem:[#allocation11 + $0xac] ss:$16 sps:$4 sm:$0xff]   ;;  %v19269_v12 = vld [vmem:[#allocation11 + $0xa0] ss:$16 sps:$4 sm:$0xff]   ;;  %vm23429_vm14 = vnez %v23242_v61 }
 0x4d3   : > { %6281 = vmatprep.subr.bf16.mxu0 %v19227_v52  ;;  %6410 = vmatprep.subr.bf16.mxu1 %v19230_v40  ;;  %v19250_v52 = vld [vmem:[#allocation11 + $0x2c] ss:$16 sps:$4 sm:$0xff]   ;;  %v19248_v40 = vld [vmem:[#allocation11 + $0x28] ss:$16 sps:$4 sm:$0xff]  }
 0x4d6   : > { %6282 = vmatpush1.bf16.msra.mxu0 %v19225_v41  ;;  %6411 = vmatpush1.bf16.msra.mxu1 %v19228_v35  ;;  %v19256_v41 = vld [vmem:[#allocation11 + $0x4c] ss:$16 sps:$4 sm:$0xff]   ;;  %v19251_v35 = vld [vmem:[#allocation11 + $0x40] ss:$16 sps:$4 sm:$0xff]  }
 0x4d7   : > { %6283 = vmatprep.subr.bf16.mxu0 %v19233_v19  ;;  %6412 = vmatprep.subr.bf16.mxu1 %v19236_v25  ;;  %v19254_v19 = vld [vmem:[#allocation11 + $0x48] ss:$16 sps:$4 sm:$0xff]   ;;  %v19259_v25 = vld [vmem:[#allocation11 + $0x64] ss:$16 sps:$4 sm:$0xff]  }
 0x4da   : > { %6284 = vmatpush1.bf16.msra.mxu0 %v19231_v28  ;;  %6413 = vmatpush1.bf16.msra.mxu1 %v19234_v53  ;;  %v19257_v28 = vld [vmem:[#allocation11 + $0x60] ss:$16 sps:$4 sm:$0xff]   ;;  %v19260_v53 = vld [vmem:[#allocation11 + $0x68] ss:$16 sps:$4 sm:$0xff]  }
 0x4db   : > { %7246 = vmatprep.subr.bf16.mxu0 %v19241_v27  ;;  %7375 = vmatprep.subr.bf16.mxu1 %v19244_v14  ;;  %v19266_v27 = vld [vmem:[#allocation11 + $0x88] ss:$16 sps:$4 sm:$0xff]   ;;  %v19271_v14 = vld [vmem:[#allocation11 + $0xa4] ss:$16 sps:$4 sm:$0xff]  }
 0x4dd   : > { %6302 = vmatmul.mubr.bf16.vlgmr.msra.gmra.mrb[16].mxu0 %v5377_v56  ;;  %6431 = vmatmul.mubr.bf16.vlgmr.msra.gmra.mrb[16].mxu1 %v5377_v56  ;;  %v19280_v56 = vld [vmem:[#allocation11 + $0xcc] ss:$16 sps:$4 sm:$0xff]  }
 0x4de   : > { %7247 = vmatpush1.bf16.msra.mxu0 %v19239_v39  ;;  %7278 = vmatprep.mubr.bf16.mxu0 %v22590_v26  ;;  %v19272_v39 = vld [vmem:[#allocation11 + $0xa8] ss:$16 sps:$4 sm:$0xff]  }
 0x4df   : > { %7376 = vmatpush1.bf16.msra.mxu1 %v19242_v60  ;;  %7407 = vmatprep.mubr.bf16.mxu1 %v22590_v26  ;;  %v19268_v26 = vld [vmem:[#allocation11 + $0x8c] ss:$16 sps:$4 sm:$0xff]   ;;  %v19277_v60 = vld [vmem:[#allocation11 + $0xc4] ss:$16 sps:$4 sm:$0xff]  }
 0x4e0   : > { %7248 = vmatprep.subr.bf16.mxu0 %v19247_v57  ;;  %7377 = vmatprep.subr.bf16.mxu1 %v19250_v52  ;;  %v19275_v57 = vld [vmem:[#allocation11 + $0xc0] ss:$16 sps:$4 sm:$0xff]   ;;  %v19278_v52 = vld [vmem:[#allocation11 + $0xc8] ss:$16 sps:$4 sm:$0xff]  }
 0x4e2   : > { %7249 = vmatpush1.bf16.msra.mxu0 %v19245_v55  ;;  %v19283_v55 = vld [vmem:[#allocation11 + $0xe4] ss:$16 sps:$4 sm:$0xff]  }
 0x4e3   : > { %7378 = vmatpush1.bf16.msra.mxu1 %v19248_v40  ;;  %7250 = vmatprep.subr.bf16.mxu0 %v19253_v43  ;;  %v19286_v40 = vld [vmem:[#allocation11 + $0xec] ss:$16 sps:$4 sm:$0xff]   ;;  %v19281_v43 = vld [vmem:[#allocation11 + $0xe0] ss:$16 sps:$4 sm:$0xff]  }
 0x4e4   : > { %7379 = vmatprep.subr.bf16.mxu1 %v19256_v41  ;;  %v19284_v41 = vld [vmem:[#allocation11 + $0xe8] ss:$16 sps:$4 sm:$0xff]  }
 0x4e6   : > { %7251 = vmatpush1.bf16.msra.mxu0 %v19251_v35  ;;  %v19289_v35 = vld [vmem:[#allocation11 + $0x104] ss:$16 sps:$4 sm:$0xff]  }
 0x4e7   : > { %7380 = vmatpush1.bf16.msra.mxu1 %v19254_v19  ;;  %7252 = vmatprep.subr.bf16.mxu0 %v19259_v25  ;;  %v19292_v19 = vld [vmem:[#allocation11 + $0x10c] ss:$16 sps:$4 sm:$0xff]   ;;  %v19287_v25 = vld [vmem:[#allocation11 + $0x100] ss:$16 sps:$4 sm:$0xff]  }
 0x4e8   : > { %7381 = vmatprep.subr.bf16.mxu1 %v19262_v44  ;;  %v19290_v44 = vld [vmem:[#allocation11 + $0x108] ss:$16 sps:$4 sm:$0xff]  }
 0x4ea   : > { %7253 = vmatpush1.bf16.msra.mxu0 %v19257_v28  ;;  %v19295_v28 = vld [vmem:[#allocation11 + $0x124] ss:$16 sps:$4 sm:$0xff]  }
 0x4eb   : > { %7382 = vmatpush1.bf16.msra.mxu1 %v19260_v53  ;;  %7254 = vmatprep.subr.bf16.mxu0 %v19265_v36  ;;  %v19298_v53 = vld [vmem:[#allocation11 + $0x12c] ss:$16 sps:$4 sm:$0xff]   ;;  %v19293_v36 = vld [vmem:[#allocation11 + $0x120] ss:$16 sps:$4 sm:$0xff]  }
 0x4ec   : > { %7383 = vmatprep.subr.bf16.mxu1 %v19268_v26  ;;  %v19296_v26 = vld [vmem:[#allocation11 + $0x128] ss:$16 sps:$4 sm:$0xff]  }
 0x4ee   : > { %7255 = vmatpush1.bf16.msra.mxu0 %v19263_v1  ;;  %v19301_v1 = vld [vmem:[#allocation11 + $0x144] ss:$16 sps:$4 sm:$0xff]  }
 0x4ef   : > { %7384 = vmatpush1.bf16.msra.mxu1 %v19266_v27  ;;  %7256 = vmatprep.subr.bf16.mxu0 %v19271_v14  ;;  %v19304_v27 = vld [vmem:[#allocation11 + $0x14c] ss:$16 sps:$4 sm:$0xff]   ;;  %v19299_v14 = vld [vmem:[#allocation11 + $0x140] ss:$16 sps:$4 sm:$0xff]  }
 0x4f0   : > { %7385 = vmatprep.subr.bf16.mxu1 %v19274_v18  ;;  %v19302_v18 = vld [vmem:[#allocation11 + $0x148] ss:$16 sps:$4 sm:$0xff]  }
 0x4f2   : > { %7257 = vmatpush1.bf16.msra.mxu0 %v19269_v12  ;;  %v19307_v12 = vld [vmem:[#allocation11 + $0x164] ss:$16 sps:$4 sm:$0xff]  }
 0x4f3   : > { %7386 = vmatpush1.bf16.msra.mxu1 %v19272_v39  ;;  %7258 = vmatprep.subr.bf16.mxu0 %v19277_v60  ;;  %v19310_v39 = vld [vmem:[#allocation11 + $0x16c] ss:$16 sps:$4 sm:$0xff]   ;;  %v19305_v60 = vld [vmem:[#allocation11 + $0x160] ss:$16 sps:$4 sm:$0xff]  }
 0x4f4   : > { %7387 = vmatprep.subr.bf16.mxu1 %v19280_v56  ;;  %v19308_v56 = vld [vmem:[#allocation11 + $0x168] ss:$16 sps:$4 sm:$0xff]  }
 0x4f6   : > { %7259 = vmatpush1.bf16.msra.mxu0 %v19275_v57  ;;  %v19313_v57 = vld [vmem:[#allocation11 + $0x184] ss:$16 sps:$4 sm:$0xff]  }
 0x4f7   : > { %7388 = vmatpush1.bf16.msra.mxu1 %v19278_v52  ;;  %7260 = vmatprep.subr.bf16.mxu0 %v19283_v55  ;;  %v19316_v52 = vld [vmem:[#allocation11 + $0x18c] ss:$16 sps:$4 sm:$0xff]   ;;  %v19311_v55 = vld [vmem:[#allocation11 + $0x180] ss:$16 sps:$4 sm:$0xff]  }
 0x4f8   : > { %7389 = vmatprep.subr.bf16.mxu1 %v19286_v40  ;;  %v19314_v40 = vld [vmem:[#allocation11 + $0x188] ss:$16 sps:$4 sm:$0xff]  }
 0x4fa   : > { %7261 = vmatpush1.bf16.msra.mxu0 %v19281_v43  ;;  %v19319_v43 = vld [vmem:[#allocation11 + $0x1a4] ss:$16 sps:$4 sm:$0xff]  }
 0x4fb   : > { %7390 = vmatpush1.bf16.msra.mxu1 %v19284_v41  ;;  %7262 = vmatprep.subr.bf16.mxu0 %v19289_v35  ;;  %v19322_v41 = vld [vmem:[#allocation11 + $0x1ac] ss:$16 sps:$4 sm:$0xff]   ;;  %v19317_v35 = vld [vmem:[#allocation11 + $0x1a0] ss:$16 sps:$4 sm:$0xff]  }
 0x4fc   : > { %7391 = vmatprep.subr.bf16.mxu1 %v19292_v19  ;;  %v19320_v19 = vld [vmem:[#allocation11 + $0x1a8] ss:$16 sps:$4 sm:$0xff]  }
 0x4fe   : > { %7263 = vmatpush1.bf16.msra.mxu0 %v19287_v25  ;;  %v19325_v25 = vld [vmem:[#allocation11 + $0x1c4] ss:$16 sps:$4 sm:$0xff]  }
 0x4ff   : > { %7392 = vmatpush1.bf16.msra.mxu1 %v19290_v44  ;;  %7264 = vmatprep.subr.bf16.mxu0 %v19295_v28  ;;  %v19328_v44 = vld [vmem:[#allocation11 + $0x1cc] ss:$16 sps:$4 sm:$0xff]   ;;  %v19323_v28 = vld [vmem:[#allocation11 + $0x1c0] ss:$16 sps:$4 sm:$0xff]  }
 0x500   : > { %7393 = vmatprep.subr.bf16.mxu1 %v19298_v53  ;;  %v19326_v53 = vld [vmem:[#allocation11 + $0x1c8] ss:$16 sps:$4 sm:$0xff]  }
 0x502   : > { %7265 = vmatpush1.bf16.msra.mxu0 %v19293_v36  ;;  %v19331_v36 = vld [vmem:[#allocation11 + $0x1e4] ss:$16 sps:$4 sm:$0xff]  }
 0x503   : > { %7394 = vmatpush1.bf16.msra.mxu1 %v19296_v26  ;;  %7266 = vmatprep.subr.bf16.mxu0 %v19301_v1  ;;  %v19334_v26 = vld [vmem:[#allocation11 + $0x1ec] ss:$16 sps:$4 sm:$0xff]   ;;  %v19329_v1 = vld [vmem:[#allocation11 + $0x1e0] ss:$16 sps:$4 sm:$0xff]  }
 0x504   : > { %7395 = vmatprep.subr.bf16.mxu1 %v19304_v27  ;;  %v19332_v27 = vld [vmem:[#allocation11 + $0x1e8] ss:$16 sps:$4 sm:$0xff]  }
 0x506   : > { %7267 = vmatpush1.bf16.msra.mxu0 %v19299_v14  ;;  %v19337_v14 = vld [vmem:[#allocation11 + $0x204] ss:$16 sps:$4 sm:$0xff]  }
 0x507   : > { %7396 = vmatpush1.bf16.msra.mxu1 %v19302_v18  ;;  %7268 = vmatprep.subr.bf16.mxu0 %v19307_v12  ;;  %v19340_v18 = vld [vmem:[#allocation11 + $0x20c] ss:$16 sps:$4 sm:$0xff]   ;;  %v19335_v12 = vld [vmem:[#allocation11 + $0x200] ss:$16 sps:$4 sm:$0xff]  }
 0x508   : > { %7397 = vmatprep.subr.bf16.mxu1 %v19310_v39  ;;  %v19338_v39 = vld [vmem:[#allocation11 + $0x208] ss:$16 sps:$4 sm:$0xff]  }
 0x50a   : > { %7269 = vmatpush1.bf16.msra.mxu0 %v19305_v60  ;;  %v19343_v60 = vld [vmem:[#allocation11 + $0x224] ss:$16 sps:$4 sm:$0xff]  }
 0x50b   : > { %7398 = vmatpush1.bf16.msra.mxu1 %v19308_v56  ;;  %7270 = vmatprep.subr.bf16.mxu0 %v19313_v57  ;;  %v19346_v56 = vld [vmem:[#allocation11 + $0x22c] ss:$16 sps:$4 sm:$0xff]   ;;  %v19341_v57 = vld [vmem:[#allocation11 + $0x220] ss:$16 sps:$4 sm:$0xff]  }
 0x50c   : > { %7399 = vmatprep.subr.bf16.mxu1 %v19316_v52  ;;  %v19344_v52 = vld [vmem:[#allocation11 + $0x228] ss:$16 sps:$4 sm:$0xff]  }
 0x50e   : > { %7271 = vmatpush1.bf16.msra.mxu0 %v19311_v55  ;;  %v19349_v55 = vld [vmem:[#allocation11 + $0x244] ss:$16 sps:$4 sm:$0xff]  }
 0x50f   : > { %7400 = vmatpush1.bf16.msra.mxu1 %v19314_v40  ;;  %7272 = vmatprep.subr.bf16.mxu0 %v19319_v43  ;;  %v19352_v40 = vld [vmem:[#allocation11 + $0x24c] ss:$16 sps:$4 sm:$0xff]   ;;  %v19347_v43 = vld [vmem:[#allocation11 + $0x240] ss:$16 sps:$4 sm:$0xff]  }
 0x510   : > { %7401 = vmatprep.subr.bf16.mxu1 %v19322_v41  ;;  %v19350_v41 = vld [vmem:[#allocation11 + $0x248] ss:$16 sps:$4 sm:$0xff]  }
 0x512   : > { %7273 = vmatpush1.bf16.msra.mxu0 %v19317_v35  ;;  %v19355_v35 = vld [vmem:[#allocation11 + $0x264] ss:$16 sps:$4 sm:$0xff]  }
 0x513   : > { %7402 = vmatpush1.bf16.msra.mxu1 %v19320_v19  ;;  %7274 = vmatprep.subr.bf16.mxu0 %v19325_v25  ;;  %v19353_v19 = vld [vmem:[#allocation11 + $0x260] ss:$16 sps:$4 sm:$0xff]   ;;  %v19356_v25 = vld [vmem:[#allocation11 + $0x268] ss:$16 sps:$4 sm:$0xff]  }
 0x514   : > { %7403 = vmatprep.subr.bf16.mxu1 %v19328_v44  ;;  %v19361_v44 = vld [vmem:[#allocation11 + $0x284] ss:$16 sps:$4 sm:$0xff]  }
 0x516   : > { %7275 = vmatpush1.bf16.msra.mxu0 %v19323_v28  ;;  %v19364_v28 = vld [vmem:[#allocation11 + $0x28c] ss:$16 sps:$4 sm:$0xff]  }
 0x517   : > { %7404 = vmatpush1.bf16.msra.mxu1 %v19326_v53  ;;  %7276 = vmatprep.subr.bf16.mxu0 %v19331_v36  ;;  %v19362_v53 = vld [vmem:[#allocation11 + $0x288] ss:$16 sps:$4 sm:$0xff]   ;;  %v19367_v36 = vld [vmem:[#allocation11 + $0x2a4] ss:$16 sps:$4 sm:$0xff]  }
 0x518   : > { %7405 = vmatprep.subr.bf16.mxu1 %v19334_v26  ;;  %v19370_v26 = vld [vmem:[#allocation11 + $0x2ac] ss:$16 sps:$4 sm:$0xff]  }
 0x51a   : > { %7277 = vmatpush1.bf16.msra.mxu0 %v19329_v1  ;;  %v19365_v1 = vld [vmem:[#allocation11 + $0x2a0] ss:$16 sps:$4 sm:$0xff]  }
 0x51b   : > { %7406 = vmatpush1.bf16.msra.mxu1 %v19332_v27  ;;  %7289 = vmatprep.subr.bf16.mxu0 %v19337_v14  ;;  %v19368_v27 = vld [vmem:[#allocation11 + $0x2a8] ss:$16 sps:$4 sm:$0xff]   ;;  %v19373_v14 = vld [vmem:[#allocation11 + $0x2c4] ss:$16 sps:$4 sm:$0xff]  }
 0x51c   : > { %7418 = vmatprep.subr.bf16.mxu1 %v19340_v18  ;;  %v19376_v18 = vld [vmem:[#allocation11 + $0x2cc] ss:$16 sps:$4 sm:$0xff]  }
 0x51d   : > { %7279 = vmatmul.mubr.bf16.vlgmr.msra.gmra.mrb[16].mxu0 %v22575_v21 }
 0x51e   : > { %7408 = vmatmul.mubr.bf16.vlgmr.msra.gmra.mrb[16].mxu1 %v22575_v21  ;;  %7290 = vmatpush1.bf16.msra.mxu0 %v19335_v12  ;;  %v19358_v21 = vld [vmem:[#allocation11 + $0x26c] ss:$16 sps:$4 sm:$0xff]   ;;  %v19371_v12 = vld [vmem:[#allocation11 + $0x2c0] ss:$16 sps:$4 sm:$0xff]  }
 0x51f   : > { %7321 = vmatprep.mubr.bf16.mxu0 %v22791_v47  ;;  %7419 = vmatpush1.bf16.msra.mxu1 %v19338_v39  ;;  %v19374_v39 = vld [vmem:[#allocation11 + $0x2c8] ss:$16 sps:$4 sm:$0xff]  }
 0x520   : > { %7450 = vmatprep.mubr.bf16.mxu1 %v22791_v47  ;;  %7291 = vmatprep.subr.bf16.mxu0 %v19343_v60  ;;  %v19359_v47 = vld [vmem:[#allocation11 + $0x280] ss:$16 sps:$4 sm:$0xff]   ;;  %v19379_v60 = vld [vmem:[#allocation11 + $0x2e4] ss:$16 sps:$4 sm:$0xff]  }
 0x521   : > { %7420 = vmatprep.subr.bf16.mxu1 %v19346_v56  ;;  %v19382_v56 = vld [vmem:[#allocation11 + $0x2ec] ss:$16 sps:$4 sm:$0xff]  }
 0x522   : > { %7292 = vmatpush1.bf16.msra.mxu0 %v19341_v57  ;;  %v19377_v57 = vld [vmem:[#allocation11 + $0x2e0] ss:$16 sps:$4 sm:$0xff]  }
 0x523   : > { %7421 = vmatpush1.bf16.msra.mxu1 %v19344_v52  ;;  %7293 = vmatprep.subr.bf16.mxu0 %v19349_v55  ;;  %v19380_v52 = vld [vmem:[#allocation11 + $0x2e8] ss:$16 sps:$4 sm:$0xff]   ;;  %v19385_v55 = vld [vmem:[#allocation11 + $0x304] ss:$16 sps:$4 sm:$0xff]  }
 0x524   : > { %7422 = vmatprep.subr.bf16.mxu1 %v19352_v40  ;;  %v19388_v40 = vld [vmem:[#allocation11 + $0x30c] ss:$16 sps:$4 sm:$0xff]  }
 0x526   : > { %7294 = vmatpush1.bf16.msra.mxu0 %v19347_v43  ;;  %v19383_v43 = vld [vmem:[#allocation11 + $0x300] ss:$16 sps:$4 sm:$0xff]  }
 0x527   : > { %7423 = vmatpush1.bf16.msra.mxu1 %v19350_v41  ;;  %7295 = vmatprep.subr.bf16.mxu0 %v19355_v35  ;;  %v19386_v41 = vld [vmem:[#allocation11 + $0x308] ss:$16 sps:$4 sm:$0xff]   ;;  %v19391_v35 = vld [vmem:[#allocation11 + $0x324] ss:$16 sps:$4 sm:$0xff]  }
 0x528   : > { %7424 = vmatprep.subr.bf16.mxu1 %v19358_v21  ;;  %v19394_v21 = vld [vmem:[#allocation11 + $0x32c] ss:$16 sps:$4 sm:$0xff]  }
 0x52a   : > { %7296 = vmatpush1.bf16.msra.mxu0 %v19353_v19  ;;  %v19389_v19 = vld [vmem:[#allocation11 + $0x320] ss:$16 sps:$4 sm:$0xff]  }
 0x52b   : > { %7425 = vmatpush1.bf16.msra.mxu1 %v19356_v25  ;;  %7297 = vmatprep.subr.bf16.mxu0 %v19361_v44  ;;  %v19392_v25 = vld [vmem:[#allocation11 + $0x328] ss:$16 sps:$4 sm:$0xff]   ;;  %v19397_v44 = vld [vmem:[#allocation11 + $0x344] ss:$16 sps:$4 sm:$0xff]  }
 0x52c   : > { %7426 = vmatprep.subr.bf16.mxu1 %v19364_v28  ;;  %v19400_v28 = vld [vmem:[#allocation11 + $0x34c] ss:$16 sps:$4 sm:$0xff]  }
 0x52e   : > { %7298 = vmatpush1.bf16.msra.mxu0 %v19359_v47  ;;  %v19395_v47 = vld [vmem:[#allocation11 + $0x340] ss:$16 sps:$4 sm:$0xff]  }
 0x52f   : > { %7427 = vmatpush1.bf16.msra.mxu1 %v19362_v53  ;;  %7299 = vmatprep.subr.bf16.mxu0 %v19367_v36  ;;  %v19398_v53 = vld [vmem:[#allocation11 + $0x348] ss:$16 sps:$4 sm:$0xff]   ;;  %v19403_v36 = vld [vmem:[#allocation11 + $0x364] ss:$16 sps:$4 sm:$0xff]  }
 0x530   : > { %7428 = vmatprep.subr.bf16.mxu1 %v19370_v26  ;;  %v19406_v26 = vld [vmem:[#allocation11 + $0x36c] ss:$16 sps:$4 sm:$0xff]  }
 0x532   : > { %7300 = vmatpush1.bf16.msra.mxu0 %v19365_v1  ;;  %v19401_v1 = vld [vmem:[#allocation11 + $0x360] ss:$16 sps:$4 sm:$0xff]  }
 0x533   : > { %7429 = vmatpush1.bf16.msra.mxu1 %v19368_v27  ;;  %7301 = vmatprep.subr.bf16.mxu0 %v19373_v14  ;;  %v19404_v27 = vld [vmem:[#allocation11 + $0x368] ss:$16 sps:$4 sm:$0xff]   ;;  %v19409_v14 = vld [vmem:[#allocation11 + $0x384] ss:$16 sps:$4 sm:$0xff]  }
 0x534   : > { %7430 = vmatprep.subr.bf16.mxu1 %v19376_v18  ;;  %v19412_v18 = vld [vmem:[#allocation11 + $0x38c] ss:$16 sps:$4 sm:$0xff]  }
 0x536   : > { %7302 = vmatpush1.bf16.msra.mxu0 %v19371_v12  ;;  %v19407_v12 = vld [vmem:[#allocation11 + $0x380] ss:$16 sps:$4 sm:$0xff]  }
 0x537   : > { %7431 = vmatpush1.bf16.msra.mxu1 %v19374_v39  ;;  %7303 = vmatprep.subr.bf16.mxu0 %v19379_v60  ;;  %v19410_v39 = vld [vmem:[#allocation11 + $0x388] ss:$16 sps:$4 sm:$0xff]   ;;  %v19415_v60 = vld [vmem:[#allocation11 + $0x3a4] ss:$16 sps:$4 sm:$0xff]  }
 0x538   : > { %7432 = vmatprep.subr.bf16.mxu1 %v19382_v56  ;;  %v19418_v56 = vld [vmem:[#allocation11 + $0x3ac] ss:$16 sps:$4 sm:$0xff]  }
 0x53a   : > { %7304 = vmatpush1.bf16.msra.mxu0 %v19377_v57  ;;  %v19413_v57 = vld [vmem:[#allocation11 + $0x3a0] ss:$16 sps:$4 sm:$0xff]  }
 0x53b   : > { %7433 = vmatpush1.bf16.msra.mxu1 %v19380_v52  ;;  %7305 = vmatprep.subr.bf16.mxu0 %v19385_v55  ;;  %v19416_v52 = vld [vmem:[#allocation11 + $0x3a8] ss:$16 sps:$4 sm:$0xff]   ;;  %v19421_v55 = vld [vmem:[#allocation11 + $0x3c4] ss:$16 sps:$4 sm:$0xff]  }
 0x53c   : > { %7434 = vmatprep.subr.bf16.mxu1 %v19388_v40  ;;  %v19424_v40 = vld [vmem:[#allocation11 + $0x3cc] ss:$16 sps:$4 sm:$0xff]  }
 0x53e   : > { %7306 = vmatpush1.bf16.msra.mxu0 %v19383_v43  ;;  %v19419_v43 = vld [vmem:[#allocation11 + $0x3c0] ss:$16 sps:$4 sm:$0xff]  }
 0x53f   : > { %7435 = vmatpush1.bf16.msra.mxu1 %v19386_v41  ;;  %7307 = vmatprep.subr.bf16.mxu0 %v19391_v35  ;;  %v19422_v41 = vld [vmem:[#allocation11 + $0x3c8] ss:$16 sps:$4 sm:$0xff]   ;;  %v19427_v35 = vld [vmem:[#allocation11 + $0x3e4] ss:$16 sps:$4 sm:$0xff]  }
 0x540   : > { %7436 = vmatprep.subr.bf16.mxu1 %v19394_v21  ;;  %v19430_v21 = vld [vmem:[#allocation11 + $0x3ec] ss:$16 sps:$4 sm:$0xff]  }
 0x542   : > { %7308 = vmatpush1.bf16.msra.mxu0 %v19389_v19  ;;  %v19425_v19 = vld [vmem:[#allocation11 + $0x3e0] ss:$16 sps:$4 sm:$0xff]  }
 0x543   : > { %7437 = vmatpush1.bf16.msra.mxu1 %v19392_v25  ;;  %7309 = vmatprep.subr.bf16.mxu0 %v19397_v44  ;;  %v19428_v25 = vld [vmem:[#allocation11 + $0x3e8] ss:$16 sps:$4 sm:$0xff]   ;;  %v19433_v44 = vld [vmem:[#allocation11 + $0x404] ss:$16 sps:$4 sm:$0xff]  }
 0x544   : > { %7438 = vmatprep.subr.bf16.mxu1 %v19400_v28  ;;  %v19436_v28 = vld [vmem:[#allocation11 + $0x40c] ss:$16 sps:$4 sm:$0xff]  }
 0x546   : > { %7310 = vmatpush1.bf16.msra.mxu0 %v19395_v47  ;;  %v19431_v47 = vld [vmem:[#allocation11 + $0x400] ss:$16 sps:$4 sm:$0xff]  }
 0x547   : > { %7439 = vmatpush1.bf16.msra.mxu1 %v19398_v53  ;;  %7311 = vmatprep.subr.bf16.mxu0 %v19403_v36  ;;  %v19434_v53 = vld [vmem:[#allocation11 + $0x408] ss:$16 sps:$4 sm:$0xff]   ;;  %v19439_v36 = vld [vmem:[#allocation11 + $0x424] ss:$16 sps:$4 sm:$0xff]  }
 0x548   : > { %7440 = vmatprep.subr.bf16.mxu1 %v19406_v26  ;;  %v19442_v26 = vld [vmem:[#allocation11 + $0x42c] ss:$16 sps:$4 sm:$0xff]  }
 0x54a   : > { %7312 = vmatpush1.bf16.msra.mxu0 %v19401_v1  ;;  %v19437_v1 = vld [vmem:[#allocation11 + $0x420] ss:$16 sps:$4 sm:$0xff]  }
 0x54b   : > { %7441 = vmatpush1.bf16.msra.mxu1 %v19404_v27  ;;  %7313 = vmatprep.subr.bf16.mxu0 %v19409_v14  ;;  %v19440_v27 = vld [vmem:[#allocation11 + $0x428] ss:$16 sps:$4 sm:$0xff]   ;;  %v19445_v14 = vld [vmem:[#allocation11 + $0x444] ss:$16 sps:$4 sm:$0xff]  }
 0x54c   : > { %7442 = vmatprep.subr.bf16.mxu1 %v19412_v18  ;;  %v19448_v18 = vld [vmem:[#allocation11 + $0x44c] ss:$16 sps:$4 sm:$0xff]  }
 0x54e   : > { %7314 = vmatpush1.bf16.msra.mxu0 %v19407_v12  ;;  %v19443_v12 = vld [vmem:[#allocation11 + $0x440] ss:$16 sps:$4 sm:$0xff]  }
 0x54f   : > { %7443 = vmatpush1.bf16.msra.mxu1 %v19410_v39  ;;  %7315 = vmatprep.subr.bf16.mxu0 %v19415_v60  ;;  %v19446_v39 = vld [vmem:[#allocation11 + $0x448] ss:$16 sps:$4 sm:$0xff]   ;;  %v19451_v60 = vld [vmem:[#allocation11 + $0x464] ss:$16 sps:$4 sm:$0xff]  }
 0x550   : > { %7444 = vmatprep.subr.bf16.mxu1 %v19418_v56  ;;  %v19449_v56 = vld [vmem:[#allocation11 + $0x460] ss:$16 sps:$4 sm:$0xff]  }
 0x552   : > { %7316 = vmatpush1.bf16.msra.mxu0 %v19413_v57  ;;  %v19452_v57 = vld [vmem:[#allocation11 + $0x468] ss:$16 sps:$4 sm:$0xff]  }
 0x553   : > { %7445 = vmatpush1.bf16.msra.mxu1 %v19416_v52  ;;  %7317 = vmatprep.subr.bf16.mxu0 %v19421_v55  ;;  %v19457_v52 = vld [vmem:[#allocation11 + $0x484] ss:$16 sps:$4 sm:$0xff]   ;;  %v19460_v55 = vld [vmem:[#allocation11 + $0x48c] ss:$16 sps:$4 sm:$0xff]  }
 0x554   : > { %7446 = vmatprep.subr.bf16.mxu1 %v19424_v40  ;;  %v19455_v40 = vld [vmem:[#allocation11 + $0x480] ss:$16 sps:$4 sm:$0xff]  }
 0x556   : > { %7318 = vmatpush1.bf16.msra.mxu0 %v19419_v43  ;;  %v19463_v43 = vld [vmem:[#allocation11 + $0x4a4] ss:$16 sps:$4 sm:$0xff]  }
 0x557   : > { %7447 = vmatpush1.bf16.msra.mxu1 %v19422_v41  ;;  %7319 = vmatprep.subr.bf16.mxu0 %v19427_v35  ;;  %v19466_v41 = vld [vmem:[#allocation11 + $0x4ac] ss:$16 sps:$4 sm:$0xff]   ;;  %v19461_v35 = vld [vmem:[#allocation11 + $0x4a0] ss:$16 sps:$4 sm:$0xff]  }
 0x558   : > { %7448 = vmatprep.subr.bf16.mxu1 %v19430_v21  ;;  %v19464_v21 = vld [vmem:[#allocation11 + $0x4a8] ss:$16 sps:$4 sm:$0xff]  }
 0x55a   : > { %7320 = vmatpush1.bf16.msra.mxu0 %v19425_v19  ;;  %v19469_v19 = vld [vmem:[#allocation11 + $0x4c4] ss:$16 sps:$4 sm:$0xff]  }
 0x55b   : > { %7449 = vmatpush1.bf16.msra.mxu1 %v19428_v25  ;;  %7332 = vmatprep.subr.bf16.mxu0 %v19433_v44  ;;  %v19472_v25 = vld [vmem:[#allocation11 + $0x4cc] ss:$16 sps:$4 sm:$0xff]   ;;  %v19467_v44 = vld [vmem:[#allocation11 + $0x4c0] ss:$16 sps:$4 sm:$0xff]  }
 0x55c   : > { %7461 = vmatprep.subr.bf16.mxu1 %v19436_v28  ;;  %v19470_v28 = vld [vmem:[#allocation11 + $0x4c8] ss:$16 sps:$4 sm:$0xff]  }
 0x55d   : > { %7322 = vmatmul.mubr.bf16.vlgmr.msra.gmra.mrb[16].mxu0 %v22857_v3 }
 0x55e   : > { %7451 = vmatmul.mubr.bf16.vlgmr.msra.gmra.mrb[16].mxu1 %v22857_v3  ;;  %7333 = vmatpush1.bf16.msra.mxu0 %v19431_v47  ;;  %v19454_v3 = vld [vmem:[#allocation11 + $0x46c] ss:$16 sps:$4 sm:$0xff]   ;;  %v19475_v47 = vld [vmem:[#allocation11 + $0x4e4] ss:$16 sps:$4 sm:$0xff]  }
 0x55f   : > { %7462 = vmatpush1.bf16.msra.mxu1 %v19434_v53  ;;  %7334 = vmatprep.subr.bf16.mxu0 %v19439_v36  ;;  %v19478_v53 = vld [vmem:[#allocation11 + $0x4ec] ss:$16 sps:$4 sm:$0xff]   ;;  %v19473_v36 = vld [vmem:[#allocation11 + $0x4e0] ss:$16 sps:$4 sm:$0xff]  }
 0x560   : > { %7463 = vmatprep.subr.bf16.mxu1 %v19442_v26  ;;  %7364 = vmatprep.mubr.bf16.mxu0 %v22863_v15  ;;  %v19476_v26 = vld [vmem:[#allocation11 + $0x4e8] ss:$16 sps:$4 sm:$0xff]  }
 0x561   : > { %7493 = vmatprep.mubr.bf16.mxu1 %v22863_v15  ;;  %v19458_v15 = vld [vmem:[#allocation11 + $0x488] ss:$16 sps:$4 sm:$0xff]  }
 0x562   : > { %7335 = vmatpush1.bf16.msra.mxu0 %v19437_v1  ;;  %v19481_v1 = vld [vmem:[#allocation11 + $0xa04] ss:$16 sps:$4 sm:$0xff]  }
 0x563   : > { %7464 = vmatpush1.bf16.msra.mxu1 %v19440_v27  ;;  %7336 = vmatprep.subr.bf16.mxu0 %v19445_v14  ;;  %v19484_v27 = vld [vmem:[#allocation11 + $0xa0c] ss:$16 sps:$4 sm:$0xff]   ;;  %v19479_v14 = vld [vmem:[#allocation11 + $0xa00] ss:$16 sps:$4 sm:$0xff]  }
 0x564   : > { %7465 = vmatprep.subr.bf16.mxu1 %v19448_v18  ;;  %v19482_v18 = vld [vmem:[#allocation11 + $0xa08] ss:$16 sps:$4 sm:$0xff]  }
 0x566   : > { %7337 = vmatpush1.bf16.msra.mxu0 %v19443_v12  ;;  %v19487_v12 = vld [vmem:[#allocation11 + $0xa24] ss:$16 sps:$4 sm:$0xff]  }
 0x567   : > { %7466 = vmatpush1.bf16.msra.mxu1 %v19446_v39  ;;  %7338 = vmatprep.subr.bf16.mxu0 %v19451_v60  ;;  %v19490_v39 = vld [vmem:[#allocation11 + $0xa2c] ss:$16 sps:$4 sm:$0xff]   ;;  %v19485_v60 = vld [vmem:[#allocation11 + $0xa20] ss:$16 sps:$4 sm:$0xff]  }
 0x568   : > { %7467 = vmatprep.subr.bf16.mxu1 %v19454_v3  ;;  %v19488_v3 = vld [vmem:[#allocation11 + $0xa28] ss:$16 sps:$4 sm:$0xff]  }
 0x56a   : > { %7339 = vmatpush1.bf16.msra.mxu0 %v19449_v56  ;;  %v19493_v56 = vld [vmem:[#allocation11 + $0xa44] ss:$16 sps:$4 sm:$0xff]  }
 0x56b   : > { %7468 = vmatpush1.bf16.msra.mxu1 %v19452_v57  ;;  %7340 = vmatprep.subr.bf16.mxu0 %v19457_v52  ;;  %v19496_v57 = vld [vmem:[#allocation11 + $0xa4c] ss:$16 sps:$4 sm:$0xff]   ;;  %v19491_v52 = vld [vmem:[#allocation11 + $0xa40] ss:$16 sps:$4 sm:$0xff]  }
 0x56c   : > { %7469 = vmatprep.subr.bf16.mxu1 %v19460_v55  ;;  %v19494_v55 = vld [vmem:[#allocation11 + $0xa48] ss:$16 sps:$4 sm:$0xff]  }
 0x56e   : > { %7341 = vmatpush1.bf16.msra.mxu0 %v19455_v40  ;;  %v19499_v40 = vld [vmem:[#allocation11 + $0xa64] ss:$16 sps:$4 sm:$0xff]  }
 0x56f   : > { %7470 = vmatpush1.bf16.msra.mxu1 %v19458_v15  ;;  %7342 = vmatprep.subr.bf16.mxu0 %v19463_v43  ;;  %v19497_v15 = vld [vmem:[#allocation11 + $0xa60] ss:$16 sps:$4 sm:$0xff]   ;;  %v19500_v43 = vld [vmem:[#allocation11 + $0xa68] ss:$16 sps:$4 sm:$0xff]  }
 0x570   : > { %7471 = vmatprep.subr.bf16.mxu1 %v19466_v41  ;;  %v19505_v41 = vld [vmem:[#allocation11 + $0xa84] ss:$16 sps:$4 sm:$0xff]  }
 0x572   : > { %7343 = vmatpush1.bf16.msra.mxu0 %v19461_v35  ;;  %v19508_v35 = vld [vmem:[#allocation11 + $0xa8c] ss:$16 sps:$4 sm:$0xff]  }
 0x573   : > { %7472 = vmatpush1.bf16.msra.mxu1 %v19464_v21  ;;  %7344 = vmatprep.subr.bf16.mxu0 %v19469_v19  ;;  %v19506_v21 = vld [vmem:[#allocation11 + $0xa88] ss:$16 sps:$4 sm:$0xff]   ;;  %v19511_v19 = vld [vmem:[#allocation11 + $0xaa4] ss:$16 sps:$4 sm:$0xff]  }
 0x574   : > { %7473 = vmatprep.subr.bf16.mxu1 %v19472_v25  ;;  %v19514_v25 = vld [vmem:[#allocation11 + $0xaac] ss:$16 sps:$4 sm:$0xff]  }
 0x576   : > { %7345 = vmatpush1.bf16.msra.mxu0 %v19467_v44  ;;  %v19509_v44 = vld [vmem:[#allocation11 + $0xaa0] ss:$16 sps:$4 sm:$0xff]  }
 0x577   : > { %7474 = vmatpush1.bf16.msra.mxu1 %v19470_v28  ;;  %7346 = vmatprep.subr.bf16.mxu0 %v19475_v47  ;;  %v19512_v28 = vld [vmem:[#allocation11 + $0xaa8] ss:$16 sps:$4 sm:$0xff]   ;;  %v19517_v47 = vld [vmem:[#allocation11 + $0xac4] ss:$16 sps:$4 sm:$0xff]  }
 0x578   : > { %7475 = vmatprep.subr.bf16.mxu1 %v19478_v53  ;;  %v19520_v53 = vld [vmem:[#allocation11 + $0xacc] ss:$16 sps:$4 sm:$0xff]  }
 0x57a   : > { %7347 = vmatpush1.bf16.msra.mxu0 %v19473_v36  ;;  %v19515_v36 = vld [vmem:[#allocation11 + $0xac0] ss:$16 sps:$4 sm:$0xff]  }
 0x57b   : > { %7476 = vmatpush1.bf16.msra.mxu1 %v19476_v26  ;;  %8501 = vmatprep.subr.bf16.mxu0 %v19481_v1  ;;  %v19518_v26 = vld [vmem:[#allocation11 + $0xac8] ss:$16 sps:$4 sm:$0xff]   ;;  %v19523_v1 = vld [vmem:[#allocation11 + $0xae4] ss:$16 sps:$4 sm:$0xff]  }
 0x57c   : > { %8630 = vmatprep.subr.bf16.mxu1 %v19484_v27  ;;  %v19526_v27 = vld [vmem:[#allocation11 + $0xaec] ss:$16 sps:$4 sm:$0xff]  }
 0x57d   : > { %7365 = vmatmul.mubr.bf16.vlgmr.msra.gmra.mrb[16].mxu0 %v22868_v13 }
 0x57e   : > { %7494 = vmatmul.mubr.bf16.vlgmr.msra.gmra.mrb[16].mxu1 %v22868_v13  ;;  %8502 = vmatpush1.bf16.msra.mxu0 %v19479_v14  ;;  %v19502_v13 = vld [vmem:[#allocation11 + $0xa6c] ss:$16 sps:$4 sm:$0xff]   ;;  %v19521_v14 = vld [vmem:[#allocation11 + $0xae0] ss:$16 sps:$4 sm:$0xff]  }
 0x57f   : > { %8533 = vmatprep.mubr.bf16.mxu0 %v22776_v5  ;;  %8631 = vmatpush1.bf16.msra.mxu1 %v19482_v18  ;;  %v19524_v18 = vld [vmem:[#allocation11 + $0xae8] ss:$16 sps:$4 sm:$0xff]  }
 0x580   : > { %8662 = vmatprep.mubr.bf16.mxu1 %v22776_v5  ;;  %8503 = vmatprep.subr.bf16.mxu0 %v19487_v12  ;;  %v19503_v5 = vld [vmem:[#allocation11 + $0xa80] ss:$16 sps:$4 sm:$0xff]   ;;  %v19529_v12 = vld [vmem:[#allocation11 + $0xb04] ss:$16 sps:$4 sm:$0xff]  }
 0x581   : > { %8632 = vmatprep.subr.bf16.mxu1 %v19490_v39  ;;  %v19532_v39 = vld [vmem:[#allocation11 + $0xb0c] ss:$16 sps:$4 sm:$0xff]  }
 0x582   : > { %8504 = vmatpush1.bf16.msra.mxu0 %v19485_v60  ;;  %v19527_v60 = vld [vmem:[#allocation11 + $0xb00] ss:$16 sps:$4 sm:$0xff]  }
 0x583   : > { %8633 = vmatpush1.bf16.msra.mxu1 %v19488_v3  ;;  %8505 = vmatprep.subr.bf16.mxu0 %v19493_v56  ;;  %v19530_v3 = vld [vmem:[#allocation11 + $0xb08] ss:$16 sps:$4 sm:$0xff]   ;;  %v19535_v56 = vld [vmem:[#allocation11 + $0xb24] ss:$16 sps:$4 sm:$0xff]  }
 0x584   : > { %8634 = vmatprep.subr.bf16.mxu1 %v19496_v57  ;;  %v19538_v57 = vld [vmem:[#allocation11 + $0xb2c] ss:$16 sps:$4 sm:$0xff]  }
 0x586   : > { %8506 = vmatpush1.bf16.msra.mxu0 %v19491_v52  ;;  %v19533_v52 = vld [vmem:[#allocation11 + $0xb20] ss:$16 sps:$4 sm:$0xff]  }
 0x587   : > { %8635 = vmatpush1.bf16.msra.mxu1 %v19494_v55  ;;  %8507 = vmatprep.subr.bf16.mxu0 %v19499_v40  ;;  %v19536_v55 = vld [vmem:[#allocation11 + $0xb28] ss:$16 sps:$4 sm:$0xff]   ;;  %v19541_v40 = vld [vmem:[#allocation11 + $0xb44] ss:$16 sps:$4 sm:$0xff]  }
 0x588   : > { %8636 = vmatprep.subr.bf16.mxu1 %v19502_v13  ;;  %v19544_v13 = vld [vmem:[#allocation11 + $0xb4c] ss:$16 sps:$4 sm:$0xff]  }
 0x58a   : > { %8508 = vmatpush1.bf16.msra.mxu0 %v19497_v15  ;;  %v19539_v15 = vld [vmem:[#allocation11 + $0xb40] ss:$16 sps:$4 sm:$0xff]  }
 0x58b   : > { %8637 = vmatpush1.bf16.msra.mxu1 %v19500_v43  ;;  %8509 = vmatprep.subr.bf16.mxu0 %v19505_v41  ;;  %v19542_v43 = vld [vmem:[#allocation11 + $0xb48] ss:$16 sps:$4 sm:$0xff]   ;;  %v19547_v41 = vld [vmem:[#allocation11 + $0xb64] ss:$16 sps:$4 sm:$0xff]  }
 0x58c   : > { %8638 = vmatprep.subr.bf16.mxu1 %v19508_v35  ;;  %v19550_v35 = vld [vmem:[#allocation11 + $0xb6c] ss:$16 sps:$4 sm:$0xff]  }
 0x58e   : > { %8510 = vmatpush1.bf16.msra.mxu0 %v19503_v5  ;;  %v19545_v5 = vld [vmem:[#allocation11 + $0xb60] ss:$16 sps:$4 sm:$0xff]  }
 0x58f   : > { %8639 = vmatpush1.bf16.msra.mxu1 %v19506_v21  ;;  %8511 = vmatprep.subr.bf16.mxu0 %v19511_v19  ;;  %v19548_v21 = vld [vmem:[#allocation11 + $0xb68] ss:$16 sps:$4 sm:$0xff]   ;;  %v19553_v19 = vld [vmem:[#allocation11 + $0xb84] ss:$16 sps:$4 sm:$0xff]  }
 0x590   : > { %8640 = vmatprep.subr.bf16.mxu1 %v19514_v25  ;;  %v19556_v25 = vld [vmem:[#allocation11 + $0xb8c] ss:$16 sps:$4 sm:$0xff]  }
 0x592   : > { %8512 = vmatpush1.bf16.msra.mxu0 %v19509_v44  ;;  %v19551_v44 = vld [vmem:[#allocation11 + $0xb80] ss:$16 sps:$4 sm:$0xff]  }
 0x593   : > { %8641 = vmatpush1.bf16.msra.mxu1 %v19512_v28  ;;  %8513 = vmatprep.subr.bf16.mxu0 %v19517_v47  ;;  %v19554_v28 = vld [vmem:[#allocation11 + $0xb88] ss:$16 sps:$4 sm:$0xff]   ;;  %v19559_v47 = vld [vmem:[#allocation11 + $0xba4] ss:$16 sps:$4 sm:$0xff]  }
 0x594   : > { %8642 = vmatprep.subr.bf16.mxu1 %v19520_v53  ;;  %v19562_v53 = vld [vmem:[#allocation11 + $0xbac] ss:$16 sps:$4 sm:$0xff]  }
 0x596   : > { %8514 = vmatpush1.bf16.msra.mxu0 %v19515_v36  ;;  %v19557_v36 = vld [vmem:[#allocation11 + $0xba0] ss:$16 sps:$4 sm:$0xff]  }
 0x597   : > { %8643 = vmatpush1.bf16.msra.mxu1 %v19518_v26  ;;  %8515 = vmatprep.subr.bf16.mxu0 %v19523_v1  ;;  %v19560_v26 = vld [vmem:[#allocation11 + $0xba8] ss:$16 sps:$4 sm:$0xff]   ;;  %v19565_v1 = vld [vmem:[#allocation11 + $0xbc4] ss:$16 sps:$4 sm:$0xff]  }
 0x598   : > { %8644 = vmatprep.subr.bf16.mxu1 %v19526_v27  ;;  %v19568_v27 = vld [vmem:[#allocation11 + $0xbcc] ss:$16 sps:$4 sm:$0xff]  }
 0x59a   : > { %8516 = vmatpush1.bf16.msra.mxu0 %v19521_v14  ;;  %v19563_v14 = vld [vmem:[#allocation11 + $0xbc0] ss:$16 sps:$4 sm:$0xff]  }
 0x59b   : > { %8645 = vmatpush1.bf16.msra.mxu1 %v19524_v18  ;;  %8517 = vmatprep.subr.bf16.mxu0 %v19529_v12  ;;  %v19566_v18 = vld [vmem:[#allocation11 + $0xbc8] ss:$16 sps:$4 sm:$0xff]   ;;  %v19571_v12 = vld [vmem:[#allocation11 + $0xbe4] ss:$16 sps:$4 sm:$0xff]  }
 0x59c   : > { %8646 = vmatprep.subr.bf16.mxu1 %v19532_v39  ;;  %v19574_v39 = vld [vmem:[#allocation11 + $0xbec] ss:$16 sps:$4 sm:$0xff]  }
 0x59e   : > { %8518 = vmatpush1.bf16.msra.mxu0 %v19527_v60  ;;  %v19569_v60 = vld [vmem:[#allocation11 + $0xbe0] ss:$16 sps:$4 sm:$0xff]  }
 0x59f   : > { %8647 = vmatpush1.bf16.msra.mxu1 %v19530_v3  ;;  %8519 = vmatprep.subr.bf16.mxu0 %v19535_v56  ;;  %v19572_v3 = vld [vmem:[#allocation11 + $0xbe8] ss:$16 sps:$4 sm:$0xff]   ;;  %v19577_v56 = vld [vmem:[#allocation11 + $0xc04] ss:$16 sps:$4 sm:$0xff]  }
 0x5a0   : > { %8648 = vmatprep.subr.bf16.mxu1 %v19538_v57  ;;  %v19580_v57 = vld [vmem:[#allocation11 + $0xc0c] ss:$16 sps:$4 sm:$0xff]  }
 0x5a2   : > { %8520 = vmatpush1.bf16.msra.mxu0 %v19533_v52  ;;  %v19575_v52 = vld [vmem:[#allocation11 + $0xc00] ss:$16 sps:$4 sm:$0xff]  }
 0x5a3   : > { %8649 = vmatpush1.bf16.msra.mxu1 %v19536_v55  ;;  %8521 = vmatprep.subr.bf16.mxu0 %v19541_v40  ;;  %v19578_v55 = vld [vmem:[#allocation11 + $0xc08] ss:$16 sps:$4 sm:$0xff]   ;;  %v19584_v40 = vld [vmem:[#allocation11 + $0xc24] ss:$16 sps:$4 sm:$0xff]  }
 0x5a4   : > { %8650 = vmatprep.subr.bf16.mxu1 %v19544_v13  ;;  %v19587_v13 = vld [vmem:[#allocation11 + $0xc2c] ss:$16 sps:$4 sm:$0xff]  }
 0x5a6   : > { %8522 = vmatpush1.bf16.msra.mxu0 %v19539_v15  ;;  %v19582_v15 = vld [vmem:[#allocation11 + $0xc20] ss:$16 sps:$4 sm:$0xff]  }
 0x5a7   : > { %8651 = vmatpush1.bf16.msra.mxu1 %v19542_v43  ;;  %8523 = vmatprep.subr.bf16.mxu0 %v19547_v41  ;;  %v19585_v43 = vld [vmem:[#allocation11 + $0xc28] ss:$16 sps:$4 sm:$0xff]   ;;  %v19590_v41 = vld [vmem:[#allocation11 + $0xc44] ss:$16 sps:$4 sm:$0xff]  }
 0x5a8   : > { %8652 = vmatprep.subr.bf16.mxu1 %v19550_v35  ;;  %v19593_v35 = vld [vmem:[#allocation11 + $0xc4c] ss:$16 sps:$4 sm:$0xff]  }
 0x5aa   : > { %8524 = vmatpush1.bf16.msra.mxu0 %v19545_v5  ;;  %v19588_v5 = vld [vmem:[#allocation11 + $0xc40] ss:$16 sps:$4 sm:$0xff]  }
 0x5ab   : > { %8653 = vmatpush1.bf16.msra.mxu1 %v19548_v21  ;;  %8525 = vmatprep.subr.bf16.mxu0 %v19553_v19  ;;  %v19591_v21 = vld [vmem:[#allocation11 + $0xc48] ss:$16 sps:$4 sm:$0xff]   ;;  %v19596_v19 = vld [vmem:[#allocation11 + $0xc64] ss:$16 sps:$4 sm:$0xff]  }
 0x5ac   : > { %8654 = vmatprep.subr.bf16.mxu1 %v19556_v25  ;;  %v19594_v25 = vld [vmem:[#allocation11 + $0xc60] ss:$16 sps:$4 sm:$0xff]  }
 0x5ae   : > { %8526 = vmatpush1.bf16.msra.mxu0 %v19551_v44  ;;  %v19597_v44 = vld [vmem:[#allocation11 + $0xc68] ss:$16 sps:$4 sm:$0xff]  }
 0x5af   : > { %8655 = vmatpush1.bf16.msra.mxu1 %v19554_v28  ;;  %8527 = vmatprep.subr.bf16.mxu0 %v19559_v47  ;;  %v19602_v28 = vld [vmem:[#allocation11 + $0xc84] ss:$16 sps:$4 sm:$0xff]   ;;  %v19605_v47 = vld [vmem:[#allocation11 + $0xc8c] ss:$16 sps:$4 sm:$0xff]  }
 0x5b0   : > { %8656 = vmatprep.subr.bf16.mxu1 %v19562_v53  ;;  %v19603_v53 = vld [vmem:[#allocation11 + $0xc88] ss:$16 sps:$4 sm:$0xff]  }
 0x5b2   : > { %8528 = vmatpush1.bf16.msra.mxu0 %v19557_v36  ;;  %v19608_v36 = vld [vmem:[#allocation11 + $0xca4] ss:$16 sps:$4 sm:$0xff]  }
 0x5b3   : > { %8657 = vmatpush1.bf16.msra.mxu1 %v19560_v26  ;;  %8529 = vmatprep.subr.bf16.mxu0 %v19565_v1  ;;  %v19611_v26 = vld [vmem:[#allocation11 + $0xcac] ss:$16 sps:$4 sm:$0xff]   ;;  %v19606_v1 = vld [vmem:[#allocation11 + $0xca0] ss:$16 sps:$4 sm:$0xff]  }
 0x5b4   : > { %8658 = vmatprep.subr.bf16.mxu1 %v19568_v27  ;;  %v19609_v27 = vld [vmem:[#allocation11 + $0xca8] ss:$16 sps:$4 sm:$0xff]  }
 0x5b6   : > { %8530 = vmatpush1.bf16.msra.mxu0 %v19563_v14  ;;  %v19614_v14 = vld [vmem:[#allocation11 + $0xcc4] ss:$16 sps:$4 sm:$0xff]  }
 0x5b7   : > { %8659 = vmatpush1.bf16.msra.mxu1 %v19566_v18  ;;  %8531 = vmatprep.subr.bf16.mxu0 %v19571_v12  ;;  %v19617_v18 = vld [vmem:[#allocation11 + $0xccc] ss:$16 sps:$4 sm:$0xff]   ;;  %v19612_v12 = vld [vmem:[#allocation11 + $0xcc0] ss:$16 sps:$4 sm:$0xff]  }
 0x5b8   : > { %8660 = vmatprep.subr.bf16.mxu1 %v19574_v39  ;;  %v19615_v39 = vld [vmem:[#allocation11 + $0xcc8] ss:$16 sps:$4 sm:$0xff]  }
 0x5ba   : > { %8532 = vmatpush1.bf16.msra.mxu0 %v19569_v60  ;;  %v19620_v60 = vld [vmem:[#allocation11 + $0xce4] ss:$16 sps:$4 sm:$0xff]  }
 0x5bb   : > { %8661 = vmatpush1.bf16.msra.mxu1 %v19572_v3  ;;  %8544 = vmatprep.subr.bf16.mxu0 %v19577_v56  ;;  %v19623_v3 = vld [vmem:[#allocation11 + $0xcec] ss:$16 sps:$4 sm:$0xff]   ;;  %v19618_v56 = vld [vmem:[#allocation11 + $0xce0] ss:$16 sps:$4 sm:$0xff]  }
 0x5bc   : > { %8673 = vmatprep.subr.bf16.mxu1 %v19580_v57  ;;  %v19621_v57 = vld [vmem:[#allocation11 + $0xce8] ss:$16 sps:$4 sm:$0xff]  }
 0x5bd   : > { %8534 = vmatmul.mubr.bf16.vlgmr.msra.gmra.mrb[16].mxu0 %v22781_v54 }
 0x5be   : > { %8663 = vmatmul.mubr.bf16.vlgmr.msra.gmra.mrb[16].mxu1 %v22781_v54  ;;  %8545 = vmatpush1.bf16.msra.mxu0 %v19575_v52  ;;  %v19599_v54 = vld [vmem:[#allocation11 + $0xc6c] ss:$16 sps:$4 sm:$0xff]   ;;  %v19626_v52 = vld [vmem:[#allocation11 + $0xd04] ss:$16 sps:$4 sm:$0xff]  }
 0x5bf   : > { %8576 = vmatprep.mubr.bf16.mxu0 %v22813_v6  ;;  %8674 = vmatpush1.bf16.msra.mxu1 %v19578_v55  ;;  %v19629_v55 = vld [vmem:[#allocation11 + $0xd0c] ss:$16 sps:$4 sm:$0xff]  }
 0x5c0   : > { %8705 = vmatprep.mubr.bf16.mxu1 %v22813_v6  ;;  %8546 = vmatprep.subr.bf16.mxu0 %v19584_v40  ;;  %v19600_v6 = vld [vmem:[#allocation11 + $0xc80] ss:$16 sps:$4 sm:$0xff]  }
 0x5c1   : > { %8675 = vmatprep.subr.bf16.mxu1 %v19587_v13  ;;  %v19624_v40 = vld [vmem:[#allocation11 + $0xd00] ss:$16 sps:$4 sm:$0xff]   ;;  %v19627_v13 = vld [vmem:[#allocation11 + $0xd08] ss:$16 sps:$4 sm:$0xff]  }
 0x5c2   : > { %8547 = vmatpush1.bf16.msra.mxu0 %v19582_v15  ;;  %v19632_v15 = vld [vmem:[#allocation11 + $0xd24] ss:$16 sps:$4 sm:$0xff]  }
 0x5c3   : > { %8676 = vmatpush1.bf16.msra.mxu1 %v19585_v43  ;;  %8548 = vmatprep.subr.bf16.mxu0 %v19590_v41  ;;  %v19635_v43 = vld [vmem:[#allocation11 + $0xd2c] ss:$16 sps:$4 sm:$0xff]   ;;  %v19630_v41 = vld [vmem:[#allocation11 + $0xd20] ss:$16 sps:$4 sm:$0xff]  }
 0x5c4   : > { %8677 = vmatprep.subr.bf16.mxu1 %v19593_v35  ;;  %v19633_v35 = vld [vmem:[#allocation11 + $0xd28] ss:$16 sps:$4 sm:$0xff]  }
 0x5c6   : > { %8549 = vmatpush1.bf16.msra.mxu0 %v19588_v5  ;;  %v19638_v5 = vld [vmem:[#allocation11 + $0xd44] ss:$16 sps:$4 sm:$0xff]  }
 0x5c7   : > { %8678 = vmatpush1.bf16.msra.mxu1 %v19591_v21  ;;  %8550 = vmatprep.subr.bf16.mxu0 %v19596_v19  ;;  %v19641_v21 = vld [vmem:[#allocation11 + $0xd4c] ss:$16 sps:$4 sm:$0xff]   ;;  %v19636_v19 = vld [vmem:[#allocation11 + $0xd40] ss:$16 sps:$4 sm:$0xff]  }
 0x5c8   : > { %8679 = vmatprep.subr.bf16.mxu1 %v19599_v54  ;;  %v19639_v54 = vld [vmem:[#allocation11 + $0xd48] ss:$16 sps:$4 sm:$0xff]  }
 0x5ca   : > { %8551 = vmatpush1.bf16.msra.mxu0 %v19594_v25  ;;  %v19644_v25 = vld [vmem:[#allocation11 + $0xd64] ss:$16 sps:$4 sm:$0xff]  }
 0x5cb   : > { %8680 = vmatpush1.bf16.msra.mxu1 %v19597_v44  ;;  %8552 = vmatprep.subr.bf16.mxu0 %v19602_v28  ;;  %v19647_v44 = vld [vmem:[#allocation11 + $0xd6c] ss:$16 sps:$4 sm:$0xff]   ;;  %v19642_v28 = vld [vmem:[#allocation11 + $0xd60] ss:$16 sps:$4 sm:$0xff]  }
 0x5cc   : > { %8681 = vmatprep.subr.bf16.mxu1 %v19605_v47  ;;  %v19645_v47 = vld [vmem:[#allocation11 + $0xd68] ss:$16 sps:$4 sm:$0xff]  }
 0x5ce   : > { %8553 = vmatpush1.bf16.msra.mxu0 %v19600_v6  ;;  %v19650_v6 = vld [vmem:[#allocation11 + $0xd84] ss:$16 sps:$4 sm:$0xff]  }
 0x5cf   : > { %8682 = vmatpush1.bf16.msra.mxu1 %v19603_v53  ;;  %8554 = vmatprep.subr.bf16.mxu0 %v19608_v36  ;;  %v19653_v53 = vld [vmem:[#allocation11 + $0xd8c] ss:$16 sps:$4 sm:$0xff]   ;;  %v19648_v36 = vld [vmem:[#allocation11 + $0xd80] ss:$16 sps:$4 sm:$0xff]  }
 0x5d0   : > { %8683 = vmatprep.subr.bf16.mxu1 %v19611_v26  ;;  %v19651_v26 = vld [vmem:[#allocation11 + $0xd88] ss:$16 sps:$4 sm:$0xff]  }
 0x5d2   : > { %8555 = vmatpush1.bf16.msra.mxu0 %v19606_v1  ;;  %v19656_v1 = vld [vmem:[#allocation11 + $0xda4] ss:$16 sps:$4 sm:$0xff]  }
 0x5d3   : > { %8684 = vmatpush1.bf16.msra.mxu1 %v19609_v27  ;;  %8556 = vmatprep.subr.bf16.mxu0 %v19614_v14  ;;  %v19659_v27 = vld [vmem:[#allocation11 + $0xdac] ss:$16 sps:$4 sm:$0xff]   ;;  %v19654_v14 = vld [vmem:[#allocation11 + $0xda0] ss:$16 sps:$4 sm:$0xff]  }
 0x5d4   : > { %8685 = vmatprep.subr.bf16.mxu1 %v19617_v18  ;;  %v19657_v18 = vld [vmem:[#allocation11 + $0xda8] ss:$16 sps:$4 sm:$0xff]  }
 0x5d6   : > { %8557 = vmatpush1.bf16.msra.mxu0 %v19612_v12  ;;  %v19662_v12 = vld [vmem:[#allocation11 + $0xdc4] ss:$16 sps:$4 sm:$0xff]  }
 0x5d7   : > { %8686 = vmatpush1.bf16.msra.mxu1 %v19615_v39  ;;  %8558 = vmatprep.subr.bf16.mxu0 %v19620_v60  ;;  %v19665_v39 = vld [vmem:[#allocation11 + $0xdcc] ss:$16 sps:$4 sm:$0xff]   ;;  %v19660_v60 = vld [vmem:[#allocation11 + $0xdc0] ss:$16 sps:$4 sm:$0xff]  }
 0x5d8   : > { %8687 = vmatprep.subr.bf16.mxu1 %v19623_v3  ;;  %v19663_v3 = vld [vmem:[#allocation11 + $0xdc8] ss:$16 sps:$4 sm:$0xff]  }
 0x5da   : > { %8559 = vmatpush1.bf16.msra.mxu0 %v19618_v56  ;;  %v19668_v56 = vld [vmem:[#allocation11 + $0xde4] ss:$16 sps:$4 sm:$0xff]  }
 0x5db   : > { %8688 = vmatpush1.bf16.msra.mxu1 %v19621_v57  ;;  %8560 = vmatprep.subr.bf16.mxu0 %v19626_v52  ;;  %v19671_v57 = vld [vmem:[#allocation11 + $0xdec] ss:$16 sps:$4 sm:$0xff]   ;;  %v19666_v52 = vld [vmem:[#allocation11 + $0xde0] ss:$16 sps:$4 sm:$0xff]  }
 0x5dc   : > { %8689 = vmatprep.subr.bf16.mxu1 %v19629_v55  ;;  %v19669_v55 = vld [vmem:[#allocation11 + $0xde8] ss:$16 sps:$4 sm:$0xff]  }
 0x5de   : > { %8561 = vmatpush1.bf16.msra.mxu0 %v19624_v40  ;;  %v19675_v40 = vld [vmem:[#allocation11 + $0xe04] ss:$16 sps:$4 sm:$0xff]  }
 0x5df   : > { %8690 = vmatpush1.bf16.msra.mxu1 %v19627_v13  ;;  %8562 = vmatprep.subr.bf16.mxu0 %v19632_v15  ;;  %v19678_v13 = vld [vmem:[#allocation11 + $0xe0c] ss:$16 sps:$4 sm:$0xff]   ;;  %v19673_v15 = vld [vmem:[#allocation11 + $0xe00] ss:$16 sps:$4 sm:$0xff]  }
 0x5e0   : > { %8691 = vmatprep.subr.bf16.mxu1 %v19635_v43  ;;  %v19676_v43 = vld [vmem:[#allocation11 + $0xe08] ss:$16 sps:$4 sm:$0xff]  }
 0x5e2   : > { %8563 = vmatpush1.bf16.msra.mxu0 %v19630_v41  ;;  %v19681_v41 = vld [vmem:[#allocation11 + $0xe24] ss:$16 sps:$4 sm:$0xff]  }
 0x5e3   : > { %8692 = vmatpush1.bf16.msra.mxu1 %v19633_v35  ;;  %8564 = vmatprep.subr.bf16.mxu0 %v19638_v5  ;;  %v19684_v35 = vld [vmem:[#allocation11 + $0xe2c] ss:$16 sps:$4 sm:$0xff]   ;;  %v19679_v5 = vld [vmem:[#allocation11 + $0xe20] ss:$16 sps:$4 sm:$0xff]  }
 0x5e4   : > { %8693 = vmatprep.subr.bf16.mxu1 %v19641_v21  ;;  %v19682_v21 = vld [vmem:[#allocation11 + $0xe28] ss:$16 sps:$4 sm:$0xff]  }
 0x5e6   : > { %8565 = vmatpush1.bf16.msra.mxu0 %v19636_v19  ;;  %v19687_v19 = vld [vmem:[#allocation11 + $0xe44] ss:$16 sps:$4 sm:$0xff]  }
 0x5e7   : > { %8694 = vmatpush1.bf16.msra.mxu1 %v19639_v54  ;;  %8566 = vmatprep.subr.bf16.mxu0 %v19644_v25  ;;  %v19690_v54 = vld [vmem:[#allocation11 + $0xe4c] ss:$16 sps:$4 sm:$0xff]   ;;  %v22894_v25 = vld [vmem:[#allocation4] sm:$0xff] }
 0x5e8   : > { %8695 = vmatprep.subr.bf16.mxu1 %v19647_v44  ;;  %v19685_v44 = vld [vmem:[#allocation11 + $0xe40] ss:$16 sps:$4 sm:$0xff]  }
 0x5ea   : > { %8567 = vmatpush1.bf16.msra.mxu0 %v19642_v28  ;;  %v19688_v28 = vld [vmem:[#allocation11 + $0xe48] ss:$16 sps:$4 sm:$0xff]  }
 0x5eb   : > { %8696 = vmatpush1.bf16.msra.mxu1 %v19645_v47  ;;  %8568 = vmatprep.subr.bf16.mxu0 %v19650_v6  ;;  %v19696_v47 = vld [vmem:[#allocation11 + $0xe6c] ss:$16 sps:$4 sm:$0xff]   ;;  %v19691_v6 = vld [vmem:[#allocation11 + $0xe60] ss:$16 sps:$4 sm:$0xff]  }
 0x5ec   : > { %8697 = vmatprep.subr.bf16.mxu1 %v19653_v53  ;;  %v19694_v53 = vld [vmem:[#allocation11 + $0xe68] ss:$16 sps:$4 sm:$0xff]  }
 0x5ee   : > { %8569 = vmatpush1.bf16.msra.mxu0 %v19648_v36  ;;  %v19699_v36 = vld [vmem:[#allocation11 + $0xe84] ss:$16 sps:$4 sm:$0xff]  }
 0x5ef   : > { %8698 = vmatpush1.bf16.msra.mxu1 %v19651_v26  ;;  %8570 = vmatprep.subr.bf16.mxu0 %v19656_v1  ;;  %v19702_v26 = vld [vmem:[#allocation11 + $0xe8c] ss:$16 sps:$4 sm:$0xff]   ;;  %v19697_v1 = vld [vmem:[#allocation11 + $0xe80] ss:$16 sps:$4 sm:$0xff]  }
 0x5f0   : > { %8699 = vmatprep.subr.bf16.mxu1 %v19659_v27  ;;  %v19700_v27 = vld [vmem:[#allocation11 + $0xe88] ss:$16 sps:$4 sm:$0xff]  }
 0x5f2   : > { %8571 = vmatpush1.bf16.msra.mxu0 %v19654_v14  ;;  %v19705_v14 = vld [vmem:[#allocation11 + $0xea4] ss:$16 sps:$4 sm:$0xff]  }
 0x5f3   : > { %8700 = vmatpush1.bf16.msra.mxu1 %v19657_v18  ;;  %8572 = vmatprep.subr.bf16.mxu0 %v19662_v12  ;;  %v19708_v18 = vld [vmem:[#allocation11 + $0xeac] ss:$16 sps:$4 sm:$0xff]   ;;  %v19703_v12 = vld [vmem:[#allocation11 + $0xea0] ss:$16 sps:$4 sm:$0xff]  }
 0x5f4   : > { %8701 = vmatprep.subr.bf16.mxu1 %v19665_v39  ;;  %v19706_v39 = vld [vmem:[#allocation11 + $0xea8] ss:$16 sps:$4 sm:$0xff]  }
 0x5f6   : > { %8573 = vmatpush1.bf16.msra.mxu0 %v19660_v60  ;;  %v19711_v60 = vld [vmem:[#allocation11 + $0xec4] ss:$16 sps:$4 sm:$0xff]  }
 0x5f7   : > { %8702 = vmatpush1.bf16.msra.mxu1 %v19663_v3  ;;  %8574 = vmatprep.subr.bf16.mxu0 %v19668_v56  ;;  %v19714_v3 = vld [vmem:[#allocation11 + $0xecc] ss:$16 sps:$4 sm:$0xff]   ;;  %v19709_v56 = vld [vmem:[#allocation11 + $0xec0] ss:$16 sps:$4 sm:$0xff]  }
 0x5f8   : > { %8703 = vmatprep.subr.bf16.mxu1 %v19671_v57  ;;  %v8970_v57 = vshrl.u32 %v22823_v42, 16 }
 0x5fa   : > { %8575 = vmatpush1.bf16.msra.mxu0 %v19666_v52  ;;  %v8973_v52 = vshll.u32 %v22823_v42, 16  ;;  %v19727_v42 = vld [vmem:[#allocation11 + $0xf0c] ss:$16 sps:$4 sm:$0xff]  }
 0x5fb   : > { %8704 = vmatpush1.bf16.msra.mxu1 %v19669_v55  ;;  %8587 = vmatprep.subr.bf16.mxu0 %v19675_v40  ;;  %v19712_v55 = vld [vmem:[#allocation11 + $0xec8] ss:$16 sps:$4 sm:$0xff]   ;;  %v19717_v40 = vld [vmem:[#allocation11 + $0xee4] ss:$16 sps:$4 sm:$0xff]  }
 0x5fc   : > { %8716 = vmatprep.subr.bf16.mxu1 %v19678_v13  ;;  %v19720_v13 = vld [vmem:[#allocation11 + $0xeec] ss:$16 sps:$4 sm:$0xff]  }
 0x5fd   : > { %8577 = vmatmul.mubr.bf16.vlgmr.msra.gmra.mrb[16].mxu0 %v22817_v34 }
 0x5fe   : > { %8706 = vmatmul.mubr.bf16.vlgmr.msra.gmra.mrb[16].mxu1 %v22817_v34  ;;  %8588 = vmatpush1.bf16.msra.mxu0 %v19673_v15  ;;  %v19693_v34 = vld [vmem:[#allocation11 + $0xe64] ss:$16 sps:$4 sm:$0xff]   ;;  %v8962_v15 = vshrl.u32 %v22745_v22, 16 }
 0x5ff   : > { %8717 = vmatpush1.bf16.msra.mxu1 %v19676_v43  ;;  %8589 = vmatprep.subr.bf16.mxu0 %v19681_v41  ;;  %v8965_v43 = vshll.u32 %v22745_v22, 16  ;;  %v19715_v41 = vld [vmem:[#allocation11 + $0xee0] ss:$16 sps:$4 sm:$0xff]  }
 0x600   : > { %8718 = vmatprep.subr.bf16.mxu1 %v19684_v35  ;;  %8619 = vmatprep.mubr.bf16.mxu0 %v22894_v25  ;;  %v8972_v35 = vrot.slane %v8970_v57, 1  ;;  %v19752_v57 = vld [vmem:[#allocation11 + $0xf8c] ss:$16 sps:$4 sm:$0xff]  }
 0x601   : > { %8748 = vmatprep.mubr.bf16.mxu1 %v22894_v25 }
 0x602   : > { %8590 = vmatpush1.bf16.msra.mxu0 %v19679_v5  ;;  %v8975_v5 = vrot.slane %v8973_v52, 2  ;;  %v19747_v52 = vld [vmem:[#allocation11 + $0xf80] ss:$16 sps:$4 sm:$0xff]  }
 0x603   : > { %8719 = vmatpush1.bf16.msra.mxu1 %v19682_v21  ;;  %8591 = vmatprep.subr.bf16.mxu0 %v19687_v19  ;;  %v19718_v21 = vld [vmem:[#allocation11 + $0xee8] ss:$16 sps:$4 sm:$0xff]   ;;  %v19724_v19 = vld [vmem:[#allocation11 + $0xf04] ss:$16 sps:$4 sm:$0xff]  }
 0x604   : > { %8720 = vmatprep.subr.bf16.mxu1 %v19690_v54  ;;  %v8964_v54 = vrot.slane %v8962_v15, 1  ;;  %v19753_v15 = vld [vmem:[#allocation11 + $0xfa0] ss:$16 sps:$4 sm:$0xff]  }
 0x606   : > { %8592 = vmatpush1.bf16.msra.mxu0 %v19685_v44  ;;  %v8967_v44 = vrot.slane %v8965_v43, 2  ;;  %v19756_v43 = vld [vmem:[#allocation11 + $0xfa8] ss:$16 sps:$4 sm:$0xff]  }
 0x607   : > { %8721 = vmatpush1.bf16.msra.mxu1 %v19688_v28  ;;  %8593 = vmatprep.subr.bf16.mxu0 %v19693_v34  ;;  %v19722_v28 = vld [vmem:[#allocation11 + $0xf00] ss:$16 sps:$4 sm:$0xff]   ;;  %v8976_v34 = vor.u32 %v8975_v5, %v8972_v35  ;;  %v19764_v35 = vld [vmem:[#allocation11 + $0xfcc] ss:$16 sps:$4 sm:$0xff]  }
 0x608   : > { %8722 = vmatprep.subr.bf16.mxu1 %v19696_v47  ;;  %v19725_v47 = vld [vmem:[#allocation11 + $0xf08] ss:$16 sps:$4 sm:$0xff]   ;;  %v8968_v22 = vor.u32 %v8967_v44, %v8964_v54  ;;  %v19759_v5 = vld [vmem:[#allocation11 + $0xfc0] ss:$16 sps:$4 sm:$0xff]  }
 0x609   : > { %v19765_v54 = vld [vmem:[#allocation11 + $0xfe0] ss:$16 sps:$4 sm:$0xff]   ;;  %v19768_v44 = vld [vmem:[#allocation11 + $0xfe8] ss:$16 sps:$4 sm:$0xff]  }
 0x60a   : > { %8594 = vmatpush1.bf16.msra.mxu0 %v19691_v6  ;;  %v19731_v6 = vld [vmem:[#allocation11 + $0xf24] ss:$16 sps:$4 sm:$0xff]  }
 0x60b   : > { %8723 = vmatpush1.bf16.msra.mxu1 %v19694_v53  ;;  %8595 = vmatprep.subr.bf16.mxu0 %v19699_v36  ;;  %v19734_v53 = vld [vmem:[#allocation11 + $0xf2c] ss:$16 sps:$4 sm:$0xff]   ;;  %v8977_v36 = vsel %vm23417_vm3, %v8968_v22, %v8976_v34  ;;  %v19774_v22 = vld [vmem:[#allocation11 + $0x1008] ss:$16 sps:$4 sm:$0xff]   ;;  %vm23430_vm3 = vmmov %vm23424_vm5 }
 0x60c   : > { %8724 = vmatprep.subr.bf16.mxu1 %v19702_v26  ;;  %v19729_v26 = vld [vmem:[#allocation11 + $0xf20] ss:$16 sps:$4 sm:$0xff]   ;;  %v19776_v34 = vld [vmem:[#allocation11 + $0x100c] ss:$16 sps:$4 sm:$0xff]  }
 0x60e   : > { %8596 = vmatpush1.bf16.msra.mxu0 %v19697_v1  ;;  %v19732_v1 = vld [vmem:[#allocation11 + $0xf28] ss:$16 sps:$4 sm:$0xff]  }
 0x60f   : > { %8725 = vmatpush1.bf16.msra.mxu1 %v19700_v27  ;;  %8597 = vmatprep.subr.bf16.mxu0 %v19705_v14  ;;  %v19737_v27 = vld [vmem:[#allocation11 + $0xf44] ss:$16 sps:$4 sm:$0xff]   ;;  %v19740_v14 = vld [vmem:[#allocation11 + $0xf4c] ss:$16 sps:$4 sm:$0xff]  }
 0x610   : > { %8726 = vmatprep.subr.bf16.mxu1 %v19708_v18  ;;  %v19735_v18 = vld [vmem:[#allocation11 + $0xf40] ss:$16 sps:$4 sm:$0xff]  }
 0x612   : > { %8598 = vmatpush1.bf16.msra.mxu0 %v19703_v12  ;;  %v19738_v12 = vld [vmem:[#allocation11 + $0xf48] ss:$16 sps:$4 sm:$0xff]  }
 0x613   : > { %8727 = vmatpush1.bf16.msra.mxu1 %v19706_v39  ;;  %8599 = vmatprep.subr.bf16.mxu0 %v19711_v60  ;;  %v19743_v39 = vld [vmem:[#allocation11 + $0xf64] ss:$16 sps:$4 sm:$0xff]   ;;  %v19741_v60 = vld [vmem:[#allocation11 + $0xf60] ss:$16 sps:$4 sm:$0xff]  }
 0x614   : > { %8728 = vmatprep.subr.bf16.mxu1 %v19714_v3  ;;  %v19744_v3 = vld [vmem:[#allocation11 + $0xf68] ss:$16 sps:$4 sm:$0xff]  }
 0x616   : > { %8600 = vmatpush1.bf16.msra.mxu0 %v19709_v56  ;;  %v19749_v56 = vld [vmem:[#allocation11 + $0xf84] ss:$16 sps:$4 sm:$0xff]  }
 0x617   : > { %8729 = vmatpush1.bf16.msra.mxu1 %v19712_v55  ;;  %8601 = vmatprep.subr.bf16.mxu0 %v19717_v40  ;;  %v19750_v55 = vld [vmem:[#allocation11 + $0xf88] ss:$16 sps:$4 sm:$0xff]   ;;  %v19755_v40 = vld [vmem:[#allocation11 + $0xfa4] ss:$16 sps:$4 sm:$0xff]  }
 0x618   : > { %8730 = vmatprep.subr.bf16.mxu1 %v19720_v13  ;;  %v19758_v13 = vld [vmem:[#allocation11 + $0xfac] ss:$16 sps:$4 sm:$0xff]  }
 0x61a   : > { %8602 = vmatpush1.bf16.msra.mxu0 %v19715_v41  ;;  %v19761_v41 = vld [vmem:[#allocation11 + $0xfc4] ss:$16 sps:$4 sm:$0xff]  }
 0x61b   : > { %8731 = vmatpush1.bf16.msra.mxu1 %v19718_v21  ;;  %9834 = vmatprep.subr.bf16.mxu0 %v19724_v19  ;;  %v19762_v21 = vld [vmem:[#allocation11 + $0xfc8] ss:$16 sps:$4 sm:$0xff]   ;;  %v19767_v19 = vld [vmem:[#allocation11 + $0xfe4] ss:$16 sps:$4 sm:$0xff]  }
 0x61c   : > { %9963 = vmatprep.subr.bf16.mxu1 %v19727_v42  ;;  %v19770_v42 = vld [vmem:[#allocation11 + $0xfec] ss:$16 sps:$4 sm:$0xff]  }
 0x61d   : > { %8620 = vmatmul.mubr.bf16.vlgmr.msra.gmra.mrb[16].mxu0 %v22821_v11 }
 0x61e   : > { %8749 = vmatmul.mubr.bf16.vlgmr.msra.gmra.mrb[16].mxu1 %v22821_v11  ;;  %9835 = vmatpush1.bf16.msra.mxu0 %v19722_v28  ;;  %v19746_v11 = vld [vmem:[#allocation11 + $0xf6c] ss:$16 sps:$4 sm:$0xff]   ;;  %v19773_v28 = vld [vmem:[#allocation11 + $0x1004] ss:$16 sps:$4 sm:$0xff]  }
 0x61f   : > { %9866 = vmatprep.mubr.bf16.mxu0 %v8977_v36  ;;  %9964 = vmatpush1.bf16.msra.mxu1 %v19725_v47  ;;  %v19771_v47 = vld [vmem:[#allocation11 + $0x1000] ss:$16 sps:$4 sm:$0xff]  }
 0x620   : > { %9995 = vmatprep.mubr.bf16.mxu1 %v8977_v36  ;;  %9836 = vmatprep.subr.bf16.mxu0 %v19731_v6  ;;  %v19779_v6 = vld [vmem:[#allocation11 + $0x1024] ss:$16 sps:$4 sm:$0xff]   ;;  %v19777_v36 = vld [vmem:[#allocation11 + $0x1020] ss:$16 sps:$4 sm:$0xff]  }
 0x621   : > { %9965 = vmatprep.subr.bf16.mxu1 %v19734_v53  ;;  %v19782_v53 = vld [vmem:[#allocation11 + $0x102c] ss:$16 sps:$4 sm:$0xff]  }
 0x622   : > { %9837 = vmatpush1.bf16.msra.mxu0 %v19729_v26  ;;  %v19780_v26 = vld [vmem:[#allocation11 + $0x1028] ss:$16 sps:$4 sm:$0xff]  }
 0x623   : > { %9966 = vmatpush1.bf16.msra.mxu1 %v19732_v1  ;;  %9838 = vmatprep.subr.bf16.mxu0 %v19737_v27  ;;  %v19785_v1 = vld [vmem:[#allocation11 + $0x1044] ss:$16 sps:$4 sm:$0xff]   ;;  %v19788_v27 = vld [vmem:[#allocation11 + $0x104c] ss:$16 sps:$4 sm:$0xff]  }
 0x624   : > { %9967 = vmatprep.subr.bf16.mxu1 %v19740_v14  ;;  %v19783_v14 = vld [vmem:[#allocation11 + $0x1040] ss:$16 sps:$4 sm:$0xff]  }
 0x626   : > { %9839 = vmatpush1.bf16.msra.mxu0 %v19735_v18  ;;  %v19786_v18 = vld [vmem:[#allocation11 + $0x1048] ss:$16 sps:$4 sm:$0xff]  }
 0x627   : > { %9968 = vmatpush1.bf16.msra.mxu1 %v19738_v12  ;;  %9840 = vmatprep.subr.bf16.mxu0 %v19743_v39  ;;  %v19791_v12 = vld [vmem:[#allocation11 + $0x1064] ss:$16 sps:$4 sm:$0xff]   ;;  %v19794_v39 = vld [vmem:[#allocation11 + $0x106c] ss:$16 sps:$4 sm:$0xff]  }
 0x628   : > { %9969 = vmatprep.subr.bf16.mxu1 %v19746_v11  ;;  %v19789_v11 = vld [vmem:[#allocation11 + $0x1060] ss:$16 sps:$4 sm:$0xff]  }
 0x62a   : > { %9841 = vmatpush1.bf16.msra.mxu0 %v19741_v60  ;;  %v19792_v60 = vld [vmem:[#allocation11 + $0x1068] ss:$16 sps:$4 sm:$0xff]  }
 0x62b   : > { %9970 = vmatpush1.bf16.msra.mxu1 %v19744_v3  ;;  %9842 = vmatprep.subr.bf16.mxu0 %v19749_v56  ;;  %v19797_v3 = vld [vmem:[#allocation11 + $0x1084] ss:$16 sps:$4 sm:$0xff]   ;;  %v19800_v56 = vld [vmem:[#allocation11 + $0x108c] ss:$16 sps:$4 sm:$0xff]  }
 0x62c   : > { %9971 = vmatprep.subr.bf16.mxu1 %v19752_v57  ;;  %v19795_v57 = vld [vmem:[#allocation11 + $0x1080] ss:$16 sps:$4 sm:$0xff]  }
 0x62e   : > { %9843 = vmatpush1.bf16.msra.mxu0 %v19747_v52  ;;  %v19798_v52 = vld [vmem:[#allocation11 + $0x1088] ss:$16 sps:$4 sm:$0xff]  }
 0x62f   : > { %9972 = vmatpush1.bf16.msra.mxu1 %v19750_v55  ;;  %9844 = vmatprep.subr.bf16.mxu0 %v19755_v40  ;;  %v19803_v55 = vld [vmem:[#allocation11 + $0x10a4] ss:$16 sps:$4 sm:$0xff]   ;;  %v19806_v40 = vld [vmem:[#allocation11 + $0x10ac] ss:$16 sps:$4 sm:$0xff]  }
 0x630   : > { %9973 = vmatprep.subr.bf16.mxu1 %v19758_v13  ;;  %v19801_v13 = vld [vmem:[#allocation11 + $0x10a0] ss:$16 sps:$4 sm:$0xff]  }
 0x632   : > { %9845 = vmatpush1.bf16.msra.mxu0 %v19753_v15  ;;  %v19804_v15 = vld [vmem:[#allocation11 + $0x10a8] ss:$16 sps:$4 sm:$0xff]  }
 0x633   : > { %9974 = vmatpush1.bf16.msra.mxu1 %v19756_v43  ;;  %9846 = vmatprep.subr.bf16.mxu0 %v19761_v41  ;;  %v19809_v43 = vld [vmem:[#allocation11 + $0x10c4] ss:$16 sps:$4 sm:$0xff]   ;;  %v19812_v41 = vld [vmem:[#allocation11 + $0x10cc] ss:$16 sps:$4 sm:$0xff]  }
 0x634   : > { %9975 = vmatprep.subr.bf16.mxu1 %v19764_v35  ;;  %v8953_v35 = vshrl.u32 %v22826_v58, 16 }
 0x636   : > { %9847 = vmatpush1.bf16.msra.mxu0 %v19759_v5  ;;  %v8956_v5 = vshll.u32 %v22826_v58, 16  ;;  %v19818_v58 = vld [vmem:[#allocation11 + $0x10ec] ss:$16 sps:$4 sm:$0xff]  }
 0x637   : > { %9976 = vmatpush1.bf16.msra.mxu1 %v19762_v21  ;;  %9848 = vmatprep.subr.bf16.mxu0 %v19767_v19  ;;  %v8945_v21 = vshrl.u32 %v22749_v30, 16  ;;  %v8948_v19 = vshll.u32 %v22749_v30, 16 }
 0x638   : > { %9977 = vmatprep.subr.bf16.mxu1 %v19770_v42  ;;  %v19807_v42 = vld [vmem:[#allocation11 + $0x10c0] ss:$16 sps:$4 sm:$0xff]  }
 0x639   : > { %v8950_v30 = vrot.slane %v8948_v19, 2  ;;  %v19841_v19 = vld [vmem:[#allocation11 + $0x1164] ss:$16 sps:$4 sm:$0xff]  }
 0x63a   : > { %9849 = vmatpush1.bf16.msra.mxu0 %v19765_v54  ;;  %v8996_v54 = vshrl.u32 %v22794_v7, 16 }
 0x63b   : > { %9978 = vmatpush1.bf16.msra.mxu1 %v19768_v44  ;;  %9850 = vmatprep.subr.bf16.mxu0 %v19773_v28  ;;  %v8999_v44 = vshll.u32 %v22794_v7, 16  ;;  %v9004_v28 = vshrl.u32 %v22829_v10, 16 }
 0x63c   : > { %9979 = vmatprep.subr.bf16.mxu1 %v19776_v34  ;;  %v9007_v34 = vshll.u32 %v22829_v10, 16  ;;  %v19822_v10 = vld [vmem:[#allocation11 + $0x1104] ss:$16 sps:$4 sm:$0xff]  }
 0x63e   : > { %9851 = vmatpush1.bf16.msra.mxu0 %v19771_v47  ;;  %v19810_v47 = vld [vmem:[#allocation11 + $0x10c8] ss:$16 sps:$4 sm:$0xff]   ;;  %v9009_v7 = vrot.slane %v9007_v34, 2  ;;  %v19850_v34 = vld [vmem:[#allocation11 + $0x118c] ss:$16 sps:$4 sm:$0xff]  }
 0x63f   : > { %9980 = vmatpush1.bf16.msra.mxu1 %v19774_v22  ;;  %9852 = vmatprep.subr.bf16.mxu0 %v19779_v6  ;;  %v19815_v22 = vld [vmem:[#allocation11 + $0x10e4] ss:$16 sps:$4 sm:$0xff]   ;;  %v8955_v6 = vrot.slane %v8953_v35, 1  ;;  %v19838_v35 = vld [vmem:[#allocation11 + $0x114c] ss:$16 sps:$4 sm:$0xff]  }
 0x640   : > { %9981 = vmatprep.subr.bf16.mxu1 %v19782_v53  ;;  %v8958_v53 = vrot.slane %v8956_v5, 2  ;;  %v19833_v5 = vld [vmem:[#allocation11 + $0x1140] ss:$16 sps:$4 sm:$0xff]  }
 0x642   : > { %9853 = vmatpush1.bf16.msra.mxu0 %v19777_v36  ;;  %v8947_v36 = vrot.slane %v8945_v21, 1  ;;  %v19836_v21 = vld [vmem:[#allocation11 + $0x1148] ss:$16 sps:$4 sm:$0xff]  }
 0x643   : > { %9982 = vmatpush1.bf16.msra.mxu1 %v19780_v26  ;;  %9854 = vmatprep.subr.bf16.mxu0 %v19785_v1  ;;  %v19813_v26 = vld [vmem:[#allocation11 + $0x10e0] ss:$16 sps:$4 sm:$0xff]   ;;  %v8998_v1 = vrot.slane %v8996_v54, 1 }
 0x644   : > { %9983 = vmatprep.subr.bf16.mxu1 %v19788_v27  ;;  %v9001_v27 = vrot.slane %v8999_v44, 2  ;;  %v19839_v54 = vld [vmem:[#allocation11 + $0x1160] ss:$16 sps:$4 sm:$0xff]   ;;  %v19842_v44 = vld [vmem:[#allocation11 + $0x1168] ss:$16 sps:$4 sm:$0xff]  }
 0x646   : > { %9855 = vmatpush1.bf16.msra.mxu0 %v19783_v14  ;;  %v9006_v14 = vrot.slane %v9004_v28, 1  ;;  %v19847_v28 = vld [vmem:[#allocation11 + $0x1184] ss:$16 sps:$4 sm:$0xff]  }
 0x647   : > { %9984 = vmatpush1.bf16.msra.mxu1 %v19786_v18  ;;  %9856 = vmatprep.subr.bf16.mxu0 %v19791_v12  ;;  %v19816_v18 = vld [vmem:[#allocation11 + $0x10e8] ss:$16 sps:$4 sm:$0xff]   ;;  %v8959_v12 = vor.u32 %v8958_v53, %v8955_v6  ;;  %v19856_v6 = vld [vmem:[#allocation11 + $0x11ac] ss:$16 sps:$4 sm:$0xff]   ;;  %v19851_v53 = vld [vmem:[#allocation11 + $0x11a0] ss:$16 sps:$4 sm:$0xff]  }
 0x648   : > { %9985 = vmatprep.subr.bf16.mxu1 %v19794_v39  ;;  %v19825_v39 = vld [vmem:[#allocation11 + $0x110c] ss:$16 sps:$4 sm:$0xff]  }
 0x64a   : > { %9857 = vmatpush1.bf16.msra.mxu0 %v19789_v11  ;;  %v8951_v11 = vor.u32 %v8950_v30, %v8947_v36  ;;  %v19854_v36 = vld [vmem:[#allocation11 + $0x11a8] ss:$16 sps:$4 sm:$0xff]   ;;  %v19859_v30 = vld [vmem:[#allocation11 + $0x11c4] ss:$16 sps:$4 sm:$0xff]  }
 0x64b   : > { %9986 = vmatpush1.bf16.msra.mxu1 %v19792_v60  ;;  %9858 = vmatprep.subr.bf16.mxu0 %v19797_v3  ;;  %v19820_v60 = vld [vmem:[#allocation11 + $0x1100] ss:$16 sps:$4 sm:$0xff]   ;;  %v9002_v3 = vor.u32 %v9001_v27, %v8998_v1  ;;  %v19860_v27 = vld [vmem:[#allocation11 + $0x11c8] ss:$16 sps:$4 sm:$0xff]  }
 0x64c   : > { %9987 = vmatprep.subr.bf16.mxu1 %v19800_v56  ;;  %v9010_v56 = vor.u32 %v9009_v7, %v9006_v14  ;;  %v19857_v1 = vld [vmem:[#allocation11 + $0x11c0] ss:$16 sps:$4 sm:$0xff]   ;;  %v19865_v14 = vld [vmem:[#allocation11 + $0x11e4] ss:$16 sps:$4 sm:$0xff]   ;;  %v19868_v7 = vld [vmem:[#allocation11 + $0x11ec] ss:$16 sps:$4 sm:$0xff]  }
 0x64e   : > { %9859 = vmatpush1.bf16.msra.mxu0 %v19795_v57  ;;  %v19823_v57 = vld [vmem:[#allocation11 + $0x1108] ss:$16 sps:$4 sm:$0xff]  }
 0x64f   : > { %9988 = vmatpush1.bf16.msra.mxu1 %v19798_v52  ;;  %9860 = vmatprep.subr.bf16.mxu0 %v19803_v55  ;;  %v8960_v52 = vsel %vm23418_vm11, %v8951_v11, %v8959_v12  ;;  %v19829_v55 = vld [vmem:[#allocation11 + $0x1124] ss:$16 sps:$4 sm:$0xff]   ;;  %v19869_v11 = vld [vmem:[#allocation11 + $0x1200] ss:$16 sps:$4 sm:$0xff]   ;;  %vm23431_vm11 = vnez %v23305_v0 }
 0x650   : > { %9989 = vmatprep.subr.bf16.mxu1 %v19806_v40  ;;  %v19832_v40 = vld [vmem:[#allocation11 + $0x112c] ss:$16 sps:$4 sm:$0xff]   ;;  %v19871_v12 = vld [vmem:[#allocation11 + $0x1204] ss:$16 sps:$4 sm:$0xff]  }
 0x652   : > { %9861 = vmatpush1.bf16.msra.mxu0 %v19801_v13  ;;  %v9011_v13 = vsel %vm23419_vm0, %v9002_v3, %v9010_v56  ;;  %v19877_v3 = vld [vmem:[#allocation11 + $0x1224] ss:$16 sps:$4 sm:$0xff]   ;;  %v19880_v56 = vld [vmem:[#allocation11 + $0x122c] ss:$16 sps:$4 sm:$0xff]   ;;  %vm23432_vm0 = vnez %v23244_v9 }
 0x653   : > { %9990 = vmatpush1.bf16.msra.mxu1 %v19804_v15  ;;  %9862 = vmatprep.subr.bf16.mxu0 %v19809_v43  ;;  %v19827_v15 = vld [vmem:[#allocation11 + $0x1120] ss:$16 sps:$4 sm:$0xff]   ;;  %v19830_v43 = vld [vmem:[#allocation11 + $0x1128] ss:$16 sps:$4 sm:$0xff]  }
 0x654   : > { %9991 = vmatprep.subr.bf16.mxu1 %v19812_v41  ;;  %v19835_v41 = vld [vmem:[#allocation11 + $0x1144] ss:$16 sps:$4 sm:$0xff]  }
 0x656   : > { %9863 = vmatpush1.bf16.msra.mxu0 %v19807_v42  ;;  %v19844_v42 = vld [vmem:[#allocation11 + $0x116c] ss:$16 sps:$4 sm:$0xff]  }
 0x657   : > { %9992 = vmatpush1.bf16.msra.mxu1 %v19810_v47  ;;  %9864 = vmatprep.subr.bf16.mxu0 %v19815_v22  ;;  %v19845_v47 = vld [vmem:[#allocation11 + $0x1180] ss:$16 sps:$4 sm:$0xff]   ;;  %v19848_v22 = vld [vmem:[#allocation11 + $0x1188] ss:$16 sps:$4 sm:$0xff]  }
 0x658   : > { %9993 = vmatprep.subr.bf16.mxu1 %v19818_v58  ;;  %v19853_v58 = vld [vmem:[#allocation11 + $0x11a4] ss:$16 sps:$4 sm:$0xff]  }
 0x65a   : > { %9865 = vmatpush1.bf16.msra.mxu0 %v19813_v26  ;;  %v19862_v26 = vld [vmem:[#allocation11 + $0x11cc] ss:$16 sps:$4 sm:$0xff]  }
 0x65b   : > { %9994 = vmatpush1.bf16.msra.mxu1 %v19816_v18  ;;  %9877 = vmatprep.subr.bf16.mxu0 %v19822_v10  ;;  %v19863_v18 = vld [vmem:[#allocation11 + $0x11e0] ss:$16 sps:$4 sm:$0xff]   ;;  %v19866_v10 = vld [vmem:[#allocation11 + $0x11e8] ss:$16 sps:$4 sm:$0xff]  }
 0x65c   : > { %10006 = vmatprep.subr.bf16.mxu1 %v19825_v39  ;;  %v19874_v39 = vld [vmem:[#allocation11 + $0x120c] ss:$16 sps:$4 sm:$0xff]  }
 0x65d   : > { %9867 = vmatmul.mubr.bf16.vlgmr.msra.gmra.mrb[16].mxu0 %v8960_v52 }
 0x65e   : > { %9996 = vmatmul.mubr.bf16.vlgmr.msra.gmra.mrb[16].mxu1 %v8960_v52  ;;  %9878 = vmatpush1.bf16.msra.mxu0 %v19820_v60  ;;  %v19872_v60 = vld [vmem:[#allocation11 + $0x1208] ss:$16 sps:$4 sm:$0xff]  }
 0x65f   : > { %9909 = vmatprep.mubr.bf16.mxu0 %v9011_v13  ;;  %10007 = vmatpush1.bf16.msra.mxu1 %v19823_v57  ;;  %v19875_v57 = vld [vmem:[#allocation11 + $0x1220] ss:$16 sps:$4 sm:$0xff]   ;;  %v19878_v52 = vld [vmem:[#allocation11 + $0x1228] ss:$16 sps:$4 sm:$0xff]  }
 0x660   : > { %10038 = vmatprep.mubr.bf16.mxu1 %v9011_v13  ;;  %9879 = vmatprep.subr.bf16.mxu0 %v19829_v55  ;;  %v19883_v55 = vld [vmem:[#allocation11 + $0x1244] ss:$16 sps:$4 sm:$0xff]   ;;  %v19881_v13 = vld [vmem:[#allocation11 + $0x1240] ss:$16 sps:$4 sm:$0xff]  }
 0x661   : > { %10008 = vmatprep.subr.bf16.mxu1 %v19832_v40  ;;  %v19886_v40 = vld [vmem:[#allocation11 + $0x124c] ss:$16 sps:$4 sm:$0xff]  }
 0x662   : > { %9880 = vmatpush1.bf16.msra.mxu0 %v19827_v15  ;;  %v19884_v15 = vld [vmem:[#allocation11 + $0x1248] ss:$16 sps:$4 sm:$0xff]  }
 0x663   : > { %10009 = vmatpush1.bf16.msra.mxu1 %v19830_v43  ;;  %9881 = vmatprep.subr.bf16.mxu0 %v19835_v41  ;;  %v19889_v43 = vld [vmem:[#allocation11 + $0x1264] ss:$16 sps:$4 sm:$0xff]   ;;  %v19892_v41 = vld [vmem:[#allocation11 + $0x126c] ss:$16 sps:$4 sm:$0xff]  }
 0x664   : > { %10010 = vmatprep.subr.bf16.mxu1 %v19838_v35  ;;  %v19887_v35 = vld [vmem:[#allocation11 + $0x1260] ss:$16 sps:$4 sm:$0xff]  }
 0x666   : > { %9882 = vmatpush1.bf16.msra.mxu0 %v19833_v5  ;;  %v19890_v5 = vld [vmem:[#allocation11 + $0x1268] ss:$16 sps:$4 sm:$0xff]  }
 0x667   : > { %10011 = vmatpush1.bf16.msra.mxu1 %v19836_v21  ;;  %9883 = vmatprep.subr.bf16.mxu0 %v19841_v19  ;;  %v19895_v21 = vld [vmem:[#allocation11 + $0x1284] ss:$16 sps:$4 sm:$0xff]   ;;  %v19898_v19 = vld [vmem:[#allocation11 + $0x128c] ss:$16 sps:$4 sm:$0xff]  }
 0x668   : > { %10012 = vmatprep.subr.bf16.mxu1 %v19844_v42  ;;  %v19893_v42 = vld [vmem:[#allocation11 + $0x1280] ss:$16 sps:$4 sm:$0xff]  }
 0x66a   : > { %9884 = vmatpush1.bf16.msra.mxu0 %v19839_v54  ;;  %v19896_v54 = vld [vmem:[#allocation11 + $0x1288] ss:$16 sps:$4 sm:$0xff]  }
 0x66b   : > { %10013 = vmatpush1.bf16.msra.mxu1 %v19842_v44  ;;  %9885 = vmatprep.subr.bf16.mxu0 %v19847_v28  ;;  %v19901_v44 = vld [vmem:[#allocation11 + $0x12a4] ss:$16 sps:$4 sm:$0xff]   ;;  %v19904_v28 = vld [vmem:[#allocation11 + $0x12ac] ss:$16 sps:$4 sm:$0xff]  }
 0x66c   : > { %10014 = vmatprep.subr.bf16.mxu1 %v19850_v34  ;;  %v19899_v34 = vld [vmem:[#allocation11 + $0x12a0] ss:$16 sps:$4 sm:$0xff]  }
 0x66e   : > { %9886 = vmatpush1.bf16.msra.mxu0 %v19845_v47  ;;  %v19902_v47 = vld [vmem:[#allocation11 + $0x12a8] ss:$16 sps:$4 sm:$0xff]  }
 0x66f   : > { %10015 = vmatpush1.bf16.msra.mxu1 %v19848_v22  ;;  %9887 = vmatprep.subr.bf16.mxu0 %v19853_v58  ;;  %v19907_v22 = vld [vmem:[#allocation11 + $0x12c4] ss:$16 sps:$4 sm:$0xff]   ;;  %v19910_v58 = vld [vmem:[#allocation11 + $0x12cc] ss:$16 sps:$4 sm:$0xff]  }
 0x670   : > { %10016 = vmatprep.subr.bf16.mxu1 %v19856_v6  ;;  %v8979_v6 = vshrl.u32 %v22807_v20, 16 }
 0x672   : > { %9888 = vmatpush1.bf16.msra.mxu0 %v19851_v53  ;;  %v8982_v53 = vshll.u32 %v22807_v20, 16  ;;  %v19914_v20 = vld [vmem:[#allocation11 + $0x12e8] ss:$16 sps:$4 sm:$0xff]  }
 0x673   : > { %10017 = vmatpush1.bf16.msra.mxu1 %v19854_v36  ;;  %9889 = vmatprep.subr.bf16.mxu0 %v19859_v30  ;;  %v8987_v36 = vshrl.u32 %v22832_v50, 16  ;;  %v8990_v30 = vshll.u32 %v22832_v50, 16 }
 0x674   : > { %10018 = vmatprep.subr.bf16.mxu1 %v19862_v26  ;;  %v19905_v26 = vld [vmem:[#allocation11 + $0x12c0] ss:$16 sps:$4 sm:$0xff]  }
 0x676   : > { %9890 = vmatpush1.bf16.msra.mxu0 %v19857_v1  ;;  %v19908_v1 = vld [vmem:[#allocation11 + $0x12c8] ss:$16 sps:$4 sm:$0xff]  }
 0x677   : > { %10019 = vmatpush1.bf16.msra.mxu1 %v19860_v27  ;;  %9891 = vmatprep.subr.bf16.mxu0 %v19865_v14  ;;  %v19913_v27 = vld [vmem:[#allocation11 + $0x12e4] ss:$16 sps:$4 sm:$0xff]   ;;  %v19916_v14 = vld [vmem:[#allocation11 + $0x12ec] ss:$16 sps:$4 sm:$0xff]  }
 0x678   : > { %10020 = vmatprep.subr.bf16.mxu1 %v19868_v7  ;;  %v8981_v7 = vrot.slane %v8979_v6, 1  ;;  %v19951_v6 = vld [vmem:[#allocation11 + $0x13a8] ss:$16 sps:$4 sm:$0xff]  }
 0x67a   : > { %9892 = vmatpush1.bf16.msra.mxu0 %v19863_v18  ;;  %v8984_v18 = vrot.slane %v8982_v53, 2  ;;  %v19956_v53 = vld [vmem:[#allocation11 + $0x13c4] ss:$16 sps:$4 sm:$0xff]  }
 0x67b   : > { %10021 = vmatpush1.bf16.msra.mxu1 %v19866_v10  ;;  %9893 = vmatprep.subr.bf16.mxu0 %v19871_v12  ;;  %v8989_v10 = vrot.slane %v8987_v36, 1  ;;  %v8992_v12 = vrot.slane %v8990_v30, 2  ;;  %v19959_v36 = vld [vmem:[#allocation11 + $0x13cc] ss:$16 sps:$4 sm:$0xff]   ;;  %v9013_v30 = vshrl.u32 %v22800_v46, 16 }
 0x67c   : > { %10022 = vmatprep.subr.bf16.mxu1 %v19874_v39  ;;  %v19911_v39 = vld [vmem:[#allocation11 + $0x12e0] ss:$16 sps:$4 sm:$0xff]   ;;  %v8985_v50 = vor.u32 %v8984_v18, %v8981_v7  ;;  %v19957_v18 = vld [vmem:[#allocation11 + $0x13c8] ss:$16 sps:$4 sm:$0xff]  }
 0x67d   : > { %v19954_v7 = vld [vmem:[#allocation11 + $0x13c0] ss:$16 sps:$4 sm:$0xff]  }
 0x67e   : > { %9894 = vmatpush1.bf16.msra.mxu0 %v19869_v11  ;;  %v19920_v11 = vld [vmem:[#allocation11 + $0x1304] ss:$16 sps:$4 sm:$0xff]  }
 0x67f   : > { %10023 = vmatpush1.bf16.msra.mxu1 %v19872_v60  ;;  %9895 = vmatprep.subr.bf16.mxu0 %v19877_v3  ;;  %v8993_v60 = vor.u32 %v8992_v12, %v8989_v10  ;;  %v19923_v3 = vld [vmem:[#allocation11 + $0x130c] ss:$16 sps:$4 sm:$0xff]   ;;  %v19962_v10 = vld [vmem:[#allocation11 + $0x13e4] ss:$16 sps:$4 sm:$0xff]  }
 0x680   : > { %10024 = vmatprep.subr.bf16.mxu1 %v19880_v56  ;;  %v19918_v56 = vld [vmem:[#allocation11 + $0x1300] ss:$16 sps:$4 sm:$0xff]   ;;  %v19965_v12 = vld [vmem:[#allocation11 + $0x13ec] ss:$16 sps:$4 sm:$0xff]  }
 0x682   : > { %9896 = vmatpush1.bf16.msra.mxu0 %v19875_v57  ;;  %v19921_v57 = vld [vmem:[#allocation11 + $0x1308] ss:$16 sps:$4 sm:$0xff]  }
 0x683   : > { %10025 = vmatpush1.bf16.msra.mxu1 %v19878_v52  ;;  %9897 = vmatprep.subr.bf16.mxu0 %v19883_v55  ;;  %v19926_v52 = vld [vmem:[#allocation11 + $0x1324] ss:$16 sps:$4 sm:$0xff]   ;;  %v8994_v55 = vsel %vm23420_vm12, %v8985_v50, %v8993_v60  ;;  %v19960_v60 = vld [vmem:[#allocation11 + $0x13e0] ss:$16 sps:$4 sm:$0xff]   ;;  %vm23433_vm12 = vmmov %vm23430_vm3 }
 0x684   : > { %10026 = vmatprep.subr.bf16.mxu1 %v19886_v40  ;;  %v19929_v40 = vld [vmem:[#allocation11 + $0x132c] ss:$16 sps:$4 sm:$0xff]  }
 0x686   : > { %9898 = vmatpush1.bf16.msra.mxu0 %v19881_v13  ;;  %v19924_v13 = vld [vmem:[#allocation11 + $0x1320] ss:$16 sps:$4 sm:$0xff]  }
 0x687   : > { %10027 = vmatpush1.bf16.msra.mxu1 %v19884_v15  ;;  %9899 = vmatprep.subr.bf16.mxu0 %v19889_v43  ;;  %v19927_v15 = vld [vmem:[#allocation11 + $0x1328] ss:$16 sps:$4 sm:$0xff]   ;;  %v19932_v43 = vld [vmem:[#allocation11 + $0x1344] ss:$16 sps:$4 sm:$0xff]  }
 0x688   : > { %10028 = vmatprep.subr.bf16.mxu1 %v19892_v41  ;;  %v19935_v41 = vld [vmem:[#allocation11 + $0x134c] ss:$16 sps:$4 sm:$0xff]  }
 0x68a   : > { %9900 = vmatpush1.bf16.msra.mxu0 %v19887_v35  ;;  %v19930_v35 = vld [vmem:[#allocation11 + $0x1340] ss:$16 sps:$4 sm:$0xff]  }
 0x68b   : > { %10029 = vmatpush1.bf16.msra.mxu1 %v19890_v5  ;;  %9901 = vmatprep.subr.bf16.mxu0 %v19895_v21  ;;  %v19933_v5 = vld [vmem:[#allocation11 + $0x1348] ss:$16 sps:$4 sm:$0xff]   ;;  %v19938_v21 = vld [vmem:[#allocation11 + $0x1364] ss:$16 sps:$4 sm:$0xff]  }
 0x68c   : > { %10030 = vmatprep.subr.bf16.mxu1 %v19898_v19  ;;  %v19941_v19 = vld [vmem:[#allocation11 + $0x136c] ss:$16 sps:$4 sm:$0xff]  }
 0x68e   : > { %9902 = vmatpush1.bf16.msra.mxu0 %v19893_v42  ;;  %v19936_v42 = vld [vmem:[#allocation11 + $0x1360] ss:$16 sps:$4 sm:$0xff]  }
 0x68f   : > { %10031 = vmatpush1.bf16.msra.mxu1 %v19896_v54  ;;  %9903 = vmatprep.subr.bf16.mxu0 %v19901_v44  ;;  %v19939_v54 = vld [vmem:[#allocation11 + $0x1368] ss:$16 sps:$4 sm:$0xff]   ;;  %v19944_v44 = vld [vmem:[#allocation11 + $0x1384] ss:$16 sps:$4 sm:$0xff]  }
 0x690   : > { %10032 = vmatprep.subr.bf16.mxu1 %v19904_v28  ;;  %v19947_v28 = vld [vmem:[#allocation11 + $0x138c] ss:$16 sps:$4 sm:$0xff]  }
 0x692   : > { %9904 = vmatpush1.bf16.msra.mxu0 %v19899_v34  ;;  %v19942_v34 = vld [vmem:[#allocation11 + $0x1380] ss:$16 sps:$4 sm:$0xff]  }
 0x693   : > { %10033 = vmatpush1.bf16.msra.mxu1 %v19902_v47  ;;  %9905 = vmatprep.subr.bf16.mxu0 %v19907_v22  ;;  %v19950_v47 = vld [vmem:[#allocation11 + $0x13a4] ss:$16 sps:$4 sm:$0xff]   ;;  %v19953_v22 = vld [vmem:[#allocation11 + $0x13ac] ss:$16 sps:$4 sm:$0xff]  }
 0x694   : > { %10034 = vmatprep.subr.bf16.mxu1 %v19910_v58  ;;  %v19948_v58 = vld [vmem:[#allocation11 + $0x13a0] ss:$16 sps:$4 sm:$0xff]  }
 0x696   : > { %9906 = vmatpush1.bf16.msra.mxu0 %v19905_v26  ;;  %v9016_v26 = vshll.u32 %v22800_v46, 16  ;;  %v19963_v46 = vld [vmem:[#allocation11 + $0x13e8] ss:$16 sps:$4 sm:$0xff]  }
 0x697   : > { %10035 = vmatpush1.bf16.msra.mxu1 %v19908_v1  ;;  %9907 = vmatprep.subr.bf16.mxu0 %v19913_v27  ;;  %v21024_v1 = vld [vmem:[#allocation3 + $0x38] ss:$0 sps:$4 sm:$0x33]  }
 0x698   : > { %10036 = vmatprep.subr.bf16.mxu1 %v19916_v14  ;;  %v9021_v27 = vshrl.u32 %v21024_v1, 16  ;;  %v9024_v14 = vshll.u32 %v21024_v1, 16  ;;  %v20003_v1 = vld [vmem:[#allocation11 + $0x14c0] ss:$16 sps:$4 sm:$0xff]  }
 0x69a   : > { %9908 = vmatpush1.bf16.msra.mxu0 %v19911_v39  ;;  %v9015_v39 = vrot.slane %v9013_v30, 1  ;;  %v9026_v50 = vrot.slane %v9024_v14, 2  ;;  %v20005_v30 = vld [vmem:[#allocation11 + $0x14c4] ss:$16 sps:$4 sm:$0xff]  }
 0x69b   : > { %10037 = vmatpush1.bf16.msra.mxu1 %v19914_v20  ;;  %9920 = vmatprep.subr.bf16.mxu0 %v19920_v11  ;;  %v9018_v20 = vrot.slane %v9016_v26, 2  ;;  %v9023_v11 = vrot.slane %v9021_v27, 1  ;;  %v20008_v26 = vld [vmem:[#allocation11 + $0x14cc] ss:$16 sps:$4 sm:$0xff]   ;;  %v20006_v27 = vld [vmem:[#allocation11 + $0x14c8] ss:$16 sps:$4 sm:$0xff]  }
 0x69c   : > { %10049 = vmatprep.subr.bf16.mxu1 %v19923_v3  ;;  %v19969_v3 = vld [vmem:[#allocation11 + $0x1404] ss:$16 sps:$4 sm:$0xff]  }
 0x69d   : > { %9910 = vmatmul.mubr.bf16.vlgmr.msra.gmra.mrb[16].mxu0 %v8994_v55  ;;  %v20011_v14 = vld [vmem:[#allocation11 + $0x14e4] ss:$16 sps:$4 sm:$0xff]  }
 0x69e   : > { %10039 = vmatmul.mubr.bf16.vlgmr.msra.gmra.mrb[16].mxu1 %v8994_v55  ;;  %9921 = vmatpush1.bf16.msra.mxu0 %v19918_v56  ;;  %v9019_v56 = vor.u32 %v9018_v20, %v9015_v39  ;;  %v19967_v55 = vld [vmem:[#allocation11 + $0x1400] ss:$16 sps:$4 sm:$0xff]   ;;  %v20020_v39 = vld [vmem:[#allocation11 + $0x150c] ss:$16 sps:$4 sm:$0xff]  }
 0x69f   : > { %10050 = vmatpush1.bf16.msra.mxu1 %v19921_v57  ;;  %9922 = vmatprep.subr.bf16.mxu0 %v19926_v52  ;;  %v9027_v57 = vor.u32 %v9026_v50, %v9023_v11  ;;  %v19972_v52 = vld [vmem:[#allocation11 + $0x140c] ss:$16 sps:$4 sm:$0xff]   ;;  %v20015_v20 = vld [vmem:[#allocation11 + $0x1500] ss:$16 sps:$4 sm:$0xff]   ;;  %v20018_v11 = vld [vmem:[#allocation11 + $0x1508] ss:$16 sps:$4 sm:$0xff]  }
 0x6a0   : > { %10051 = vmatprep.subr.bf16.mxu1 %v19929_v40  ;;  %9952 = vmatprep.mubr.bf16.mxu0 %v22894_v25  ;;  %v19970_v40 = vld [vmem:[#allocation11 + $0x1408] ss:$16 sps:$4 sm:$0xff]   ;;  %v20023_v50 = vld [vmem:[#allocation11 + $0x1524] ss:$16 sps:$4 sm:$0xff]  }
 0x6a1   : > { %10081 = vmatprep.mubr.bf16.mxu1 %v22894_v25  ;;  %v19945_v25 = vld [vmem:[#allocation11 + $0x1388] ss:$16 sps:$4 sm:$0xff]  }
 0x6a2   : > { %9923 = vmatpush1.bf16.msra.mxu0 %v19924_v13  ;;  %v9028_v13 = vsel %vm23421_vm10, %v9019_v56, %v9027_v57  ;;  %v20029_v56 = vld [vmem:[#allocation11 + $0x1544] ss:$16 sps:$4 sm:$0xff]   ;;  %v20032_v57 = vld [vmem:[#allocation11 + $0x154c] ss:$16 sps:$4 sm:$0xff]   ;;  %vm23434_vm10 = vnez %v23277_v37 }
 0x6a3   : > { %10052 = vmatpush1.bf16.msra.mxu1 %v19927_v15  ;;  %9924 = vmatprep.subr.bf16.mxu0 %v19932_v43  ;;  %v19975_v15 = vld [vmem:[#allocation11 + $0x1424] ss:$16 sps:$4 sm:$0xff]   ;;  %v19978_v43 = vld [vmem:[#allocation11 + $0x142c] ss:$16 sps:$4 sm:$0xff]  }
 0x6a4   : > { %10053 = vmatprep.subr.bf16.mxu1 %v19935_v41  ;;  %v19973_v41 = vld [vmem:[#allocation11 + $0x1420] ss:$16 sps:$4 sm:$0xff]  }
 0x6a6   : > { %9925 = vmatpush1.bf16.msra.mxu0 %v19930_v35  ;;  %v19976_v35 = vld [vmem:[#allocation11 + $0x1428] ss:$16 sps:$4 sm:$0xff]  }
 0x6a7   : > { %10054 = vmatpush1.bf16.msra.mxu1 %v19933_v5  ;;  %9926 = vmatprep.subr.bf16.mxu0 %v19938_v21  ;;  %v19981_v5 = vld [vmem:[#allocation11 + $0x1444] ss:$16 sps:$4 sm:$0xff]   ;;  %v19984_v21 = vld [vmem:[#allocation11 + $0x144c] ss:$16 sps:$4 sm:$0xff]  }
 0x6a8   : > { %10055 = vmatprep.subr.bf16.mxu1 %v19941_v19  ;;  %v19979_v19 = vld [vmem:[#allocation11 + $0x1440] ss:$16 sps:$4 sm:$0xff]  }
 0x6aa   : > { %9927 = vmatpush1.bf16.msra.mxu0 %v19936_v42  ;;  %v19982_v42 = vld [vmem:[#allocation11 + $0x1448] ss:$16 sps:$4 sm:$0xff]  }
 0x6ab   : > { %10056 = vmatpush1.bf16.msra.mxu1 %v19939_v54  ;;  %9928 = vmatprep.subr.bf16.mxu0 %v19944_v44  ;;  %v19987_v54 = vld [vmem:[#allocation11 + $0x1464] ss:$16 sps:$4 sm:$0xff]   ;;  %v19990_v44 = vld [vmem:[#allocation11 + $0x146c] ss:$16 sps:$4 sm:$0xff]  }
 0x6ac   : > { %10057 = vmatprep.subr.bf16.mxu1 %v19947_v28  ;;  %v19985_v28 = vld [vmem:[#allocation11 + $0x1460] ss:$16 sps:$4 sm:$0xff]  }
 0x6ae   : > { %9929 = vmatpush1.bf16.msra.mxu0 %v19942_v34  ;;  %v19988_v34 = vld [vmem:[#allocation11 + $0x1468] ss:$16 sps:$4 sm:$0xff]  }
 0x6af   : > { %10058 = vmatpush1.bf16.msra.mxu1 %v19945_v25  ;;  %9930 = vmatprep.subr.bf16.mxu0 %v19950_v47  ;;  %v19993_v25 = vld [vmem:[#allocation11 + $0x1484] ss:$16 sps:$4 sm:$0xff]   ;;  %v19996_v47 = vld [vmem:[#allocation11 + $0x148c] ss:$16 sps:$4 sm:$0xff]  }
 0x6b0   : > { %10059 = vmatprep.subr.bf16.mxu1 %v19953_v22  ;;  %v19994_v22 = vld [vmem:[#allocation11 + $0x1488] ss:$16 sps:$4 sm:$0xff]  }
 0x6b2   : > { %9931 = vmatpush1.bf16.msra.mxu0 %v19948_v58  ;;  %v19999_v58 = vld [vmem:[#allocation11 + $0x14a4] ss:$16 sps:$4 sm:$0xff]  }
 0x6b3   : > { %10060 = vmatpush1.bf16.msra.mxu1 %v19951_v6  ;;  %9932 = vmatprep.subr.bf16.mxu0 %v19956_v53  ;;  %v20002_v6 = vld [vmem:[#allocation11 + $0x14ac] ss:$16 sps:$4 sm:$0xff]   ;;  %v19997_v53 = vld [vmem:[#allocation11 + $0x14a0] ss:$16 sps:$4 sm:$0xff]  }
 0x6b4   : > { %10061 = vmatprep.subr.bf16.mxu1 %v19959_v36  ;;  %v20000_v36 = vld [vmem:[#allocation11 + $0x14a8] ss:$16 sps:$4 sm:$0xff]  }
 0x6b6   : > { %9933 = vmatpush1.bf16.msra.mxu0 %v19954_v7  ;;  %v20014_v7 = vld [vmem:[#allocation11 + $0x14ec] ss:$16 sps:$4 sm:$0xff]  }
 0x6b7   : > { %10062 = vmatpush1.bf16.msra.mxu1 %v19957_v18  ;;  %9934 = vmatprep.subr.bf16.mxu0 %v19962_v10  ;;  %v20009_v18 = vld [vmem:[#allocation11 + $0x14e0] ss:$16 sps:$4 sm:$0xff]   ;;  %v20012_v10 = vld [vmem:[#allocation11 + $0x14e8] ss:$16 sps:$4 sm:$0xff]  }
 0x6b8   : > { %10063 = vmatprep.subr.bf16.mxu1 %v19965_v12  ;;  %v20017_v12 = vld [vmem:[#allocation11 + $0x1504] ss:$16 sps:$4 sm:$0xff]  }
 0x6ba   : > { %9935 = vmatpush1.bf16.msra.mxu0 %v19960_v60  ;;  %v20026_v60 = vld [vmem:[#allocation11 + $0x152c] ss:$16 sps:$4 sm:$0xff]  }
 0x6bb   : > { %10064 = vmatpush1.bf16.msra.mxu1 %v19963_v46  ;;  %11097 = vmatprep.subr.bf16.mxu0 %v19969_v3  ;;  %v20021_v46 = vld [vmem:[#allocation11 + $0x1520] ss:$16 sps:$4 sm:$0xff]   ;;  %v20024_v3 = vld [vmem:[#allocation11 + $0x1528] ss:$16 sps:$4 sm:$0xff]  }
 0x6bc   : > { %11226 = vmatprep.subr.bf16.mxu1 %v19972_v52  ;;  %v20027_v52 = vld [vmem:[#allocation11 + $0x1540] ss:$16 sps:$4 sm:$0xff]  }
 0x6bd   : > { %9953 = vmatmul.mubr.bf16.vlgmr.msra.gmra.mrb[16].mxu0 %v9028_v13 }
 0x6be   : > { %10082 = vmatmul.mubr.bf16.vlgmr.msra.gmra.mrb[16].mxu1 %v9028_v13  ;;  %11098 = vmatpush1.bf16.msra.mxu0 %v19967_v55  ;;  %v20030_v55 = vld [vmem:[#allocation11 + $0x1548] ss:$16 sps:$4 sm:$0xff]   ;;  %v20038_v13 = vld [vmem:[#allocation11 + $0x156c] ss:$16 sps:$4 sm:$0xff]  }
 0x6bf   : > { %11129 = vmatprep.mubr.bf16.mxu0 %v22839_v17  ;;  %11227 = vmatpush1.bf16.msra.mxu1 %v19970_v40  ;;  %v20035_v40 = vld [vmem:[#allocation11 + $0x1564] ss:$16 sps:$4 sm:$0xff]  }
 0x6c0   : > { %11258 = vmatprep.mubr.bf16.mxu1 %v22839_v17  ;;  %11099 = vmatprep.subr.bf16.mxu0 %v19975_v15  ;;  %v19991_v17 = vld [vmem:[#allocation11 + $0x1480] ss:$16 sps:$4 sm:$0xff]  }
 0x6c1   : > { %11228 = vmatprep.subr.bf16.mxu1 %v19978_v43  ;;  %v20033_v15 = vld [vmem:[#allocation11 + $0x1560] ss:$16 sps:$4 sm:$0xff]   ;;  %v20036_v43 = vld [vmem:[#allocation11 + $0x1568] ss:$16 sps:$4 sm:$0xff]  }
 0x6c2   : > { %11100 = vmatpush1.bf16.msra.mxu0 %v19973_v41  ;;  %v20041_v41 = vld [vmem:[#allocation11 + $0x1584] ss:$16 sps:$4 sm:$0xff]  }
 0x6c3   : > { %11229 = vmatpush1.bf16.msra.mxu1 %v19976_v35  ;;  %11101 = vmatprep.subr.bf16.mxu0 %v19981_v5  ;;  %v20044_v35 = vld [vmem:[#allocation11 + $0x158c] ss:$16 sps:$4 sm:$0xff]   ;;  %v20039_v5 = vld [vmem:[#allocation11 + $0x1580] ss:$16 sps:$4 sm:$0xff]  }
 0x6c4   : > { %11230 = vmatprep.subr.bf16.mxu1 %v19984_v21  ;;  %v20042_v21 = vld [vmem:[#allocation11 + $0x1588] ss:$16 sps:$4 sm:$0xff]  }
 0x6c6   : > { %11102 = vmatpush1.bf16.msra.mxu0 %v19979_v19  ;;  %v20047_v19 = vld [vmem:[#allocation11 + $0x15a4] ss:$16 sps:$4 sm:$0xff]  }
 0x6c7   : > { %11231 = vmatpush1.bf16.msra.mxu1 %v19982_v42  ;;  %11103 = vmatprep.subr.bf16.mxu0 %v19987_v54  ;;  %v20050_v42 = vld [vmem:[#allocation11 + $0x15ac] ss:$16 sps:$4 sm:$0xff]   ;;  %v20045_v54 = vld [vmem:[#allocation11 + $0x15a0] ss:$16 sps:$4 sm:$0xff]  }
 0x6c8   : > { %11232 = vmatprep.subr.bf16.mxu1 %v19990_v44  ;;  %v20048_v44 = vld [vmem:[#allocation11 + $0x15a8] ss:$16 sps:$4 sm:$0xff]  }
 0x6ca   : > { %11104 = vmatpush1.bf16.msra.mxu0 %v19985_v28  ;;  %v20053_v28 = vld [vmem:[#allocation11 + $0x15c4] ss:$16 sps:$4 sm:$0xff]  }
 0x6cb   : > { %11233 = vmatpush1.bf16.msra.mxu1 %v19988_v34  ;;  %11105 = vmatprep.subr.bf16.mxu0 %v19993_v25  ;;  %v20056_v34 = vld [vmem:[#allocation11 + $0x15cc] ss:$16 sps:$4 sm:$0xff]   ;;  %v20051_v25 = vld [vmem:[#allocation11 + $0x15c0] ss:$16 sps:$4 sm:$0xff]  }
 0x6cc   : > { %11234 = vmatprep.subr.bf16.mxu1 %v19996_v47  ;;  %v20054_v47 = vld [vmem:[#allocation11 + $0x15c8] ss:$16 sps:$4 sm:$0xff]  }
 0x6ce   : > { %11106 = vmatpush1.bf16.msra.mxu0 %v19991_v17  ;;  %v20059_v17 = vld [vmem:[#allocation11 + $0x15e4] ss:$16 sps:$4 sm:$0xff]  }
 0x6cf   : > { %11235 = vmatpush1.bf16.msra.mxu1 %v19994_v22  ;;  %11107 = vmatprep.subr.bf16.mxu0 %v19999_v58  ;;  %v20062_v22 = vld [vmem:[#allocation11 + $0x15ec] ss:$16 sps:$4 sm:$0xff]   ;;  %v20057_v58 = vld [vmem:[#allocation11 + $0x15e0] ss:$16 sps:$4 sm:$0xff]  }
 0x6d0   : > { %11236 = vmatprep.subr.bf16.mxu1 %v20002_v6  ;;  %v20060_v6 = vld [vmem:[#allocation11 + $0x15e8] ss:$16 sps:$4 sm:$0xff]  }
 0x6d2   : > { %11108 = vmatpush1.bf16.msra.mxu0 %v19997_v53  ;;  %v20065_v53 = vld [vmem:[#allocation11 + $0x1604] ss:$16 sps:$4 sm:$0xff]  }
 0x6d3   : > { %11237 = vmatpush1.bf16.msra.mxu1 %v20000_v36  ;;  %11109 = vmatprep.subr.bf16.mxu0 %v20005_v30  ;;  %v20068_v36 = vld [vmem:[#allocation11 + $0x160c] ss:$16 sps:$4 sm:$0xff]   ;;  %v20063_v30 = vld [vmem:[#allocation11 + $0x1600] ss:$16 sps:$4 sm:$0xff]  }
 0x6d4   : > { %11238 = vmatprep.subr.bf16.mxu1 %v20008_v26  ;;  %v20066_v26 = vld [vmem:[#allocation11 + $0x1608] ss:$16 sps:$4 sm:$0xff]  }
 0x6d6   : > { %11110 = vmatpush1.bf16.msra.mxu0 %v20003_v1  ;;  %v20072_v1 = vld [vmem:[#allocation11 + $0x1624] ss:$16 sps:$4 sm:$0xff]  }
 0x6d7   : > { %11239 = vmatpush1.bf16.msra.mxu1 %v20006_v27  ;;  %11111 = vmatprep.subr.bf16.mxu0 %v20011_v14  ;;  %v20075_v27 = vld [vmem:[#allocation11 + $0x162c] ss:$16 sps:$4 sm:$0xff]   ;;  %v20070_v14 = vld [vmem:[#allocation11 + $0x1620] ss:$16 sps:$4 sm:$0xff]  }
 0x6d8   : > { %11240 = vmatprep.subr.bf16.mxu1 %v20014_v7  ;;  %v20073_v7 = vld [vmem:[#allocation11 + $0x1628] ss:$16 sps:$4 sm:$0xff]  }
 0x6da   : > { %11112 = vmatpush1.bf16.msra.mxu0 %v20009_v18  ;;  %v20078_v18 = vld [vmem:[#allocation11 + $0x1644] ss:$16 sps:$4 sm:$0xff]  }
 0x6db   : > { %11241 = vmatpush1.bf16.msra.mxu1 %v20012_v10  ;;  %11113 = vmatprep.subr.bf16.mxu0 %v20017_v12  ;;  %v20081_v10 = vld [vmem:[#allocation11 + $0x164c] ss:$16 sps:$4 sm:$0xff]   ;;  %v20076_v12 = vld [vmem:[#allocation11 + $0x1640] ss:$16 sps:$4 sm:$0xff]  }
 0x6dc   : > { %11242 = vmatprep.subr.bf16.mxu1 %v20020_v39  ;;  %v20079_v39 = vld [vmem:[#allocation11 + $0x1648] ss:$16 sps:$4 sm:$0xff]  }
 0x6de   : > { %11114 = vmatpush1.bf16.msra.mxu0 %v20015_v20  ;;  %v20084_v20 = vld [vmem:[#allocation11 + $0x1664] ss:$16 sps:$4 sm:$0xff]  }
 0x6df   : > { %11243 = vmatpush1.bf16.msra.mxu1 %v20018_v11  ;;  %11115 = vmatprep.subr.bf16.mxu0 %v20023_v50  ;;  %v20082_v11 = vld [vmem:[#allocation11 + $0x1660] ss:$16 sps:$4 sm:$0xff]   ;;  %v20085_v50 = vld [vmem:[#allocation11 + $0x1668] ss:$16 sps:$4 sm:$0xff]  }
 0x6e0   : > { %11244 = vmatprep.subr.bf16.mxu1 %v20026_v60  ;;  %v20090_v60 = vld [vmem:[#allocation11 + $0x1684] ss:$16 sps:$4 sm:$0xff]  }
 0x6e2   : > { %11116 = vmatpush1.bf16.msra.mxu0 %v20021_v46  ;;  %v20093_v46 = vld [vmem:[#allocation11 + $0x168c] ss:$16 sps:$4 sm:$0xff]  }
 0x6e3   : > { %11245 = vmatpush1.bf16.msra.mxu1 %v20024_v3  ;;  %11117 = vmatprep.subr.bf16.mxu0 %v20029_v56  ;;  %v20091_v3 = vld [vmem:[#allocation11 + $0x1688] ss:$16 sps:$4 sm:$0xff]   ;;  %v20096_v56 = vld [vmem:[#allocation11 + $0x16a4] ss:$16 sps:$4 sm:$0xff]  }
 0x6e4   : > { %11246 = vmatprep.subr.bf16.mxu1 %v20032_v57  ;;  %v20099_v57 = vld [vmem:[#allocation11 + $0x16ac] ss:$16 sps:$4 sm:$0xff]  }
 0x6e6   : > { %11118 = vmatpush1.bf16.msra.mxu0 %v20027_v52  ;;  %v20094_v52 = vld [vmem:[#allocation11 + $0x16a0] ss:$16 sps:$4 sm:$0xff]  }
 0x6e7   : > { %11247 = vmatpush1.bf16.msra.mxu1 %v20030_v55  ;;  %11119 = vmatprep.subr.bf16.mxu0 %v20035_v40  ;;  %v20097_v55 = vld [vmem:[#allocation11 + $0x16a8] ss:$16 sps:$4 sm:$0xff]   ;;  %v20102_v40 = vld [vmem:[#allocation11 + $0x16c4] ss:$16 sps:$4 sm:$0xff]  }
 0x6e8   : > { %11248 = vmatprep.subr.bf16.mxu1 %v20038_v13  ;;  %v20105_v13 = vld [vmem:[#allocation11 + $0x16cc] ss:$16 sps:$4 sm:$0xff]  }
 0x6ea   : > { %11120 = vmatpush1.bf16.msra.mxu0 %v20033_v15  ;;  %v20100_v15 = vld [vmem:[#allocation11 + $0x16c0] ss:$16 sps:$4 sm:$0xff]  }
 0x6eb   : > { %11249 = vmatpush1.bf16.msra.mxu1 %v20036_v43  ;;  %11121 = vmatprep.subr.bf16.mxu0 %v20041_v41  ;;  %v20103_v43 = vld [vmem:[#allocation11 + $0x16c8] ss:$16 sps:$4 sm:$0xff]   ;;  %v20108_v41 = vld [vmem:[#allocation11 + $0x16e4] ss:$16 sps:$4 sm:$0xff]  }
 0x6ec   : > { %11250 = vmatprep.subr.bf16.mxu1 %v20044_v35  ;;  %v20111_v35 = vld [vmem:[#allocation11 + $0x16ec] ss:$16 sps:$4 sm:$0xff]  }
 0x6ee   : > { %11122 = vmatpush1.bf16.msra.mxu0 %v20039_v5  ;;  %v20106_v5 = vld [vmem:[#allocation11 + $0x16e0] ss:$16 sps:$4 sm:$0xff]  }
 0x6ef   : > { %11251 = vmatpush1.bf16.msra.mxu1 %v20042_v21  ;;  %11123 = vmatprep.subr.bf16.mxu0 %v20047_v19  ;;  %v20109_v21 = vld [vmem:[#allocation11 + $0x16e8] ss:$16 sps:$4 sm:$0xff]   ;;  %v20114_v19 = vld [vmem:[#allocation11 + $0x1704] ss:$16 sps:$4 sm:$0xff]  }
 0x6f0   : > { %11252 = vmatprep.subr.bf16.mxu1 %v20050_v42  ;;  %v20117_v42 = vld [vmem:[#allocation11 + $0x170c] ss:$16 sps:$4 sm:$0xff]  }
 0x6f2   : > { %11124 = vmatpush1.bf16.msra.mxu0 %v20045_v54  ;;  %v20112_v54 = vld [vmem:[#allocation11 + $0x1700] ss:$16 sps:$4 sm:$0xff]  }
 0x6f3   : > { %11253 = vmatpush1.bf16.msra.mxu1 %v20048_v44  ;;  %11125 = vmatprep.subr.bf16.mxu0 %v20053_v28  ;;  %v20115_v44 = vld [vmem:[#allocation11 + $0x1708] ss:$16 sps:$4 sm:$0xff]   ;;  %v20120_v28 = vld [vmem:[#allocation11 + $0x1724] ss:$16 sps:$4 sm:$0xff]  }
 0x6f4   : > { %11254 = vmatprep.subr.bf16.mxu1 %v20056_v34  ;;  %v20123_v34 = vld [vmem:[#allocation11 + $0x172c] ss:$16 sps:$4 sm:$0xff]  }
 0x6f6   : > { %11126 = vmatpush1.bf16.msra.mxu0 %v20051_v25  ;;  %v20118_v25 = vld [vmem:[#allocation11 + $0x1720] ss:$16 sps:$4 sm:$0xff]  }
 0x6f7   : > { %11255 = vmatpush1.bf16.msra.mxu1 %v20054_v47  ;;  %11127 = vmatprep.subr.bf16.mxu0 %v20059_v17  ;;  %v20121_v47 = vld [vmem:[#allocation11 + $0x1728] ss:$16 sps:$4 sm:$0xff]   ;;  %v20126_v17 = vld [vmem:[#allocation11 + $0x1744] ss:$16 sps:$4 sm:$0xff]  }
 0x6f8   : > { %11256 = vmatprep.subr.bf16.mxu1 %v20062_v22  ;;  %v20129_v22 = vld [vmem:[#allocation11 + $0x174c] ss:$16 sps:$4 sm:$0xff]  }
 0x6fa   : > { %11128 = vmatpush1.bf16.msra.mxu0 %v20057_v58  ;;  %v20124_v58 = vld [vmem:[#allocation11 + $0x1740] ss:$16 sps:$4 sm:$0xff]  }
 0x6fb   : > { %11257 = vmatpush1.bf16.msra.mxu1 %v20060_v6  ;;  %11140 = vmatprep.subr.bf16.mxu0 %v20065_v53  ;;  %v20127_v6 = vld [vmem:[#allocation11 + $0x1748] ss:$16 sps:$4 sm:$0xff]   ;;  %v20132_v53 = vld [vmem:[#allocation11 + $0x1764] ss:$16 sps:$4 sm:$0xff]  }
 0x6fc   : > { %11269 = vmatprep.subr.bf16.mxu1 %v20068_v36  ;;  %v20135_v36 = vld [vmem:[#allocation11 + $0x176c] ss:$16 sps:$4 sm:$0xff]  }
 0x6fd   : > { %11130 = vmatmul.mubr.bf16.vlgmr.msra.gmra.mrb[16].mxu0 %v22843_v33 }
 0x6fe   : > { %11259 = vmatmul.mubr.bf16.vlgmr.msra.gmra.mrb[16].mxu1 %v22843_v33  ;;  %11141 = vmatpush1.bf16.msra.mxu0 %v20063_v30  ;;  %v20087_v33 = vld [vmem:[#allocation11 + $0x166c] ss:$16 sps:$4 sm:$0xff]   ;;  %v20130_v30 = vld [vmem:[#allocation11 + $0x1760] ss:$16 sps:$4 sm:$0xff]  }
 0x6ff   : > { %11172 = vmatprep.mubr.bf16.mxu0 %v22847_v48  ;;  %11270 = vmatpush1.bf16.msra.mxu1 %v20066_v26  ;;  %v20133_v26 = vld [vmem:[#allocation11 + $0x1768] ss:$16 sps:$4 sm:$0xff]  }
 0x700   : > { %11301 = vmatprep.mubr.bf16.mxu1 %v22847_v48  ;;  %11142 = vmatprep.subr.bf16.mxu0 %v20072_v1  ;;  %v20088_v48 = vld [vmem:[#allocation11 + $0x1680] ss:$16 sps:$4 sm:$0xff]   ;;  %v20138_v1 = vld [vmem:[#allocation11 + $0x1784] ss:$16 sps:$4 sm:$0xff]  }
 0x701   : > { %11271 = vmatprep.subr.bf16.mxu1 %v20075_v27  ;;  %v20141_v27 = vld [vmem:[#allocation11 + $0x178c] ss:$16 sps:$4 sm:$0xff]  }
 0x702   : > { %11143 = vmatpush1.bf16.msra.mxu0 %v20070_v14  ;;  %v20136_v14 = vld [vmem:[#allocation11 + $0x1780] ss:$16 sps:$4 sm:$0xff]  }
 0x703   : > { %11272 = vmatpush1.bf16.msra.mxu1 %v20073_v7  ;;  %11144 = vmatprep.subr.bf16.mxu0 %v20078_v18  ;;  %v20139_v7 = vld [vmem:[#allocation11 + $0x1788] ss:$16 sps:$4 sm:$0xff]   ;;  %v20144_v18 = vld [vmem:[#allocation11 + $0x17a4] ss:$16 sps:$4 sm:$0xff]  }
 0x704   : > { %11273 = vmatprep.subr.bf16.mxu1 %v20081_v10  ;;  %v20147_v10 = vld [vmem:[#allocation11 + $0x17ac] ss:$16 sps:$4 sm:$0xff]  }
 0x706   : > { %11145 = vmatpush1.bf16.msra.mxu0 %v20076_v12  ;;  %v20142_v12 = vld [vmem:[#allocation11 + $0x17a0] ss:$16 sps:$4 sm:$0xff]  }
 0x707   : > { %11274 = vmatpush1.bf16.msra.mxu1 %v20079_v39  ;;  %11146 = vmatprep.subr.bf16.mxu0 %v20084_v20  ;;  %v20145_v39 = vld [vmem:[#allocation11 + $0x17a8] ss:$16 sps:$4 sm:$0xff]   ;;  %v20150_v20 = vld [vmem:[#allocation11 + $0x17c4] ss:$16 sps:$4 sm:$0xff]  }
 0x708   : > { %11275 = vmatprep.subr.bf16.mxu1 %v20087_v33  ;;  %v20153_v33 = vld [vmem:[#allocation11 + $0x17cc] ss:$16 sps:$4 sm:$0xff]  }
 0x70a   : > { %11147 = vmatpush1.bf16.msra.mxu0 %v20082_v11  ;;  %v20148_v11 = vld [vmem:[#allocation11 + $0x17c0] ss:$16 sps:$4 sm:$0xff]  }
 0x70b   : > { %11276 = vmatpush1.bf16.msra.mxu1 %v20085_v50  ;;  %11148 = vmatprep.subr.bf16.mxu0 %v20090_v60  ;;  %v20151_v50 = vld [vmem:[#allocation11 + $0x17c8] ss:$16 sps:$4 sm:$0xff]   ;;  %v20156_v60 = vld [vmem:[#allocation11 + $0x17e4] ss:$16 sps:$4 sm:$0xff]  }
 0x70c   : > { %11277 = vmatprep.subr.bf16.mxu1 %v20093_v46  ;;  %v20159_v46 = vld [vmem:[#allocation11 + $0x17ec] ss:$16 sps:$4 sm:$0xff]  }
 0x70e   : > { %11149 = vmatpush1.bf16.msra.mxu0 %v20088_v48  ;;  %v20154_v48 = vld [vmem:[#allocation11 + $0x17e0] ss:$16 sps:$4 sm:$0xff]  }
 0x70f   : > { %11278 = vmatpush1.bf16.msra.mxu1 %v20091_v3  ;;  %11150 = vmatprep.subr.bf16.mxu0 %v20096_v56  ;;  %v20157_v3 = vld [vmem:[#allocation11 + $0x17e8] ss:$16 sps:$4 sm:$0xff]   ;;  %v20163_v56 = vld [vmem:[#allocation11 + $0x1804] ss:$16 sps:$4 sm:$0xff]  }
 0x710   : > { %11279 = vmatprep.subr.bf16.mxu1 %v20099_v57  ;;  %v20166_v57 = vld [vmem:[#allocation11 + $0x180c] ss:$16 sps:$4 sm:$0xff]  }
 0x712   : > { %11151 = vmatpush1.bf16.msra.mxu0 %v20094_v52  ;;  %v20161_v52 = vld [vmem:[#allocation11 + $0x1800] ss:$16 sps:$4 sm:$0xff]  }
 0x713   : > { %11280 = vmatpush1.bf16.msra.mxu1 %v20097_v55  ;;  %11152 = vmatprep.subr.bf16.mxu0 %v20102_v40  ;;  %v20164_v55 = vld [vmem:[#allocation11 + $0x1808] ss:$16 sps:$4 sm:$0xff]   ;;  %v20169_v40 = vld [vmem:[#allocation11 + $0x1824] ss:$16 sps:$4 sm:$0xff]  }
 0x714   : > { %11281 = vmatprep.subr.bf16.mxu1 %v20105_v13  ;;  %v20172_v13 = vld [vmem:[#allocation11 + $0x182c] ss:$16 sps:$4 sm:$0xff]  }
 0x716   : > { %11153 = vmatpush1.bf16.msra.mxu0 %v20100_v15  ;;  %v20167_v15 = vld [vmem:[#allocation11 + $0x1820] ss:$16 sps:$4 sm:$0xff]  }
 0x717   : > { %11282 = vmatpush1.bf16.msra.mxu1 %v20103_v43  ;;  %11154 = vmatprep.subr.bf16.mxu0 %v20108_v41  ;;  %v20170_v43 = vld [vmem:[#allocation11 + $0x1828] ss:$16 sps:$4 sm:$0xff]   ;;  %v20175_v41 = vld [vmem:[#allocation11 + $0x1844] ss:$16 sps:$4 sm:$0xff]  }
 0x718   : > { %11283 = vmatprep.subr.bf16.mxu1 %v20111_v35  ;;  %v20178_v35 = vld [vmem:[#allocation11 + $0x184c] ss:$16 sps:$4 sm:$0xff]  }
 0x71a   : > { %11155 = vmatpush1.bf16.msra.mxu0 %v20106_v5  ;;  %v22933_v5 = vld [vmem:[#allocation4] sm:$0xff] }
 0x71b   : > { %11284 = vmatpush1.bf16.msra.mxu1 %v20109_v21  ;;  %11156 = vmatprep.subr.bf16.mxu0 %v20114_v19  ;;  %v20173_v21 = vld [vmem:[#allocation11 + $0x1840] ss:$16 sps:$4 sm:$0xff]   ;;  %v20176_v19 = vld [vmem:[#allocation11 + $0x1848] ss:$16 sps:$4 sm:$0xff]  }
 0x71c   : > { %11285 = vmatprep.subr.bf16.mxu1 %v20117_v42  ;;  %v20184_v42 = vld [vmem:[#allocation11 + $0x186c] ss:$16 sps:$4 sm:$0xff]  }
 0x71e   : > { %11157 = vmatpush1.bf16.msra.mxu0 %v20112_v54  ;;  %v20179_v54 = vld [vmem:[#allocation11 + $0x1860] ss:$16 sps:$4 sm:$0xff]  }
 0x71f   : > { %11286 = vmatpush1.bf16.msra.mxu1 %v20115_v44  ;;  %11158 = vmatprep.subr.bf16.mxu0 %v20120_v28  ;;  %v20182_v44 = vld [vmem:[#allocation11 + $0x1868] ss:$16 sps:$4 sm:$0xff]   ;;  %v20187_v28 = vld [vmem:[#allocation11 + $0x1884] ss:$16 sps:$4 sm:$0xff]  }
 0x720   : > { %11287 = vmatprep.subr.bf16.mxu1 %v20123_v34  ;;  %v20190_v34 = vld [vmem:[#allocation11 + $0x188c] ss:$16 sps:$4 sm:$0xff]  }
 0x722   : > { %11159 = vmatpush1.bf16.msra.mxu0 %v20118_v25  ;;  %v20185_v25 = vld [vmem:[#allocation11 + $0x1880] ss:$16 sps:$4 sm:$0xff]  }
 0x723   : > { %11288 = vmatpush1.bf16.msra.mxu1 %v20121_v47  ;;  %11160 = vmatprep.subr.bf16.mxu0 %v20126_v17  ;;  %v20188_v47 = vld [vmem:[#allocation11 + $0x1888] ss:$16 sps:$4 sm:$0xff]   ;;  %v20193_v17 = vld [vmem:[#allocation11 + $0x18a4] ss:$16 sps:$4 sm:$0xff]  }
 0x724   : > { %11289 = vmatprep.subr.bf16.mxu1 %v20129_v22  ;;  %v20196_v22 = vld [vmem:[#allocation11 + $0x18ac] ss:$16 sps:$4 sm:$0xff]  }
 0x726   : > { %11161 = vmatpush1.bf16.msra.mxu0 %v20124_v58  ;;  %v20191_v58 = vld [vmem:[#allocation11 + $0x18a0] ss:$16 sps:$4 sm:$0xff]  }
 0x727   : > { %11290 = vmatpush1.bf16.msra.mxu1 %v20127_v6  ;;  %11162 = vmatprep.subr.bf16.mxu0 %v20132_v53  ;;  %v20194_v6 = vld [vmem:[#allocation11 + $0x18a8] ss:$16 sps:$4 sm:$0xff]   ;;  %v20199_v53 = vld [vmem:[#allocation11 + $0x18c4] ss:$16 sps:$4 sm:$0xff]  }
 0x728   : > { %11291 = vmatprep.subr.bf16.mxu1 %v20135_v36  ;;  %v20202_v36 = vld [vmem:[#allocation11 + $0x18cc] ss:$16 sps:$4 sm:$0xff]  }
 0x72a   : > { %11163 = vmatpush1.bf16.msra.mxu0 %v20130_v30  ;;  %v20197_v30 = vld [vmem:[#allocation11 + $0x18c0] ss:$16 sps:$4 sm:$0xff]  }
 0x72b   : > { %11292 = vmatpush1.bf16.msra.mxu1 %v20133_v26  ;;  %11164 = vmatprep.subr.bf16.mxu0 %v20138_v1  ;;  %v20200_v26 = vld [vmem:[#allocation11 + $0x18c8] ss:$16 sps:$4 sm:$0xff]   ;;  %v20205_v1 = vld [vmem:[#allocation11 + $0x18e4] ss:$16 sps:$4 sm:$0xff]  }
 0x72c   : > { %11293 = vmatprep.subr.bf16.mxu1 %v20141_v27  ;;  %v20208_v27 = vld [vmem:[#allocation11 + $0x18ec] ss:$16 sps:$4 sm:$0xff]  }
 0x72e   : > { %11165 = vmatpush1.bf16.msra.mxu0 %v20136_v14  ;;  %v20203_v14 = vld [vmem:[#allocation11 + $0x18e0] ss:$16 sps:$4 sm:$0xff]  }
 0x72f   : > { %11294 = vmatpush1.bf16.msra.mxu1 %v20139_v7  ;;  %11166 = vmatprep.subr.bf16.mxu0 %v20144_v18  ;;  %v20206_v7 = vld [vmem:[#allocation11 + $0x18e8] ss:$16 sps:$4 sm:$0xff]   ;;  %v20210_v18 = vld [vmem:[#allocation14 + $0x300] ss:$16 sps:$4 sm:$0xff]  }
 0x730   : > { %11295 = vmatprep.subr.bf16.mxu1 %v20147_v10  ;;  %v20212_v10 = vld [vmem:[#allocation14 + $0x304] ss:$16 sps:$4 sm:$0xff]  }
 0x732   : > { %11167 = vmatpush1.bf16.msra.mxu0 %v20142_v12  ;;  %v20213_v12 = vld [vmem:[#allocation14 + $0x308] ss:$16 sps:$4 sm:$0xff]  }
 0x733   : > { %11296 = vmatpush1.bf16.msra.mxu1 %v20145_v39  ;;  %11168 = vmatprep.subr.bf16.mxu0 %v20150_v20  ;;  %v20215_v39 = vld [vmem:[#allocation14 + $0x30c] ss:$16 sps:$4 sm:$0xff]   ;;  %v20218_v20 = vld [vmem:[#allocation14 + $0x324] ss:$16 sps:$4 sm:$0xff]  }
 0x734   : > { %11297 = vmatprep.subr.bf16.mxu1 %v20153_v33  ;;  %v20221_v33 = vld [vmem:[#allocation14 + $0x32c] ss:$16 sps:$4 sm:$0xff]  }
 0x736   : > { %11169 = vmatpush1.bf16.msra.mxu0 %v20148_v11  ;;  %v20216_v11 = vld [vmem:[#allocation14 + $0x320] ss:$16 sps:$4 sm:$0xff]  }
 0x737   : > { %11298 = vmatpush1.bf16.msra.mxu1 %v20151_v50  ;;  %11170 = vmatprep.subr.bf16.mxu0 %v20156_v60  ;;  %v20219_v50 = vld [vmem:[#allocation14 + $0x328] ss:$16 sps:$4 sm:$0xff]   ;;  %v20224_v60 = vld [vmem:[#allocation14 + $0x344] ss:$16 sps:$4 sm:$0xff]  }
 0x738   : > { %11299 = vmatprep.subr.bf16.mxu1 %v20159_v46  ;;  %v20227_v46 = vld [vmem:[#allocation14 + $0x34c] ss:$16 sps:$4 sm:$0xff]  }
 0x73a   : > { %11171 = vmatpush1.bf16.msra.mxu0 %v20154_v48  ;;  %v20222_v48 = vld [vmem:[#allocation14 + $0x340] ss:$16 sps:$4 sm:$0xff]  }
 0x73b   : > { %11300 = vmatpush1.bf16.msra.mxu1 %v20157_v3  ;;  %11183 = vmatprep.subr.bf16.mxu0 %v20163_v56  ;;  %v20230_v3 = vld [vmem:[#allocation14 + $0x364] ss:$16 sps:$4 sm:$0xff]   ;;  %v20233_v56 = vld [vmem:[#allocation14 + $0x36c] ss:$16 sps:$4 sm:$0xff]  }
 0x73c   : > { %11312 = vmatprep.subr.bf16.mxu1 %v20166_v57  ;;  %v20228_v57 = vld [vmem:[#allocation14 + $0x360] ss:$16 sps:$4 sm:$0xff]  }
 0x73d   : > { %11173 = vmatmul.mubr.bf16.vlgmr.msra.gmra.mrb[16].mxu0 %v22850_v51 }
 0x73e   : > { %11302 = vmatmul.mubr.bf16.vlgmr.msra.gmra.mrb[16].mxu1 %v22850_v51  ;;  %11184 = vmatpush1.bf16.msra.mxu0 %v20161_v52  ;;  %v20181_v51 = vld [vmem:[#allocation11 + $0x1864] ss:$16 sps:$4 sm:$0xff]   ;;  %v20231_v52 = vld [vmem:[#allocation14 + $0x368] ss:$16 sps:$4 sm:$0xff]  }
 0x73f   : > { %11313 = vmatpush1.bf16.msra.mxu1 %v20164_v55  ;;  %11185 = vmatprep.subr.bf16.mxu0 %v20169_v40  ;;  %v20236_v55 = vld [vmem:[#allocation14 + $0x384] ss:$16 sps:$4 sm:$0xff]   ;;  %v20239_v40 = vld [vmem:[#allocation14 + $0x38c] ss:$16 sps:$4 sm:$0xff]  }
 0x740   : > { %11314 = vmatprep.subr.bf16.mxu1 %v20172_v13  ;;  %11215 = vmatprep.mubr.bf16.mxu0 %v22933_v5  ;;  %v20234_v13 = vld [vmem:[#allocation14 + $0x380] ss:$16 sps:$4 sm:$0xff]  }
 0x741   : > { %11344 = vmatprep.mubr.bf16.mxu1 %v22933_v5 }
 0x742   : > { %11186 = vmatpush1.bf16.msra.mxu0 %v20167_v15  ;;  %v20237_v15 = vld [vmem:[#allocation14 + $0x388] ss:$16 sps:$4 sm:$0xff]  }
 0x743   : > { %11315 = vmatpush1.bf16.msra.mxu1 %v20170_v43  ;;  %11187 = vmatprep.subr.bf16.mxu0 %v20175_v41  ;;  %v20242_v43 = vld [vmem:[#allocation14 + $0x3a4] ss:$16 sps:$4 sm:$0xff]   ;;  %v20245_v41 = vld [vmem:[#allocation14 + $0x3ac] ss:$16 sps:$4 sm:$0xff]  }
 0x744   : > { %11316 = vmatprep.subr.bf16.mxu1 %v20178_v35  ;;  %v20240_v35 = vld [vmem:[#allocation14 + $0x3a0] ss:$16 sps:$4 sm:$0xff]  }
 0x746   : > { %11188 = vmatpush1.bf16.msra.mxu0 %v20173_v21  ;;  %v20243_v21 = vld [vmem:[#allocation14 + $0x3a8] ss:$16 sps:$4 sm:$0xff]  }
 0x747   : > { %11317 = vmatpush1.bf16.msra.mxu1 %v20176_v19  ;;  %11189 = vmatprep.subr.bf16.mxu0 %v20181_v51  ;;  %v20248_v19 = vld [vmem:[#allocation14 + $0x3c4] ss:$16 sps:$4 sm:$0xff]   ;;  %v20251_v51 = vld [vmem:[#allocation14 + $0x3cc] ss:$16 sps:$4 sm:$0xff]  }
 0x748   : > { %11318 = vmatprep.subr.bf16.mxu1 %v20184_v42  ;;  %v20246_v42 = vld [vmem:[#allocation14 + $0x3c0] ss:$16 sps:$4 sm:$0xff]  }
 0x74a   : > { %11190 = vmatpush1.bf16.msra.mxu0 %v20179_v54  ;;  %v20249_v54 = vld [vmem:[#allocation14 + $0x3c8] ss:$16 sps:$4 sm:$0xff]  }
 0x74b   : > { %11319 = vmatpush1.bf16.msra.mxu1 %v20182_v44  ;;  %11191 = vmatprep.subr.bf16.mxu0 %v20187_v28  ;;  %v20254_v44 = vld [vmem:[#allocation14 + $0x3e4] ss:$16 sps:$4 sm:$0xff]   ;;  %v20257_v28 = vld [vmem:[#allocation14 + $0x3ec] ss:$16 sps:$4 sm:$0xff]  }
 0x74c   : > { %11320 = vmatprep.subr.bf16.mxu1 %v20190_v34  ;;  %v20252_v34 = vld [vmem:[#allocation14 + $0x3e0] ss:$16 sps:$4 sm:$0xff]  }
 0x74e   : > { %11192 = vmatpush1.bf16.msra.mxu0 %v20185_v25  ;;  %v20255_v25 = vld [vmem:[#allocation14 + $0x3e8] ss:$16 sps:$4 sm:$0xff]  }
 0x74f   : > { %11321 = vmatpush1.bf16.msra.mxu1 %v20188_v47  ;;  %11193 = vmatprep.subr.bf16.mxu0 %v20193_v17  ;;  %v11367_v47 = vld [vmem:[#allocation12] sm:$0x3] }
 0x750   : > { %11322 = vmatprep.subr.bf16.mxu1 %v20196_v22  ;;  %v11372_v22 = vrot.slane %v11367_v47, %v21980_v29 }
 0x752   : > { %11194 = vmatpush1.bf16.msra.mxu0 %v20191_v58 }
 0x753   : > { %11323 = vmatpush1.bf16.msra.mxu1 %v20194_v6  ;;  %11195 = vmatprep.subr.bf16.mxu0 %v20199_v53  ;;  %v11376_v53 = vrot.slane %v11367_v47, %v21984_v31 }
 0x754   : > { %11324 = vmatprep.subr.bf16.mxu1 %v20202_v36 }
 0x756   : > { %11196 = vmatpush1.bf16.msra.mxu0 %v20197_v30 }
 0x757   : > { %11325 = vmatpush1.bf16.msra.mxu1 %v20200_v26  ;;  %11197 = vmatprep.subr.bf16.mxu0 %v20205_v1 }
 0x758   : > { %11326 = vmatprep.subr.bf16.mxu1 %v20208_v27 }
 0x75a   : > { %11198 = vmatpush1.bf16.msra.mxu0 %v20203_v14 }
 0x75b   : > { %11327 = vmatpush1.bf16.msra.mxu1 %v20206_v7  ;;  %12383 = vmatprep.subr.bf16.mxu0 %v20212_v10 }
 0x75c   : > { %12465 = vmatprep.subr.bf16.mxu1 %v20215_v39 }
 0x75d   : > { %11216 = vmatmul.mubr.bf16.vlgmr.msra.gmra.mrb[16].mxu0 %v22853_v49 }
 0x75e   : > { %11345 = vmatmul.mubr.bf16.vlgmr.msra.gmra.mrb[16].mxu1 %v22853_v49  ;;  %12384 = vmatpush1.bf16.msra.mxu0 %v20210_v18  ;;  %v20225_v49 = vld [vmem:[#allocation14 + $0x348] ss:$16 sps:$4 sm:$0xff]  }
 0x75f   : > { %12466 = vmatpush1.bf16.msra.mxu1 %v20213_v12  ;;  %12385 = vmatprep.subr.bf16.mxu0 %v20218_v20 }
 0x760   : > { %12467 = vmatprep.subr.bf16.mxu1 %v20221_v33 }
 0x762   : > { %12386 = vmatpush1.bf16.msra.mxu0 %v20216_v11 }
 0x763   : > { %12468 = vmatpush1.bf16.msra.mxu1 %v20219_v50  ;;  %12387 = vmatprep.subr.bf16.mxu0 %v20224_v60 }
 0x764   : > { %12469 = vmatprep.subr.bf16.mxu1 %v20227_v46 }
 0x766   : > { %12388 = vmatpush1.bf16.msra.mxu0 %v20222_v48 }
 0x767   : > { %12470 = vmatpush1.bf16.msra.mxu1 %v20225_v49  ;;  %12389 = vmatprep.subr.bf16.mxu0 %v20230_v3 }
 0x768   : > { %12471 = vmatprep.subr.bf16.mxu1 %v20233_v56 }
 0x76a   : > { %12390 = vmatpush1.bf16.msra.mxu0 %v20228_v57 }
 0x76b   : > { %12472 = vmatpush1.bf16.msra.mxu1 %v20231_v52  ;;  %12391 = vmatprep.subr.bf16.mxu0 %v20236_v55 }
 0x76c   : > { %12473 = vmatprep.subr.bf16.mxu1 %v20239_v40 }
 0x76e   : > { %12392 = vmatpush1.bf16.msra.mxu0 %v20234_v13 }
 0x76f   : > { %12474 = vmatpush1.bf16.msra.mxu1 %v20237_v15  ;;  %12393 = vmatprep.subr.bf16.mxu0 %v20242_v43 }
 0x770   : > { %12475 = vmatprep.subr.bf16.mxu1 %v20245_v41 }
 0x772   : > { %12394 = vmatpush1.bf16.msra.mxu0 %v20240_v35 }
 0x773   : > { %12476 = vmatpush1.bf16.msra.mxu1 %v20243_v21  ;;  %12395 = vmatprep.subr.bf16.mxu0 %v20248_v19 }
 0x774   : > { %12477 = vmatprep.subr.bf16.mxu1 %v20251_v51 }
 0x776   : > { %12396 = vmatpush1.bf16.msra.mxu0 %v20246_v42 }
 0x777   : > { %12478 = vmatpush1.bf16.msra.mxu1 %v20249_v54  ;;  %12397 = vmatprep.subr.bf16.mxu0 %v20254_v44 }
 0x778   : > { %12479 = vmatprep.subr.bf16.mxu1 %v20257_v28 }
 0x77a   : > { %12398 = vmatpush1.bf16.msra.mxu0 %v20252_v34 }
 0x77b   : > { %12480 = vmatpush1.bf16.msra.mxu1 %v20255_v25 }
 0x830   : > { %v11217_v17 = vpop.f32.mrb[16].mxu0 }
 0x831   : > { %v11346_v58 = vpop.f32.mrb[16].mxu1  ;;  %v11219_v6 = vpop.f32.mrb[17].mxu0 }
 0x832   : > { %v11363_v36 = vmax.f32 %v11217_v17, %v11346_v58  ;;  %v11348_v30 = vpop.f32.mrb[17].mxu1  ;;  %v11221_v26 = vpop.f32.mrb[18].mxu0 }
 0x833   : > { %v11364_v1 = vmax.f32 %v11219_v6, %v11348_v30  ;;  %v11350_v27 = vpop.f32.mrb[18].mxu1  ;;  %v11223_v14 = vpop.f32.mrb[19].mxu0 }
 0x834   : > { %v11379_v7 = vadd.f32 %v11372_v22, %v11363_v36  ;;  %v11365_v18 = vmax.f32 %v11221_v26, %v11350_v27  ;;  %v11352_v10 = vpop.f32.mrb[19].mxu1 }
 0x835   : > { %v11380_v12 = vadd.f32 %v11376_v53, %v11364_v1  ;;  %v11366_v39 = vmax.f32 %v11223_v14, %v11352_v10 }
 0x836   : > { %11383 = vst [vmem:[#allocation5] sm:$0xff] %v11379_v7  ;;  %v11381_v20 = vadd.f32 %v11372_v22, %v11365_v18 }
 0x837   : > { %11384 = vst [vmem:[#allocation5 + $0x8] sm:$0xff] %v11380_v12  ;;  %v11382_v33 = vadd.f32 %v11376_v53, %v11366_v39  ;;  %v20258_v39 = vld [vmem:[#allocation14 + $0x400] ss:$16 sps:$4 sm:$0xff]  }
 0x838   : > { %11385 = vst [vmem:[#allocation5 + $0x20] sm:$0xff] %v11381_v20  ;;  %v20260_v20 = vld [vmem:[#allocation14 + $0x404] ss:$16 sps:$4 sm:$0xff]  }
 0x839   : > { %11386 = vst [vmem:[#allocation5 + $0x28] sm:$0xff] %v11382_v33  ;;  %v20261_v33 = vld [vmem:[#allocation14 + $0x408] ss:$16 sps:$4 sm:$0xff]   ;;  %12399 = vmatprep.subr.bf16.mxu0 %v20260_v20  ;;  %v20302_v20 = vld [vmem:[#allocation14 + $0x4e4] ss:$16 sps:$4 sm:$0xff]  }
 0x83a   : > { %12400 = vmatpush1.bf16.msra.mxu0 %v20258_v39  ;;  %v20297_v39 = vld [vmem:[#allocation14 + $0x4c8] ss:$16 sps:$4 sm:$0xff]  }
 0x83e   : > { %v11458_v11 = vld [vmem:[#allocation5 + $0x4] ss:$8 sm:$0x3]  ;;  %v11459_v50 = vld [vmem:[#allocation5 + $0x5] ss:$8 sm:$0x3] }
 0x83f   : > { %v11460_v60 = vmax.f32 %v11458_v11, %v11459_v50  ;;  %v11387_v46 = vld [vmem:[#allocation5] ss:$8 sm:$0x3]  ;;  %v11388_v48 = vld [vmem:[#allocation5 + $0x1] ss:$8 sm:$0x3] }
 0x840   : > { %v11389_v49 = vmax.f32 %v11387_v46, %v11388_v48  ;;  %v11600_v3 = vld [vmem:[#allocation5 + $0x24] ss:$8 sm:$0x3]  ;;  %v11601_v56 = vld [vmem:[#allocation5 + $0x25] ss:$8 sm:$0x3] }
 0x841   : > { %v11465_v57 = vrot.slane %v11460_v60, %v21980_v29  ;;  %v11469_v52 = vrot.slane %v11460_v60, %v21984_v31  ;;  %v11602_v55 = vmax.f32 %v11600_v3, %v11601_v56  ;;  %v11529_v40 = vld [vmem:[#allocation5 + $0x20] ss:$8 sm:$0x3]  ;;  %v11530_v13 = vld [vmem:[#allocation5 + $0x21] ss:$8 sm:$0x3] }
 0x842   : > { %v11394_v15 = vrot.slane %v11389_v49, %v21980_v29  ;;  %v11398_v43 = vrot.slane %v11389_v49, %v21984_v31  ;;  %v11531_v41 = vmax.f32 %v11529_v40, %v11530_v13  ;;  %v11563_v35 = vld [vmem:[#allocation5 + $0x22] ss:$8 sm:$0x3]  ;;  %v11564_v21 = vld [vmem:[#allocation5 + $0x23] ss:$8 sm:$0x3] }
 0x843   : > { %v18358_v19 = vpack.c.bf16 %v11469_v52, %v11465_v57  ;;  %v11607_v51 = vrot.slane %v11602_v55, %v21980_v29  ;;  %v11611_v42 = vrot.slane %v11602_v55, %v21984_v31  ;;  %v11565_v54 = vmax.f32 %v11563_v35, %v11564_v21  ;;  %v11633_v44 = vld [vmem:[#allocation5 + $0x26] ss:$8 sm:$0x3]  ;;  %v11634_v28 = vld [vmem:[#allocation5 + $0x27] ss:$8 sm:$0x3] }
 0x844   : > { %v18356_v34 = vpack.c.bf16 %v11398_v43, %v11394_v15  ;;  %v11536_v25 = vrot.slane %v11531_v41, %v21980_v29  ;;  %v11540_v47 = vrot.slane %v11531_v41, %v21984_v31  ;;  %v11635_v17 = vmax.f32 %v11633_v44, %v11634_v28  ;;  %v11421_v22 = vld [vmem:[#allocation5 + $0x2] ss:$8 sm:$0x3]  ;;  %v11422_v58 = vld [vmem:[#allocation5 + $0x3] ss:$8 sm:$0x3] }
 0x845   : > { %v11479_v6 = vrot.slane %v18358_v19, 6  ;;  %v11570_v53 = vrot.slane %v11565_v54, %v21980_v29  ;;  %v11574_v36 = vrot.slane %v11565_v54, %v21984_v31  ;;  %v11492_v30 = vld [vmem:[#allocation5 + $0x6] ss:$8 sm:$0x3]  ;;  %v11423_v10 = vmax.f32 %v11421_v22, %v11422_v58  ;;  %v20263_v60 = vld [vmem:[#allocation14 + $0x40c] ss:$16 sps:$4 sm:$0xff]  }
 0x846   : > { %v11408_v26 = vrot.slane %v18356_v34, 7  ;;  %v18360_v1 = vpack.c.bf16 %v11540_v47, %v11536_v25  ;;  %v11640_v27 = vrot.slane %v11635_v17, %v21980_v29  ;;  %v11644_v14 = vrot.slane %v11635_v17, %v21984_v31  ;;  %v11493_v7 = vld [vmem:[#allocation5 + $0x7] ss:$8 sm:$0x3]  ;;  %12481 = vmatprep.subr.bf16.mxu1 %v20263_v60  ;;  %v20266_v15 = vld [vmem:[#allocation14 + $0x424] ss:$16 sps:$4 sm:$0xff]  }
 0x847   : > { %11480 = vrot.lane.b32.xlu0 %v11479_v6, %s21412_s22  ;;  %v18361_v18 = vpack.c.bf16 %v11574_v36, %v11570_v53  ;;  %v11494_v12 = vmax.f32 %v11492_v30, %v11493_v7  ;;  %v18362_v11 = vpack.c.bf16 %v11611_v42, %v11607_v51  ;;  %v11428_v48 = vrot.slane %v11423_v10, %v21980_v29  ;;  %v20264_v52 = vld [vmem:[#allocation14 + $0x420] ss:$16 sps:$4 sm:$0xff]   ;;  %v20267_v43 = vld [vmem:[#allocation14 + $0x428] ss:$16 sps:$4 sm:$0xff]   ;;  %v20269_v35 = vld [vmem:[#allocation14 + $0x42c] ss:$16 sps:$4 sm:$0xff]  }
 0x848   : > { %11409 = vrot.lane.b32.xlu1 %v11408_v26, %s21412_s22  ;;  %v18363_v50 = vpack.c.bf16 %v11644_v14, %v11640_v27  ;;  %v11432_v49 = vrot.slane %v11423_v10, %v21984_v31  ;;  %v11550_v56 = vrot.slane %v18360_v1, 5  ;;  %12482 = vmatpush1.bf16.msra.mxu1 %v20261_v33  ;;  %v20272_v51 = vld [vmem:[#allocation14 + $0x444] ss:$16 sps:$4 sm:$0xff]   ;;  %v20270_v54 = vld [vmem:[#allocation14 + $0x440] ss:$16 sps:$4 sm:$0xff]  }
 0x849   : > { %v11585_v46 = vshll.u32 %v18361_v18, 16  ;;  %v11499_v3 = vrot.slane %v11494_v12, %v21980_v29  ;;  %v11503_v57 = vrot.slane %v11494_v12, %v21984_v31  ;;  %12401 = vmatprep.subr.bf16.mxu0 %v20266_v15  ;;  %12483 = vmatprep.subr.bf16.mxu1 %v20269_v35  ;;  %v20275_v44 = vld [vmem:[#allocation14 + $0x44c] ss:$16 sps:$4 sm:$0xff]   ;;  %v20273_v34 = vld [vmem:[#allocation14 + $0x448] ss:$16 sps:$4 sm:$0xff]  }
 0x84a   : > { %v11655_v40 = vshll.u32 %v18363_v50, 16  ;;  %v18357_v13 = vpack.c.bf16 %v11432_v49, %v11428_v48  ;;  %12402 = vmatpush1.bf16.msra.mxu0 %v20264_v52  ;;  %v20278_v25 = vld [vmem:[#allocation14 + $0x464] ss:$16 sps:$4 sm:$0xff]   ;;  %v20281_v17 = vld [vmem:[#allocation14 + $0x46c] ss:$16 sps:$4 sm:$0xff]  }
 0x84b   : > { %11621 = vrot.lane.b32.xlu0 %v18362_v11, %s21412_s22  ;;  %v11587_v55 = vrot.slane %v11585_v46, 5  ;;  %v18359_v41 = vpack.c.bf16 %v11503_v57, %v11499_v3  ;;  %12403 = vmatprep.subr.bf16.mxu0 %v20272_v51  ;;  %v20276_v58 = vld [vmem:[#allocation14 + $0x460] ss:$16 sps:$4 sm:$0xff]   ;;  %v20279_v6 = vld [vmem:[#allocation14 + $0x468] ss:$16 sps:$4 sm:$0xff]  }
 0x84c   : > { %11551 = vrot.lane.b32.xlu1 %v11550_v56, %s21412_s22  ;;  %v11443_v19 = vshll.u32 %v18357_v13, 16  ;;  %12484 = vmatpush1.bf16.msra.mxu1 %v20267_v43  ;;  %v20284_v53 = vld [vmem:[#allocation14 + $0x484] ss:$16 sps:$4 sm:$0xff]   ;;  %v20287_v36 = vld [vmem:[#allocation14 + $0x48c] ss:$16 sps:$4 sm:$0xff]  }
 0x84d   : > { %v18979_v21 = vpack.i.bf16 %v11655_v40, %v11587_v55  ;;  %v11514_v42 = vshll.u32 %v18359_v41, 16  ;;  %12485 = vmatprep.subr.bf16.mxu1 %v20275_v44  ;;  %v20282_v30 = vld [vmem:[#allocation14 + $0x480] ss:$16 sps:$4 sm:$0xff]   ;;  %v20285_v26 = vld [vmem:[#allocation14 + $0x488] ss:$16 sps:$4 sm:$0xff]  }
 0x84e   : > { %v11445_v28 = vrot.slane %v11443_v19, 7  ;;  %12404 = vmatpush1.bf16.msra.mxu0 %v20270_v54  ;;  %v20290_v1 = vld [vmem:[#allocation14 + $0x4a4] ss:$16 sps:$4 sm:$0xff]   ;;  %v20293_v27 = vld [vmem:[#allocation14 + $0x4ac] ss:$16 sps:$4 sm:$0xff]  }
 0x84f   : > { %18980 = vrot.lane.b32.xlu0 %v18979_v21, %s21412_s22  ;;  %v11516_v47 = vrot.slane %v11514_v42, 6  ;;  %12405 = vmatprep.subr.bf16.mxu0 %v20278_v25  ;;  %v20288_v14 = vld [vmem:[#allocation14 + $0x4a0] ss:$16 sps:$4 sm:$0xff]   ;;  %v20291_v7 = vld [vmem:[#allocation14 + $0x4a8] ss:$16 sps:$4 sm:$0xff]  }
 0x850   : > { %12486 = vmatpush1.bf16.msra.mxu1 %v20273_v34  ;;  %v20296_v18 = vld [vmem:[#allocation14 + $0x4c4] ss:$16 sps:$4 sm:$0xff]   ;;  %v20299_v10 = vld [vmem:[#allocation14 + $0x4cc] ss:$16 sps:$4 sm:$0xff]   ;;  %v20294_v12 = vld [vmem:[#allocation14 + $0x4c0] ss:$16 sps:$4 sm:$0xff]  }
 0x851   : > { %v18974_v22 = vpack.i.bf16 %v11516_v47, %v11445_v28  ;;  %12487 = vmatprep.subr.bf16.mxu1 %v20281_v17  ;;  %v20305_v33 = vld [vmem:[#allocation14 + $0x4ec] ss:$16 sps:$4 sm:$0xff]   ;;  %v20300_v11 = vld [vmem:[#allocation14 + $0x4e0] ss:$16 sps:$4 sm:$0xff]   ;;  %v20303_v50 = vld [vmem:[#allocation14 + $0x4e8] ss:$16 sps:$4 sm:$0xff]  }
 0x852   : > { %12406 = vmatpush1.bf16.msra.mxu0 %v20276_v58  ;;  %v20309_v60 = vld [vmem:[#allocation14 + $0x504] ss:$16 sps:$4 sm:$0xff]   ;;  %v20312_v46 = vld [vmem:[#allocation14 + $0x50c] ss:$16 sps:$4 sm:$0xff]   ;;  %v11418_v57 = vld [vmem:[#allocation4 + $0x8] sm:$0x2] }
 0x853   : > { %18975 = vrot.lane.b32.xlu1 %v18974_v22, %s21412_s22  ;;  %12407 = vmatprep.subr.bf16.mxu0 %v20284_v53  ;;  %v11489_v48 = vld [vmem:[#allocation4 + $0x8] sm:$0x4]  ;;  %v11486_v3 = vld [vmem:[#allocation4] sm:$0x44]  ;;  %v11415_v55 = vld [vmem:[#allocation4] sm:$0x22] }
 0x854   : > { %12488 = vmatpush1.bf16.msra.mxu1 %v20279_v6  ;;  %v11630_v21 = vld [vmem:[#allocation4 + $0x14] sm:$0x1]  ;;  %v11627_v42 = vld [vmem:[#allocation4 + $0xc] sm:$0x11] }
 0x855   : > { %12489 = vmatprep.subr.bf16.mxu1 %v20287_v36 }
 0x856   : > { %12408 = vmatpush1.bf16.msra.mxu0 %v20282_v30 }
 0x857   : > { %12409 = vmatprep.subr.bf16.mxu0 %v20290_v1 }
 0x858   : > { %12490 = vmatpush1.bf16.msra.mxu1 %v20285_v26 }
 0x859   : > { %12491 = vmatprep.subr.bf16.mxu1 %v20293_v27 }
 0x85a   : > { %12410 = vmatpush1.bf16.msra.mxu0 %v20288_v14 }
 0x85b   : > { %12411 = vmatprep.subr.bf16.mxu0 %v20296_v18 }
 0x85c   : > { %12492 = vmatpush1.bf16.msra.mxu1 %v20291_v7 }
 0x85d   : > { %12493 = vmatprep.subr.bf16.mxu1 %v20299_v10 }
 0x85e   : > { %12412 = vmatpush1.bf16.msra.mxu0 %v20294_v12 }
 0x85f   : > { %12413 = vmatprep.subr.bf16.mxu0 %v20302_v20 }
 0x860   : > { %12494 = vmatpush1.bf16.msra.mxu1 %v20297_v39 }
 0x861   : > { %12495 = vmatprep.subr.bf16.mxu1 %v20305_v33 }
 0x862   : > { %12414 = vmatpush1.bf16.msra.mxu0 %v20300_v11 }
 0x863   : > { %12424 = vmatprep.subr.bf16.mxu0 %v20309_v60 }
 0x864   : > { %12496 = vmatpush1.bf16.msra.mxu1 %v20303_v50 }
 0x865   : > { %12506 = vmatprep.subr.bf16.mxu1 %v20312_v46 }
 0x8b9   : > { %v11481_v49 = vpop.permute.xlu0 %11480 }
 0x8ba   : > { %v11482_v56 = vrot.slane %v11481_v49, 4  ;;  %v11410_v52 = vpop.permute.xlu1 %11409 }
 0x8bb   : > { %v11411_v40 = vrot.slane %v11410_v52, 4 }
 0x8bc   : > { %v11483_v13 = vsel %vm23422_vm6, %v11482_v56, %v11481_v49  ;;  %v11490_v15 = vsel %vm23351_vm8, %v11482_v56, %v11489_v48  ;;  %vm23427_vm8 = vmmov %vm23424_vm5 }
 0x8bd   : > { %v11487_v43 = vsel %vm23423_vm15, %v11483_v13, %v11486_v3  ;;  %11491 = vst [vmem:[#allocation4 + $0x8] sm:$0x4] %v11490_v15  ;;  %v11412_v41 = vsel %vm23424_vm5, %v11411_v40, %v11410_v52  ;;  %v11419_v35 = vsel %vm23425_vm13, %v11411_v40, %v11418_v57  ;;  %v11622_v19 = vpop.permute.xlu0 %11621  ;;  %vm23435_vm6 = vmmov %vm23430_vm3  ;;  %vm23436_vm15 = vnez %v23275_v38  ;;  %v20307_v13 = vld [vmem:[#allocation14 + $0x500] ss:$16 sps:$4 sm:$0xff]   ;;  %v20310_v15 = vld [vmem:[#allocation14 + $0x508] ss:$16 sps:$4 sm:$0xff]  }
 0x8be   : > { %11488 = vst [vmem:[#allocation4] sm:$0x44] %v11487_v43  ;;  %v11416_v51 = vsel %vm23426_vm7, %v11412_v41, %v11415_v55  ;;  %11420 = vst [vmem:[#allocation4 + $0x8] sm:$0x2] %v11419_v35  ;;  %v11623_v54 = vrot.slane %v11622_v19, 4  ;;  %v11552_v44 = vpop.permute.xlu1 %11551  ;;  %vm23440_vm7 = vnez %v23279_v59 }
 0x8bf   : > { %11417 = vst [vmem:[#allocation4] sm:$0x22] %v11416_v51  ;;  %v11553_v28 = vrot.slane %v11552_v44, 4  ;;  %vm23437_vm5 = vmmov %vm23430_vm3  ;;  %v20316_v41 = vld [vmem:[#allocation14 + $0x524] ss:$16 sps:$4 sm:$0xff]  }
 0x8c0   : > { %v11624_v34 = vsel %vm23427_vm8, %v11623_v54, %v11622_v19  ;;  %v11631_v24 = vsel %vm23428_vm2, %v11623_v54, %v11630_v21  ;;  %vm23439_vm13 = vmmov %vm23430_vm3  ;;  %vm23441_vm8 = vnez %v23282_v62  ;;  %v20319_v35 = vld [vmem:[#allocation14 + $0x52c] ss:$16 sps:$4 sm:$0xff]   ;;  %v20314_v21 = vld [vmem:[#allocation14 + $0x520] ss:$16 sps:$4 sm:$0xff]  }
 0x8c1   : > { %v11628_v25 = vsel %vm23429_vm14, %v11624_v34, %v11627_v42  ;;  %11632 = vst [vmem:[#allocation4 + $0x14] sm:$0x1] %v11631_v24  ;;  %v11554_v23 = vsel %vm23430_vm3, %v11553_v28, %v11552_v44  ;;  %v11561_v47 = vsel %vm23431_vm11, %v11553_v28, %v11560_v16  ;;  %v18981_v17 = vpop.permute.xlu0 %18980  ;;  %v20317_v19 = vld [vmem:[#allocation14 + $0x528] ss:$16 sps:$4 sm:$0xff]   ;;  %v20322_v51 = vld [vmem:[#allocation14 + $0x544] ss:$16 sps:$4 sm:$0xff]  }
 0x8c2   : > { %11629 = vst [vmem:[#allocation4 + $0xc] sm:$0x11] %v11628_v25  ;;  %v11558_v22 = vsel %vm23432_vm0, %v11554_v23, %v11557_v63  ;;  %11562 = vst [vmem:[#allocation4 + $0x8] sm:$0x8] %v11561_v47  ;;  %v18983_v58 = vunpack.i.h.bf16 %v18981_v17  ;;  %v18982_v6 = vunpack.i.l.bf16 %v18981_v17  ;;  %v20325_v42 = vld [vmem:[#allocation14 + $0x54c] ss:$16 sps:$4 sm:$0xff]  }
 0x8c3   : > { %11559 = vst [vmem:[#allocation4] sm:$0x88] %v11558_v22  ;;  %v20320_v54 = vld [vmem:[#allocation14 + $0x540] ss:$16 sps:$4 sm:$0xff]   ;;  %v20323_v16 = vld [vmem:[#allocation14 + $0x548] ss:$16 sps:$4 sm:$0xff]  }
 0x8c4   : > { %v11659_v45 = vrot.slane %v18983_v58, 4  ;;  %v11590_v53 = vrot.slane %v18982_v6, 4  ;;  %v11526_v30 = vld [vmem:[#allocation4 + $0x8] sm:$0x4]  ;;  %v20328_v44 = vld [vmem:[#allocation14 + $0x564] ss:$16 sps:$4 sm:$0xff]  }
 0x8c5   : > { %v18976_v36 = vpop.permute.xlu1 %18975  ;;  %v11455_v61 = vld [vmem:[#allocation4 + $0x8] sm:$0x2]  ;;  %v11523_v0 = vld [vmem:[#allocation4] sm:$0x44]  ;;  %v20331_v63 = vld [vmem:[#allocation14 + $0x56c] ss:$16 sps:$4 sm:$0xff]  }
 0x8c6   : > { %v18978_v26 = vunpack.i.h.bf16 %v18976_v36  ;;  %v18977_v1 = vunpack.i.l.bf16 %v18976_v36  ;;  %v11452_v14 = vld [vmem:[#allocation4] sm:$0x22]  ;;  %v11660_v18 = vsel %vm23433_vm12, %v11659_v45, %v18983_v58  ;;  %v11591_v33 = vsel %vm23435_vm6, %v11590_v53, %v18982_v6  ;;  %v20329_v34 = vld [vmem:[#allocation14 + $0x568] ss:$16 sps:$4 sm:$0xff]   ;;  %v20337_v25 = vld [vmem:[#allocation14 + $0x58c] ss:$16 sps:$4 sm:$0xff]  }
 0x8c7   : > { %v20326_v28 = vld [vmem:[#allocation14 + $0x560] ss:$16 sps:$4 sm:$0xff]   ;;  %v20334_v24 = vld [vmem:[#allocation14 + $0x584] ss:$16 sps:$4 sm:$0xff]   ;;  %v20335_v47 = vld [vmem:[#allocation14 + $0x588] ss:$16 sps:$4 sm:$0xff]  }
 0x8c8   : > { %v11666_v27 = vld [vmem:[#allocation4 + $0x14] sm:$0x1]  ;;  %v11519_v12 = vrot.slane %v18978_v26, 4  ;;  %v11448_v39 = vrot.slane %v18977_v1, 4  ;;  %v20332_v23 = vld [vmem:[#allocation14 + $0x580] ss:$16 sps:$4 sm:$0xff]  }
 0x8c9   : > { %v11663_v7 = vld [vmem:[#allocation4 + $0xc] sm:$0x11]  ;;  %v11667_v9 = vsel %vm22669_vm4, %v11659_v45, %v11666_v27  ;;  %v11597_v10 = vld [vmem:[#allocation4 + $0x8] sm:$0x8]  ;;  %vm23438_vm4 = vnez %v23355_v2  ;;  %v20340_v17 = vld [vmem:[#allocation14 + $0x5a4] ss:$16 sps:$4 sm:$0xff]  }
 0x8ca   : > { %v11664_v20 = vsel %vm23434_vm10, %v11660_v18, %v11663_v7  ;;  %11668 = vst [vmem:[#allocation4 + $0x14] sm:$0x1] %v11667_v9  ;;  %v11594_v11 = vld [vmem:[#allocation4] sm:$0x88]  ;;  %v11598_v50 = vsel %vm22693_vm1, %v11590_v53, %v11597_v10  ;;  %v11520_v4 = vsel %vm23437_vm5, %v11519_v12, %v18978_v26  ;;  %v11527_v46 = vsel %vm23438_vm4, %v11519_v12, %v11526_v30  ;;  %v20343_v22 = vld [vmem:[#allocation14 + $0x5ac] ss:$16 sps:$4 sm:$0xff]  }
 0x8cb   : > { %11665 = vst [vmem:[#allocation4 + $0xc] sm:$0x11] %v11664_v20  ;;  %v11595_v60 = vsel %vm23436_vm15, %v11591_v33, %v11594_v11  ;;  %11599 = vst [vmem:[#allocation4 + $0x8] sm:$0x8] %v11598_v50  ;;  %v11449_v37 = vsel %vm23439_vm13, %v11448_v39, %v18977_v1  ;;  %v11524_v48 = vsel %vm23440_vm7, %v11520_v4, %v11523_v0  ;;  %v20338_v45 = vld [vmem:[#allocation14 + $0x5a0] ss:$16 sps:$4 sm:$0xff]  }
 0x8cc   : > { %11596 = vst [vmem:[#allocation4] sm:$0x88] %v11595_v60  ;;  %11528 = vst [vmem:[#allocation4 + $0x8] sm:$0x4] %v11527_v46  ;;  %v11453_v32 = vsel %vm23441_vm8, %v11449_v37, %v11452_v14  ;;  %v11456_v38 = vsel %vm22599_vm9, %v11448_v39, %v11455_v61  ;;  %v20341_v53 = vld [vmem:[#allocation14 + $0x5a8] ss:$16 sps:$4 sm:$0xff]  }
 0x8cd   : > { %11525 = vst [vmem:[#allocation4] sm:$0x44] %v11524_v48  ;;  %11454 = vst [vmem:[#allocation4] sm:$0x22] %v11453_v32  ;;  %v20346_v36 = vld [vmem:[#allocation14 + $0x5c4] ss:$16 sps:$4 sm:$0xff]  }
 0x8ce   : > { %11457 = vst [vmem:[#allocation4 + $0x8] sm:$0x2] %v11456_v38  ;;  %v20349_v61 = vld [vmem:[#allocation14 + $0x5cc] ss:$16 sps:$4 sm:$0xff]   ;;  %v20344_v26 = vld [vmem:[#allocation14 + $0x5c0] ss:$16 sps:$4 sm:$0xff]  }
 0x8cf   : > { %v20347_v1 = vld [vmem:[#allocation14 + $0x5c8] ss:$16 sps:$4 sm:$0xff]   ;;  %v20352_v27 = vld [vmem:[#allocation14 + $0x5e4] ss:$16 sps:$4 sm:$0xff]   ;;  %v20355_v14 = vld [vmem:[#allocation14 + $0x5ec] ss:$16 sps:$4 sm:$0xff]  }
 0x8d0   : > { %v20350_v7 = vld [vmem:[#allocation14 + $0x5e0] ss:$16 sps:$4 sm:$0xff]   ;;  %v20353_v18 = vld [vmem:[#allocation14 + $0x5e8] ss:$16 sps:$4 sm:$0xff]   ;;  %v20359_v10 = vld [vmem:[#allocation14 + $0x4] ss:$16 sps:$4 sm:$0xff]  }
 0x8d1   : > { %v23015_v6 = vld [vmem:[#allocation4 + $0x14] sm:$0x1]  ;;  %v20362_v12 = vld [vmem:[#allocation14 + $0xc] ss:$16 sps:$4 sm:$0xff]   ;;  %v20357_v20 = vld [vmem:[#allocation14] ss:$16 sps:$4 sm:$0xff]  }
 0x8d2   : > { %v23003_v49 = vld [vmem:[#allocation4 + $0xc] sm:$0x11]  ;;  %v20360_v11 = vld [vmem:[#allocation14 + $0x8] ss:$16 sps:$4 sm:$0xff]   ;;  %v20366_v60 = vld [vmem:[#allocation14 + $0x24] ss:$16 sps:$4 sm:$0xff]  }
 0x8d3   : > { %v20369_v4 = vld [vmem:[#allocation14 + $0x2c] ss:$16 sps:$4 sm:$0xff]   ;;  %v20364_v46 = vld [vmem:[#allocation14 + $0x20] ss:$16 sps:$4 sm:$0xff]   ;;  %v20367_v37 = vld [vmem:[#allocation14 + $0x28] ss:$16 sps:$4 sm:$0xff]  }
 0x8d4   : > { %v23005_v2 = vld [vmem:[#allocation4] sm:$0xff]  ;;  %v20375_v32 = vld [vmem:[#allocation14 + $0x4c] ss:$16 sps:$4 sm:$0xff]   ;;  %vm21414_vm9 = vmmov 0  }
 0x8d5   : > { %v17754_v3 = vcombine.high %v23005_v2, %v23003_v49  ;;  %v17753_v59 = vcombine.low %v23005_v2, %v23003_v49  ;;  %v23013_v58 = vld [vmem:[#allocation4 + $0x8] sm:$0xf]  ;;  %v17853_v50 = vcombine.high %v23005_v2, %v23005_v2  ;;  %v20372_v48 = vld [vmem:[#allocation14 + $0x44] ss:$16 sps:$4 sm:$0xff]   ;;  %v20370_v38 = vld [vmem:[#allocation14 + $0x40] ss:$16 sps:$4 sm:$0xff]  }
 0x8d6   : > { %v17755_v30 = vcombine.low %v23013_v58, %v23015_v6 }
 0x8d7   : > { %v11889_v56 = vshll.u32 %v17754_v3, 16  ;;  %v11882_v57 = vshll.u32 %v17753_v59, 16  ;;  %v11887_v62 = vshrl.u32 %v17754_v3, 16  ;;  %v11880_v55 = vshrl.u32 %v17753_v59, 16  ;;  %v20373_v3 = vld [vmem:[#allocation14 + $0x48] ss:$16 sps:$4 sm:$0xff]  }
 0x8d8   : > { %v11896_v0 = vshll.u32 %v17755_v30, 16  ;;  %v11894_v39 = vshrl.u32 %v17755_v30, 16  ;;  %v20378_v59 = vld [vmem:[#allocation14 + $0x64] ss:$16 sps:$4 sm:$0xff]   ;;  %v20429_v30 = vld [vmem:[#allocation14 + $0x16c] ss:$16 sps:$4 sm:$0xff]  }
 0x8d9   : > { %v11891_v52 = vrot.slane %v11889_v56, 1  ;;  %v11884_v8 = vrot.slane %v11882_v57, 1  ;;  %v20381_v56 = vld [vmem:[#allocation14 + $0x6c] ss:$16 sps:$4 sm:$0xff]   ;;  %v20376_v57 = vld [vmem:[#allocation14 + $0x60] ss:$16 sps:$4 sm:$0xff]  }
 0x8da   : > { %v11898_v9 = vrot.slane %v11896_v0, 1  ;;  %v20430_v0 = vld [vmem:[#allocation14 + $0x180] ss:$16 sps:$4 sm:$0xff]  }
 0x8db   : > { %v11892_v40 = vor.u32 %v11891_v52, %v11887_v62  ;;  %v11885_v43 = vor.u32 %v11884_v8, %v11880_v55  ;;  %v20379_v62 = vld [vmem:[#allocation14 + $0x68] ss:$16 sps:$4 sm:$0xff]   ;;  %v20384_v52 = vld [vmem:[#allocation14 + $0x84] ss:$16 sps:$4 sm:$0xff]   ;;  %v20387_v55 = vld [vmem:[#allocation14 + $0x8c] ss:$16 sps:$4 sm:$0xff]  }
 0x8dc   : > { %v11899_v33 = vor.u32 %v11898_v9, %v11894_v39  ;;  %v20382_v8 = vld [vmem:[#allocation14 + $0x80] ss:$16 sps:$4 sm:$0xff]   ;;  %v20441_v9 = vld [vmem:[#allocation14 + $0x1ac] ss:$16 sps:$4 sm:$0xff]   ;;  %v20444_v39 = vld [vmem:[#allocation14 + $0x1c4] ss:$16 sps:$4 sm:$0xff]  }
 0x8dd   : > { %12415 = vmatprep.mubr.bf16.mxu0 %v11892_v40  ;;  %12497 = vmatprep.mubr.bf16.mxu1 %v11892_v40  ;;  %v20385_v40 = vld [vmem:[#allocation14 + $0x88] ss:$16 sps:$4 sm:$0xff]  }
 0x8de   : > { %12416 = vmatmul.mubr.bf16.vlgmr.msra.gmra.mrb[20].mxu0 %v11885_v43  ;;  %12498 = vmatmul.mubr.bf16.vlgmr.msra.gmra.mrb[20].mxu1 %v11885_v43  ;;  %v20388_v43 = vld [vmem:[#allocation14 + $0xa0] ss:$16 sps:$4 sm:$0xff]  }
 0x8df   : > { %12425 = vmatpush1.bf16.msra.mxu0 %v20307_v13  ;;  %12507 = vmatpush1.bf16.msra.mxu1 %v20310_v15  ;;  %v20390_v13 = vld [vmem:[#allocation14 + $0xa4] ss:$16 sps:$4 sm:$0xff]   ;;  %v20393_v15 = vld [vmem:[#allocation14 + $0xac] ss:$16 sps:$4 sm:$0xff]  }
 0x8e0   : > { %12426 = vmatprep.subr.bf16.mxu0 %v20316_v41  ;;  %12508 = vmatprep.subr.bf16.mxu1 %v20319_v35  ;;  %v20391_v41 = vld [vmem:[#allocation14 + $0xa8] ss:$16 sps:$4 sm:$0xff]   ;;  %v20396_v35 = vld [vmem:[#allocation14 + $0xc4] ss:$16 sps:$4 sm:$0xff]  }
 0x8e1   : > { %12456 = vmatprep.mubr.bf16.mxu0 %v22933_v5  ;;  %12538 = vmatprep.mubr.bf16.mxu1 %v22933_v5 }
 0x8e3   : > { %12427 = vmatpush1.bf16.msra.mxu0 %v20314_v21  ;;  %12509 = vmatpush1.bf16.msra.mxu1 %v20317_v19  ;;  %v20399_v21 = vld [vmem:[#allocation14 + $0xcc] ss:$16 sps:$4 sm:$0xff]   ;;  %v20394_v19 = vld [vmem:[#allocation14 + $0xc0] ss:$16 sps:$4 sm:$0xff]  }
 0x8e4   : > { %12428 = vmatprep.subr.bf16.mxu0 %v20322_v51  ;;  %12510 = vmatprep.subr.bf16.mxu1 %v20325_v42  ;;  %v20397_v51 = vld [vmem:[#allocation14 + $0xc8] ss:$16 sps:$4 sm:$0xff]   ;;  %v20402_v42 = vld [vmem:[#allocation14 + $0xe4] ss:$16 sps:$4 sm:$0xff]  }
 0x8e7   : > { %12429 = vmatpush1.bf16.msra.mxu0 %v20320_v54  ;;  %12511 = vmatpush1.bf16.msra.mxu1 %v20323_v16  ;;  %v20405_v54 = vld [vmem:[#allocation14 + $0xec] ss:$16 sps:$4 sm:$0xff]   ;;  %v20400_v16 = vld [vmem:[#allocation14 + $0xe0] ss:$16 sps:$4 sm:$0xff]  }
 0x8e8   : > { %12430 = vmatprep.subr.bf16.mxu0 %v20328_v44  ;;  %12512 = vmatprep.subr.bf16.mxu1 %v20331_v63  ;;  %v20403_v44 = vld [vmem:[#allocation14 + $0xe8] ss:$16 sps:$4 sm:$0xff]   ;;  %v20408_v63 = vld [vmem:[#allocation14 + $0x104] ss:$16 sps:$4 sm:$0xff]  }
 0x8eb   : > { %12431 = vmatpush1.bf16.msra.mxu0 %v20326_v28  ;;  %12513 = vmatpush1.bf16.msra.mxu1 %v20329_v34  ;;  %v20411_v28 = vld [vmem:[#allocation14 + $0x10c] ss:$16 sps:$4 sm:$0xff]   ;;  %v20406_v34 = vld [vmem:[#allocation14 + $0x100] ss:$16 sps:$4 sm:$0xff]  }
 0x8ec   : > { %12432 = vmatprep.subr.bf16.mxu0 %v20334_v24  ;;  %12514 = vmatprep.subr.bf16.mxu1 %v20337_v25  ;;  %v20409_v24 = vld [vmem:[#allocation14 + $0x108] ss:$16 sps:$4 sm:$0xff]   ;;  %v20414_v25 = vld [vmem:[#allocation14 + $0x124] ss:$16 sps:$4 sm:$0xff]  }
 0x8ef   : > { %12433 = vmatpush1.bf16.msra.mxu0 %v20332_v23  ;;  %12515 = vmatpush1.bf16.msra.mxu1 %v20335_v47  ;;  %v20417_v23 = vld [vmem:[#allocation14 + $0x12c] ss:$16 sps:$4 sm:$0xff]   ;;  %v20412_v47 = vld [vmem:[#allocation14 + $0x120] ss:$16 sps:$4 sm:$0xff]  }
 0x8f0   : > { %12434 = vmatprep.subr.bf16.mxu0 %v20340_v17  ;;  %12516 = vmatprep.subr.bf16.mxu1 %v20343_v22  ;;  %v20415_v17 = vld [vmem:[#allocation14 + $0x128] ss:$16 sps:$4 sm:$0xff]   ;;  %v20420_v22 = vld [vmem:[#allocation14 + $0x144] ss:$16 sps:$4 sm:$0xff]  }
 0x8f3   : > { %12435 = vmatpush1.bf16.msra.mxu0 %v20338_v45  ;;  %12517 = vmatpush1.bf16.msra.mxu1 %v20341_v53  ;;  %v20423_v45 = vld [vmem:[#allocation14 + $0x14c] ss:$16 sps:$4 sm:$0xff]   ;;  %v20418_v53 = vld [vmem:[#allocation14 + $0x140] ss:$16 sps:$4 sm:$0xff]  }
 0x8f4   : > { %12436 = vmatprep.subr.bf16.mxu0 %v20346_v36  ;;  %12518 = vmatprep.subr.bf16.mxu1 %v20349_v61  ;;  %v20421_v36 = vld [vmem:[#allocation14 + $0x148] ss:$16 sps:$4 sm:$0xff]   ;;  %v20426_v61 = vld [vmem:[#allocation14 + $0x164] ss:$16 sps:$4 sm:$0xff]  }
 0x8f7   : > { %12437 = vmatpush1.bf16.msra.mxu0 %v20344_v26  ;;  %12519 = vmatpush1.bf16.msra.mxu1 %v20347_v1  ;;  %v20424_v26 = vld [vmem:[#allocation14 + $0x160] ss:$16 sps:$4 sm:$0xff]   ;;  %v20427_v1 = vld [vmem:[#allocation14 + $0x168] ss:$16 sps:$4 sm:$0xff]  }
 0x8f8   : > { %12438 = vmatprep.subr.bf16.mxu0 %v20352_v27  ;;  %12520 = vmatprep.subr.bf16.mxu1 %v20355_v14  ;;  %v20432_v27 = vld [vmem:[#allocation14 + $0x184] ss:$16 sps:$4 sm:$0xff]   ;;  %v20435_v14 = vld [vmem:[#allocation14 + $0x18c] ss:$16 sps:$4 sm:$0xff]  }
 0x8fb   : > { %12439 = vmatpush1.bf16.msra.mxu0 %v20350_v7  ;;  %12521 = vmatpush1.bf16.msra.mxu1 %v20353_v18  ;;  %v20433_v7 = vld [vmem:[#allocation14 + $0x188] ss:$16 sps:$4 sm:$0xff]   ;;  %v20438_v18 = vld [vmem:[#allocation14 + $0x1a4] ss:$16 sps:$4 sm:$0xff]  }
 0x8fc   : > { %13033 = vmatprep.subr.bf16.mxu0 %v20359_v10  ;;  %13115 = vmatprep.subr.bf16.mxu1 %v20362_v12  ;;  %v20436_v10 = vld [vmem:[#allocation14 + $0x1a0] ss:$16 sps:$4 sm:$0xff]   ;;  %v20439_v12 = vld [vmem:[#allocation14 + $0x1a8] ss:$16 sps:$4 sm:$0xff]  }
 0x8fe   : > { %12457 = vmatmul.mubr.bf16.vlgmr.msra.gmra.mrb[20].mxu0 %v11899_v33  ;;  %12539 = vmatmul.mubr.bf16.vlgmr.msra.gmra.mrb[20].mxu1 %v11899_v33  ;;  %v20442_v33 = vld [vmem:[#allocation14 + $0x1c0] ss:$16 sps:$4 sm:$0xff]  }
 0x8ff   : > { %13034 = vmatpush1.bf16.msra.mxu0 %v20357_v20  ;;  %13065 = vmatprep.mubr.bf16.mxu0 %v17853_v50  ;;  %v20447_v20 = vld [vmem:[#allocation14 + $0x1cc] ss:$16 sps:$4 sm:$0xff]  }
 0x900   : > { %13116 = vmatpush1.bf16.msra.mxu1 %v20360_v11  ;;  %13147 = vmatprep.mubr.bf16.mxu1 %v17853_v50  ;;  %v20445_v11 = vld [vmem:[#allocation14 + $0x1c8] ss:$16 sps:$4 sm:$0xff]   ;;  %v20450_v50 = vld [vmem:[#allocation14 + $0x1e4] ss:$16 sps:$4 sm:$0xff]  }
 0x901   : > { %13035 = vmatprep.subr.bf16.mxu0 %v20366_v60  ;;  %13117 = vmatprep.subr.bf16.mxu1 %v20369_v4  ;;  %v20453_v60 = vld [vmem:[#allocation14 + $0x1ec] ss:$16 sps:$4 sm:$0xff]   ;;  %v20448_v4 = vld [vmem:[#allocation14 + $0x1e0] ss:$16 sps:$4 sm:$0xff]  }
 0x903   : > { %13036 = vmatpush1.bf16.msra.mxu0 %v20364_v46  ;;  %v20451_v46 = vld [vmem:[#allocation14 + $0x1e8] ss:$16 sps:$4 sm:$0xff]  }
 0x904   : > { %13118 = vmatpush1.bf16.msra.mxu1 %v20367_v37  ;;  %13037 = vmatprep.subr.bf16.mxu0 %v20372_v48  ;;  %v20457_v37 = vld [vmem:[#allocation14 + $0x204] ss:$16 sps:$4 sm:$0xff]   ;;  %v20460_v48 = vld [vmem:[#allocation14 + $0x20c] ss:$16 sps:$4 sm:$0xff]  }
 0x905   : > { %13119 = vmatprep.subr.bf16.mxu1 %v20375_v32  ;;  %v20455_v32 = vld [vmem:[#allocation14 + $0x200] ss:$16 sps:$4 sm:$0xff]  }
 0x907   : > { %13038 = vmatpush1.bf16.msra.mxu0 %v20370_v38  ;;  %v17852_v38 = vcombine.low %v23005_v2, %v23005_v2  ;;  %v20467_v2 = vld [vmem:[#allocation14 + $0x240] ss:$16 sps:$4 sm:$0xff]  }
 0x908   : > { %13120 = vmatpush1.bf16.msra.mxu1 %v20373_v3  ;;  %13039 = vmatprep.subr.bf16.mxu0 %v20378_v59  ;;  %v20458_v3 = vld [vmem:[#allocation14 + $0x208] ss:$16 sps:$4 sm:$0xff]   ;;  %v20463_v59 = vld [vmem:[#allocation14 + $0x224] ss:$16 sps:$4 sm:$0xff]  }
 0x909   : > { %13121 = vmatprep.subr.bf16.mxu1 %v20381_v56  ;;  %v20466_v56 = vld [vmem:[#allocation14 + $0x22c] ss:$16 sps:$4 sm:$0xff]  }
 0x90b   : > { %13040 = vmatpush1.bf16.msra.mxu0 %v20376_v57  ;;  %v20461_v57 = vld [vmem:[#allocation14 + $0x220] ss:$16 sps:$4 sm:$0xff]  }
 0x90c   : > { %13122 = vmatpush1.bf16.msra.mxu1 %v20379_v62  ;;  %13041 = vmatprep.subr.bf16.mxu0 %v20384_v52  ;;  %v20464_v62 = vld [vmem:[#allocation14 + $0x228] ss:$16 sps:$4 sm:$0xff]   ;;  %v20469_v52 = vld [vmem:[#allocation14 + $0x244] ss:$16 sps:$4 sm:$0xff]  }
 0x90d   : > { %13123 = vmatprep.subr.bf16.mxu1 %v20387_v55  ;;  %v20472_v55 = vld [vmem:[#allocation14 + $0x24c] ss:$16 sps:$4 sm:$0xff]  }
 0x90f   : > { %13042 = vmatpush1.bf16.msra.mxu0 %v20382_v8  ;;  %v20470_v8 = vld [vmem:[#allocation14 + $0x248] ss:$16 sps:$4 sm:$0xff]  }
 0x910   : > { %13124 = vmatpush1.bf16.msra.mxu1 %v20385_v40  ;;  %13043 = vmatprep.subr.bf16.mxu0 %v20390_v13  ;;  %v20475_v40 = vld [vmem:[#allocation14 + $0x264] ss:$16 sps:$4 sm:$0xff]   ;;  %v20478_v13 = vld [vmem:[#allocation14 + $0x26c] ss:$16 sps:$4 sm:$0xff]  }
 0x911   : > { %13125 = vmatprep.subr.bf16.mxu1 %v20393_v15  ;;  %v20473_v15 = vld [vmem:[#allocation14 + $0x260] ss:$16 sps:$4 sm:$0xff]  }
 0x913   : > { %13044 = vmatpush1.bf16.msra.mxu0 %v20388_v43  ;;  %v20476_v43 = vld [vmem:[#allocation14 + $0x268] ss:$16 sps:$4 sm:$0xff]  }
 0x914   : > { %13126 = vmatpush1.bf16.msra.mxu1 %v20391_v41  ;;  %13045 = vmatprep.subr.bf16.mxu0 %v20396_v35  ;;  %v20481_v41 = vld [vmem:[#allocation14 + $0x284] ss:$16 sps:$4 sm:$0xff]   ;;  %v20484_v35 = vld [vmem:[#allocation14 + $0x28c] ss:$16 sps:$4 sm:$0xff]  }
 0x915   : > { %13127 = vmatprep.subr.bf16.mxu1 %v20399_v21  ;;  %v20479_v21 = vld [vmem:[#allocation14 + $0x280] ss:$16 sps:$4 sm:$0xff]  }
 0x917   : > { %13046 = vmatpush1.bf16.msra.mxu0 %v20394_v19  ;;  %v20482_v19 = vld [vmem:[#allocation14 + $0x288] ss:$16 sps:$4 sm:$0xff]  }
 0x918   : > { %13128 = vmatpush1.bf16.msra.mxu1 %v20397_v51  ;;  %13047 = vmatprep.subr.bf16.mxu0 %v20402_v42  ;;  %v20487_v51 = vld [vmem:[#allocation14 + $0x2a4] ss:$16 sps:$4 sm:$0xff]   ;;  %v20490_v42 = vld [vmem:[#allocation14 + $0x2ac] ss:$16 sps:$4 sm:$0xff]  }
 0x919   : > { %13129 = vmatprep.subr.bf16.mxu1 %v20405_v54  ;;  %v20485_v54 = vld [vmem:[#allocation14 + $0x2a0] ss:$16 sps:$4 sm:$0xff]  }
 0x91b   : > { %13048 = vmatpush1.bf16.msra.mxu0 %v20400_v16  ;;  %v20488_v16 = vld [vmem:[#allocation14 + $0x2a8] ss:$16 sps:$4 sm:$0xff]  }
 0x91c   : > { %13130 = vmatpush1.bf16.msra.mxu1 %v20403_v44  ;;  %13049 = vmatprep.subr.bf16.mxu0 %v20408_v63  ;;  %v20493_v44 = vld [vmem:[#allocation14 + $0x2c4] ss:$16 sps:$4 sm:$0xff]   ;;  %v20496_v63 = vld [vmem:[#allocation14 + $0x2cc] ss:$16 sps:$4 sm:$0xff]  }
 0x91d   : > { %13131 = vmatprep.subr.bf16.mxu1 %v20411_v28  ;;  %v20491_v28 = vld [vmem:[#allocation14 + $0x2c0] ss:$16 sps:$4 sm:$0xff]  }
 0x91f   : > { %13050 = vmatpush1.bf16.msra.mxu0 %v20406_v34  ;;  %v20494_v34 = vld [vmem:[#allocation14 + $0x2c8] ss:$16 sps:$4 sm:$0xff]  }
 0x920   : > { %13132 = vmatpush1.bf16.msra.mxu1 %v20409_v24  ;;  %13051 = vmatprep.subr.bf16.mxu0 %v20414_v25  ;;  %v20499_v24 = vld [vmem:[#allocation14 + $0x2e4] ss:$16 sps:$4 sm:$0xff]   ;;  %v20502_v25 = vld [vmem:[#allocation14 + $0x2ec] ss:$16 sps:$4 sm:$0xff]  }
 0x921   : > { %13133 = vmatprep.subr.bf16.mxu1 %v20417_v23  ;;  %v20497_v23 = vld [vmem:[#allocation14 + $0x2e0] ss:$16 sps:$4 sm:$0xff]  }
 0x923   : > { %13052 = vmatpush1.bf16.msra.mxu0 %v20412_v47  ;;  %v23025_v47 = vld [vmem:[#allocation4] sm:$0xee] }
 0x924   : > { %13134 = vmatpush1.bf16.msra.mxu1 %v20415_v17  ;;  %13053 = vmatprep.subr.bf16.mxu0 %v20420_v22  ;;  %v20500_v17 = vld [vmem:[#allocation14 + $0x2e8] ss:$16 sps:$4 sm:$0xff]   ;;  %v20506_v22 = vld [vmem:[#allocation14 + $0x604] ss:$16 sps:$4 sm:$0xff]  }
 0x925   : > { %13135 = vmatprep.subr.bf16.mxu1 %v20423_v45  ;;  %v20509_v45 = vld [vmem:[#allocation14 + $0x60c] ss:$16 sps:$4 sm:$0xff]  }
 0x927   : > { %13054 = vmatpush1.bf16.msra.mxu0 %v20418_v53  ;;  %v17952_v53 = vcombine.high %v23025_v47, %v23003_v49 }
 0x928   : > { %13136 = vmatpush1.bf16.msra.mxu1 %v20421_v36  ;;  %13055 = vmatprep.subr.bf16.mxu0 %v20426_v61  ;;  %v20504_v36 = vld [vmem:[#allocation14 + $0x600] ss:$16 sps:$4 sm:$0xff]   ;;  %v17854_v61 = vcombine.low %v23013_v58, %v23013_v58 }
 0x929   : > { %13137 = vmatprep.subr.bf16.mxu1 %v20429_v30  ;;  %v20507_v30 = vld [vmem:[#allocation14 + $0x608] ss:$16 sps:$4 sm:$0xff]   ;;  %v20517_v58 = vld [vmem:[#allocation14 + $0x640] ss:$16 sps:$4 sm:$0xff]  }
 0x92b   : > { %13056 = vmatpush1.bf16.msra.mxu0 %v20424_v26  ;;  %v20513_v26 = vld [vmem:[#allocation14 + $0x624] ss:$16 sps:$4 sm:$0xff]  }
 0x92c   : > { %13138 = vmatpush1.bf16.msra.mxu1 %v20427_v1  ;;  %13057 = vmatprep.subr.bf16.mxu0 %v20432_v27  ;;  %v13305_v1 = vrot.slane %v17952_v53, 1  ;;  %v20516_v27 = vld [vmem:[#allocation14 + $0x62c] ss:$16 sps:$4 sm:$0xff]  }
 0x92d   : > { %13139 = vmatprep.subr.bf16.mxu1 %v20435_v14  ;;  %v20511_v14 = vld [vmem:[#allocation14 + $0x620] ss:$16 sps:$4 sm:$0xff]   ;;  %v20594_v53 = vld [vmem:[#allocation14 + $0x7cc] ss:$16 sps:$4 sm:$0xff]  }
 0x92f   : > { %13058 = vmatpush1.bf16.msra.mxu0 %v20430_v0  ;;  %v20514_v0 = vld [vmem:[#allocation14 + $0x628] ss:$16 sps:$4 sm:$0xff]  }
 0x930   : > { %13140 = vmatpush1.bf16.msra.mxu1 %v20433_v7  ;;  %13059 = vmatprep.subr.bf16.mxu0 %v20438_v18  ;;  %v20519_v7 = vld [vmem:[#allocation14 + $0x644] ss:$16 sps:$4 sm:$0xff]   ;;  %v20522_v18 = vld [vmem:[#allocation14 + $0x64c] ss:$16 sps:$4 sm:$0xff]  }
 0x931   : > { %13141 = vmatprep.subr.bf16.mxu1 %v20441_v9  ;;  %v20520_v9 = vld [vmem:[#allocation14 + $0x648] ss:$16 sps:$4 sm:$0xff]  }
 0x933   : > { %13060 = vmatpush1.bf16.msra.mxu0 %v20436_v10  ;;  %v20525_v10 = vld [vmem:[#allocation14 + $0x664] ss:$16 sps:$4 sm:$0xff]  }
 0x934   : > { %13142 = vmatpush1.bf16.msra.mxu1 %v20439_v12  ;;  %13061 = vmatprep.subr.bf16.mxu0 %v20444_v39  ;;  %v20528_v12 = vld [vmem:[#allocation14 + $0x66c] ss:$16 sps:$4 sm:$0xff]   ;;  %v20523_v39 = vld [vmem:[#allocation14 + $0x660] ss:$16 sps:$4 sm:$0xff]  }
 0x935   : > { %13143 = vmatprep.subr.bf16.mxu1 %v20447_v20  ;;  %v20526_v20 = vld [vmem:[#allocation14 + $0x668] ss:$16 sps:$4 sm:$0xff]  }
 0x937   : > { %13062 = vmatpush1.bf16.msra.mxu0 %v20442_v33  ;;  %v20531_v33 = vld [vmem:[#allocation14 + $0x684] ss:$16 sps:$4 sm:$0xff]  }
 0x938   : > { %13144 = vmatpush1.bf16.msra.mxu1 %v20445_v11  ;;  %13063 = vmatprep.subr.bf16.mxu0 %v20450_v50  ;;  %v20534_v11 = vld [vmem:[#allocation14 + $0x68c] ss:$16 sps:$4 sm:$0xff]   ;;  %v20529_v50 = vld [vmem:[#allocation14 + $0x680] ss:$16 sps:$4 sm:$0xff]  }
 0x939   : > { %13145 = vmatprep.subr.bf16.mxu1 %v20453_v60  ;;  %v20532_v60 = vld [vmem:[#allocation14 + $0x688] ss:$16 sps:$4 sm:$0xff]  }
 0x93b   : > { %13064 = vmatpush1.bf16.msra.mxu0 %v20448_v4  ;;  %v20537_v4 = vld [vmem:[#allocation14 + $0x6a4] ss:$16 sps:$4 sm:$0xff]  }
 0x93c   : > { %13146 = vmatpush1.bf16.msra.mxu1 %v20451_v46  ;;  %13074 = vmatprep.subr.bf16.mxu0 %v20457_v37  ;;  %v20540_v46 = vld [vmem:[#allocation14 + $0x6ac] ss:$16 sps:$4 sm:$0xff]   ;;  %v20535_v37 = vld [vmem:[#allocation14 + $0x6a0] ss:$16 sps:$4 sm:$0xff]  }
 0x93d   : > { %13156 = vmatprep.subr.bf16.mxu1 %v20460_v48  ;;  %v20538_v48 = vld [vmem:[#allocation14 + $0x6a8] ss:$16 sps:$4 sm:$0xff]  }
 0x93e   : > { %13066 = vmatmul.mubr.bf16.vlgmr.msra.gmra.mrb[20].mxu0 %v17852_v38 }
 0x93f   : > { %13148 = vmatmul.mubr.bf16.vlgmr.msra.gmra.mrb[20].mxu1 %v17852_v38  ;;  %13075 = vmatpush1.bf16.msra.mxu0 %v20455_v32  ;;  %v20543_v32 = vld [vmem:[#allocation14 + $0x6c4] ss:$16 sps:$4 sm:$0xff]   ;;  %v20546_v38 = vld [vmem:[#allocation14 + $0x6cc] ss:$16 sps:$4 sm:$0xff]  }
 0x940   : > { %13157 = vmatpush1.bf16.msra.mxu1 %v20458_v3  ;;  %13076 = vmatprep.subr.bf16.mxu0 %v20463_v59  ;;  %v20541_v3 = vld [vmem:[#allocation14 + $0x6c0] ss:$16 sps:$4 sm:$0xff]   ;;  %v20544_v59 = vld [vmem:[#allocation14 + $0x6c8] ss:$16 sps:$4 sm:$0xff]  }
 0x941   : > { %13158 = vmatprep.subr.bf16.mxu1 %v20466_v56  ;;  %13106 = vmatprep.mubr.bf16.mxu0 %v22933_v5  ;;  %v20549_v56 = vld [vmem:[#allocation14 + $0x6e4] ss:$16 sps:$4 sm:$0xff]  }
 0x942   : > { %13188 = vmatprep.mubr.bf16.mxu1 %v22933_v5 }
 0x943   : > { %13077 = vmatpush1.bf16.msra.mxu0 %v20461_v57  ;;  %v20552_v57 = vld [vmem:[#allocation14 + $0x6ec] ss:$16 sps:$4 sm:$0xff]  }
 0x944   : > { %13159 = vmatpush1.bf16.msra.mxu1 %v20464_v62  ;;  %13078 = vmatprep.subr.bf16.mxu0 %v20469_v52  ;;  %v20547_v62 = vld [vmem:[#allocation14 + $0x6e0] ss:$16 sps:$4 sm:$0xff]   ;;  %v20550_v52 = vld [vmem:[#allocation14 + $0x6e8] ss:$16 sps:$4 sm:$0xff]  }
 0x945   : > { %13160 = vmatprep.subr.bf16.mxu1 %v20472_v55  ;;  %v20555_v55 = vld [vmem:[#allocation14 + $0x704] ss:$16 sps:$4 sm:$0xff]  }
 0x947   : > { %13079 = vmatpush1.bf16.msra.mxu0 %v20467_v2  ;;  %v20558_v2 = vld [vmem:[#allocation14 + $0x70c] ss:$16 sps:$4 sm:$0xff]  }
 0x948   : > { %13161 = vmatpush1.bf16.msra.mxu1 %v20470_v8  ;;  %13080 = vmatprep.subr.bf16.mxu0 %v20475_v40  ;;  %v20553_v8 = vld [vmem:[#allocation14 + $0x700] ss:$16 sps:$4 sm:$0xff]   ;;  %v20556_v40 = vld [vmem:[#allocation14 + $0x708] ss:$16 sps:$4 sm:$0xff]  }
 0x949   : > { %13162 = vmatprep.subr.bf16.mxu1 %v20478_v13  ;;  %v20561_v13 = vld [vmem:[#allocation14 + $0x724] ss:$16 sps:$4 sm:$0xff]  }
 0x94b   : > { %13081 = vmatpush1.bf16.msra.mxu0 %v20473_v15  ;;  %v20564_v15 = vld [vmem:[#allocation14 + $0x72c] ss:$16 sps:$4 sm:$0xff]  }
 0x94c   : > { %13163 = vmatpush1.bf16.msra.mxu1 %v20476_v43  ;;  %13082 = vmatprep.subr.bf16.mxu0 %v20481_v41  ;;  %v20559_v43 = vld [vmem:[#allocation14 + $0x720] ss:$16 sps:$4 sm:$0xff]   ;;  %v20562_v41 = vld [vmem:[#allocation14 + $0x728] ss:$16 sps:$4 sm:$0xff]  }
 0x94d   : > { %13164 = vmatprep.subr.bf16.mxu1 %v20484_v35  ;;  %v20567_v35 = vld [vmem:[#allocation14 + $0x744] ss:$16 sps:$4 sm:$0xff]  }
 0x94f   : > { %13083 = vmatpush1.bf16.msra.mxu0 %v20479_v21  ;;  %v20570_v21 = vld [vmem:[#allocation14 + $0x74c] ss:$16 sps:$4 sm:$0xff]  }
 0x950   : > { %13165 = vmatpush1.bf16.msra.mxu1 %v20482_v19  ;;  %13084 = vmatprep.subr.bf16.mxu0 %v20487_v51  ;;  %v20565_v19 = vld [vmem:[#allocation14 + $0x740] ss:$16 sps:$4 sm:$0xff]   ;;  %v20568_v51 = vld [vmem:[#allocation14 + $0x748] ss:$16 sps:$4 sm:$0xff]  }
 0x951   : > { %13166 = vmatprep.subr.bf16.mxu1 %v20490_v42  ;;  %v20573_v42 = vld [vmem:[#allocation14 + $0x764] ss:$16 sps:$4 sm:$0xff]  }
 0x953   : > { %13085 = vmatpush1.bf16.msra.mxu0 %v20485_v54  ;;  %v20576_v54 = vld [vmem:[#allocation14 + $0x76c] ss:$16 sps:$4 sm:$0xff]  }
 0x954   : > { %13167 = vmatpush1.bf16.msra.mxu1 %v20488_v16  ;;  %13086 = vmatprep.subr.bf16.mxu0 %v20493_v44  ;;  %v20571_v16 = vld [vmem:[#allocation14 + $0x760] ss:$16 sps:$4 sm:$0xff]   ;;  %v20574_v44 = vld [vmem:[#allocation14 + $0x768] ss:$16 sps:$4 sm:$0xff]  }
 0x955   : > { %13168 = vmatprep.subr.bf16.mxu1 %v20496_v63  ;;  %v20579_v63 = vld [vmem:[#allocation14 + $0x784] ss:$16 sps:$4 sm:$0xff]  }
 0x957   : > { %13087 = vmatpush1.bf16.msra.mxu0 %v20491_v28  ;;  %v20582_v28 = vld [vmem:[#allocation14 + $0x78c] ss:$16 sps:$4 sm:$0xff]  }
 0x958   : > { %13169 = vmatpush1.bf16.msra.mxu1 %v20494_v34  ;;  %13088 = vmatprep.subr.bf16.mxu0 %v20499_v24  ;;  %v20577_v34 = vld [vmem:[#allocation14 + $0x780] ss:$16 sps:$4 sm:$0xff]   ;;  %v20580_v24 = vld [vmem:[#allocation14 + $0x788] ss:$16 sps:$4 sm:$0xff]  }
 0x959   : > { %13170 = vmatprep.subr.bf16.mxu1 %v20502_v25  ;;  %v20585_v25 = vld [vmem:[#allocation14 + $0x7a4] ss:$16 sps:$4 sm:$0xff]  }
 0x95b   : > { %13089 = vmatpush1.bf16.msra.mxu0 %v20497_v23  ;;  %v20588_v23 = vld [vmem:[#allocation14 + $0x7ac] ss:$16 sps:$4 sm:$0xff]  }
 0x95c   : > { %13171 = vmatpush1.bf16.msra.mxu1 %v20500_v17  ;;  %13790 = vmatprep.subr.bf16.mxu0 %v20506_v22  ;;  %v20583_v17 = vld [vmem:[#allocation14 + $0x7a0] ss:$16 sps:$4 sm:$0xff]   ;;  %v20586_v22 = vld [vmem:[#allocation14 + $0x7a8] ss:$16 sps:$4 sm:$0xff]  }
 0x95d   : > { %13872 = vmatprep.subr.bf16.mxu1 %v20509_v45  ;;  %v20591_v45 = vld [vmem:[#allocation14 + $0x7c4] ss:$16 sps:$4 sm:$0xff]  }
 0x95e   : > { %13107 = vmatmul.mubr.bf16.vlgmr.msra.gmra.mrb[20].mxu0 %v17854_v61 }
 0x95f   : > { %13189 = vmatmul.mubr.bf16.vlgmr.msra.gmra.mrb[20].mxu1 %v17854_v61  ;;  %13791 = vmatpush1.bf16.msra.mxu0 %v20504_v36  ;;  %v20589_v36 = vld [vmem:[#allocation14 + $0x7c0] ss:$16 sps:$4 sm:$0xff]   ;;  %v20592_v61 = vld [vmem:[#allocation14 + $0x7c8] ss:$16 sps:$4 sm:$0xff]  }
 0x960   : > { %13822 = vmatprep.mubr.bf16.mxu0 %v13305_v1  ;;  %13873 = vmatpush1.bf16.msra.mxu1 %v20507_v30  ;;  %v20597_v30 = vld [vmem:[#allocation14 + $0x7e4] ss:$16 sps:$4 sm:$0xff]  }
 0x961   : > { %13904 = vmatprep.mubr.bf16.mxu1 %v13305_v1  ;;  %13792 = vmatprep.subr.bf16.mxu0 %v20513_v26  ;;  %v20600_v26 = vld [vmem:[#allocation14 + $0x7ec] ss:$16 sps:$4 sm:$0xff]   ;;  %v20595_v1 = vld [vmem:[#allocation14 + $0x7e0] ss:$16 sps:$4 sm:$0xff]  }
 0x962   : > { %13874 = vmatprep.subr.bf16.mxu1 %v20516_v27  ;;  %v20598_v27 = vld [vmem:[#allocation14 + $0x7e8] ss:$16 sps:$4 sm:$0xff]  }
 0x963   : > { %13793 = vmatpush1.bf16.msra.mxu0 %v20511_v14  ;;  %v17951_v14 = vcombine.low %v23025_v47, %v23003_v49  ;;  %v20616_v49 = vld [vmem:[#allocation14 + $0x844] ss:$16 sps:$4 sm:$0xff]  }
 0x964   : > { %13875 = vmatpush1.bf16.msra.mxu1 %v20514_v0  ;;  %13794 = vmatprep.subr.bf16.mxu0 %v20519_v7  ;;  %v20604_v0 = vld [vmem:[#allocation14 + $0x804] ss:$16 sps:$4 sm:$0xff]   ;;  %v20607_v7 = vld [vmem:[#allocation14 + $0x80c] ss:$16 sps:$4 sm:$0xff]  }
 0x965   : > { %13876 = vmatprep.subr.bf16.mxu1 %v20522_v18  ;;  %v20602_v18 = vld [vmem:[#allocation14 + $0x800] ss:$16 sps:$4 sm:$0xff]  }
 0x967   : > { %13795 = vmatpush1.bf16.msra.mxu0 %v20517_v58  ;;  %v13304_v58 = vrot.slane %v17951_v14, 1  ;;  %v20679_v14 = vld [vmem:[#allocation14 + $0x984] ss:$16 sps:$4 sm:$0xff]  }
 0x968   : > { %13877 = vmatpush1.bf16.msra.mxu1 %v20520_v9  ;;  %13796 = vmatprep.subr.bf16.mxu0 %v20525_v10  ;;  %v20605_v9 = vld [vmem:[#allocation14 + $0x808] ss:$16 sps:$4 sm:$0xff]   ;;  %v20610_v10 = vld [vmem:[#allocation14 + $0x824] ss:$16 sps:$4 sm:$0xff]  }
 0x969   : > { %13878 = vmatprep.subr.bf16.mxu1 %v20528_v12  ;;  %v20613_v12 = vld [vmem:[#allocation14 + $0x82c] ss:$16 sps:$4 sm:$0xff]  }
 0x96b   : > { %13797 = vmatpush1.bf16.msra.mxu0 %v20523_v39  ;;  %v20608_v39 = vld [vmem:[#allocation14 + $0x820] ss:$16 sps:$4 sm:$0xff]  }
 0x96c   : > { %13879 = vmatpush1.bf16.msra.mxu1 %v20526_v20  ;;  %13798 = vmatprep.subr.bf16.mxu0 %v20531_v33  ;;  %v20611_v20 = vld [vmem:[#allocation14 + $0x828] ss:$16 sps:$4 sm:$0xff]   ;;  %v20619_v33 = vld [vmem:[#allocation14 + $0x84c] ss:$16 sps:$4 sm:$0xff]  }
 0x96d   : > { %13880 = vmatprep.subr.bf16.mxu1 %v20534_v11  ;;  %v20614_v11 = vld [vmem:[#allocation14 + $0x840] ss:$16 sps:$4 sm:$0xff]  }
 0x96f   : > { %13799 = vmatpush1.bf16.msra.mxu0 %v20529_v50  ;;  %v20617_v50 = vld [vmem:[#allocation14 + $0x848] ss:$16 sps:$4 sm:$0xff]  }
 0x970   : > { %13881 = vmatpush1.bf16.msra.mxu1 %v20532_v60  ;;  %13800 = vmatprep.subr.bf16.mxu0 %v20537_v4  ;;  %v20622_v60 = vld [vmem:[#allocation14 + $0x864] ss:$16 sps:$4 sm:$0xff]   ;;  %v20625_v4 = vld [vmem:[#allocation14 + $0x86c] ss:$16 sps:$4 sm:$0xff]  }
 0x971   : > { %13882 = vmatprep.subr.bf16.mxu1 %v20540_v46  ;;  %v20620_v46 = vld [vmem:[#allocation14 + $0x860] ss:$16 sps:$4 sm:$0xff]  }
 0x973   : > { %13801 = vmatpush1.bf16.msra.mxu0 %v20535_v37  ;;  %v20623_v37 = vld [vmem:[#allocation14 + $0x868] ss:$16 sps:$4 sm:$0xff]  }
 0x974   : > { %13883 = vmatpush1.bf16.msra.mxu1 %v20538_v48  ;;  %13802 = vmatprep.subr.bf16.mxu0 %v20543_v32  ;;  %v20628_v48 = vld [vmem:[#allocation14 + $0x884] ss:$16 sps:$4 sm:$0xff]   ;;  %v20631_v32 = vld [vmem:[#allocation14 + $0x88c] ss:$16 sps:$4 sm:$0xff]  }
 0x975   : > { %13884 = vmatprep.subr.bf16.mxu1 %v20546_v38  ;;  %v20626_v38 = vld [vmem:[#allocation14 + $0x880] ss:$16 sps:$4 sm:$0xff]  }
 0x977   : > { %13803 = vmatpush1.bf16.msra.mxu0 %v20541_v3  ;;  %v20629_v3 = vld [vmem:[#allocation14 + $0x888] ss:$16 sps:$4 sm:$0xff]  }
 0x978   : > { %13885 = vmatpush1.bf16.msra.mxu1 %v20544_v59  ;;  %13804 = vmatprep.subr.bf16.mxu0 %v20549_v56  ;;  %v20634_v59 = vld [vmem:[#allocation14 + $0x8a4] ss:$16 sps:$4 sm:$0xff]   ;;  %v20637_v56 = vld [vmem:[#allocation14 + $0x8ac] ss:$16 sps:$4 sm:$0xff]  }
 0x979   : > { %13886 = vmatprep.subr.bf16.mxu1 %v20552_v57  ;;  %v20632_v57 = vld [vmem:[#allocation14 + $0x8a0] ss:$16 sps:$4 sm:$0xff]  }
 0x97b   : > { %13805 = vmatpush1.bf16.msra.mxu0 %v20547_v62  ;;  %v23035_v62 = vld [vmem:[#allocation4 + $0xc] sm:$0x33] }
 0x97c   : > { %13887 = vmatpush1.bf16.msra.mxu1 %v20550_v52  ;;  %13806 = vmatprep.subr.bf16.mxu0 %v20555_v55  ;;  %v20635_v52 = vld [vmem:[#allocation14 + $0x8a8] ss:$16 sps:$4 sm:$0xff]   ;;  %v20640_v55 = vld [vmem:[#allocation14 + $0x8c4] ss:$16 sps:$4 sm:$0xff]  }
 0x97d   : > { %13888 = vmatprep.subr.bf16.mxu1 %v20558_v2  ;;  %v20643_v2 = vld [vmem:[#allocation14 + $0x8cc] ss:$16 sps:$4 sm:$0xff]  }
 0x97f   : > { %13807 = vmatpush1.bf16.msra.mxu0 %v20553_v8  ;;  %v18051_v8 = vcombine.high %v23025_v47, %v23035_v62 }
 0x980   : > { %13889 = vmatpush1.bf16.msra.mxu1 %v20556_v40  ;;  %13808 = vmatprep.subr.bf16.mxu0 %v20561_v13  ;;  %v20638_v40 = vld [vmem:[#allocation14 + $0x8c0] ss:$16 sps:$4 sm:$0xff]   ;;  %v20641_v13 = vld [vmem:[#allocation14 + $0x8c8] ss:$16 sps:$4 sm:$0xff]  }
 0x981   : > { %13890 = vmatprep.subr.bf16.mxu1 %v20564_v15  ;;  %v20646_v15 = vld [vmem:[#allocation14 + $0x8e4] ss:$16 sps:$4 sm:$0xff]  }
 0x983   : > { %13809 = vmatpush1.bf16.msra.mxu0 %v20559_v43  ;;  %v20649_v43 = vld [vmem:[#allocation14 + $0x8ec] ss:$16 sps:$4 sm:$0xff]  }
 0x984   : > { %13891 = vmatpush1.bf16.msra.mxu1 %v20562_v41  ;;  %13810 = vmatprep.subr.bf16.mxu0 %v20567_v35  ;;  %v23039_v41 = vld [vmem:[#allocation4 + $0x8] sm:$0xe]  ;;  %v14074_v35 = vshrl.u32 %v18051_v8, 16 }
 0x985   : > { %13892 = vmatprep.subr.bf16.mxu1 %v20570_v21  ;;  %v14077_v21 = vshll.u32 %v18051_v8, 16  ;;  %v20721_v8 = vld [vmem:[#allocation14 + $0xa64] ss:$16 sps:$4 sm:$0xff]  }
 0x987   : > { %13811 = vmatpush1.bf16.msra.mxu0 %v20565_v19  ;;  %v20644_v19 = vld [vmem:[#allocation14 + $0x8e0] ss:$16 sps:$4 sm:$0xff]  }
 0x988   : > { %13893 = vmatpush1.bf16.msra.mxu1 %v20568_v51  ;;  %13812 = vmatprep.subr.bf16.mxu0 %v20573_v42  ;;  %v20647_v51 = vld [vmem:[#allocation14 + $0x8e8] ss:$16 sps:$4 sm:$0xff]   ;;  %v17953_v42 = vcombine.low %v23039_v41, %v23015_v6 }
 0x989   : > { %13894 = vmatprep.subr.bf16.mxu1 %v20576_v54  ;;  %v20654_v54 = vld [vmem:[#allocation14 + $0x904] ss:$16 sps:$4 sm:$0xff]   ;;  %v20662_v6 = vld [vmem:[#allocation14 + $0x928] ss:$16 sps:$4 sm:$0xff]  }
 0x98b   : > { %13813 = vmatpush1.bf16.msra.mxu0 %v20571_v16  ;;  %v20657_v16 = vld [vmem:[#allocation14 + $0x90c] ss:$16 sps:$4 sm:$0xff]  }
 0x98c   : > { %13895 = vmatpush1.bf16.msra.mxu1 %v20574_v44  ;;  %13814 = vmatprep.subr.bf16.mxu0 %v20579_v63  ;;  %v14076_v44 = vrot.slane %v14074_v35, 1  ;;  %v14079_v63 = vrot.slane %v14077_v21, 2  ;;  %v20730_v35 = vld [vmem:[#allocation14 + $0xa8c] ss:$16 sps:$4 sm:$0xff]   ;;  %v20725_v21 = vld [vmem:[#allocation14 + $0xa80] ss:$16 sps:$4 sm:$0xff]  }
 0x98d   : > { %13896 = vmatprep.subr.bf16.mxu1 %v20582_v28  ;;  %v20652_v28 = vld [vmem:[#allocation14 + $0x900] ss:$16 sps:$4 sm:$0xff]  }
 0x98f   : > { %13815 = vmatpush1.bf16.msra.mxu0 %v20577_v34  ;;  %v13306_v34 = vrot.slane %v17953_v42, 1  ;;  %v20736_v42 = vld [vmem:[#allocation14 + $0xaac] ss:$16 sps:$4 sm:$0xff]  }
 0x990   : > { %13897 = vmatpush1.bf16.msra.mxu1 %v20580_v24  ;;  %13816 = vmatprep.subr.bf16.mxu0 %v20585_v25  ;;  %v20655_v24 = vld [vmem:[#allocation14 + $0x908] ss:$16 sps:$4 sm:$0xff]   ;;  %v20661_v25 = vld [vmem:[#allocation14 + $0x924] ss:$16 sps:$4 sm:$0xff]  }
 0x991   : > { %13898 = vmatprep.subr.bf16.mxu1 %v20588_v23  ;;  %v14080_v23 = vor.u32 %v14079_v63, %v14076_v44  ;;  %v20739_v44 = vld [vmem:[#allocation14 + $0xac4] ss:$16 sps:$4 sm:$0xff]   ;;  %v18050_v63 = vcombine.low %v23025_v47, %v23035_v62 }
 0x992   : > { %v20752_v47 = vld [vmem:[#allocation14 + $0xb04] ss:$16 sps:$4 sm:$0xff]  }
 0x993   : > { %13817 = vmatpush1.bf16.msra.mxu0 %v20583_v17  ;;  %v20664_v17 = vld [vmem:[#allocation14 + $0x92c] ss:$16 sps:$4 sm:$0xff]  }
 0x994   : > { %13899 = vmatpush1.bf16.msra.mxu1 %v20586_v22  ;;  %13818 = vmatprep.subr.bf16.mxu0 %v20591_v45  ;;  %v20659_v22 = vld [vmem:[#allocation14 + $0x920] ss:$16 sps:$4 sm:$0xff]   ;;  %v20667_v45 = vld [vmem:[#allocation14 + $0x944] ss:$16 sps:$4 sm:$0xff]  }
 0x995   : > { %13900 = vmatprep.subr.bf16.mxu1 %v20594_v53  ;;  %v20670_v53 = vld [vmem:[#allocation14 + $0x94c] ss:$16 sps:$4 sm:$0xff]  }
 0x997   : > { %13819 = vmatpush1.bf16.msra.mxu0 %v20589_v36  ;;  %v20665_v36 = vld [vmem:[#allocation14 + $0x940] ss:$16 sps:$4 sm:$0xff]  }
 0x998   : > { %13901 = vmatpush1.bf16.msra.mxu1 %v20592_v61  ;;  %13820 = vmatprep.subr.bf16.mxu0 %v20597_v30  ;;  %v20668_v61 = vld [vmem:[#allocation14 + $0x948] ss:$16 sps:$4 sm:$0xff]   ;;  %v20673_v30 = vld [vmem:[#allocation14 + $0x964] ss:$16 sps:$4 sm:$0xff]  }
 0x999   : > { %13902 = vmatprep.subr.bf16.mxu1 %v20600_v26  ;;  %v20676_v26 = vld [vmem:[#allocation14 + $0x96c] ss:$16 sps:$4 sm:$0xff]  }
 0x99b   : > { %13821 = vmatpush1.bf16.msra.mxu0 %v20595_v1  ;;  %v20671_v1 = vld [vmem:[#allocation14 + $0x960] ss:$16 sps:$4 sm:$0xff]  }
 0x99c   : > { %13903 = vmatpush1.bf16.msra.mxu1 %v20598_v27  ;;  %13831 = vmatprep.subr.bf16.mxu0 %v20604_v0  ;;  %v20674_v27 = vld [vmem:[#allocation14 + $0x968] ss:$16 sps:$4 sm:$0xff]   ;;  %v20682_v0 = vld [vmem:[#allocation14 + $0x98c] ss:$16 sps:$4 sm:$0xff]  }
 0x99d   : > { %13913 = vmatprep.subr.bf16.mxu1 %v20607_v7  ;;  %v20677_v7 = vld [vmem:[#allocation14 + $0x980] ss:$16 sps:$4 sm:$0xff]  }
 0x99e   : > { %13823 = vmatmul.mubr.bf16.vlgmr.msra.gmra.mrb[20].mxu0 %v13304_v58 }
 0x99f   : > { %13905 = vmatmul.mubr.bf16.vlgmr.msra.gmra.mrb[20].mxu1 %v13304_v58  ;;  %13832 = vmatpush1.bf16.msra.mxu0 %v20602_v18  ;;  %v20680_v18 = vld [vmem:[#allocation14 + $0x988] ss:$16 sps:$4 sm:$0xff]   ;;  %v20685_v58 = vld [vmem:[#allocation14 + $0x9a4] ss:$16 sps:$4 sm:$0xff]  }
 0x9a0   : > { %13914 = vmatpush1.bf16.msra.mxu1 %v20605_v9  ;;  %13833 = vmatprep.subr.bf16.mxu0 %v20610_v10  ;;  %v20688_v9 = vld [vmem:[#allocation14 + $0x9ac] ss:$16 sps:$4 sm:$0xff]   ;;  %v20683_v10 = vld [vmem:[#allocation14 + $0x9a0] ss:$16 sps:$4 sm:$0xff]  }
 0x9a1   : > { %13915 = vmatprep.subr.bf16.mxu1 %v20613_v12  ;;  %13863 = vmatprep.mubr.bf16.mxu0 %v22933_v5  ;;  %v20686_v12 = vld [vmem:[#allocation14 + $0x9a8] ss:$16 sps:$4 sm:$0xff]  }
 0x9a2   : > { %13945 = vmatprep.mubr.bf16.mxu1 %v22933_v5 }
 0x9a3   : > { %13834 = vmatpush1.bf16.msra.mxu0 %v20608_v39  ;;  %v20691_v39 = vld [vmem:[#allocation14 + $0x9c4] ss:$16 sps:$4 sm:$0xff]  }
 0x9a4   : > { %13916 = vmatpush1.bf16.msra.mxu1 %v20611_v20  ;;  %13835 = vmatprep.subr.bf16.mxu0 %v20616_v49  ;;  %v20694_v20 = vld [vmem:[#allocation14 + $0x9cc] ss:$16 sps:$4 sm:$0xff]   ;;  %v20689_v49 = vld [vmem:[#allocation14 + $0x9c0] ss:$16 sps:$4 sm:$0xff]  }
 0x9a5   : > { %13917 = vmatprep.subr.bf16.mxu1 %v20619_v33  ;;  %v20692_v33 = vld [vmem:[#allocation14 + $0x9c8] ss:$16 sps:$4 sm:$0xff]  }
 0x9a7   : > { %13836 = vmatpush1.bf16.msra.mxu0 %v20614_v11  ;;  %v20697_v11 = vld [vmem:[#allocation14 + $0x9e4] ss:$16 sps:$4 sm:$0xff]  }
 0x9a8   : > { %13918 = vmatpush1.bf16.msra.mxu1 %v20617_v50  ;;  %13837 = vmatprep.subr.bf16.mxu0 %v20622_v60  ;;  %v20700_v50 = vld [vmem:[#allocation14 + $0x9ec] ss:$16 sps:$4 sm:$0xff]   ;;  %v20695_v60 = vld [vmem:[#allocation14 + $0x9e0] ss:$16 sps:$4 sm:$0xff]  }
 0x9a9   : > { %13919 = vmatprep.subr.bf16.mxu1 %v20625_v4  ;;  %v20698_v4 = vld [vmem:[#allocation14 + $0x9e8] ss:$16 sps:$4 sm:$0xff]  }
 0x9ab   : > { %13838 = vmatpush1.bf16.msra.mxu0 %v20620_v46  ;;  %v20703_v46 = vld [vmem:[#allocation14 + $0xa04] ss:$16 sps:$4 sm:$0xff]  }
 0x9ac   : > { %13920 = vmatpush1.bf16.msra.mxu1 %v20623_v37  ;;  %13839 = vmatprep.subr.bf16.mxu0 %v20628_v48  ;;  %v20706_v37 = vld [vmem:[#allocation14 + $0xa0c] ss:$16 sps:$4 sm:$0xff]   ;;  %v20701_v48 = vld [vmem:[#allocation14 + $0xa00] ss:$16 sps:$4 sm:$0xff]  }
 0x9ad   : > { %13921 = vmatprep.subr.bf16.mxu1 %v20631_v32  ;;  %v20704_v32 = vld [vmem:[#allocation14 + $0xa08] ss:$16 sps:$4 sm:$0xff]  }
 0x9af   : > { %13840 = vmatpush1.bf16.msra.mxu0 %v20626_v38  ;;  %v20709_v38 = vld [vmem:[#allocation14 + $0xa24] ss:$16 sps:$4 sm:$0xff]  }
 0x9b0   : > { %13922 = vmatpush1.bf16.msra.mxu1 %v20629_v3  ;;  %13841 = vmatprep.subr.bf16.mxu0 %v20634_v59  ;;  %v20712_v3 = vld [vmem:[#allocation14 + $0xa2c] ss:$16 sps:$4 sm:$0xff]   ;;  %v20707_v59 = vld [vmem:[#allocation14 + $0xa20] ss:$16 sps:$4 sm:$0xff]  }
 0x9b1   : > { %13923 = vmatprep.subr.bf16.mxu1 %v20637_v56  ;;  %v20710_v56 = vld [vmem:[#allocation14 + $0xa28] ss:$16 sps:$4 sm:$0xff]  }
 0x9b3   : > { %13842 = vmatpush1.bf16.msra.mxu0 %v20632_v57  ;;  %v20715_v57 = vld [vmem:[#allocation14 + $0xa44] ss:$16 sps:$4 sm:$0xff]  }
 0x9b4   : > { %13924 = vmatpush1.bf16.msra.mxu1 %v20635_v52  ;;  %13843 = vmatprep.subr.bf16.mxu0 %v20640_v55  ;;  %v20718_v52 = vld [vmem:[#allocation14 + $0xa4c] ss:$16 sps:$4 sm:$0xff]   ;;  %v20713_v55 = vld [vmem:[#allocation14 + $0xa40] ss:$16 sps:$4 sm:$0xff]  }
 0x9b5   : > { %13925 = vmatprep.subr.bf16.mxu1 %v20643_v2  ;;  %v20716_v2 = vld [vmem:[#allocation14 + $0xa48] ss:$16 sps:$4 sm:$0xff]  }
 0x9b7   : > { %13844 = vmatpush1.bf16.msra.mxu0 %v20638_v40  ;;  %v20724_v40 = vld [vmem:[#allocation14 + $0xa6c] ss:$16 sps:$4 sm:$0xff]  }
 0x9b8   : > { %13926 = vmatpush1.bf16.msra.mxu1 %v20641_v13  ;;  %13845 = vmatprep.subr.bf16.mxu0 %v20646_v15  ;;  %v20719_v13 = vld [vmem:[#allocation14 + $0xa60] ss:$16 sps:$4 sm:$0xff]   ;;  %v20722_v15 = vld [vmem:[#allocation14 + $0xa68] ss:$16 sps:$4 sm:$0xff]  }
 0x9b9   : > { %13927 = vmatprep.subr.bf16.mxu1 %v20649_v43  ;;  %v20727_v43 = vld [vmem:[#allocation14 + $0xa84] ss:$16 sps:$4 sm:$0xff]  }
 0x9bb   : > { %13846 = vmatpush1.bf16.msra.mxu0 %v20644_v19  ;;  %v20728_v19 = vld [vmem:[#allocation14 + $0xa88] ss:$16 sps:$4 sm:$0xff]  }
 0x9bc   : > { %13928 = vmatpush1.bf16.msra.mxu1 %v20647_v51  ;;  %14572 = vmatprep.subr.bf16.mxu0 %v20654_v54  ;;  %v20733_v51 = vld [vmem:[#allocation14 + $0xaa4] ss:$16 sps:$4 sm:$0xff]   ;;  %v20731_v54 = vld [vmem:[#allocation14 + $0xaa0] ss:$16 sps:$4 sm:$0xff]  }
 0x9bd   : > { %14654 = vmatprep.subr.bf16.mxu1 %v20657_v16  ;;  %v20734_v16 = vld [vmem:[#allocation14 + $0xaa8] ss:$16 sps:$4 sm:$0xff]  }
 0x9be   : > { %13864 = vmatmul.mubr.bf16.vlgmr.msra.gmra.mrb[20].mxu0 %v13306_v34 }
 0x9bf   : > { %13946 = vmatmul.mubr.bf16.vlgmr.msra.gmra.mrb[20].mxu1 %v13306_v34  ;;  %14573 = vmatpush1.bf16.msra.mxu0 %v20652_v28  ;;  %v20742_v28 = vld [vmem:[#allocation14 + $0xacc] ss:$16 sps:$4 sm:$0xff]   ;;  %v20737_v34 = vld [vmem:[#allocation14 + $0xac0] ss:$16 sps:$4 sm:$0xff]  }
 0x9c0   : > { %14604 = vmatprep.mubr.bf16.mxu0 %v14080_v23  ;;  %14655 = vmatpush1.bf16.msra.mxu1 %v20655_v24  ;;  %v20740_v24 = vld [vmem:[#allocation14 + $0xac8] ss:$16 sps:$4 sm:$0xff]  }
 0x9c1   : > { %14686 = vmatprep.mubr.bf16.mxu1 %v14080_v23  ;;  %14574 = vmatprep.subr.bf16.mxu0 %v20661_v25  ;;  %v20745_v25 = vld [vmem:[#allocation14 + $0xae4] ss:$16 sps:$4 sm:$0xff]   ;;  %v14066_v23 = vshrl.u32 %v18050_v63, 16 }
 0x9c2   : > { %14656 = vmatprep.subr.bf16.mxu1 %v20664_v17  ;;  %v14069_v17 = vshll.u32 %v18050_v63, 16  ;;  %v20811_v63 = vld [vmem:[#allocation14 + $0xc2c] ss:$16 sps:$4 sm:$0xff]  }
 0x9c3   : > { %14575 = vmatpush1.bf16.msra.mxu0 %v20659_v22  ;;  %v20748_v22 = vld [vmem:[#allocation14 + $0xaec] ss:$16 sps:$4 sm:$0xff]  }
 0x9c4   : > { %14657 = vmatpush1.bf16.msra.mxu1 %v20662_v6  ;;  %14576 = vmatprep.subr.bf16.mxu0 %v20667_v45  ;;  %v20743_v6 = vld [vmem:[#allocation14 + $0xae0] ss:$16 sps:$4 sm:$0xff]   ;;  %v20746_v45 = vld [vmem:[#allocation14 + $0xae8] ss:$16 sps:$4 sm:$0xff]  }
 0x9c5   : > { %14658 = vmatprep.subr.bf16.mxu1 %v20670_v53  ;;  %v14068_v53 = vrot.slane %v14066_v23, 1  ;;  %v20812_v23 = vld [vmem:[#allocation14 + $0xc40] ss:$16 sps:$4 sm:$0xff]  }
 0x9c7   : > { %14577 = vmatpush1.bf16.msra.mxu0 %v20665_v36  ;;  %v14071_v36 = vrot.slane %v14069_v17, 2  ;;  %v20815_v17 = vld [vmem:[#allocation14 + $0xc48] ss:$16 sps:$4 sm:$0xff]  }
 0x9c8   : > { %14659 = vmatpush1.bf16.msra.mxu1 %v20668_v61  ;;  %14578 = vmatprep.subr.bf16.mxu0 %v20673_v30  ;;  %v20755_v61 = vld [vmem:[#allocation14 + $0xb0c] ss:$16 sps:$4 sm:$0xff]   ;;  %v20750_v30 = vld [vmem:[#allocation14 + $0xb00] ss:$16 sps:$4 sm:$0xff]  }
 0x9c9   : > { %14660 = vmatprep.subr.bf16.mxu1 %v20676_v26  ;;  %v14072_v26 = vor.u32 %v14071_v36, %v14068_v53  ;;  %v20821_v53 = vld [vmem:[#allocation14 + $0xc68] ss:$16 sps:$4 sm:$0xff]   ;;  %v20826_v36 = vld [vmem:[#allocation14 + $0xc84] ss:$16 sps:$4 sm:$0xff]  }
 0x9cb   : > { %14579 = vmatpush1.bf16.msra.mxu0 %v20671_v1  ;;  %v20753_v1 = vld [vmem:[#allocation14 + $0xb08] ss:$16 sps:$4 sm:$0xff]  }
 0x9cc   : > { %14661 = vmatpush1.bf16.msra.mxu1 %v20674_v27  ;;  %14580 = vmatprep.subr.bf16.mxu0 %v20679_v14  ;;  %v20758_v27 = vld [vmem:[#allocation14 + $0xb24] ss:$16 sps:$4 sm:$0xff]   ;;  %v20761_v14 = vld [vmem:[#allocation14 + $0xb2c] ss:$16 sps:$4 sm:$0xff]  }
 0x9cd   : > { %14662 = vmatprep.subr.bf16.mxu1 %v20682_v0  ;;  %v20756_v0 = vld [vmem:[#allocation14 + $0xb20] ss:$16 sps:$4 sm:$0xff]  }
 0x9cf   : > { %14581 = vmatpush1.bf16.msra.mxu0 %v20677_v7  ;;  %v20759_v7 = vld [vmem:[#allocation14 + $0xb28] ss:$16 sps:$4 sm:$0xff]  }
 0x9d0   : > { %14663 = vmatpush1.bf16.msra.mxu1 %v20680_v18  ;;  %14582 = vmatprep.subr.bf16.mxu0 %v20685_v58  ;;  %v20764_v18 = vld [vmem:[#allocation14 + $0xb44] ss:$16 sps:$4 sm:$0xff]   ;;  %v20767_v58 = vld [vmem:[#allocation14 + $0xb4c] ss:$16 sps:$4 sm:$0xff]  }
 0x9d1   : > { %14664 = vmatprep.subr.bf16.mxu1 %v20688_v9  ;;  %v20762_v9 = vld [vmem:[#allocation14 + $0xb40] ss:$16 sps:$4 sm:$0xff]  }
 0x9d3   : > { %14583 = vmatpush1.bf16.msra.mxu0 %v20683_v10  ;;  %v20765_v10 = vld [vmem:[#allocation14 + $0xb48] ss:$16 sps:$4 sm:$0xff]  }
 0x9d4   : > { %14665 = vmatpush1.bf16.msra.mxu1 %v20686_v12  ;;  %14584 = vmatprep.subr.bf16.mxu0 %v20691_v39  ;;  %v20770_v12 = vld [vmem:[#allocation14 + $0xb64] ss:$16 sps:$4 sm:$0xff]   ;;  %v20773_v39 = vld [vmem:[#allocation14 + $0xb6c] ss:$16 sps:$4 sm:$0xff]  }
 0x9d5   : > { %14666 = vmatprep.subr.bf16.mxu1 %v20694_v20  ;;  %v20768_v20 = vld [vmem:[#allocation14 + $0xb60] ss:$16 sps:$4 sm:$0xff]  }
 0x9d7   : > { %14585 = vmatpush1.bf16.msra.mxu0 %v20689_v49  ;;  %v20771_v49 = vld [vmem:[#allocation14 + $0xb68] ss:$16 sps:$4 sm:$0xff]  }
 0x9d8   : > { %14667 = vmatpush1.bf16.msra.mxu1 %v20692_v33  ;;  %14586 = vmatprep.subr.bf16.mxu0 %v20697_v11  ;;  %v20776_v33 = vld [vmem:[#allocation14 + $0xb84] ss:$16 sps:$4 sm:$0xff]   ;;  %v20779_v11 = vld [vmem:[#allocation14 + $0xb8c] ss:$16 sps:$4 sm:$0xff]  }
 0x9d9   : > { %14668 = vmatprep.subr.bf16.mxu1 %v20700_v50  ;;  %v20774_v50 = vld [vmem:[#allocation14 + $0xb80] ss:$16 sps:$4 sm:$0xff]  }
 0x9db   : > { %14587 = vmatpush1.bf16.msra.mxu0 %v20695_v60  ;;  %v20777_v60 = vld [vmem:[#allocation14 + $0xb88] ss:$16 sps:$4 sm:$0xff]  }
 0x9dc   : > { %14669 = vmatpush1.bf16.msra.mxu1 %v20698_v4  ;;  %14588 = vmatprep.subr.bf16.mxu0 %v20703_v46  ;;  %v20782_v4 = vld [vmem:[#allocation14 + $0xba4] ss:$16 sps:$4 sm:$0xff]  }
 0x9dd   : > { %14670 = vmatprep.subr.bf16.mxu1 %v20706_v37  ;;  %v23047_v46 = vld [vmem:[#allocation4 + $0x14] sm:$0x3]  ;;  %v20785_v37 = vld [vmem:[#allocation14 + $0xbac] ss:$16 sps:$4 sm:$0xff]  }
 0x9df   : > { %14589 = vmatpush1.bf16.msra.mxu0 %v20701_v48  ;;  %v20780_v48 = vld [vmem:[#allocation14 + $0xba0] ss:$16 sps:$4 sm:$0xff]  }
 0x9e0   : > { %14671 = vmatpush1.bf16.msra.mxu1 %v20704_v32  ;;  %14590 = vmatprep.subr.bf16.mxu0 %v20709_v38  ;;  %v18052_v32 = vcombine.low %v23039_v41, %v23047_v46  ;;  %v20783_v38 = vld [vmem:[#allocation14 + $0xba8] ss:$16 sps:$4 sm:$0xff]  }
 0x9e1   : > { %14672 = vmatprep.subr.bf16.mxu1 %v20712_v3  ;;  %v20788_v3 = vld [vmem:[#allocation14 + $0xbc4] ss:$16 sps:$4 sm:$0xff]   ;;  %v20795_v41 = vld [vmem:[#allocation14 + $0xbe8] ss:$16 sps:$4 sm:$0xff]  }
 0x9e3   : > { %14591 = vmatpush1.bf16.msra.mxu0 %v20707_v59  ;;  %v20791_v59 = vld [vmem:[#allocation14 + $0xbcc] ss:$16 sps:$4 sm:$0xff]  }
 0x9e4   : > { %14673 = vmatpush1.bf16.msra.mxu1 %v20710_v56  ;;  %14592 = vmatprep.subr.bf16.mxu0 %v20715_v57  ;;  %v20786_v56 = vld [vmem:[#allocation14 + $0xbc0] ss:$16 sps:$4 sm:$0xff]   ;;  %v20789_v57 = vld [vmem:[#allocation14 + $0xbc8] ss:$16 sps:$4 sm:$0xff]  }
 0x9e5   : > { %14674 = vmatprep.subr.bf16.mxu1 %v20718_v52  ;;  %v20794_v52 = vld [vmem:[#allocation14 + $0xbe4] ss:$16 sps:$4 sm:$0xff]  }
 0x9e7   : > { %14593 = vmatpush1.bf16.msra.mxu0 %v20713_v55  ;;  %v14082_v55 = vshrl.u32 %v18052_v32, 16 }
 0x9e8   : > { %14675 = vmatpush1.bf16.msra.mxu1 %v20716_v2  ;;  %14594 = vmatprep.subr.bf16.mxu0 %v20721_v8  ;;  %v14085_v2 = vshll.u32 %v18052_v32, 16  ;;  %v20797_v8 = vld [vmem:[#allocation14 + $0xbec] ss:$16 sps:$4 sm:$0xff]  }
 0x9e9   : > { %14676 = vmatprep.subr.bf16.mxu1 %v20724_v40  ;;  %v20792_v40 = vld [vmem:[#allocation14 + $0xbe0] ss:$16 sps:$4 sm:$0xff]   ;;  %v20865_v32 = vld [vmem:[#allocation14 + $0xd4c] ss:$16 sps:$4 sm:$0xff]  }
 0x9eb   : > { %14595 = vmatpush1.bf16.msra.mxu0 %v20719_v13  ;;  %v23051_v13 = vld [vmem:[#allocation4] sm:$0xcc] }
 0x9ec   : > { %14677 = vmatpush1.bf16.msra.mxu1 %v20722_v15  ;;  %14596 = vmatprep.subr.bf16.mxu0 %v20727_v43  ;;  %v14084_v15 = vrot.slane %v14082_v55, 1  ;;  %v14087_v43 = vrot.slane %v14085_v2, 2  ;;  %v20874_v55 = vld [vmem:[#allocation14 + $0xd84] ss:$16 sps:$4 sm:$0xff]   ;;  %v20877_v2 = vld [vmem:[#allocation14 + $0xd8c] ss:$16 sps:$4 sm:$0xff]  }
 0x9ed   : > { %14678 = vmatprep.subr.bf16.mxu1 %v20730_v35  ;;  %v20800_v35 = vld [vmem:[#allocation14 + $0xc04] ss:$16 sps:$4 sm:$0xff]  }
 0x9ef   : > { %14597 = vmatpush1.bf16.msra.mxu0 %v20725_v21  ;;  %v20803_v21 = vld [vmem:[#allocation14 + $0xc0c] ss:$16 sps:$4 sm:$0xff]  }
 0x9f0   : > { %14679 = vmatpush1.bf16.msra.mxu1 %v20728_v19  ;;  %14598 = vmatprep.subr.bf16.mxu0 %v20733_v51  ;;  %v18150_v19 = vcombine.high %v23051_v13, %v23035_v62  ;;  %v20798_v51 = vld [vmem:[#allocation14 + $0xc00] ss:$16 sps:$4 sm:$0xff]  }
 0x9f1   : > { %14680 = vmatprep.subr.bf16.mxu1 %v20736_v42  ;;  %v14088_v42 = vor.u32 %v14087_v43, %v14084_v15  ;;  %v20883_v15 = vld [vmem:[#allocation14 + $0xdac] ss:$16 sps:$4 sm:$0xff]   ;;  %v20878_v43 = vld [vmem:[#allocation14 + $0xda0] ss:$16 sps:$4 sm:$0xff]  }
 0x9f3   : > { %14599 = vmatpush1.bf16.msra.mxu0 %v20731_v54  ;;  %v20801_v54 = vld [vmem:[#allocation14 + $0xc08] ss:$16 sps:$4 sm:$0xff]  }
 0x9f4   : > { %14681 = vmatpush1.bf16.msra.mxu1 %v20734_v16  ;;  %14600 = vmatprep.subr.bf16.mxu0 %v20739_v44  ;;  %v20808_v16 = vld [vmem:[#allocation14 + $0xc24] ss:$16 sps:$4 sm:$0xff]   ;;  %v14848_v44 = vrot.slane %v18150_v19, 2  ;;  %v20889_v19 = vld [vmem:[#allocation14 + $0xdcc] ss:$16 sps:$4 sm:$0xff]  }
 0x9f5   : > { %14682 = vmatprep.subr.bf16.mxu1 %v20742_v28  ;;  %v20806_v28 = vld [vmem:[#allocation14 + $0xc20] ss:$16 sps:$4 sm:$0xff]  }
 0x9f7   : > { %14601 = vmatpush1.bf16.msra.mxu0 %v20737_v34  ;;  %v20809_v34 = vld [vmem:[#allocation14 + $0xc28] ss:$16 sps:$4 sm:$0xff]  }
 0x9f8   : > { %14683 = vmatpush1.bf16.msra.mxu1 %v20740_v24  ;;  %14602 = vmatprep.subr.bf16.mxu0 %v20745_v25  ;;  %v20814_v24 = vld [vmem:[#allocation14 + $0xc44] ss:$16 sps:$4 sm:$0xff]   ;;  %v20817_v25 = vld [vmem:[#allocation14 + $0xc4c] ss:$16 sps:$4 sm:$0xff]  }
 0x9f9   : > { %14684 = vmatprep.subr.bf16.mxu1 %v20748_v22  ;;  %v20820_v22 = vld [vmem:[#allocation14 + $0xc64] ss:$16 sps:$4 sm:$0xff]  }
 0x9fb   : > { %14603 = vmatpush1.bf16.msra.mxu0 %v20743_v6  ;;  %v20823_v6 = vld [vmem:[#allocation14 + $0xc6c] ss:$16 sps:$4 sm:$0xff]  }
 0x9fc   : > { %14685 = vmatpush1.bf16.msra.mxu1 %v20746_v45  ;;  %14613 = vmatprep.subr.bf16.mxu0 %v20752_v47  ;;  %v20818_v45 = vld [vmem:[#allocation14 + $0xc60] ss:$16 sps:$4 sm:$0xff]   ;;  %v20829_v47 = vld [vmem:[#allocation14 + $0xc8c] ss:$16 sps:$4 sm:$0xff]  }
 0x9fd   : > { %14695 = vmatprep.subr.bf16.mxu1 %v20755_v61  ;;  %v20824_v61 = vld [vmem:[#allocation14 + $0xc80] ss:$16 sps:$4 sm:$0xff]  }
 0x9fe   : > { %14605 = vmatmul.mubr.bf16.vlgmr.msra.gmra.mrb[20].mxu0 %v14072_v26 }
 0x9ff   : > { %14687 = vmatmul.mubr.bf16.vlgmr.msra.gmra.mrb[20].mxu1 %v14072_v26  ;;  %14614 = vmatpush1.bf16.msra.mxu0 %v20750_v30  ;;  %v20827_v30 = vld [vmem:[#allocation14 + $0xc88] ss:$16 sps:$4 sm:$0xff]   ;;  %v20832_v26 = vld [vmem:[#allocation14 + $0xca4] ss:$16 sps:$4 sm:$0xff]  }
 0xa00   : > { %14696 = vmatpush1.bf16.msra.mxu1 %v20753_v1  ;;  %14615 = vmatprep.subr.bf16.mxu0 %v20758_v27  ;;  %v20835_v1 = vld [vmem:[#allocation14 + $0xcac] ss:$16 sps:$4 sm:$0xff]   ;;  %v20830_v27 = vld [vmem:[#allocation14 + $0xca0] ss:$16 sps:$4 sm:$0xff]  }
 0xa01   : > { %14697 = vmatprep.subr.bf16.mxu1 %v20761_v14  ;;  %14645 = vmatprep.mubr.bf16.mxu0 %v22933_v5  ;;  %v20833_v14 = vld [vmem:[#allocation14 + $0xca8] ss:$16 sps:$4 sm:$0xff]  }
 0xa02   : > { %14727 = vmatprep.mubr.bf16.mxu1 %v22933_v5 }
 0xa03   : > { %14616 = vmatpush1.bf16.msra.mxu0 %v20756_v0  ;;  %v20838_v0 = vld [vmem:[#allocation14 + $0xcc4] ss:$16 sps:$4 sm:$0xff]  }
 0xa04   : > { %14698 = vmatpush1.bf16.msra.mxu1 %v20759_v7  ;;  %14617 = vmatprep.subr.bf16.mxu0 %v20764_v18  ;;  %v20841_v7 = vld [vmem:[#allocation14 + $0xccc] ss:$16 sps:$4 sm:$0xff]   ;;  %v20836_v18 = vld [vmem:[#allocation14 + $0xcc0] ss:$16 sps:$4 sm:$0xff]  }
 0xa05   : > { %14699 = vmatprep.subr.bf16.mxu1 %v20767_v58  ;;  %v20839_v58 = vld [vmem:[#allocation14 + $0xcc8] ss:$16 sps:$4 sm:$0xff]  }
 0xa07   : > { %14618 = vmatpush1.bf16.msra.mxu0 %v20762_v9  ;;  %v20844_v9 = vld [vmem:[#allocation14 + $0xce4] ss:$16 sps:$4 sm:$0xff]  }
 0xa08   : > { %14700 = vmatpush1.bf16.msra.mxu1 %v20765_v10  ;;  %14619 = vmatprep.subr.bf16.mxu0 %v20770_v12  ;;  %v20847_v10 = vld [vmem:[#allocation14 + $0xcec] ss:$16 sps:$4 sm:$0xff]   ;;  %v20842_v12 = vld [vmem:[#allocation14 + $0xce0] ss:$16 sps:$4 sm:$0xff]  }
 0xa09   : > { %14701 = vmatprep.subr.bf16.mxu1 %v20773_v39  ;;  %v20845_v39 = vld [vmem:[#allocation14 + $0xce8] ss:$16 sps:$4 sm:$0xff]  }
 0xa0b   : > { %14620 = vmatpush1.bf16.msra.mxu0 %v20768_v20  ;;  %v20850_v20 = vld [vmem:[#allocation14 + $0xd04] ss:$16 sps:$4 sm:$0xff]  }
 0xa0c   : > { %14702 = vmatpush1.bf16.msra.mxu1 %v20771_v49  ;;  %14621 = vmatprep.subr.bf16.mxu0 %v20776_v33  ;;  %v20853_v49 = vld [vmem:[#allocation14 + $0xd0c] ss:$16 sps:$4 sm:$0xff]   ;;  %v20848_v33 = vld [vmem:[#allocation14 + $0xd00] ss:$16 sps:$4 sm:$0xff]  }
 0xa0d   : > { %14703 = vmatprep.subr.bf16.mxu1 %v20779_v11  ;;  %v20851_v11 = vld [vmem:[#allocation14 + $0xd08] ss:$16 sps:$4 sm:$0xff]  }
 0xa0f   : > { %14622 = vmatpush1.bf16.msra.mxu0 %v20774_v50  ;;  %v20856_v50 = vld [vmem:[#allocation14 + $0xd24] ss:$16 sps:$4 sm:$0xff]  }
 0xa10   : > { %14704 = vmatpush1.bf16.msra.mxu1 %v20777_v60  ;;  %14623 = vmatprep.subr.bf16.mxu0 %v20782_v4  ;;  %v20859_v60 = vld [vmem:[#allocation14 + $0xd2c] ss:$16 sps:$4 sm:$0xff]   ;;  %v20854_v4 = vld [vmem:[#allocation14 + $0xd20] ss:$16 sps:$4 sm:$0xff]  }
 0xa11   : > { %14705 = vmatprep.subr.bf16.mxu1 %v20785_v37  ;;  %v20857_v37 = vld [vmem:[#allocation14 + $0xd28] ss:$16 sps:$4 sm:$0xff]  }
 0xa13   : > { %14624 = vmatpush1.bf16.msra.mxu0 %v20780_v48  ;;  %v20862_v48 = vld [vmem:[#allocation14 + $0xd44] ss:$16 sps:$4 sm:$0xff]  }
 0xa14   : > { %14706 = vmatpush1.bf16.msra.mxu1 %v20783_v38  ;;  %14625 = vmatprep.subr.bf16.mxu0 %v20788_v3  ;;  %v20860_v38 = vld [vmem:[#allocation14 + $0xd40] ss:$16 sps:$4 sm:$0xff]   ;;  %v20863_v3 = vld [vmem:[#allocation14 + $0xd48] ss:$16 sps:$4 sm:$0xff]  }
 0xa15   : > { %14707 = vmatprep.subr.bf16.mxu1 %v20791_v59  ;;  %v20868_v59 = vld [vmem:[#allocation14 + $0xd64] ss:$16 sps:$4 sm:$0xff]  }
 0xa17   : > { %14626 = vmatpush1.bf16.msra.mxu0 %v20786_v56  ;;  %v20871_v56 = vld [vmem:[#allocation14 + $0xd6c] ss:$16 sps:$4 sm:$0xff]  }
 0xa18   : > { %14708 = vmatpush1.bf16.msra.mxu1 %v20789_v57  ;;  %14627 = vmatprep.subr.bf16.mxu0 %v20794_v52  ;;  %v20866_v57 = vld [vmem:[#allocation14 + $0xd60] ss:$16 sps:$4 sm:$0xff]   ;;  %v20869_v52 = vld [vmem:[#allocation14 + $0xd68] ss:$16 sps:$4 sm:$0xff]  }
 0xa19   : > { %14709 = vmatprep.subr.bf16.mxu1 %v20797_v8  ;;  %v20872_v8 = vld [vmem:[#allocation14 + $0xd80] ss:$16 sps:$4 sm:$0xff]  }
 0xa1b   : > { %14628 = vmatpush1.bf16.msra.mxu0 %v20792_v40  ;;  %v20875_v40 = vld [vmem:[#allocation14 + $0xd88] ss:$16 sps:$4 sm:$0xff]  }
 0xa1c   : > { %14710 = vmatpush1.bf16.msra.mxu1 %v20795_v41  ;;  %15333 = vmatprep.subr.bf16.mxu0 %v20800_v35  ;;  %v20880_v41 = vld [vmem:[#allocation14 + $0xda4] ss:$16 sps:$4 sm:$0xff]   ;;  %v20881_v35 = vld [vmem:[#allocation14 + $0xda8] ss:$16 sps:$4 sm:$0xff]  }
 0xa1d   : > { %15415 = vmatprep.subr.bf16.mxu1 %v20803_v21  ;;  %v20886_v21 = vld [vmem:[#allocation14 + $0xdc4] ss:$16 sps:$4 sm:$0xff]  }
 0xa1e   : > { %14646 = vmatmul.mubr.bf16.vlgmr.msra.gmra.mrb[20].mxu0 %v14088_v42 }
 0xa1f   : > { %14728 = vmatmul.mubr.bf16.vlgmr.msra.gmra.mrb[20].mxu1 %v14088_v42  ;;  %15334 = vmatpush1.bf16.msra.mxu0 %v20798_v51  ;;  %v20884_v51 = vld [vmem:[#allocation14 + $0xdc0] ss:$16 sps:$4 sm:$0xff]   ;;  %v20887_v42 = vld [vmem:[#allocation14 + $0xdc8] ss:$16 sps:$4 sm:$0xff]  }
 0xa20   : > { %15365 = vmatprep.mubr.bf16.mxu0 %v14848_v44  ;;  %15416 = vmatpush1.bf16.msra.mxu1 %v20801_v54  ;;  %v20892_v54 = vld [vmem:[#allocation14 + $0xde4] ss:$16 sps:$4 sm:$0xff]  }
 0xa21   : > { %15447 = vmatprep.mubr.bf16.mxu1 %v14848_v44  ;;  %15335 = vmatprep.subr.bf16.mxu0 %v20808_v16  ;;  %v20895_v16 = vld [vmem:[#allocation14 + $0xdec] ss:$16 sps:$4 sm:$0xff]   ;;  %v20890_v44 = vld [vmem:[#allocation14 + $0xde0] ss:$16 sps:$4 sm:$0xff]  }
 0xa22   : > { %15417 = vmatprep.subr.bf16.mxu1 %v20811_v63  ;;  %v18149_v63 = vcombine.low %v23051_v13, %v23035_v62  ;;  %v20905_v62 = vld [vmem:[#allocation14 + $0xe28] ss:$16 sps:$4 sm:$0xff]   ;;  %v20910_v13 = vld [vmem:[#allocation14 + $0xe44] ss:$16 sps:$4 sm:$0xff]  }
 0xa23   : > { %15336 = vmatpush1.bf16.msra.mxu0 %v20806_v28  ;;  %v20893_v28 = vld [vmem:[#allocation14 + $0xde8] ss:$16 sps:$4 sm:$0xff]  }
 0xa24   : > { %15418 = vmatpush1.bf16.msra.mxu1 %v20809_v34  ;;  %15337 = vmatprep.subr.bf16.mxu0 %v20814_v24  ;;  %v20898_v34 = vld [vmem:[#allocation14 + $0xe04] ss:$16 sps:$4 sm:$0xff]   ;;  %v20901_v24 = vld [vmem:[#allocation14 + $0xe0c] ss:$16 sps:$4 sm:$0xff]  }
 0xa25   : > { %15419 = vmatprep.subr.bf16.mxu1 %v20817_v25  ;;  %v20896_v25 = vld [vmem:[#allocation14 + $0xe00] ss:$16 sps:$4 sm:$0xff]  }
 0xa27   : > { %15338 = vmatpush1.bf16.msra.mxu0 %v20812_v23  ;;  %v14847_v23 = vrot.slane %v18149_v63, 2  ;;  %v20969_v63 = vld [vmem:[#allocation17 + $0xf0] sm:$0xff]  }
 0xa28   : > { %15420 = vmatpush1.bf16.msra.mxu1 %v20815_v17  ;;  %15339 = vmatprep.subr.bf16.mxu0 %v20820_v22  ;;  %v20899_v17 = vld [vmem:[#allocation14 + $0xe08] ss:$16 sps:$4 sm:$0xff]   ;;  %v20904_v22 = vld [vmem:[#allocation14 + $0xe24] ss:$16 sps:$4 sm:$0xff]  }
 0xa29   : > { %15421 = vmatprep.subr.bf16.mxu1 %v20823_v6  ;;  %v20907_v6 = vld [vmem:[#allocation14 + $0xe2c] ss:$16 sps:$4 sm:$0xff]  }
 0xa2b   : > { %15340 = vmatpush1.bf16.msra.mxu0 %v20818_v45  ;;  %v20902_v45 = vld [vmem:[#allocation14 + $0xe20] ss:$16 sps:$4 sm:$0xff]  }
 0xa2c   : > { %15422 = vmatpush1.bf16.msra.mxu1 %v20821_v53  ;;  %15341 = vmatprep.subr.bf16.mxu0 %v20826_v36  ;;  %v20913_v53 = vld [vmem:[#allocation14 + $0xe4c] ss:$16 sps:$4 sm:$0xff]   ;;  %v20908_v36 = vld [vmem:[#allocation14 + $0xe40] ss:$16 sps:$4 sm:$0xff]  }
 0xa2d   : > { %15423 = vmatprep.subr.bf16.mxu1 %v20829_v47  ;;  %v20911_v47 = vld [vmem:[#allocation14 + $0xe48] ss:$16 sps:$4 sm:$0xff]  }
 0xa2f   : > { %15342 = vmatpush1.bf16.msra.mxu0 %v20824_v61  ;;  %v20916_v61 = vld [vmem:[#allocation14 + $0xe64] ss:$16 sps:$4 sm:$0xff]  }
 0xa30   : > { %15424 = vmatpush1.bf16.msra.mxu1 %v20827_v30  ;;  %15343 = vmatprep.subr.bf16.mxu0 %v20832_v26  ;;  %v20919_v30 = vld [vmem:[#allocation14 + $0xe6c] ss:$16 sps:$4 sm:$0xff]   ;;  %v20914_v26 = vld [vmem:[#allocation14 + $0xe60] ss:$16 sps:$4 sm:$0xff]  }
 0xa31   : > { %15425 = vmatprep.subr.bf16.mxu1 %v20835_v1  ;;  %v20917_v1 = vld [vmem:[#allocation14 + $0xe68] ss:$16 sps:$4 sm:$0xff]  }
 0xa33   : > { %15344 = vmatpush1.bf16.msra.mxu0 %v20830_v27  ;;  %v20922_v27 = vld [vmem:[#allocation14 + $0xe84] ss:$16 sps:$4 sm:$0xff]  }
 0xa34   : > { %15426 = vmatpush1.bf16.msra.mxu1 %v20833_v14  ;;  %15345 = vmatprep.subr.bf16.mxu0 %v20838_v0  ;;  %v20925_v14 = vld [vmem:[#allocation14 + $0xe8c] ss:$16 sps:$4 sm:$0xff]   ;;  %v20920_v0 = vld [vmem:[#allocation14 + $0xe80] ss:$16 sps:$4 sm:$0xff]  }
 0xa35   : > { %15427 = vmatprep.subr.bf16.mxu1 %v20841_v7  ;;  %v20928_v7 = vld [vmem:[#allocation14 + $0xea4] ss:$16 sps:$4 sm:$0xff]  }
 0xa37   : > { %15346 = vmatpush1.bf16.msra.mxu0 %v20836_v18  ;;  %v20931_v18 = vld [vmem:[#allocation14 + $0xeac] ss:$16 sps:$4 sm:$0xff]  }
 0xa38   : > { %15428 = vmatpush1.bf16.msra.mxu1 %v20839_v58  ;;  %15347 = vmatprep.subr.bf16.mxu0 %v20844_v9  ;;  %v20926_v58 = vld [vmem:[#allocation14 + $0xea0] ss:$16 sps:$4 sm:$0xff]   ;;  %v20929_v9 = vld [vmem:[#allocation14 + $0xea8] ss:$16 sps:$4 sm:$0xff]  }
 0xa39   : > { %15429 = vmatprep.subr.bf16.mxu1 %v20847_v10  ;;  %v20934_v10 = vld [vmem:[#allocation14 + $0xec4] ss:$16 sps:$4 sm:$0xff]  }
 0xa3b   : > { %15348 = vmatpush1.bf16.msra.mxu0 %v20842_v12  ;;  %v20937_v12 = vld [vmem:[#allocation14 + $0xecc] ss:$16 sps:$4 sm:$0xff]  }
 0xa3c   : > { %15430 = vmatpush1.bf16.msra.mxu1 %v20845_v39  ;;  %15349 = vmatprep.subr.bf16.mxu0 %v20850_v20  ;;  %v20932_v39 = vld [vmem:[#allocation14 + $0xec0] ss:$16 sps:$4 sm:$0xff]   ;;  %v20935_v20 = vld [vmem:[#allocation14 + $0xec8] ss:$16 sps:$4 sm:$0xff]  }
 0xa3d   : > { %15431 = vmatprep.subr.bf16.mxu1 %v20853_v49  ;;  %v20940_v49 = vld [vmem:[#allocation14 + $0xee4] ss:$16 sps:$4 sm:$0xff]  }
 0xa3f   : > { %15350 = vmatpush1.bf16.msra.mxu0 %v20848_v33  ;;  %v20943_v33 = vld [vmem:[#allocation14 + $0xeec] ss:$16 sps:$4 sm:$0xff]  }
 0xa40   : > { %15432 = vmatpush1.bf16.msra.mxu1 %v20851_v11  ;;  %15351 = vmatprep.subr.bf16.mxu0 %v20856_v50  ;;  %v14741_v11 = vld [vmem:[#allocation4 + $0x8] sm:$0xc]  ;;  %v20938_v50 = vld [vmem:[#allocation14 + $0xee0] ss:$16 sps:$4 sm:$0xff]  }
 0xa41   : > { %15433 = vmatprep.subr.bf16.mxu1 %v20859_v60  ;;  %v20941_v60 = vld [vmem:[#allocation14 + $0xee8] ss:$16 sps:$4 sm:$0xff]  }
 0xa43   : > { %15352 = vmatpush1.bf16.msra.mxu0 %v20854_v4  ;;  %v18151_v4 = vcombine.low %v14741_v11, %v23047_v46  ;;  %v20953_v46 = vld [vmem:[#allocation17 + $0xd0] sm:$0xff]  }
 0xa44   : > { %15434 = vmatpush1.bf16.msra.mxu1 %v20857_v37  ;;  %15353 = vmatprep.subr.bf16.mxu0 %v20862_v48  ;;  %v20945_v37 = vld [vmem:[#allocation17 + $0xc0] sm:$0xff]  }
 0xa45   : > { %15435 = vmatprep.subr.bf16.mxu1 %v20865_v32  ;;  %v20946_v48 = vld [vmem:[#allocation17 + $0x40] sm:$0xff]  }
 0xa46   : > { %v20947_v32 = vld [vmem:[#allocation17 + $0x80] sm:$0xff]  }
 0xa47   : > { %15354 = vmatpush1.bf16.msra.mxu0 %v20860_v38  ;;  %v14849_v38 = vrot.slane %v18151_v4, 2 }
 0xa48   : > { %15436 = vmatpush1.bf16.msra.mxu1 %v20863_v3  ;;  %15355 = vmatprep.subr.bf16.mxu0 %v20868_v59  ;;  %v20948_v3 = vld [vmem:[#allocation17] sm:$0xff]   ;;  %v20949_v59 = vld [vmem:[#allocation17 + $0xc8] sm:$0xff]  }
 0xa49   : > { %15437 = vmatprep.subr.bf16.mxu1 %v20871_v56  ;;  %v20950_v56 = vld [vmem:[#allocation17 + $0x48] sm:$0xff]  }
 0xa4b   : > { %15356 = vmatpush1.bf16.msra.mxu0 %v20866_v57  ;;  %v20951_v57 = vld [vmem:[#allocation17 + $0x88] sm:$0xff]  }
 0xa4c   : > { %15438 = vmatpush1.bf16.msra.mxu1 %v20869_v52  ;;  %15357 = vmatprep.subr.bf16.mxu0 %v20874_v55  ;;  %v20952_v52 = vld [vmem:[#allocation17 + $0x8] sm:$0xff]   ;;  %v20954_v55 = vld [vmem:[#allocation17 + $0x50] sm:$0xff]  }
 0xa4d   : > { %15439 = vmatprep.subr.bf16.mxu1 %v20877_v2  ;;  %v20955_v2 = vld [vmem:[#allocation17 + $0x90] sm:$0xff]  }
 0xa4f   : > { %15358 = vmatpush1.bf16.msra.mxu0 %v20872_v8  ;;  %v20956_v8 = vld [vmem:[#allocation17 + $0x10] sm:$0xff]  }
 0xa50   : > { %15440 = vmatpush1.bf16.msra.mxu1 %v20875_v40  ;;  %15359 = vmatprep.subr.bf16.mxu0 %v20880_v41  ;;  %v20957_v40 = vld [vmem:[#allocation17 + $0xd8] sm:$0xff]  }
 0xa51   : > { %15441 = vmatprep.subr.bf16.mxu1 %v20883_v15  ;;  %v20958_v41 = vld [vmem:[#allocation17 + $0x58] sm:$0xff]  }
 0xa52   : > { %v20959_v15 = vld [vmem:[#allocation17 + $0x98] sm:$0xff]  }
 0xa53   : > { %15360 = vmatpush1.bf16.msra.mxu0 %v20878_v43  ;;  %v20960_v43 = vld [vmem:[#allocation17 + $0x18] sm:$0xff]  }
 0xa54   : > { %15442 = vmatpush1.bf16.msra.mxu1 %v20881_v35  ;;  %15361 = vmatprep.subr.bf16.mxu0 %v20886_v21  ;;  %v20961_v35 = vld [vmem:[#allocation17 + $0xe0] sm:$0xff]  }
 0xa55   : > { %15443 = vmatprep.subr.bf16.mxu1 %v20889_v19  ;;  %v20962_v21 = vld [vmem:[#allocation17 + $0x60] sm:$0xff]  }
 0xa56   : > { %v20963_v19 = vld [vmem:[#allocation17 + $0xa0] sm:$0xff]  }
 0xa57   : > { %15362 = vmatpush1.bf16.msra.mxu0 %v20884_v51  ;;  %v20964_v51 = vld [vmem:[#allocation17 + $0x20] sm:$0xff]  }
 0xa58   : > { %15444 = vmatpush1.bf16.msra.mxu1 %v20887_v42  ;;  %15363 = vmatprep.subr.bf16.mxu0 %v20892_v54  ;;  %v20965_v42 = vld [vmem:[#allocation17 + $0xe8] sm:$0xff]  }
 0xa59   : > { %15445 = vmatprep.subr.bf16.mxu1 %v20895_v16  ;;  %v20966_v54 = vld [vmem:[#allocation17 + $0x68] sm:$0xff]  }
 0xa5a   : > { %v20967_v16 = vld [vmem:[#allocation17 + $0xa8] sm:$0xff]  }
 0xa5b   : > { %15364 = vmatpush1.bf16.msra.mxu0 %v20890_v44  ;;  %v20968_v44 = vld [vmem:[#allocation17 + $0x28] sm:$0xff]  }
 0xa5c   : > { %15446 = vmatpush1.bf16.msra.mxu1 %v20893_v28  ;;  %15374 = vmatprep.subr.bf16.mxu0 %v20898_v34  ;;  %v20970_v28 = vld [vmem:[#allocation17 + $0x70] sm:$0xff]  }
 0xa5d   : > { %15456 = vmatprep.subr.bf16.mxu1 %v20901_v24  ;;  %v20971_v34 = vld [vmem:[#allocation17 + $0xb0] sm:$0xff]  }
 0xa5e   : > { %15366 = vmatmul.mubr.bf16.vlgmr.msra.gmra.mrb[20].mxu0 %v14847_v23  ;;  %v20972_v24 = vld [vmem:[#allocation17 + $0x30] sm:$0xff]  }
 0xa5f   : > { %15448 = vmatmul.mubr.bf16.vlgmr.msra.gmra.mrb[20].mxu1 %v14847_v23  ;;  %15375 = vmatpush1.bf16.msra.mxu0 %v20896_v25  ;;  %v20973_v25 = vld [vmem:[#allocation17 + $0xf8] sm:$0xff]  }
 0xa60   : > { %15457 = vmatpush1.bf16.msra.mxu1 %v20899_v17  ;;  %15376 = vmatprep.subr.bf16.mxu0 %v20904_v22  ;;  %v20974_v23 = vld [vmem:[#allocation17 + $0x78] sm:$0xff]  }
 0xa61   : > { %15458 = vmatprep.subr.bf16.mxu1 %v20907_v6  ;;  %15406 = vmatprep.mubr.bf16.mxu0 %v22933_v5  ;;  %v20975_v17 = vld [vmem:[#allocation17 + $0xb8] sm:$0xff]   ;;  %v20977_v6 = vld [vmem:[#allocation17 + $0x140] sm:$0xff]  }
 0xa62   : > { %15488 = vmatprep.mubr.bf16.mxu1 %v22933_v5  ;;  %v20923_v5 = vld [vmem:[#allocation14 + $0xe88] ss:$16 sps:$4 sm:$0xff]  }
 0xa63   : > { %15377 = vmatpush1.bf16.msra.mxu0 %v20902_v45  ;;  %v20976_v22 = vld [vmem:[#allocation17 + $0x38] sm:$0xff]   ;;  %v20978_v45 = vld [vmem:[#allocation17 + $0x1c0] sm:$0xff]  }
 0xa64   : > { %15459 = vmatpush1.bf16.msra.mxu1 %v20905_v62  ;;  %15378 = vmatprep.subr.bf16.mxu0 %v20910_v13  ;;  %v15503_v62 = vld [vmem:[#allocation15] sm:$0x3] }
 0xa65   : > { %15460 = vmatprep.subr.bf16.mxu1 %v20913_v53  ;;  %v15508_v53 = vrot.slane %v15503_v62, %v21980_v29 }
 0xa67   : > { %15379 = vmatpush1.bf16.msra.mxu0 %v20908_v36 }
 0xa68   : > { %15461 = vmatpush1.bf16.msra.mxu1 %v20911_v47  ;;  %15380 = vmatprep.subr.bf16.mxu0 %v20916_v61  ;;  %v15512_v61 = vrot.slane %v15503_v62, %v21984_v31  ;;  %v21003_v62 = vld [vmem:[#allocation17 + $0x130] sm:$0xff]  }
 0xa69   : > { %15462 = vmatprep.subr.bf16.mxu1 %v20919_v30 }
 0xa6b   : > { %15381 = vmatpush1.bf16.msra.mxu0 %v20914_v26 }
 0xa6c   : > { %15463 = vmatpush1.bf16.msra.mxu1 %v20917_v1  ;;  %15382 = vmatprep.subr.bf16.mxu0 %v20922_v27 }
 0xa6d   : > { %15464 = vmatprep.subr.bf16.mxu1 %v20925_v14 }
 0xa6f   : > { %15383 = vmatpush1.bf16.msra.mxu0 %v20920_v0 }
 0xa70   : > { %15465 = vmatpush1.bf16.msra.mxu1 %v20923_v5  ;;  %15384 = vmatprep.subr.bf16.mxu0 %v20928_v7 }
 0xa71   : > { %15466 = vmatprep.subr.bf16.mxu1 %v20931_v18 }
 0xa73   : > { %15385 = vmatpush1.bf16.msra.mxu0 %v20926_v58 }
 0xa74   : > { %15467 = vmatpush1.bf16.msra.mxu1 %v20929_v9  ;;  %15386 = vmatprep.subr.bf16.mxu0 %v20934_v10 }
 0xa75   : > { %15468 = vmatprep.subr.bf16.mxu1 %v20937_v12 }
 0xa77   : > { %15387 = vmatpush1.bf16.msra.mxu0 %v20932_v39 }
 0xa78   : > { %15469 = vmatpush1.bf16.msra.mxu1 %v20935_v20  ;;  %15388 = vmatprep.subr.bf16.mxu0 %v20940_v49 }
 0xa79   : > { %15470 = vmatprep.subr.bf16.mxu1 %v20943_v33 }
 0xa7b   : > { %15389 = vmatpush1.bf16.msra.mxu0 %v20938_v50 }
 0xa7c   : > { %15471 = vmatpush1.bf16.msra.mxu1 %v20941_v60  ;;  %18364 = vmatprep.subr.bf16.mxu0 %v20945_v37 }
 0xa7d   : > { %18386 = vmatprep.subr.bf16.mxu1 %v20946_v48 }
 0xa7e   : > { %15407 = vmatmul.mubr.bf16.vlgmr.msra.gmra.mrb[20].mxu0 %v14849_v38 }
 0xa7f   : > { %15489 = vmatmul.mubr.bf16.vlgmr.msra.gmra.mrb[20].mxu1 %v14849_v38  ;;  %18365 = vmatpush3.bf16.msra.mxu0 %v20947_v32 }
 0xa80   : > { %18387 = vmatpush3.bf16.msra.mxu1 %v20948_v3  ;;  %18366 = vmatprep.subr.bf16.mxu0 %v20949_v59 }
 0xa81   : > { %18388 = vmatprep.subr.bf16.mxu1 %v20950_v56  ;;  %v20979_v56 = vld [vmem:[#allocation17 + $0x100] sm:$0xff]  }
 0xa83   : > { %18367 = vmatpush3.bf16.msra.mxu0 %v20951_v57 }
 0xa84   : > { %18389 = vmatpush3.bf16.msra.mxu1 %v20952_v52  ;;  %18368 = vmatprep.subr.bf16.mxu0 %v20953_v46 }
 0xa85   : > { %18390 = vmatprep.subr.bf16.mxu1 %v20954_v55  ;;  %v20980_v55 = vld [vmem:[#allocation17 + $0x180] sm:$0xff]  }
 0xa87   : > { %18369 = vmatpush3.bf16.msra.mxu0 %v20955_v2 }
 0xa88   : > { %18391 = vmatpush3.bf16.msra.mxu1 %v20956_v8  ;;  %18370 = vmatprep.subr.bf16.mxu0 %v20957_v40  ;;  %v20981_v8 = vld [vmem:[#allocation17 + $0x148] sm:$0xff]  }
 0xa89   : > { %18392 = vmatprep.subr.bf16.mxu1 %v20958_v41  ;;  %v20982_v41 = vld [vmem:[#allocation17 + $0x1c8] sm:$0xff]  }
 0xa8b   : > { %18371 = vmatpush3.bf16.msra.mxu0 %v20959_v15 }
 0xa8c   : > { %18393 = vmatpush3.bf16.msra.mxu1 %v20960_v43  ;;  %18372 = vmatprep.subr.bf16.mxu0 %v20961_v35  ;;  %v20983_v43 = vld [vmem:[#allocation17 + $0x108] sm:$0xff]  }
 0xa8d   : > { %18394 = vmatprep.subr.bf16.mxu1 %v20962_v21  ;;  %v20984_v35 = vld [vmem:[#allocation17 + $0x188] sm:$0xff]   ;;  %v20985_v21 = vld [vmem:[#allocation17 + $0x150] sm:$0xff]  }
 0xa8f   : > { %18373 = vmatpush3.bf16.msra.mxu0 %v20963_v19  ;;  %v20986_v19 = vld [vmem:[#allocation17 + $0x1d0] sm:$0xff]  }
 0xa90   : > { %18395 = vmatpush3.bf16.msra.mxu1 %v20964_v51  ;;  %18374 = vmatprep.subr.bf16.mxu0 %v20965_v42  ;;  %v20988_v51 = vld [vmem:[#allocation17 + $0x190] sm:$0xff]   ;;  %v20989_v42 = vld [vmem:[#allocation17 + $0x158] sm:$0xff]  }
 0xa91   : > { %18396 = vmatprep.subr.bf16.mxu1 %v20966_v54  ;;  %v20990_v54 = vld [vmem:[#allocation17 + $0x1d8] sm:$0xff]  }
 0xa93   : > { %18375 = vmatpush3.bf16.msra.mxu0 %v20967_v16  ;;  %v20991_v16 = vld [vmem:[#allocation17 + $0x118] sm:$0xff]  }
 0xa94   : > { %18397 = vmatpush3.bf16.msra.mxu1 %v20968_v44  ;;  %18376 = vmatprep.subr.bf16.mxu0 %v20969_v63  ;;  %v20992_v44 = vld [vmem:[#allocation17 + $0x198] sm:$0xff]   ;;  %v20993_v63 = vld [vmem:[#allocation17 + $0x160] sm:$0xff]  }
 0xa95   : > { %18398 = vmatprep.subr.bf16.mxu1 %v20970_v28  ;;  %v20994_v28 = vld [vmem:[#allocation17 + $0x1e0] sm:$0xff]  }
 0xa97   : > { %18377 = vmatpush3.bf16.msra.mxu0 %v20971_v34  ;;  %v20995_v34 = vld [vmem:[#allocation17 + $0x120] sm:$0xff]  }
 0xa98   : > { %18399 = vmatpush3.bf16.msra.mxu1 %v20972_v24  ;;  %18378 = vmatprep.subr.bf16.mxu0 %v20973_v25  ;;  %v20996_v24 = vld [vmem:[#allocation17 + $0x1a0] sm:$0xff]   ;;  %v20997_v25 = vld [vmem:[#allocation17 + $0x168] sm:$0xff]  }
 0xa99   : > { %18400 = vmatprep.subr.bf16.mxu1 %v20974_v23  ;;  %v20998_v23 = vld [vmem:[#allocation17 + $0x1e8] sm:$0xff]  }
 0xa9b   : > { %18379 = vmatpush3.bf16.msra.mxu0 %v20975_v17  ;;  %v20999_v17 = vld [vmem:[#allocation17 + $0x128] sm:$0xff]  }
 0xa9c   : > { %18401 = vmatpush3.bf16.msra.mxu1 %v20976_v22  ;;  %18408 = vmatprep.subr.bf16.mxu0 %v20977_v6  ;;  %v21000_v22 = vld [vmem:[#allocation17 + $0x1a8] sm:$0xff]   ;;  %v21001_v6 = vld [vmem:[#allocation17 + $0x170] sm:$0xff]  }
 0xa9d   : > { %18430 = vmatprep.subr.bf16.mxu1 %v20978_v45  ;;  %v21002_v45 = vld [vmem:[#allocation17 + $0x1f0] sm:$0xff]  }
 0xb51   : > { %v15408_v13 = vpop.f32.mrb[20].mxu0 }
 0xb52   : > { %v15490_v36 = vpop.f32.mrb[20].mxu1  ;;  %v15410_v47 = vpop.f32.mrb[21].mxu0 }
 0xb53   : > { %v15501_v30 = vmax.f32 %v15408_v13, %v15490_v36  ;;  %v15492_v26 = vpop.f32.mrb[21].mxu1  ;;  %v15412_v1 = vpop.f32.mrb[22].mxu0  ;;  %v21004_v13 = vld [vmem:[#allocation17 + $0x1b0] sm:$0xff]   ;;  %v21006_v36 = vld [vmem:[#allocation17 + $0x1f8] sm:$0xff]  }
 0xb54   : > { %v15502_v27 = vmax.f32 %v15410_v47, %v15492_v26  ;;  %v15494_v14 = vpop.f32.mrb[22].mxu1  ;;  %v15413_v0 = vpop.f32.mrb[23].mxu0  ;;  %v21007_v47 = vld [vmem:[#allocation17 + $0x138] sm:$0xff]  }
 0xb55   : > { %v15515_v5 = vadd.f32 %v15508_v53, %v15501_v30  ;;  %v15495_v7 = vpop.f32.mrb[23].mxu1  ;;  %v21005_v53 = vld [vmem:[#allocation17 + $0x178] sm:$0xff]   ;;  %v21009_v14 = vld [vmem:[#allocation20] sm:$0xff]   ;;  %v21413_v0 = vmov 0.0  }
 0xb56   : > { %v15516_v18 = vadd.f32 %v15512_v61, %v15502_v27  ;;  %v21008_v61 = vld [vmem:[#allocation17 + $0x1b8] sm:$0xff]  }
 0xb57   : > { %15517 = vst [vmem:[#allocation5] sm:$0xff] %v15515_v5  ;;  %v21010_v5 = vld [vmem:[#allocation20 + $0x8] sm:$0xff]   ;;  %v21011_v7 = vld [vmem:[#allocation20 + $0x10] sm:$0xff]  }
 0xb58   : > { %15518 = vst [vmem:[#allocation5 + $0x8] sm:$0xff] %v15516_v18  ;;  %v21012_v18 = vld [vmem:[#allocation20 + $0x18] sm:$0xff]  }
 0xb5f   : > { %v15567_v58 = vld [vmem:[#allocation5 + $0x2] ss:$8 sm:$0x3]  ;;  %v15568_v9 = vld [vmem:[#allocation5 + $0x3] ss:$8 sm:$0x3] }
 0xb60   : > { %v15569_v10 = vmax.f32 %v15567_v58, %v15568_v9  ;;  %v15519_v12 = vld [vmem:[#allocation5] ss:$8 sm:$0x3]  ;;  %v15520_v39 = vld [vmem:[#allocation5 + $0x1] ss:$8 sm:$0x3] }
 0xb61   : > { %v15521_v20 = vmax.f32 %v15519_v12, %v15520_v39  ;;  %v15888_v49 = vld [vmem:[#allocation5 + $0x4] ss:$8 sm:$0x3]  ;;  %v15889_v33 = vld [vmem:[#allocation5 + $0x5] ss:$8 sm:$0x3] }
 0xb62   : > { %v15578_v11 = vrot.slane %v15569_v10, %v21984_v31  ;;  %v15574_v50 = vrot.slane %v15569_v10, %v21980_v29  ;;  %v23064_v60 = vmax.f32 %v15888_v49, %v15889_v33  ;;  %v16074_v4 = vld [vmem:[#allocation5 + $0x6] ss:$8 sm:$0x3]  ;;  %v16075_v37 = vld [vmem:[#allocation5 + $0x7] ss:$8 sm:$0x3] }
 0xb63   : > { %v15530_v48 = vrot.slane %v15521_v20, %v21984_v31  ;;  %v15526_v32 = vrot.slane %v15521_v20, %v21980_v29  ;;  %v23068_v38 = vmax.f32 %v16074_v4, %v16075_v37  ;;  %v21014_v58 = vld [vmem:[#allocation20 + $0x28] sm:$0xff]   ;;  %v21015_v9 = vld [vmem:[#allocation20 + $0x30] sm:$0xff]   ;;  %v21016_v10 = vld [vmem:[#allocation20 + $0x38] sm:$0xff]  }
 0xb64   : > { %v15582_v3 = vpack.c.bf16 %v15578_v11, %v15578_v11  ;;  %v15581_v59 = vpack.c.bf16 %v15574_v50, %v15574_v50  ;;  %v15899_v57 = vrot.slane %v23064_v60, %v21984_v31  ;;  %v15895_v30 = vrot.slane %v23064_v60, %v21980_v29 }
 0xb65   : > { %v15534_v52 = vpack.c.bf16 %v15530_v48, %v15530_v48  ;;  %v15533_v46 = vpack.c.bf16 %v15526_v32, %v15526_v32  ;;  %v16085_v2 = vrot.slane %v23068_v38, %v21984_v31  ;;  %v20987_v31 = vld [vmem:[#allocation17 + $0x110] sm:$0xff]   ;;  %v16081_v26 = vrot.slane %v23068_v38, %v21980_v29  ;;  %v21013_v29 = vld [vmem:[#allocation20 + $0x20] sm:$0xff]  }
 0xb66   : > { %15744 = vmatprep.mubr.bf16.mxu0 %v15582_v3  ;;  %v15903_v40 = vpack.c.bf16 %v15899_v57, %v15899_v57  ;;  %v15902_v1 = vpack.c.bf16 %v15895_v30, %v15895_v30 }
 0xb67   : > { %15880 = vmatprep.mubr.bf16.mxu1 %v15534_v52  ;;  %15745 = vmatmul.mubr.bf16.vlgmr.msra.gmra.mrb[24].mxu0 %v15581_v59  ;;  %v16089_v15 = vpack.c.bf16 %v16085_v2, %v16085_v2  ;;  %v16088_v27 = vpack.c.bf16 %v16081_v26, %v16081_v26 }
 0xb68   : > { %15881 = vmatmul.mubr.bf16.vlgmr.msra.gmra.mrb[24].mxu1 %v15533_v46  ;;  %18409 = vmatpush3.bf16.msra.mxu0 %v20979_v56 }
 0xb69   : > { %18431 = vmatpush3.bf16.msra.mxu1 %v20980_v55  ;;  %16065 = vmatprep.mubr.bf16.mxu0 %v15903_v40  ;;  %v16260_v40 = vld [vmem:[#allocation18] sm:$0x1] }
 0xb6a   : > { %16251 = vmatprep.mubr.bf16.mxu1 %v16089_v15  ;;  %18410 = vmatprep.subr.bf16.mxu0 %v20981_v8 }
 0xb6b   : > { %18432 = vmatprep.subr.bf16.mxu1 %v20982_v41 }
 0xb6c   : > { %18411 = vmatpush3.bf16.msra.mxu0 %v20983_v43 }
 0xb6d   : > { %18433 = vmatpush3.bf16.msra.mxu1 %v20984_v35  ;;  %18412 = vmatprep.subr.bf16.mxu0 %v20985_v21  ;;  %v16280_v21 = vld [vmem:[#allocation21] sm:$0x1] }
 0xb6e   : > { %18434 = vmatprep.subr.bf16.mxu1 %v20986_v19 }
 0xb70   : > { %18413 = vmatpush3.bf16.msra.mxu0 %v20987_v31 }
 0xb71   : > { %18435 = vmatpush3.bf16.msra.mxu1 %v20988_v51  ;;  %18414 = vmatprep.subr.bf16.mxu0 %v20989_v42 }
 0xb72   : > { %18436 = vmatprep.subr.bf16.mxu1 %v20990_v54 }
 0xb74   : > { %18415 = vmatpush3.bf16.msra.mxu0 %v20991_v16 }
 0xb75   : > { %18437 = vmatpush3.bf16.msra.mxu1 %v20992_v44  ;;  %18416 = vmatprep.subr.bf16.mxu0 %v20993_v63 }
 0xb76   : > { %18438 = vmatprep.subr.bf16.mxu1 %v20994_v28 }
 0xb78   : > { %18417 = vmatpush3.bf16.msra.mxu0 %v20995_v34 }
 0xb79   : > { %18439 = vmatpush3.bf16.msra.mxu1 %v20996_v24  ;;  %18418 = vmatprep.subr.bf16.mxu0 %v20997_v25 }
 0xb7a   : > { %18440 = vmatprep.subr.bf16.mxu1 %v20998_v23 }
 0xb7c   : > { %18419 = vmatpush3.bf16.msra.mxu0 %v20999_v17 }
 0xb7d   : > { %18441 = vmatpush3.bf16.msra.mxu1 %v21000_v22  ;;  %18420 = vmatprep.subr.bf16.mxu0 %v21001_v6 }
 0xb7e   : > { %18442 = vmatprep.subr.bf16.mxu1 %v21002_v45 }
 0xb80   : > { %18421 = vmatpush3.bf16.msra.mxu0 %v21003_v62 }
 0xb81   : > { %18443 = vmatpush3.bf16.msra.mxu1 %v21004_v13  ;;  %18422 = vmatprep.subr.bf16.mxu0 %v21005_v53 }
 0xb82   : > { %18444 = vmatprep.subr.bf16.mxu1 %v21006_v36 }
 0xb84   : > { %18423 = vmatpush3.bf16.msra.mxu0 %v21007_v47 }
 0xb85   : > { %18445 = vmatpush3.bf16.msra.mxu1 %v21008_v61  ;;  %18461 = vmatprep.subr.bf16.mxu0 %v21413_v0 }
 0xb87   : > { %16066 = vmatmul.mubr.bf16.vlgmr.msra.gmra.mrb[28].mxu0 %v15902_v1 }
 0xb88   : > { %16252 = vmatmul.mubr.bf16.vlgmr.msra.gmra.mrb[28].mxu1 %v16088_v27  ;;  %18462 = vmatpush3.bf16.msra.mxu0 %v21009_v14 }
 0xb89   : > { %18463 = vmatprep.subr.bf16.mxu0 %v21413_v0  ;;  %18477 = vmatprep.mubr.msk.bf16.mxu0 %vm21414_vm9, %v21413_v0 }
 0xb8c   : > { %18464 = vmatpush3.bf16.msra.mxu0 %v21010_v5 }
 0xb8d   : > { %18465 = vmatprep.subr.bf16.mxu0 %v21413_v0 }
 0xb90   : > { %18466 = vmatpush3.bf16.msra.mxu0 %v21011_v7 }
 0xb91   : > { %18467 = vmatprep.subr.bf16.mxu0 %v21413_v0 }
 0xb94   : > { %18468 = vmatpush3.bf16.msra.mxu0 %v21012_v18 }
 0xb95   : > { %18469 = vmatprep.subr.bf16.mxu0 %v21413_v0 }
 0xb98   : > { %18470 = vmatpush3.bf16.msra.mxu0 %v21013_v29 }
 0xb99   : > { %18471 = vmatprep.subr.bf16.mxu0 %v21413_v0 }
 0xb9c   : > { %18472 = vmatpush3.bf16.msra.mxu0 %v21014_v58 }
 0xb9d   : > { %18473 = vmatprep.subr.bf16.mxu0 %v21413_v0 }
 0xba0   : > { %18474 = vmatpush3.bf16.msra.mxu0 %v21015_v9 }
 0xba1   : > { %18475 = vmatprep.subr.bf16.mxu0 %v21413_v0 }
 0xba4   : > { %18476 = vmatpush3.bf16.msra.mxu0 %v21016_v10 }
 0xc3a   : > { %v18380_v12 = vpop.f32.mrb[24].mxu0 }
 0xc3b   : > { %v18402_v39 = vpop.f32.mrb[24].mxu1  ;;  %v18381_v20 = vpop.f32.mrb[25].mxu0 }
 0xc3c   : > { %v18382_v49 = vadd.f32 %v18381_v20, %v18380_v12  ;;  %v18403_v33 = vpop.f32.mrb[25].mxu1  ;;  %v18383_v11 = vpop.f32.mrb[26].mxu0 }
 0xc3d   : > { %v18404_v50 = vadd.f32 %v18403_v33, %v18402_v39  ;;  %v18405_v60 = vpop.f32.mrb[26].mxu1  ;;  %v18384_v4 = vpop.f32.mrb[27].mxu0 }
 0xc3e   : > { %v18406_v37 = vpop.f32.mrb[27].mxu1 }
 0xc3f   : > { %v15883_v48 = vadd.f32 %v18404_v50, %v18382_v49 }
 0xc5a   : > { %v18424_v32 = vpop.f32.mrb[28].mxu0 }
 0xc5b   : > { %v18446_v38 = vpop.f32.mrb[28].mxu1  ;;  %v18425_v3 = vpop.f32.mrb[29].mxu0 }
 0xc5c   : > { %v18426_v59 = vadd.f32 %v18425_v3, %v18424_v32  ;;  %v18447_v56 = vpop.f32.mrb[29].mxu1  ;;  %v18427_v57 = vpop.f32.mrb[30].mxu0 }
 0xc5d   : > { %v18448_v52 = vadd.f32 %v18447_v56, %v18446_v38  ;;  %v18449_v46 = vpop.f32.mrb[30].mxu1  ;;  %v18428_v55 = vpop.f32.mrb[31].mxu0 }
 0xc5e   : > { %v16073_v2 = vadd.f32 %v18426_v59, %v15883_v48  ;;  %v18450_v8 = vpop.f32.mrb[31].mxu1 }
 0xc60   : > { %v16259_v41 = vadd.f32 %v18448_v52, %v16073_v2 }
 0xc62   : > { %v16261_v15 = vadd.f32 %v16260_v40, %v16259_v41 }
 0xc64   : > { %v16262_v43 = vmax.f32 %v16261_v15, 0.0 }
 0xc66   : > { %v16263_v35 = vpack.c.bf16 %v16262_v43, %v16262_v43 }
 0xc68   : > { %18478 = vmatmul.mubr.bf16.vlgmr.msra.gmra.mrb[32].mxu0 %v16263_v35 }
 0xd3b   : > { %v16363_v19 = vpop.f32.mrb[32].mxu0 }
 0xd3c   : > { %v16364_v31 = vadd.f32 %v16363_v19, %v16280_v21  ;;  %v18479_v51 = vpop.f32.mrb[33].mxu0 }
 0xd3d   : > { %v16366_v42 = vpop.f32.mrb[34].mxu0 }
 0xd3e   : > { %16369 = vst [vmem:[%s514_s25] sm:$0x1] %v16364_v31  ;;  %v18480_v54 = vpop.f32.mrb[35].mxu0 }
 0xd3f   : > { %21319 = shalt.err (!%p21316_p10)
}
 0xd40   : > { %s21320_s15 = scalar_lea.hbm %s23083_s17, 16  ;;  %s21324_s30 = scalar_lea.hbm %s23136_s11, 32 }
 0xd41   : > { %p21321_p2 = scmp.ne.s32.totalorder %s23083_s17, %s21320_s15  ;;  %p21325_p7 = scmp.lt.u32.totalorder %s23083_s17, %s23136_s11 }
 0xd42   : > { %p21326_p8 = scmp.lt.u32.totalorder %s21324_s30, %s21320_s15  ;;  %p21328_p13 = scmp.lt.u32.totalorder %s21320_s15, %s23083_s17 }
 0xd43   : > { %p21322_p3 = pnand %p21321_p2, %p23442_p0 }
 0xd44   : > { %p21327_p11 = por %p21326_p8, %p21325_p7 }
 0xd45   : > { %p21323_p4 = pneg %p21322_p3 }
 0xd46   : > { %p21329_p1 = por %p21328_p13, %p21327_p11 }
 0xd48   : > { %p21330_p6 = pnand %p21329_p1, %p21323_p4 }
 0xd4a   : > { %21333 = shalt.err (!%p21330_p6)
}
 0xd4b   : > { %18833 = dma.vmem_to_hbm [thread:$0]  (%p23442_p0), %s23085_s19, 16, %s23083_s17, %s16371_s2  }
 0xd4c PF: > { %s23443_s23 = sld [smem:[#allocation31_spill]]  ;;  %s23444_s4 = sld [smem:[#allocation35_spill]] }
 0xd4d   : > { %p18890_p5 = scmp.ge.s32.totalorder %s21392_s20, 2 }
 0xd52   : > { %s16395_s25 = sand.u32 1, %s23443_s23   ;;  %p23445_p9 = scmp.ne.s32.totalorder %s23444_s4, 0 }
 0xd53   : > { %s16396_s28 = scalar_lea.sflag [#allocation8], %s16395_s25 }
 0xd54   : > { %p18867_p12 = pnand %p18890_p5, %p23445_p9 }
 0xd56   : > { %21375 = dma.done.wait (!%p18867_p12), %s16396_s28, 16  }
 0xd57   : > { %21377 = vsyncadd (!%p18867_p12), %s16396_s28, 4294967280  ;;  %s23446_s20 = sld [smem:[#allocation33_spill]]  ;;  %s23447_s16 = sld [smem:[#allocation32_spill]] }
 0xd58   : > { %s23448_s19 = sld [smem:[#allocation34_spill]]  ;;  %s23449_s17 = smov %s21384_s18 }
 0xd5d   : > { %p27_p10 = scmp.ge.s32.totalorder %s23446_s20, 4   ;;  %s23450_s18 = smov %s23447_s16 }
 0xd5f   :  { %29 = sbr.rel (!%p27_p10) target bundleno = 12 (0xc), region = 186 }
 0xd66   :  { %16400 = vsyncpa [#allocation7], 1 }
 0xd67   :  { %16402 = vsyncpa [#allocation7 + $0x1], 1 }
 0xd68   :  { %16403 = vsyncpa [#allocation10], 1 }
 0xd69   :  { %16404 = vsyncpa [#allocation13], 1 }
 0xd6a   :  { %16405 = vsyncpa [#allocation16], 1 }
 0xd6b   :  { %16406 = vsyncpa [#allocation19], 1 }
 0xd6c   :  { %16407 = vsyncpa [#allocation22], 1 }
 0xd6d   :  { %16408 = vsyncpa [#allocation8], 1 }
 0xd6e   :  { %16410 = vsyncpa [#allocation8 + $0x1], 1 }

</bundles_post_ra>
